<compile_context>
chip_gen: v5e
topology: v5e:2x2
jax: 0.10.0
libtpu: 0.0.40
codegen_flags: <defaults>
</compile_context>

<pallas_src>
import functools
import math

import numpy as np
import jax
import jax.numpy as jnp
from jax import lax
from jax.experimental import pallas as pl
from jax.experimental.pallas import tpu as pltpu

EPS = 1e-5
VMEM_LIMIT = 64 * 1024 * 1024          # fits v7x physical VMEM, below v5e/v6e


# ---------------------------------------------------------------------------
# math helpers usable inside kernels
# ---------------------------------------------------------------------------
def _ln2d(x, gamma, beta, eps):
    """LayerNorm over last axis (f32). gamma/beta: (1, C), broadcastable."""
    mu = jnp.mean(x, axis=-1, keepdims=True)
    xc = x - mu
    var = jnp.mean(xc * xc, axis=-1, keepdims=True)
    return xc * lax.rsqrt(var + eps) * gamma + beta


def _gelu_exact(x):
    """erf-based (exact) GELU; erf via Abramowitz-Stegun 7.1.26 (|err|<1.5e-7),
    built only from exp/div so it lowers cleanly on the TPU EUP."""
    a1, a2, a3, a4, a5 = (0.254829592, -0.284496736, 1.421413741,
                          -1.453152027, 1.061405429)
    p = 0.3275911
    z = x * (1.0 / math.sqrt(2.0))
    az = jnp.abs(z)
    t = 1.0 / (1.0 + p * az)
    poly = ((((a5 * t + a4) * t + a3) * t + a2) * t + a1) * t
    erf_abs = 1.0 - poly * jnp.exp(-az * az)
    erf_z = jnp.where(z >= 0, erf_abs, -erf_abs)
    return 0.5 * x * (1.0 + erf_z)


# ---------------------------------------------------------------------------
# Kernels
# ---------------------------------------------------------------------------
def _patch_embed_kernel(p_ref, w_ref, b_ref, g_ref, be_ref, o_ref, *, eps):
    """Fused patch-embedding matmul + bias + LayerNorm.  p_ref: (T, Cin*ph*pw) bf16."""
    y = jnp.dot(p_ref[...], w_ref[...],
                preferred_element_type=jnp.float32) + b_ref[...]
    o_ref[...] = _ln2d(y, g_ref[...], be_ref[...], eps).astype(o_ref.dtype)


def _window_attn_kernel(x_ref, g1_ref, b1_ref, wqkv_ref, bqkv_ref, wproj_ref,
                        bproj_ref, rpb_ref, *rest, num_heads, eps, has_mask):
    """Fused: norm1 -> windowed MHSA (+rel bias, +optional shift mask) -> proj -> residual.

    x_ref    : (WG, N, C) f32   WG windows of N tokens (pre-norm, residual src)
    wqkv_ref : (C, 3C) bf16, bqkv_ref: (1, 3C) f32
    wproj_ref: (C, C)  bf16, bproj_ref: (1, C)  f32
    rpb_ref  : (num_heads, N, N) f32  relative-position bias
    mask (only when has_mask): (WG, N, N) f32 shifted-window attention mask
    """
    if has_mask:
        mask_ref, o_ref = rest
    else:
        mask_ref = None
        (o_ref,) = rest

    WG, N, C = x_ref.shape
    hd = C // num_heads
    scale = float(hd) ** -0.5

    x3 = x_ref[...].astype(jnp.float32)                       # (WG, N, C)
    x2 = x3.reshape(WG * N, C)
    xn = _ln2d(x2, g1_ref[...], b1_ref[...], eps)             # norm1 fused in
    qkv = jnp.dot(xn.astype(jnp.bfloat16), wqkv_ref[...],
                  preferred_element_type=jnp.float32) + bqkv_ref[...]
    qkv = qkv.reshape(WG, N, 3 * C)

    heads = []
    for h in range(num_heads):                                # static unroll
        q = qkv[:, :, h * hd:(h + 1) * hd] * scale
        k = qkv[:, :, C + h * hd:C + (h + 1) * hd]
        v = qkv[:, :, 2 * C + h * hd:2 * C + (h + 1) * hd]
        attn = jnp.einsum("wnd,wmd->wnm",
                          q.astype(jnp.bfloat16), k.astype(jnp.bfloat16),
                          preferred_element_type=jnp.float32)  # (WG, N, N)
        attn = attn + rpb_ref[h][None]
        if has_mask:
            attn = attn + mask_ref[...]
        attn = attn - jnp.max(attn, axis=-1, keepdims=True)    # f32 softmax
        pexp = jnp.exp(attn)
        inv = pl.reciprocal(jnp.sum(pexp, axis=-1, keepdims=True), approx=True)
        pexp = pexp * inv
        heads.append(jnp.einsum("wnm,wmd->wnd",
                                pexp.astype(jnp.bfloat16), v.astype(jnp.bfloat16),
                                preferred_element_type=jnp.float32))
    ctx = jnp.concatenate(heads, axis=-1).reshape(WG * N, C)
    out = jnp.dot(ctx.astype(jnp.bfloat16), wproj_ref[...],
                  preferred_element_type=jnp.float32) + bproj_ref[...]
    o_ref[...] = (x3 + out.reshape(WG, N, C)).astype(o_ref.dtype)


def _mlp_kernel(x_ref, g_ref, b_ref, w1_ref, b1_ref, w2_ref, b2_ref, o_ref, *, eps):
    """Fused: norm2 -> Linear -> GELU -> Linear -> residual.  x_ref: (T, C) f32."""
    x = x_ref[...].astype(jnp.float32)
    xn = _ln2d(x, g_ref[...], b_ref[...], eps)
    h = jnp.dot(xn.astype(jnp.bfloat16), w1_ref[...],
                preferred_element_type=jnp.float32) + b1_ref[...]
    h = _gelu_exact(h)
    y = jnp.dot(h.astype(jnp.bfloat16), w2_ref[...],
                preferred_element_type=jnp.float32) + b2_ref[...]
    o_ref[...] = (x + y).astype(o_ref.dtype)


def _patch_merge_kernel(x_ref, g_ref, b_ref, w_ref, o_ref, *, eps):
    """Fused: LayerNorm(4C) -> Linear(4C -> 2C, no bias).  x_ref: (T, 4C)."""
    x = x_ref[...].astype(jnp.float32)
    xn = _ln2d(x, g_ref[...], b_ref[...], eps)
    o_ref[...] = jnp.dot(xn.astype(jnp.bfloat16), w_ref[...],
                         preferred_element_type=jnp.float32).astype(o_ref.dtype)


def _head_kernel(x_ref, g_ref, b_ref, w_ref, bias_ref, o_ref, *, eps):
    """Fused: final LayerNorm -> global average pool -> classifier.
    x_ref: (B, HW, C); pooling is a single vectorized reduce (no per-batch loop)."""
    x = x_ref[...].astype(jnp.float32)                 # (B, HW, C)
    xn = _ln2d(x, g_ref[...], b_ref[...], eps)
    pooled = jnp.mean(xn, axis=1)                      # (B, C)
    o_ref[...] = (jnp.dot(pooled, w_ref[...],
                          preferred_element_type=jnp.float32)
                  + bias_ref[...]).astype(o_ref.dtype)


# ---------------------------------------------------------------------------
# Tiling helpers
# ---------------------------------------------------------------------------
def _pick_tile(total, target=256):
    """Largest multiple-of-8 divisor of `total` not exceeding target (or total)."""
    for t in range(min(total, target), 0, -1):
        if total % t == 0 and (t % 8 == 0 or t == total):
            return t
    return total


def _windows_per_step(num_win, tokens_per_win, target_tokens=512):
    """Windows per grid step so WG*N >= target_tokens (MXU-friendly M dim)."""
    wg = max(1, min(num_win, target_tokens // max(tokens_per_win, 1)))
    while num_win % wg:
        wg -= 1
    return wg


# ---------------------------------------------------------------------------
# Static (numpy) builders for the shift mask and the relative-position bias
# ---------------------------------------------------------------------------
def _build_attn_mask(pH, pW, ws, ss):
    """(num_windows, N, N) additive mask (0 / -100) for shifted windows."""
    m = np.zeros((pH, pW), np.float32)
    h_bounds = [0, pH - ws[0], pH - ss[0], pH]
    w_bounds = [0, pW - ws[1], pW - ss[1], pW]
    cnt = 0
    for i in range(3):
        for j in range(3):
            m[h_bounds[i]:h_bounds[i + 1], w_bounds[j]:w_bounds[j + 1]] = cnt
            cnt += 1
    nH, nW = pH // ws[0], pW // ws[1]
    m = m.reshape(nH, ws[0], nW, ws[1]).transpose(0, 2, 1, 3)
    m = m.reshape(nH * nW, ws[0] * ws[1])
    diff = m[:, None, :] - m[:, :, None]
    return jnp.asarray(np.where(diff != 0, -100.0, 0.0).astype(np.float32))


def _rel_pos_index(ws):
    wh, ww = ws
    coords = np.stack(np.meshgrid(np.arange(wh), np.arange(ww), indexing="ij"))
    cf = coords.reshape(2, -1)
    rel = (cf[:, :, None] - cf[:, None, :]).transpose(1, 2, 0).astype(np.int64)
    rel[:, :, 0] += wh - 1
    rel[:, :, 1] += ww - 1
    rel[:, :, 0] *= 2 * ww - 1
    return rel.sum(-1).reshape(-1)


def _rel_pos_bias(table, ws, num_heads):
    N = ws[0] * ws[1]
    idx = jnp.asarray(_rel_pos_index(ws))
    bias = jnp.take(table, idx, axis=0)            # (N*N, heads)
    return bias.reshape(N, N, num_heads).transpose(2, 0, 1)


# ---------------------------------------------------------------------------
# Pallas-call wrappers
# ---------------------------------------------------------------------------
def _patch_embed_call(patches, w_flat, b, g, be):
    T, K = patches.shape
    E = w_flat.shape[1]
    tile = _pick_tile(T)
    return pl.pallas_call(
        functools.partial(_patch_embed_kernel, eps=EPS),
        out_shape=jax.ShapeDtypeStruct((T, E), jnp.float32),
        grid=(T // tile,),
        in_specs=[
            pl.BlockSpec((tile, K), lambda i: (i, 0)),
            pl.BlockSpec((K, E), lambda i: (0, 0)),
            pl.BlockSpec((1, E), lambda i: (0, 0)),
            pl.BlockSpec((1, E), lambda i: (0, 0)),
            pl.BlockSpec((1, E), lambda i: (0, 0)),
        ],
        out_specs=pl.BlockSpec((tile, E), lambda i: (i, 0)),
        compiler_params=pltpu.CompilerParams(
            dimension_semantics=("parallel",), vmem_limit_bytes=VMEM_LIMIT),
    )(patches, w_flat, b, g, be)


def _attn_block(feats, blk, window_size, shift_size, num_heads):
    """x + shifted_window_attention(norm1(x)), fully fused in one kernel."""
    B, H, W, C = feats.shape
    ws0, ws1 = window_size
    pad_b = (ws0 - H % ws0) % ws0
    pad_r = (ws1 - W % ws1) % ws1
    # TODO(synk): spatial-padding path (H or W not a multiple of the window) is
    # not fused here; standard Swin feature-map sizes need no padding.
    assert pad_b == 0 and pad_r == 0
    pH, pW = H, W
    ss = list(shift_size)
    if ws0 >= pH:
        ss[0] = 0
    if ws1 >= pW:
        ss[1] = 0
    shifted = sum(ss) > 0

    x = feats
    if shifted:
        x = jnp.roll(x, (-ss[0], -ss[1]), axis=(1, 2))
    nH, nW = pH // ws0, pW // ws1
    num_win, N = nH * nW, ws0 * ws1
    xw = x.reshape(B, nH, ws0, nW, ws1, C).transpose(0, 1, 3, 2, 4, 5)
    xw = xw.reshape(B * num_win, N, C)

    WG = _windows_per_step(num_win, N)     # windows processed per grid step
    bpi = num_win // WG                    # window-blocks per image
    grid = (B * num_win) // WG

    operands = [xw, blk["g1"], blk["b1"], blk["wqkv"], blk["bqkv"],
                blk["wproj"], blk["bproj"], blk["rpb"]]
    in_specs = [
        pl.BlockSpec((WG, N, C), lambda g: (g, 0, 0)),
        pl.BlockSpec((1, C), lambda g: (0, 0)),
        pl.BlockSpec((1, C), lambda g: (0, 0)),
        pl.BlockSpec((C, 3 * C), lambda g: (0, 0)),
        pl.BlockSpec((1, 3 * C), lambda g: (0, 0)),
        pl.BlockSpec((C, C), lambda g: (0, 0)),
        pl.BlockSpec((1, C), lambda g: (0, 0)),
        pl.BlockSpec((num_heads, N, N), lambda g: (0, 0, 0)),
    ]
    if shifted:
        # Only shifted blocks pay for a mask operand; unshifted blocks skip the
        # DMA stream and the broadcast add entirely.
        mask = _build_attn_mask(pH, pW, window_size, ss)       # (num_win, N, N)
        operands.append(mask)
        in_specs.append(pl.BlockSpec((WG, N, N), lambda g: (g % bpi, 0, 0)))

    out_w = pl.pallas_call(
        functools.partial(_window_attn_kernel, num_heads=num_heads, eps=EPS,
                          has_mask=shifted),
        out_shape=jax.ShapeDtypeStruct((B * num_win, N, C), jnp.float32),
        grid=(grid,),
        in_specs=in_specs,
        out_specs=pl.BlockSpec((WG, N, C), lambda g: (g, 0, 0)),
        compiler_params=pltpu.CompilerParams(
            dimension_semantics=("parallel",), vmem_limit_bytes=VMEM_LIMIT),
    )(*operands)

    out = out_w.reshape(B, nH, nW, ws0, ws1, C).transpose(0, 1, 3, 2, 4, 5)
    out = out.reshape(B, pH, pW, C)
    if shifted:
        out = jnp.roll(out, (ss[0], ss[1]), axis=(1, 2))
    return out


def _mlp_block(feats, blk):
    """x + MLP(norm2(x)), fully fused in one kernel over token tiles."""
    B, H, W, C = feats.shape
    T = B * H * W
    hidden = blk["w1"].shape[1]
    x = feats.reshape(T, C)
    tile = _pick_tile(T)
    y = pl.pallas_call(
        functools.partial(_mlp_kernel, eps=EPS),
        out_shape=jax.ShapeDtypeStruct((T, C), jnp.float32),
        grid=(T // tile,),
        in_specs=[
            pl.BlockSpec((tile, C), lambda i: (i, 0)),
            pl.BlockSpec((1, C), lambda i: (0, 0)),
            pl.BlockSpec((1, C), lambda i: (0, 0)),
            pl.BlockSpec((C, hidden), lambda i: (0, 0)),
            pl.BlockSpec((1, hidden), lambda i: (0, 0)),
            pl.BlockSpec((hidden, C), lambda i: (0, 0)),
            pl.BlockSpec((1, C), lambda i: (0, 0)),
        ],
        out_specs=pl.BlockSpec((tile, C), lambda i: (i, 0)),
        compiler_params=pltpu.CompilerParams(
            dimension_semantics=("parallel",), vmem_limit_bytes=VMEM_LIMIT),
    )(x, blk["g2"], blk["b2"], blk["w1"], blk["bb1"], blk["w2"], blk["bb2"])
    return y.reshape(B, H, W, C)


def _patch_merging(feats, prm):
    B, H, W, C = feats.shape
    x = jnp.pad(feats, ((0, 0), (0, H % 2), (0, W % 2), (0, 0)))
    x0 = x[:, 0::2, 0::2, :]
    x1 = x[:, 1::2, 0::2, :]
    x2 = x[:, 0::2, 1::2, :]
    x3 = x[:, 1::2, 1::2, :]
    xm = jnp.concatenate([x0, x1, x2, x3], axis=-1)     # (B, H/2, W/2, 4C)
    B2, H2, W2, C4 = xm.shape
    C2 = prm["w"].shape[1]
    T = B2 * H2 * W2
    tokens = xm.reshape(T, C4)
    tile = _pick_tile(T)
    out = pl.pallas_call(
        functools.partial(_patch_merge_kernel, eps=EPS),
        out_shape=jax.ShapeDtypeStruct((T, C2), jnp.float32),
        grid=(T // tile,),
        in_specs=[
            pl.BlockSpec((tile, C4), lambda i: (i, 0)),
            pl.BlockSpec((1, C4), lambda i: (0, 0)),
            pl.BlockSpec((1, C4), lambda i: (0, 0)),
            pl.BlockSpec((C4, C2), lambda i: (0, 0)),
        ],
        out_specs=pl.BlockSpec((tile, C2), lambda i: (i, 0)),
        compiler_params=pltpu.CompilerParams(
            dimension_semantics=("parallel",), vmem_limit_bytes=VMEM_LIMIT),
    )(tokens, prm["g"], prm["b"], prm["w"])
    return out.reshape(B2, H2, W2, C2)


def _head(feats, prm):
    B, H, W, C = feats.shape
    HW = H * W
    ncls = prm["w"].shape[1]
    x = feats.reshape(B, HW, C)
    # TODO(synk): grid=(1,) here; tile over B for large batches on v7x (2 TCs).
    return pl.pallas_call(
        functools.partial(_head_kernel, eps=EPS),
        out_shape=jax.ShapeDtypeStruct((B, ncls), jnp.float32),
        grid=(1,),
        in_specs=[
            pl.BlockSpec((B, HW, C), lambda i: (0, 0, 0)),
            pl.BlockSpec((1, C), lambda i: (0, 0)),
            pl.BlockSpec((1, C), lambda i: (0, 0)),
            pl.BlockSpec((C, ncls), lambda i: (0, 0)),
            pl.BlockSpec((1, ncls), lambda i: (0, 0)),
        ],
        out_specs=pl.BlockSpec((B, ncls), lambda i: (0, 0)),
        compiler_params=pltpu.CompilerParams(vmem_limit_bytes=VMEM_LIMIT),
    )(x, prm["g"], prm["b"], prm["w"], prm["bias"])


# ---------------------------------------------------------------------------
# One-time parameter preparation for the Pallas path
# (bf16 weight casts, flattened conv weight, hoisted relative-position bias)
# ---------------------------------------------------------------------------
def prepare_fast_params(params, cfg):
    ws = cfg["window_size"]
    pe = params["patch_embed"]
    E = pe["w_conv"].shape[0]
    fp = {
        "patch_embed": {
            "w_flat": pe["w_conv"].reshape(E, -1).T.astype(jnp.bfloat16),
            "b": pe["b_conv"], "g": pe["g"], "beta": pe["b"],
        },
        "stages": [],
        "head": dict(params["head"]),     # head matmul kept f32 (tiny, final)
    }
    for si, depth in enumerate(cfg["depths"]):
        nh = cfg["num_heads"][si]
        src = params["stages"][si]
        blocks = []
        for li in range(depth):
            blk = src["blocks"][li]
            blocks.append(dict(
                g1=blk["g1"], b1=blk["b1"],
                wqkv=blk["wqkv"].astype(jnp.bfloat16), bqkv=blk["bqkv"],
                wproj=blk["wproj"].astype(jnp.bfloat16), bproj=blk["bproj"],
                g2=blk["g2"], b2=blk["b2"],
                w1=blk["w1"].astype(jnp.bfloat16), bb1=blk["bb1"],
                w2=blk["w2"].astype(jnp.bfloat16), bb2=blk["bb2"],
                rpb=_rel_pos_bias(blk["rpb_table"], ws, nh),   # (nh, N, N) f32
            ))
        st = {"blocks": blocks}
        if si < len(cfg["depths"]) - 1:
            mg = src["merge"]
            st["merge"] = {"g": mg["g"], "b": mg["b"],
                           "w": mg["w"].astype(jnp.bfloat16)}
        fp["stages"].append(st)
    return fp


# ---------------------------------------------------------------------------
# Full model forward (Pallas path)
# ---------------------------------------------------------------------------
def swin_forward(x, fparams, cfg):
    """x: (B, Cin, H, W) -> logits (B, num_classes)."""
    B, Cin, H, W = x.shape
    ph, pw = cfg["patch_size"]
    assert H % ph == 0 and W % pw == 0
    Ht, Wt = H // ph, W // pw

    pe = fparams["patch_embed"]
    E = pe["w_flat"].shape[1]
    # stride==kernel conv == patch-flatten + matmul; extraction is pure layout.
    patches = x.reshape(B, Cin, Ht, ph, Wt, pw).transpose(0, 2, 4, 1, 3, 5)
    patches = patches.reshape(B * Ht * Wt, Cin * ph * pw).astype(jnp.bfloat16)
    tokens = _patch_embed_call(patches, pe["w_flat"], pe["b"], pe["g"], pe["beta"])
    feats = tokens.reshape(B, Ht, Wt, E)

    ws = cfg["window_size"]
    for si, depth in enumerate(cfg["depths"]):
        stage = fparams["stages"][si]
        nh = cfg["num_heads"][si]
        for li in range(depth):
            shift = [0, 0] if li % 2 == 0 else [w // 2 for w in ws]
            blk = stage["blocks"][li]
            feats = _attn_block(feats, blk, ws, shift, nh)
            feats = _mlp_block(feats, blk)
        if si < len(cfg["depths"]) - 1:
            feats = _patch_merging(feats, stage["merge"])

    return _head(feats, fparams["head"])


# ---------------------------------------------------------------------------
# Pure-JAX reference (mirrors the PyTorch forward, inference mode, f32)
# ---------------------------------------------------------------------------
def _ref_layernorm(x, g, b, eps=EPS):
    mu = jnp.mean(x, axis=-1, keepdims=True)
    var = jnp.mean((x - mu) ** 2, axis=-1, keepdims=True)
    return (x - mu) / jnp.sqrt(var + eps) * g + b


def _ref_swa(x, blk, window_size, shift_size, num_heads):
    B, H, W, C = x.shape
    ws0, ws1 = window_size
    pad_b = (ws0 - H % ws0) % ws0
    pad_r = (ws1 - W % ws1) % ws1
    xp = jnp.pad(x, ((0, 0), (0, pad_b), (0, pad_r), (0, 0)))
    pH, pW = H + pad_b, W + pad_r
    ss = list(shift_size)
    if ws0 >= pH:
        ss[0] = 0
    if ws1 >= pW:
        ss[1] = 0
    if sum(ss) > 0:
        xp = jnp.roll(xp, (-ss[0], -ss[1]), axis=(1, 2))
    nH, nW = pH // ws0, pW // ws1
    num_win, N = nH * nW, ws0 * ws1
    hd = C // num_heads
    xw = xp.reshape(B, nH, ws0, nW, ws1, C).transpose(0, 1, 3, 2, 4, 5)
    xw = xw.reshape(B * num_win, N, C)
    qkv = xw @ blk["wqkv"] + blk["bqkv"]
    qkv = qkv.reshape(B * num_win, N, 3, num_heads, hd).transpose(2, 0, 3, 1, 4)
    q, k, v = qkv[0], qkv[1], qkv[2]
    q = q * (hd ** -0.5)
    attn = jnp.einsum("bhnd,bhmd->bhnm", q, k)
    attn = attn + _rel_pos_bias(blk["rpb_table"], window_size, num_heads)[None]
    if sum(ss) > 0:
        mask = _build_attn_mask(pH, pW, window_size, ss)
        attn = attn.reshape(B, num_win, num_heads, N, N) + mask[None, :, None]
        attn = attn.reshape(B * num_win, num_heads, N, N)
    attn = jax.nn.softmax(attn, axis=-1)
    out = jnp.einsum("bhnm,bhmd->bhnd", attn, v)
    out = out.transpose(0, 2, 1, 3).reshape(B * num_win, N, C)
    out = out @ blk["wproj"] + blk["bproj"]
    out = out.reshape(B, nH, nW, ws0, ws1, C).transpose(0, 1, 3, 2, 4, 5)
    out = out.reshape(B, pH, pW, C)
    if sum(ss) > 0:
        out = jnp.roll(out, (ss[0], ss[1]), axis=(1, 2))
    return out[:, :H, :W, :]


def _ref_block(x, blk, window_size, shift_size, num_heads):
    x = x + _ref_swa(_ref_layernorm(x, blk["g1"], blk["b1"]),
                     blk, window_size, shift_size, num_heads)
    h = _ref_layernorm(x, blk["g2"], blk["b2"])
    h = jax.nn.gelu(h @ blk["w1"] + blk["bb1"], approximate=False)
    return x + (h @ blk["w2"] + blk["bb2"])


def _ref_patch_merging(x, prm):
    B, H, W, C = x.shape
    x = jnp.pad(x, ((0, 0), (0, H % 2), (0, W % 2), (0, 0)))
    x0 = x[:, 0::2, 0::2, :]
    x1 = x[:, 1::2, 0::2, :]
    x2 = x[:, 0::2, 1::2, :]
    x3 = x[:, 1::2, 1::2, :]
    x = jnp.concatenate([x0, x1, x2, x3], axis=-1)
    return _ref_layernorm(x, prm["g"], prm["b"]) @ prm["w"]


def _ref_forward(x, params, cfg):
    pe = params["patch_embed"]
    y = lax.conv_general_dilated(
        x, pe["w_conv"], window_strides=tuple(cfg["patch_size"]),
        padding="VALID", dimension_numbers=("NCHW", "OIHW", "NCHW"))
    y = jnp.transpose(y, (0, 2, 3, 1)) + pe["b_conv"]
    feats = _ref_layernorm(y, pe["g"], pe["b"])
    ws = cfg["window_size"]
    for si, depth in enumerate(cfg["depths"]):
        stage = params["stages"][si]
        nh = cfg["num_heads"][si]
        for li in range(depth):
            shift = [0, 0] if li % 2 == 0 else [w // 2 for w in ws]
            feats = _ref_block(feats, stage["blocks"][li], ws, shift, nh)
        if si < len(cfg["depths"]) - 1:
            feats = _ref_patch_merging(feats, stage["merge"])
    hp = params["head"]
    feats = _ref_layernorm(feats, hp["g"], hp["b"])
    pooled = jnp.mean(feats, axis=(1, 2))
    return pooled @ hp["w"] + hp["bias"]


# ---------------------------------------------------------------------------
# Deterministic parameter construction
# ---------------------------------------------------------------------------
def init_params(key, cfg):
    keys = iter(jax.random.split(key, 256))
    nxt = lambda: next(keys)

    def linear(din, dout, std=0.02):
        return (std * jax.random.normal(nxt(), (din, dout), jnp.float32),
                0.02 * jax.random.normal(nxt(), (1, dout), jnp.float32))

    def ln(dim):
        return (1.0 + 0.1 * jax.random.normal(nxt(), (1, dim), jnp.float32),
                0.02 * jax.random.normal(nxt(), (1, dim), jnp.float32))

    ph, pw = cfg["patch_size"]
    E, Cin, ws = cfg["embed_dim"], cfg["in_channels"], cfg["window_size"]

    pe_g, pe_b = ln(E)
    params = {
        "patch_embed": {
            "w_conv": 0.05 * jax.random.normal(nxt(), (E, Cin, ph, pw), jnp.float32),
            "b_conv": 0.02 * jax.random.normal(nxt(), (1, E), jnp.float32),
            "g": pe_g, "b": pe_b,
        },
        "stages": [],
    }

    for si, depth in enumerate(cfg["depths"]):
        dim = E * (2 ** si)
        hidden = int(dim * cfg["mlp_ratio"])
        nh = cfg["num_heads"][si]
        blocks = []
        for _ in range(depth):
            g1, b1 = ln(dim)
            wqkv, bqkv = linear(dim, 3 * dim)
            wproj, bproj = linear(dim, dim)
            g2, b2 = ln(dim)
            w1, bb1 = linear(dim, hidden)
            w2, bb2 = linear(hidden, dim)
            table = 0.02 * jax.random.normal(
                nxt(), ((2 * ws[0] - 1) * (2 * ws[1] - 1), nh), jnp.float32)
            blocks.append(dict(g1=g1, b1=b1, wqkv=wqkv, bqkv=bqkv,
                               wproj=wproj, bproj=bproj, g2=g2, b2=b2,
                               w1=w1, bb1=bb1, w2=w2, bb2=bb2,
                               rpb_table=table))
        stage = {"blocks": blocks}
        if si < len(cfg["depths"]) - 1:
            mg, mb = ln(4 * dim)
            stage["merge"] = {
                "g": mg, "b": mb,
                "w": 0.02 * jax.random.normal(nxt(), (4 * dim, 2 * dim), jnp.float32),
            }
        params["stages"].append(stage)

    nf = E * (2 ** (len(cfg["depths"]) - 1))
    hg, hb = ln(nf)
    hw_, hbias = linear(nf, cfg["num_classes"])
    params["head"] = {"g": hg, "b": hb, "w": hw_, "bias": hbias}
    return params


# ---------------------------------------------------------------------------
# Main
# ---------------------------------------------------------------------------
if __name__ == "__main__":
    cfg = dict(patch_size=[4, 4], embed_dim=32, depths=[2, 2],
               num_heads=[2, 4], window_size=[4, 4], mlp_ratio=4.0,
               num_classes=8, in_channels=3)
    key = jax.random.PRNGKey(0)
    kx, kp = jax.random.split(key)
    B, H, W = 2, 32, 32
    x = jax.random.normal(kx, (B, cfg["in_channels"], H, W), jnp.float32)
    params = init_params(kp, cfg)
    fparams = prepare_fast_params(params, cfg)      # one-time bf16/rpb prep

    fwd = jax.jit(functools.partial(swin_forward, cfg=cfg))
    out = jax.block_until_ready(fwd(x, fparams))
    ref = jax.block_until_ready(_ref_forward(x, params, cfg))

    assert out.shape == (B, cfg["num_classes"])
    # bf16 MXU operands (f32 accumulation / stats) -> bf16-level tolerance.
    if not jnp.allclose(out, ref, atol=2e-2, rtol=2e-2):
        err = float(jnp.max(jnp.abs(out - ref)))
        raise AssertionError(f"Pallas SwinTransformer mismatch (max abs err={err})")
    print("KERNEL_OK")
</pallas_src>

<mosaic_0001>
module attributes {stable_mosaic.version = 11 : i64} {
  func.func @_patch_embed_kernel(%arg0: i32, %arg1: memref<128x48xbf16, #tpu.memory_space<vmem>>, %arg2: memref<48x32xbf16, #tpu.memory_space<vmem>>, %arg3: memref<1x32xf32, #tpu.memory_space<vmem>>, %arg4: memref<1x32xf32, #tpu.memory_space<vmem>>, %arg5: memref<1x32xf32, #tpu.memory_space<vmem>>, %arg6: memref<128x32xf32, #tpu.memory_space<vmem>>) attributes {dimension_semantics = [#tpu.dimension_semantics<parallel>], iteration_bounds = array<i64: 1>, scalar_prefetch = 0 : i64, scratch_operands = 0 : i64, tpu.core_type = #tpu.core_type<tc>, window_params = [{transform_indices = @transform_0, window_bounds = array<i64: 128, 48>}, {pipeline_mode = #tpu.pipeline_mode<synchronous>, transform_indices = @transform_1, window_bounds = array<i64: 48, 32>}, {pipeline_mode = #tpu.pipeline_mode<synchronous>, transform_indices = @transform_2, window_bounds = array<i64: 1, 32>}, {pipeline_mode = #tpu.pipeline_mode<synchronous>, transform_indices = @transform_3, window_bounds = array<i64: 1, 32>}, {pipeline_mode = #tpu.pipeline_mode<synchronous>, transform_indices = @transform_4, window_bounds = array<i64: 1, 32>}, {transform_indices = @transform_5, window_bounds = array<i64: 128, 32>}]} {
    %c0 = arith.constant 0 : index
    %c0_0 = arith.constant 0 : index
    %0 = vector.load %arg1[%c0, %c0_0] : memref<128x48xbf16, #tpu.memory_space<vmem>>, vector<128x48xbf16>
    %c0_1 = arith.constant 0 : index
    %c0_2 = arith.constant 0 : index
    %1 = vector.load %arg2[%c0_1, %c0_2] : memref<48x32xbf16, #tpu.memory_space<vmem>>, vector<48x32xbf16>
    %cst = arith.constant dense<0.000000e+00> : vector<128x32xf32>
    %2 = tpu.matmul %0, %1, %cst {dimension_numbers = #tpu.dot_dimension_numbers<[1], [0], [0], [1], [0, 0, 1, 1], [], []>} : vector<128x48xbf16>, vector<48x32xbf16>, vector<128x32xf32> -> vector<128x32xf32>
    %c0_3 = arith.constant 0 : index
    %c0_4 = arith.constant 0 : index
    %3 = vector.load %arg3[%c0_3, %c0_4] : memref<1x32xf32, #tpu.memory_space<vmem>>, vector<1x32xf32>
    %4 = vector.broadcast %3 : vector<1x32xf32> to vector<128x32xf32>
    %5 = arith.addf %2, %4 : vector<128x32xf32>
    %c0_5 = arith.constant 0 : index
    %c0_6 = arith.constant 0 : index
    %6 = vector.load %arg4[%c0_5, %c0_6] : memref<1x32xf32, #tpu.memory_space<vmem>>, vector<1x32xf32>
    %c0_7 = arith.constant 0 : index
    %c0_8 = arith.constant 0 : index
    %7 = vector.load %arg5[%c0_7, %c0_8] : memref<1x32xf32, #tpu.memory_space<vmem>>, vector<1x32xf32>
    %cst_9 = arith.constant dense<0.000000e+00> : vector<128xf32>
    %8 = vector.multi_reduction <add>, %5, %cst_9 [1] : vector<128x32xf32> to vector<128xf32>
    %9 = vector.shape_cast %8 : vector<128xf32> to vector<128x1xf32>
    %cst_10 = arith.constant 3.200000e+01 : f32
    %10 = vector.broadcast %cst_10 : f32 to vector<128x1xf32>
    %11 = arith.divf %9, %10 : vector<128x1xf32>
    %12 = vector.broadcast %11 : vector<128x1xf32> to vector<128x32xf32>
    %13 = arith.subf %5, %12 : vector<128x32xf32>
    %14 = arith.mulf %13, %13 : vector<128x32xf32>
    %cst_11 = arith.constant dense<0.000000e+00> : vector<128xf32>
    %15 = vector.multi_reduction <add>, %14, %cst_11 [1] : vector<128x32xf32> to vector<128xf32>
    %16 = vector.shape_cast %15 : vector<128xf32> to vector<128x1xf32>
    %cst_12 = arith.constant 3.200000e+01 : f32
    %17 = vector.broadcast %cst_12 : f32 to vector<128x1xf32>
    %18 = arith.divf %16, %17 : vector<128x1xf32>
    %cst_13 = arith.constant 9.99999974E-6 : f32
    %19 = vector.broadcast %cst_13 : f32 to vector<128x1xf32>
    %20 = arith.addf %18, %19 : vector<128x1xf32>
    %21 = math.rsqrt %20 : vector<128x1xf32>
    %22 = vector.broadcast %21 : vector<128x1xf32> to vector<128x32xf32>
    %23 = arith.mulf %13, %22 : vector<128x32xf32>
    %24 = vector.broadcast %6 : vector<1x32xf32> to vector<128x32xf32>
    %25 = arith.mulf %23, %24 : vector<128x32xf32>
    %26 = vector.broadcast %7 : vector<1x32xf32> to vector<128x32xf32>
    %27 = arith.addf %25, %26 : vector<128x32xf32>
    %c0_14 = arith.constant 0 : index
    %c0_15 = arith.constant 0 : index
    %28 = vector.load %arg6[%c0_14, %c0_15] : memref<128x32xf32, #tpu.memory_space<vmem>>, vector<128x32xf32>
    tpu.vector_store %arg6[%c0_14, %c0_15], %27 {strides = array<i32>} : memref<128x32xf32, #tpu.memory_space<vmem>>, vector<128x32xf32>,
    return
  }
  func.func @transform_0(%arg0: i32) -> (i32, i32) {
    %c0_i32 = arith.constant 0 : i32
    %c0_i32_0 = arith.constant 0 : i32
    return %arg0, %c0_i32 : i32, i32
  }
  func.func @transform_1(%arg0: i32) -> (i32, i32) {
    %c0_i32 = arith.constant 0 : i32
    %c0_i32_0 = arith.constant 0 : i32
    %c0_i32_1 = arith.constant 0 : i32
    return %c0_i32, %c0_i32_0 : i32, i32
  }
  func.func @transform_2(%arg0: i32) -> (i32, i32) {
    %c0_i32 = arith.constant 0 : i32
    %c0_i32_0 = arith.constant 0 : i32
    %c0_i32_1 = arith.constant 0 : i32
    return %c0_i32, %c0_i32_0 : i32, i32
  }
  func.func @transform_3(%arg0: i32) -> (i32, i32) {
    %c0_i32 = arith.constant 0 : i32
    %c0_i32_0 = arith.constant 0 : i32
    %c0_i32_1 = arith.constant 0 : i32
    return %c0_i32, %c0_i32_0 : i32, i32
  }
  func.func @transform_4(%arg0: i32) -> (i32, i32) {
    %c0_i32 = arith.constant 0 : i32
    %c0_i32_0 = arith.constant 0 : i32
    %c0_i32_1 = arith.constant 0 : i32
    return %c0_i32, %c0_i32_0 : i32, i32
  }
  func.func @transform_5(%arg0: i32) -> (i32, i32) {
    %c0_i32 = arith.constant 0 : i32
    %c0_i32_0 = arith.constant 0 : i32
    return %arg0, %c0_i32 : i32, i32
  }
}

module attributes {stable_mosaic.version = 11 : i64} {
  func.func @_window_attn_kernel(%arg0: i32, %arg1: memref<4x16x32xf32, #tpu.memory_space<vmem>>, %arg2: memref<1x32xf32, #tpu.memory_space<vmem>>, %arg3: memref<1x32xf32, #tpu.memory_space<vmem>>, %arg4: memref<32x96xbf16, #tpu.memory_space<vmem>>, %arg5: memref<1x96xf32, #tpu.memory_space<vmem>>, %arg6: memref<32x32xbf16, #tpu.memory_space<vmem>>, %arg7: memref<1x32xf32, #tpu.memory_space<vmem>>, %arg8: memref<2x16x16xf32, #tpu.memory_space<vmem>>, %arg9: memref<4x16x32xf32, #tpu.memory_space<vmem>>) attributes {dimension_semantics = [#tpu.dimension_semantics<parallel>], iteration_bounds = array<i64: 2>, scalar_prefetch = 0 : i64, scratch_operands = 0 : i64, tpu.core_type = #tpu.core_type<tc>, window_params = [{transform_indices = @transform_0, window_bounds = array<i64: 4, 16, 32>}, {pipeline_mode = #tpu.pipeline_mode<synchronous>, transform_indices = @transform_1, window_bounds = array<i64: 1, 32>}, {pipeline_mode = #tpu.pipeline_mode<synchronous>, transform_indices = @transform_2, window_bounds = array<i64: 1, 32>}, {pipeline_mode = #tpu.pipeline_mode<synchronous>, transform_indices = @transform_3, window_bounds = array<i64: 32, 96>}, {pipeline_mode = #tpu.pipeline_mode<synchronous>, transform_indices = @transform_4, window_bounds = array<i64: 1, 96>}, {pipeline_mode = #tpu.pipeline_mode<synchronous>, transform_indices = @transform_5, window_bounds = array<i64: 32, 32>}, {pipeline_mode = #tpu.pipeline_mode<synchronous>, transform_indices = @transform_6, window_bounds = array<i64: 1, 32>}, {pipeline_mode = #tpu.pipeline_mode<synchronous>, transform_indices = @transform_7, window_bounds = array<i64: 2, 16, 16>}, {transform_indices = @transform_8, window_bounds = array<i64: 4, 16, 32>}]} {
    %c0 = arith.constant 0 : index
    %c0_0 = arith.constant 0 : index
    %c0_1 = arith.constant 0 : index
    %0 = vector.load %arg1[%c0, %c0_0, %c0_1] : memref<4x16x32xf32, #tpu.memory_space<vmem>>, vector<4x16x32xf32>
    %1 = vector.shape_cast %0 : vector<4x16x32xf32> to vector<64x32xf32>
    %c0_2 = arith.constant 0 : index
    %c0_3 = arith.constant 0 : index
    %2 = vector.load %arg2[%c0_2, %c0_3] : memref<1x32xf32, #tpu.memory_space<vmem>>, vector<1x32xf32>
    %c0_4 = arith.constant 0 : index
    %c0_5 = arith.constant 0 : index
    %3 = vector.load %arg3[%c0_4, %c0_5] : memref<1x32xf32, #tpu.memory_space<vmem>>, vector<1x32xf32>
    %cst = arith.constant dense<0.000000e+00> : vector<64xf32>
    %4 = vector.multi_reduction <add>, %1, %cst [1] : vector<64x32xf32> to vector<64xf32>
    %5 = vector.shape_cast %4 : vector<64xf32> to vector<64x1xf32>
    %cst_6 = arith.constant 3.200000e+01 : f32
    %6 = vector.broadcast %cst_6 : f32 to vector<64x1xf32>
    %7 = arith.divf %5, %6 : vector<64x1xf32>
    %8 = vector.broadcast %7 : vector<64x1xf32> to vector<64x32xf32>
    %9 = arith.subf %1, %8 : vector<64x32xf32>
    %10 = arith.mulf %9, %9 : vector<64x32xf32>
    %cst_7 = arith.constant dense<0.000000e+00> : vector<64xf32>
    %11 = vector.multi_reduction <add>, %10, %cst_7 [1] : vector<64x32xf32> to vector<64xf32>
    %12 = vector.shape_cast %11 : vector<64xf32> to vector<64x1xf32>
    %cst_8 = arith.constant 3.200000e+01 : f32
    %13 = vector.broadcast %cst_8 : f32 to vector<64x1xf32>
    %14 = arith.divf %12, %13 : vector<64x1xf32>
    %cst_9 = arith.constant 9.99999974E-6 : f32
    %15 = vector.broadcast %cst_9 : f32 to vector<64x1xf32>
    %16 = arith.addf %14, %15 : vector<64x1xf32>
    %17 = math.rsqrt %16 : vector<64x1xf32>
    %18 = vector.broadcast %17 : vector<64x1xf32> to vector<64x32xf32>
    %19 = arith.mulf %9, %18 : vector<64x32xf32>
    %20 = vector.broadcast %2 : vector<1x32xf32> to vector<64x32xf32>
    %21 = arith.mulf %19, %20 : vector<64x32xf32>
    %22 = vector.broadcast %3 : vector<1x32xf32> to vector<64x32xf32>
    %23 = arith.addf %21, %22 : vector<64x32xf32>
    %24 = arith.truncf %23 : vector<64x32xf32> to vector<64x32xbf16>
    %c0_10 = arith.constant 0 : index
    %c0_11 = arith.constant 0 : index
    %25 = vector.load %arg4[%c0_10, %c0_11] : memref<32x96xbf16, #tpu.memory_space<vmem>>, vector<32x96xbf16>
    %cst_12 = arith.constant dense<0.000000e+00> : vector<64x96xf32>
    %26 = tpu.matmul %24, %25, %cst_12 {dimension_numbers = #tpu.dot_dimension_numbers<[1], [0], [0], [1], [0, 0, 1, 1], [], []>} : vector<64x32xbf16>, vector<32x96xbf16>, vector<64x96xf32> -> vector<64x96xf32>
    %c0_13 = arith.constant 0 : index
    %c0_14 = arith.constant 0 : index
    %27 = vector.load %arg5[%c0_13, %c0_14] : memref<1x96xf32, #tpu.memory_space<vmem>>, vector<1x96xf32>
    %28 = vector.broadcast %27 : vector<1x96xf32> to vector<64x96xf32>
    %29 = arith.addf %26, %28 : vector<64x96xf32>
    %30 = vector.shape_cast %29 : vector<64x96xf32> to vector<4x16x96xf32>
    %31 = vector.extract_strided_slice %30 {offsets = [0, 0, 0], sizes = [4, 16, 16], strides = [1, 1, 1]} : vector<4x16x96xf32> to vector<4x16x16xf32>
    %cst_15 = arith.constant 2.500000e-01 : f32
    %32 = vector.broadcast %cst_15 : f32 to vector<4x16x16xf32>
    %33 = arith.mulf %31, %32 : vector<4x16x16xf32>
    %34 = vector.extract_strided_slice %30 {offsets = [0, 0, 32], sizes = [4, 16, 16], strides = [1, 1, 1]} : vector<4x16x96xf32> to vector<4x16x16xf32>
    %35 = vector.extract_strided_slice %30 {offsets = [0, 0, 64], sizes = [4, 16, 16], strides = [1, 1, 1]} : vector<4x16x96xf32> to vector<4x16x16xf32>
    %36 = arith.truncf %33 : vector<4x16x16xf32> to vector<4x16x16xbf16>
    %37 = arith.truncf %34 : vector<4x16x16xf32> to vector<4x16x16xbf16>
    "tpu.trace_start"() <{level = 10 : i32, message = "wnd,wmd->wnm"}> : () -> ()
    %cst_16 = arith.constant dense<0.000000e+00> : vector<4x16x16xf32>
    %38 = tpu.matmul %36, %37, %cst_16 {dimension_numbers = #tpu.dot_dimension_numbers<[2], [2], [1], [1], [0, 0, 0, 1, 1, 1], [0], [0]>} : vector<4x16x16xbf16>, vector<4x16x16xbf16>, vector<4x16x16xf32> -> vector<4x16x16xf32>
    "tpu.trace_stop"() : () -> ()
    %c0_17 = arith.constant 0 : index
    %c0_18 = arith.constant 0 : index
    %c0_19 = arith.constant 0 : index
    %39 = vector.load %arg8[%c0_17, %c0_18, %c0_19] : memref<2x16x16xf32, #tpu.memory_space<vmem>>, vector<1x16x16xf32>
    %40 = vector.shape_cast %39 : vector<1x16x16xf32> to vector<16x16xf32>
    %41 = vector.shape_cast %40 : vector<16x16xf32> to vector<1x16x16xf32>
    %42 = vector.broadcast %41 : vector<1x16x16xf32> to vector<4x16x16xf32>
    %43 = arith.addf %38, %42 : vector<4x16x16xf32>
    %cst_20 = arith.constant dense<0xFF800000> : vector<4x16xf32>
    %44 = vector.multi_reduction <maximumf>, %43, %cst_20 [2] : vector<4x16x16xf32> to vector<4x16xf32>
    %45 = vector.shape_cast %44 : vector<4x16xf32> to vector<4x16x1xf32>
    %46 = vector.broadcast %45 : vector<4x16x1xf32> to vector<4x16x16xf32>
    %47 = arith.subf %43, %46 : vector<4x16x16xf32>
    %48 = math.exp %47 : vector<4x16x16xf32>
    %cst_21 = arith.constant dense<0.000000e+00> : vector<4x16xf32>
    %49 = vector.multi_reduction <add>, %48, %cst_21 [2] : vector<4x16x16xf32> to vector<4x16xf32>
    %50 = vector.shape_cast %49 : vector<4x16xf32> to vector<4x16x1xf32>
    %51 = tpu.reciprocal %50 {approx = true} : vector<4x16x1xf32> -> vector<4x16x1xf32>
    %52 = vector.broadcast %51 : vector<4x16x1xf32> to vector<4x16x16xf32>
    %53 = arith.mulf %48, %52 : vector<4x16x16xf32>
    %54 = arith.truncf %53 : vector<4x16x16xf32> to vector<4x16x16xbf16>
    %55 = arith.truncf %35 : vector<4x16x16xf32> to vector<4x16x16xbf16>
    "tpu.trace_start"() <{level = 10 : i32, message = "wnm,wmd->wnd"}> : () -> ()
    %cst_22 = arith.constant dense<0.000000e+00> : vector<4x16x16xf32>
    %56 = tpu.matmul %54, %55, %cst_22 {dimension_numbers = #tpu.dot_dimension_numbers<[2], [1], [1], [2], [0, 0, 0, 1, 1, 2], [0], [0]>} : vector<4x16x16xbf16>, vector<4x16x16xbf16>, vector<4x16x16xf32> -> vector<4x16x16xf32>
    "tpu.trace_stop"() : () -> ()
    %57 = vector.extract_strided_slice %30 {offsets = [0, 0, 16], sizes = [4, 16, 16], strides = [1, 1, 1]} : vector<4x16x96xf32> to vector<4x16x16xf32>
    %cst_23 = arith.constant 2.500000e-01 : f32
    %58 = vector.broadcast %cst_23 : f32 to vector<4x16x16xf32>
    %59 = arith.mulf %57, %58 : vector<4x16x16xf32>
    %60 = vector.extract_strided_slice %30 {offsets = [0, 0, 48], sizes = [4, 16, 16], strides = [1, 1, 1]} : vector<4x16x96xf32> to vector<4x16x16xf32>
    %61 = vector.extract_strided_slice %30 {offsets = [0, 0, 80], sizes = [4, 16, 16], strides = [1, 1, 1]} : vector<4x16x96xf32> to vector<4x16x16xf32>
    %62 = arith.truncf %59 : vector<4x16x16xf32> to vector<4x16x16xbf16>
    %63 = arith.truncf %60 : vector<4x16x16xf32> to vector<4x16x16xbf16>
    "tpu.trace_start"() <{level = 10 : i32, message = "wnd,wmd->wnm"}> : () -> ()
    %cst_24 = arith.constant dense<0.000000e+00> : vector<4x16x16xf32>
    %64 = tpu.matmul %62, %63, %cst_24 {dimension_numbers = #tpu.dot_dimension_numbers<[2], [2], [1], [1], [0, 0, 0, 1, 1, 1], [0], [0]>} : vector<4x16x16xbf16>, vector<4x16x16xbf16>, vector<4x16x16xf32> -> vector<4x16x16xf32>
    "tpu.trace_stop"() : () -> ()
    %c1 = arith.constant 1 : index
    %c0_25 = arith.constant 0 : index
    %c0_26 = arith.constant 0 : index
    %65 = vector.load %arg8[%c1, %c0_25, %c0_26] : memref<2x16x16xf32, #tpu.memory_space<vmem>>, vector<1x16x16xf32>
    %66 = vector.shape_cast %65 : vector<1x16x16xf32> to vector<16x16xf32>
    %67 = vector.shape_cast %66 : vector<16x16xf32> to vector<1x16x16xf32>
    %68 = vector.broadcast %67 : vector<1x16x16xf32> to vector<4x16x16xf32>
    %69 = arith.addf %64, %68 : vector<4x16x16xf32>
    %cst_27 = arith.constant dense<0xFF800000> : vector<4x16xf32>
    %70 = vector.multi_reduction <maximumf>, %69, %cst_27 [2] : vector<4x16x16xf32> to vector<4x16xf32>
    %71 = vector.shape_cast %70 : vector<4x16xf32> to vector<4x16x1xf32>
    %72 = vector.broadcast %71 : vector<4x16x1xf32> to vector<4x16x16xf32>
    %73 = arith.subf %69, %72 : vector<4x16x16xf32>
    %74 = math.exp %73 : vector<4x16x16xf32>
    %cst_28 = arith.constant dense<0.000000e+00> : vector<4x16xf32>
    %75 = vector.multi_reduction <add>, %74, %cst_28 [2] : vector<4x16x16xf32> to vector<4x16xf32>
    %76 = vector.shape_cast %75 : vector<4x16xf32> to vector<4x16x1xf32>
    %77 = tpu.reciprocal %76 {approx = true} : vector<4x16x1xf32> -> vector<4x16x1xf32>
    %78 = vector.broadcast %77 : vector<4x16x1xf32> to vector<4x16x16xf32>
    %79 = arith.mulf %74, %78 : vector<4x16x16xf32>
    %80 = arith.truncf %79 : vector<4x16x16xf32> to vector<4x16x16xbf16>
    %81 = arith.truncf %61 : vector<4x16x16xf32> to vector<4x16x16xbf16>
    "tpu.trace_start"() <{level = 10 : i32, message = "wnm,wmd->wnd"}> : () -> ()
    %cst_29 = arith.constant dense<0.000000e+00> : vector<4x16x16xf32>
    %82 = tpu.matmul %80, %81, %cst_29 {dimension_numbers = #tpu.dot_dimension_numbers<[2], [1], [1], [2], [0, 0, 0, 1, 1, 2], [0], [0]>} : vector<4x16x16xbf16>, vector<4x16x16xbf16>, vector<4x16x16xf32> -> vector<4x16x16xf32>
    "tpu.trace_stop"() : () -> ()
    %83 = tpu.concatenate %56, %82 in 2 : vector<4x16x16xf32>, vector<4x16x16xf32> -> vector<4x16x32xf32>
    %84 = vector.shape_cast %83 : vector<4x16x32xf32> to vector<64x32xf32>
    %85 = arith.truncf %84 : vector<64x32xf32> to vector<64x32xbf16>
    %c0_30 = arith.constant 0 : index
    %c0_31 = arith.constant 0 : index
    %86 = vector.load %arg6[%c0_30, %c0_31] : memref<32x32xbf16, #tpu.memory_space<vmem>>, vector<32x32xbf16>
    %cst_32 = arith.constant dense<0.000000e+00> : vector<64x32xf32>
    %87 = tpu.matmul %85, %86, %cst_32 {dimension_numbers = #tpu.dot_dimension_numbers<[1], [0], [0], [1], [0, 0, 1, 1], [], []>} : vector<64x32xbf16>, vector<32x32xbf16>, vector<64x32xf32> -> vector<64x32xf32>
    %c0_33 = arith.constant 0 : index
    %c0_34 = arith.constant 0 : index
    %88 = vector.load %arg7[%c0_33, %c0_34] : memref<1x32xf32, #tpu.memory_space<vmem>>, vector<1x32xf32>
    %89 = vector.broadcast %88 : vector<1x32xf32> to vector<64x32xf32>
    %90 = arith.addf %87, %89 : vector<64x32xf32>
    %91 = vector.shape_cast %90 : vector<64x32xf32> to vector<4x16x32xf32>
    %92 = arith.addf %0, %91 : vector<4x16x32xf32>
    %c0_35 = arith.constant 0 : index
    %c0_36 = arith.constant 0 : index
    %c0_37 = arith.constant 0 : index
    %93 = vector.load %arg9[%c0_35, %c0_36, %c0_37] : memref<4x16x32xf32, #tpu.memory_space<vmem>>, vector<4x16x32xf32>
    tpu.vector_store %arg9[%c0_35, %c0_36, %c0_37], %92 {strides = array<i32>} : memref<4x16x32xf32, #tpu.memory_space<vmem>>, vector<4x16x32xf32>,
    return
  }
  func.func @transform_0(%arg0: i32) -> (i32, i32, i32) {
    %c0_i32 = arith.constant 0 : i32
    %c0_i32_0 = arith.constant 0 : i32
    %c0_i32_1 = arith.constant 0 : i32
    return %arg0, %c0_i32, %c0_i32_0 : i32, i32, i32
  }
  func.func @transform_1(%arg0: i32) -> (i32, i32) {
    %c0_i32 = arith.constant 0 : i32
    %c0_i32_0 = arith.constant 0 : i32
    %c0_i32_1 = arith.constant 0 : i32
    return %c0_i32, %c0_i32_0 : i32, i32
  }
  func.func @transform_2(%arg0: i32) -> (i32, i32) {
    %c0_i32 = arith.constant 0 : i32
    %c0_i32_0 = arith.constant 0 : i32
    %c0_i32_1 = arith.constant 0 : i32
    return %c0_i32, %c0_i32_0 : i32, i32
  }
  func.func @transform_3(%arg0: i32) -> (i32, i32) {
    %c0_i32 = arith.constant 0 : i32
    %c0_i32_0 = arith.constant 0 : i32
    %c0_i32_1 = arith.constant 0 : i32
    return %c0_i32, %c0_i32_0 : i32, i32
  }
  func.func @transform_4(%arg0: i32) -> (i32, i32) {
    %c0_i32 = arith.constant 0 : i32
    %c0_i32_0 = arith.constant 0 : i32
    %c0_i32_1 = arith.constant 0 : i32
    return %c0_i32, %c0_i32_0 : i32, i32
  }
  func.func @transform_5(%arg0: i32) -> (i32, i32) {
    %c0_i32 = arith.constant 0 : i32
    %c0_i32_0 = arith.constant 0 : i32
    %c0_i32_1 = arith.constant 0 : i32
    return %c0_i32, %c0_i32_0 : i32, i32
  }
  func.func @transform_6(%arg0: i32) -> (i32, i32) {
    %c0_i32 = arith.constant 0 : i32
    %c0_i32_0 = arith.constant 0 : i32
    %c0_i32_1 = arith.constant 0 : i32
    return %c0_i32, %c0_i32_0 : i32, i32
  }
  func.func @transform_7(%arg0: i32) -> (i32, i32, i32) {
    %c0_i32 = arith.constant 0 : i32
    %c0_i32_0 = arith.constant 0 : i32
    %c0_i32_1 = arith.constant 0 : i32
    %c0_i32_2 = arith.constant 0 : i32
    return %c0_i32, %c0_i32_0, %c0_i32_1 : i32, i32, i32
  }
  func.func @transform_8(%arg0: i32) -> (i32, i32, i32) {
    %c0_i32 = arith.constant 0 : i32
    %c0_i32_0 = arith.constant 0 : i32
    %c0_i32_1 = arith.constant 0 : i32
    return %arg0, %c0_i32, %c0_i32_0 : i32, i32, i32
  }
}

module attributes {stable_mosaic.version = 11 : i64} {
  func.func @_mlp_kernel(%arg0: i32, %arg1: memref<128x32xf32, #tpu.memory_space<vmem>>, %arg2: memref<1x32xf32, #tpu.memory_space<vmem>>, %arg3: memref<1x32xf32, #tpu.memory_space<vmem>>, %arg4: memref<32x128xbf16, #tpu.memory_space<vmem>>, %arg5: memref<1x128xf32, #tpu.memory_space<vmem>>, %arg6: memref<128x32xbf16, #tpu.memory_space<vmem>>, %arg7: memref<1x32xf32, #tpu.memory_space<vmem>>, %arg8: memref<128x32xf32, #tpu.memory_space<vmem>>) attributes {dimension_semantics = [#tpu.dimension_semantics<parallel>], iteration_bounds = array<i64: 1>, scalar_prefetch = 0 : i64, scratch_operands = 0 : i64, tpu.core_type = #tpu.core_type<tc>, window_params = [{transform_indices = @transform_0, window_bounds = array<i64: 128, 32>}, {pipeline_mode = #tpu.pipeline_mode<synchronous>, transform_indices = @transform_1, window_bounds = array<i64: 1, 32>}, {pipeline_mode = #tpu.pipeline_mode<synchronous>, transform_indices = @transform_2, window_bounds = array<i64: 1, 32>}, {pipeline_mode = #tpu.pipeline_mode<synchronous>, transform_indices = @transform_3, window_bounds = array<i64: 32, 128>}, {pipeline_mode = #tpu.pipeline_mode<synchronous>, transform_indices = @transform_4, window_bounds = array<i64: 1, 128>}, {pipeline_mode = #tpu.pipeline_mode<synchronous>, transform_indices = @transform_5, window_bounds = array<i64: 128, 32>}, {pipeline_mode = #tpu.pipeline_mode<synchronous>, transform_indices = @transform_6, window_bounds = array<i64: 1, 32>}, {transform_indices = @transform_7, window_bounds = array<i64: 128, 32>}]} {
    %c0 = arith.constant 0 : index
    %c0_0 = arith.constant 0 : index
    %0 = vector.load %arg1[%c0, %c0_0] : memref<128x32xf32, #tpu.memory_space<vmem>>, vector<128x32xf32>
    %c0_1 = arith.constant 0 : index
    %c0_2 = arith.constant 0 : index
    %1 = vector.load %arg2[%c0_1, %c0_2] : memref<1x32xf32, #tpu.memory_space<vmem>>, vector<1x32xf32>
    %c0_3 = arith.constant 0 : index
    %c0_4 = arith.constant 0 : index
    %2 = vector.load %arg3[%c0_3, %c0_4] : memref<1x32xf32, #tpu.memory_space<vmem>>, vector<1x32xf32>
    %cst = arith.constant dense<0.000000e+00> : vector<128xf32>
    %3 = vector.multi_reduction <add>, %0, %cst [1] : vector<128x32xf32> to vector<128xf32>
    %4 = vector.shape_cast %3 : vector<128xf32> to vector<128x1xf32>
    %cst_5 = arith.constant 3.200000e+01 : f32
    %5 = vector.broadcast %cst_5 : f32 to vector<128x1xf32>
    %6 = arith.divf %4, %5 : vector<128x1xf32>
    %7 = vector.broadcast %6 : vector<128x1xf32> to vector<128x32xf32>
    %8 = arith.subf %0, %7 : vector<128x32xf32>
    %9 = arith.mulf %8, %8 : vector<128x32xf32>
    %cst_6 = arith.constant dense<0.000000e+00> : vector<128xf32>
    %10 = vector.multi_reduction <add>, %9, %cst_6 [1] : vector<128x32xf32> to vector<128xf32>
    %11 = vector.shape_cast %10 : vector<128xf32> to vector<128x1xf32>
    %cst_7 = arith.constant 3.200000e+01 : f32
    %12 = vector.broadcast %cst_7 : f32 to vector<128x1xf32>
    %13 = arith.divf %11, %12 : vector<128x1xf32>
    %cst_8 = arith.constant 9.99999974E-6 : f32
    %14 = vector.broadcast %cst_8 : f32 to vector<128x1xf32>
    %15 = arith.addf %13, %14 : vector<128x1xf32>
    %16 = math.rsqrt %15 : vector<128x1xf32>
    %17 = vector.broadcast %16 : vector<128x1xf32> to vector<128x32xf32>
    %18 = arith.mulf %8, %17 : vector<128x32xf32>
    %19 = vector.broadcast %1 : vector<1x32xf32> to vector<128x32xf32>
    %20 = arith.mulf %18, %19 : vector<128x32xf32>
    %21 = vector.broadcast %2 : vector<1x32xf32> to vector<128x32xf32>
    %22 = arith.addf %20, %21 : vector<128x32xf32>
    %23 = arith.truncf %22 : vector<128x32xf32> to vector<128x32xbf16>
    %c0_9 = arith.constant 0 : index
    %c0_10 = arith.constant 0 : index
    %24 = vector.load %arg4[%c0_9, %c0_10] : memref<32x128xbf16, #tpu.memory_space<vmem>>, vector<32x128xbf16>
    %cst_11 = arith.constant dense<0.000000e+00> : vector<128x128xf32>
    %25 = tpu.matmul %23, %24, %cst_11 {dimension_numbers = #tpu.dot_dimension_numbers<[1], [0], [0], [1], [0, 0, 1, 1], [], []>} : vector<128x32xbf16>, vector<32x128xbf16>, vector<128x128xf32> -> vector<128x128xf32>
    %c0_12 = arith.constant 0 : index
    %c0_13 = arith.constant 0 : index
    %26 = vector.load %arg5[%c0_12, %c0_13] : memref<1x128xf32, #tpu.memory_space<vmem>>, vector<1x128xf32>
    %27 = vector.broadcast %26 : vector<1x128xf32> to vector<128x128xf32>
    %28 = arith.addf %25, %27 : vector<128x128xf32>
    %cst_14 = arith.constant 0.707106769 : f32
    %29 = vector.broadcast %cst_14 : f32 to vector<128x128xf32>
    %30 = arith.mulf %28, %29 : vector<128x128xf32>
    %31 = math.absf %30 : vector<128x128xf32>
    %cst_15 = arith.constant 0.327591091 : f32
    %32 = vector.broadcast %cst_15 : f32 to vector<128x128xf32>
    %33 = arith.mulf %32, %31 : vector<128x128xf32>
    %cst_16 = arith.constant 1.000000e+00 : f32
    %34 = vector.broadcast %cst_16 : f32 to vector<128x128xf32>
    %35 = arith.addf %34, %33 : vector<128x128xf32>
    %cst_17 = arith.constant 1.000000e+00 : f32
    %36 = vector.broadcast %cst_17 : f32 to vector<128x128xf32>
    %37 = arith.divf %36, %35 : vector<128x128xf32>
    %cst_18 = arith.constant 1.06140542 : f32
    %38 = vector.broadcast %cst_18 : f32 to vector<128x128xf32>
    %39 = arith.mulf %38, %37 : vector<128x128xf32>
    %cst_19 = arith.constant -1.45315206 : f32
    %40 = vector.broadcast %cst_19 : f32 to vector<128x128xf32>
    %41 = arith.addf %39, %40 : vector<128x128xf32>
    %42 = arith.mulf %41, %37 : vector<128x128xf32>
    %cst_20 = arith.constant 1.42141378 : f32
    %43 = vector.broadcast %cst_20 : f32 to vector<128x128xf32>
    %44 = arith.addf %42, %43 : vector<128x128xf32>
    %45 = arith.mulf %44, %37 : vector<128x128xf32>
    %cst_21 = arith.constant -0.284496725 : f32
    %46 = vector.broadcast %cst_21 : f32 to vector<128x128xf32>
    %47 = arith.addf %45, %46 : vector<128x128xf32>
    %48 = arith.mulf %47, %37 : vector<128x128xf32>
    %cst_22 = arith.constant 0.254829586 : f32
    %49 = vector.broadcast %cst_22 : f32 to vector<128x128xf32>
    %50 = arith.addf %48, %49 : vector<128x128xf32>
    %51 = arith.mulf %50, %37 : vector<128x128xf32>
    %cst_23 = arith.constant 0.000000e+00 : f32
    %52 = vector.broadcast %cst_23 : f32 to vector<128x128xf32>
    %53 = arith.subf %52, %31 : vector<128x128xf32>
    %54 = arith.mulf %53, %31 : vector<128x128xf32>
    %55 = math.exp %54 : vector<128x128xf32>
    %56 = arith.mulf %51, %55 : vector<128x128xf32>
    %cst_24 = arith.constant 1.000000e+00 : f32
    %57 = vector.broadcast %cst_24 : f32 to vector<128x128xf32>
    %58 = arith.subf %57, %56 : vector<128x128xf32>
    %cst_25 = arith.constant 0.000000e+00 : f32
    %59 = vector.broadcast %cst_25 : f32 to vector<128x128xf32>
    %60 = arith.cmpf oge, %30, %59 : vector<128x128xf32>
    %cst_26 = arith.constant 0.000000e+00 : f32
    %61 = vector.broadcast %cst_26 : f32 to vector<128x128xf32>
    %62 = arith.subf %61, %58 : vector<128x128xf32>
    %63 = arith.select %60, %58, %62 : vector<128x128xi1>, vector<128x128xf32>
    %cst_27 = arith.constant 5.000000e-01 : f32
    %64 = vector.broadcast %cst_27 : f32 to vector<128x128xf32>
    %65 = arith.mulf %64, %28 : vector<128x128xf32>
    %cst_28 = arith.constant 1.000000e+00 : f32
    %66 = vector.broadcast %cst_28 : f32 to vector<128x128xf32>
    %67 = arith.addf %66, %63 : vector<128x128xf32>
    %68 = arith.mulf %65, %67 : vector<128x128xf32>
    %69 = arith.truncf %68 : vector<128x128xf32> to vector<128x128xbf16>
    %c0_29 = arith.constant 0 : index
    %c0_30 = arith.constant 0 : index
    %70 = vector.load %arg6[%c0_29, %c0_30] : memref<128x32xbf16, #tpu.memory_space<vmem>>, vector<128x32xbf16>
    %cst_31 = arith.constant dense<0.000000e+00> : vector<128x32xf32>
    %71 = tpu.matmul %69, %70, %cst_31 {dimension_numbers = #tpu.dot_dimension_numbers<[1], [0], [0], [1], [0, 0, 1, 1], [], []>} : vector<128x128xbf16>, vector<128x32xbf16>, vector<128x32xf32> -> vector<128x32xf32>
    %c0_32 = arith.constant 0 : index
    %c0_33 = arith.constant 0 : index
    %72 = vector.load %arg7[%c0_32, %c0_33] : memref<1x32xf32, #tpu.memory_space<vmem>>, vector<1x32xf32>
    %73 = vector.broadcast %72 : vector<1x32xf32> to vector<128x32xf32>
    %74 = arith.addf %71, %73 : vector<128x32xf32>
    %75 = arith.addf %0, %74 : vector<128x32xf32>
    %c0_34 = arith.constant 0 : index
    %c0_35 = arith.constant 0 : index
    %76 = vector.load %arg8[%c0_34, %c0_35] : memref<128x32xf32, #tpu.memory_space<vmem>>, vector<128x32xf32>
    tpu.vector_store %arg8[%c0_34, %c0_35], %75 {strides = array<i32>} : memref<128x32xf32, #tpu.memory_space<vmem>>, vector<128x32xf32>,
    return
  }
  func.func @transform_0(%arg0: i32) -> (i32, i32) {
    %c0_i32 = arith.constant 0 : i32
    %c0_i32_0 = arith.constant 0 : i32
    return %arg0, %c0_i32 : i32, i32
  }
  func.func @transform_1(%arg0: i32) -> (i32, i32) {
    %c0_i32 = arith.constant 0 : i32
    %c0_i32_0 = arith.constant 0 : i32
    %c0_i32_1 = arith.constant 0 : i32
    return %c0_i32, %c0_i32_0 : i32, i32
  }
  func.func @transform_2(%arg0: i32) -> (i32, i32) {
    %c0_i32 = arith.constant 0 : i32
    %c0_i32_0 = arith.constant 0 : i32
    %c0_i32_1 = arith.constant 0 : i32
    return %c0_i32, %c0_i32_0 : i32, i32
  }
  func.func @transform_3(%arg0: i32) -> (i32, i32) {
    %c0_i32 = arith.constant 0 : i32
    %c0_i32_0 = arith.constant 0 : i32
    %c0_i32_1 = arith.constant 0 : i32
    return %c0_i32, %c0_i32_0 : i32, i32
  }
  func.func @transform_4(%arg0: i32) -> (i32, i32) {
    %c0_i32 = arith.constant 0 : i32
    %c0_i32_0 = arith.constant 0 : i32
    %c0_i32_1 = arith.constant 0 : i32
    return %c0_i32, %c0_i32_0 : i32, i32
  }
  func.func @transform_5(%arg0: i32) -> (i32, i32) {
    %c0_i32 = arith.constant 0 : i32
    %c0_i32_0 = arith.constant 0 : i32
    %c0_i32_1 = arith.constant 0 : i32
    return %c0_i32, %c0_i32_0 : i32, i32
  }
  func.func @transform_6(%arg0: i32) -> (i32, i32) {
    %c0_i32 = arith.constant 0 : i32
    %c0_i32_0 = arith.constant 0 : i32
    %c0_i32_1 = arith.constant 0 : i32
    return %c0_i32, %c0_i32_0 : i32, i32
  }
  func.func @transform_7(%arg0: i32) -> (i32, i32) {
    %c0_i32 = arith.constant 0 : i32
    %c0_i32_0 = arith.constant 0 : i32
    return %arg0, %c0_i32 : i32, i32
  }
}

module attributes {stable_mosaic.version = 11 : i64} {
  func.func @_window_attn_kernel(%arg0: i32, %arg1: memref<4x16x32xf32, #tpu.memory_space<vmem>>, %arg2: memref<1x32xf32, #tpu.memory_space<vmem>>, %arg3: memref<1x32xf32, #tpu.memory_space<vmem>>, %arg4: memref<32x96xbf16, #tpu.memory_space<vmem>>, %arg5: memref<1x96xf32, #tpu.memory_space<vmem>>, %arg6: memref<32x32xbf16, #tpu.memory_space<vmem>>, %arg7: memref<1x32xf32, #tpu.memory_space<vmem>>, %arg8: memref<2x16x16xf32, #tpu.memory_space<vmem>>, %arg9: memref<4x16x16xf32, #tpu.memory_space<vmem>>, %arg10: memref<4x16x32xf32, #tpu.memory_space<vmem>>) attributes {dimension_semantics = [#tpu.dimension_semantics<parallel>], iteration_bounds = array<i64: 2>, scalar_prefetch = 0 : i64, scratch_operands = 0 : i64, tpu.core_type = #tpu.core_type<tc>, window_params = [{transform_indices = @transform_0, window_bounds = array<i64: 4, 16, 32>}, {pipeline_mode = #tpu.pipeline_mode<synchronous>, transform_indices = @transform_1, window_bounds = array<i64: 1, 32>}, {pipeline_mode = #tpu.pipeline_mode<synchronous>, transform_indices = @transform_2, window_bounds = array<i64: 1, 32>}, {pipeline_mode = #tpu.pipeline_mode<synchronous>, transform_indices = @transform_3, window_bounds = array<i64: 32, 96>}, {pipeline_mode = #tpu.pipeline_mode<synchronous>, transform_indices = @transform_4, window_bounds = array<i64: 1, 96>}, {pipeline_mode = #tpu.pipeline_mode<synchronous>, transform_indices = @transform_5, window_bounds = array<i64: 32, 32>}, {pipeline_mode = #tpu.pipeline_mode<synchronous>, transform_indices = @transform_6, window_bounds = array<i64: 1, 32>}, {pipeline_mode = #tpu.pipeline_mode<synchronous>, transform_indices = @transform_7, window_bounds = array<i64: 2, 16, 16>}, {transform_indices = @transform_8, window_bounds = array<i64: 4, 16, 16>}, {transform_indices = @transform_9, window_bounds = array<i64: 4, 16, 32>}]} {
    %c0 = arith.constant 0 : index
    %c0_0 = arith.constant 0 : index
    %c0_1 = arith.constant 0 : index
    %0 = vector.load %arg1[%c0, %c0_0, %c0_1] : memref<4x16x32xf32, #tpu.memory_space<vmem>>, vector<4x16x32xf32>
    %1 = vector.shape_cast %0 : vector<4x16x32xf32> to vector<64x32xf32>
    %c0_2 = arith.constant 0 : index
    %c0_3 = arith.constant 0 : index
    %2 = vector.load %arg2[%c0_2, %c0_3] : memref<1x32xf32, #tpu.memory_space<vmem>>, vector<1x32xf32>
    %c0_4 = arith.constant 0 : index
    %c0_5 = arith.constant 0 : index
    %3 = vector.load %arg3[%c0_4, %c0_5] : memref<1x32xf32, #tpu.memory_space<vmem>>, vector<1x32xf32>
    %cst = arith.constant dense<0.000000e+00> : vector<64xf32>
    %4 = vector.multi_reduction <add>, %1, %cst [1] : vector<64x32xf32> to vector<64xf32>
    %5 = vector.shape_cast %4 : vector<64xf32> to vector<64x1xf32>
    %cst_6 = arith.constant 3.200000e+01 : f32
    %6 = vector.broadcast %cst_6 : f32 to vector<64x1xf32>
    %7 = arith.divf %5, %6 : vector<64x1xf32>
    %8 = vector.broadcast %7 : vector<64x1xf32> to vector<64x32xf32>
    %9 = arith.subf %1, %8 : vector<64x32xf32>
    %10 = arith.mulf %9, %9 : vector<64x32xf32>
    %cst_7 = arith.constant dense<0.000000e+00> : vector<64xf32>
    %11 = vector.multi_reduction <add>, %10, %cst_7 [1] : vector<64x32xf32> to vector<64xf32>
    %12 = vector.shape_cast %11 : vector<64xf32> to vector<64x1xf32>
    %cst_8 = arith.constant 3.200000e+01 : f32
    %13 = vector.broadcast %cst_8 : f32 to vector<64x1xf32>
    %14 = arith.divf %12, %13 : vector<64x1xf32>
    %cst_9 = arith.constant 9.99999974E-6 : f32
    %15 = vector.broadcast %cst_9 : f32 to vector<64x1xf32>
    %16 = arith.addf %14, %15 : vector<64x1xf32>
    %17 = math.rsqrt %16 : vector<64x1xf32>
    %18 = vector.broadcast %17 : vector<64x1xf32> to vector<64x32xf32>
    %19 = arith.mulf %9, %18 : vector<64x32xf32>
    %20 = vector.broadcast %2 : vector<1x32xf32> to vector<64x32xf32>
    %21 = arith.mulf %19, %20 : vector<64x32xf32>
    %22 = vector.broadcast %3 : vector<1x32xf32> to vector<64x32xf32>
    %23 = arith.addf %21, %22 : vector<64x32xf32>
    %24 = arith.truncf %23 : vector<64x32xf32> to vector<64x32xbf16>
    %c0_10 = arith.constant 0 : index
    %c0_11 = arith.constant 0 : index
    %25 = vector.load %arg4[%c0_10, %c0_11] : memref<32x96xbf16, #tpu.memory_space<vmem>>, vector<32x96xbf16>
    %cst_12 = arith.constant dense<0.000000e+00> : vector<64x96xf32>
    %26 = tpu.matmul %24, %25, %cst_12 {dimension_numbers = #tpu.dot_dimension_numbers<[1], [0], [0], [1], [0, 0, 1, 1], [], []>} : vector<64x32xbf16>, vector<32x96xbf16>, vector<64x96xf32> -> vector<64x96xf32>
    %c0_13 = arith.constant 0 : index
    %c0_14 = arith.constant 0 : index
    %27 = vector.load %arg5[%c0_13, %c0_14] : memref<1x96xf32, #tpu.memory_space<vmem>>, vector<1x96xf32>
    %28 = vector.broadcast %27 : vector<1x96xf32> to vector<64x96xf32>
    %29 = arith.addf %26, %28 : vector<64x96xf32>
    %30 = vector.shape_cast %29 : vector<64x96xf32> to vector<4x16x96xf32>
    %31 = vector.extract_strided_slice %30 {offsets = [0, 0, 0], sizes = [4, 16, 16], strides = [1, 1, 1]} : vector<4x16x96xf32> to vector<4x16x16xf32>
    %cst_15 = arith.constant 2.500000e-01 : f32
    %32 = vector.broadcast %cst_15 : f32 to vector<4x16x16xf32>
    %33 = arith.mulf %31, %32 : vector<4x16x16xf32>
    %34 = vector.extract_strided_slice %30 {offsets = [0, 0, 32], sizes = [4, 16, 16], strides = [1, 1, 1]} : vector<4x16x96xf32> to vector<4x16x16xf32>
    %35 = vector.extract_strided_slice %30 {offsets = [0, 0, 64], sizes = [4, 16, 16], strides = [1, 1, 1]} : vector<4x16x96xf32> to vector<4x16x16xf32>
    %36 = arith.truncf %33 : vector<4x16x16xf32> to vector<4x16x16xbf16>
    %37 = arith.truncf %34 : vector<4x16x16xf32> to vector<4x16x16xbf16>
    "tpu.trace_start"() <{level = 10 : i32, message = "wnd,wmd->wnm"}> : () -> ()
    %cst_16 = arith.constant dense<0.000000e+00> : vector<4x16x16xf32>
    %38 = tpu.matmul %36, %37, %cst_16 {dimension_numbers = #tpu.dot_dimension_numbers<[2], [2], [1], [1], [0, 0, 0, 1, 1, 1], [0], [0]>} : vector<4x16x16xbf16>, vector<4x16x16xbf16>, vector<4x16x16xf32> -> vector<4x16x16xf32>
    "tpu.trace_stop"() : () -> ()
    %c0_17 = arith.constant 0 : index
    %c0_18 = arith.constant 0 : index
    %c0_19 = arith.constant 0 : index
    %39 = vector.load %arg8[%c0_17, %c0_18, %c0_19] : memref<2x16x16xf32, #tpu.memory_space<vmem>>, vector<1x16x16xf32>
    %40 = vector.shape_cast %39 : vector<1x16x16xf32> to vector<16x16xf32>
    %41 = vector.shape_cast %40 : vector<16x16xf32> to vector<1x16x16xf32>
    %42 = vector.broadcast %41 : vector<1x16x16xf32> to vector<4x16x16xf32>
    %43 = arith.addf %38, %42 : vector<4x16x16xf32>
    %c0_20 = arith.constant 0 : index
    %c0_21 = arith.constant 0 : index
    %c0_22 = arith.constant 0 : index
    %44 = vector.load %arg9[%c0_20, %c0_21, %c0_22] : memref<4x16x16xf32, #tpu.memory_space<vmem>>, vector<4x16x16xf32>
    %45 = arith.addf %43, %44 : vector<4x16x16xf32>
    %cst_23 = arith.constant dense<0xFF800000> : vector<4x16xf32>
    %46 = vector.multi_reduction <maximumf>, %45, %cst_23 [2] : vector<4x16x16xf32> to vector<4x16xf32>
    %47 = vector.shape_cast %46 : vector<4x16xf32> to vector<4x16x1xf32>
    %48 = vector.broadcast %47 : vector<4x16x1xf32> to vector<4x16x16xf32>
    %49 = arith.subf %45, %48 : vector<4x16x16xf32>
    %50 = math.exp %49 : vector<4x16x16xf32>
    %cst_24 = arith.constant dense<0.000000e+00> : vector<4x16xf32>
    %51 = vector.multi_reduction <add>, %50, %cst_24 [2] : vector<4x16x16xf32> to vector<4x16xf32>
    %52 = vector.shape_cast %51 : vector<4x16xf32> to vector<4x16x1xf32>
    %53 = tpu.reciprocal %52 {approx = true} : vector<4x16x1xf32> -> vector<4x16x1xf32>
    %54 = vector.broadcast %53 : vector<4x16x1xf32> to vector<4x16x16xf32>
    %55 = arith.mulf %50, %54 : vector<4x16x16xf32>
    %56 = arith.truncf %55 : vector<4x16x16xf32> to vector<4x16x16xbf16>
    %57 = arith.truncf %35 : vector<4x16x16xf32> to vector<4x16x16xbf16>
    "tpu.trace_start"() <{level = 10 : i32, message = "wnm,wmd->wnd"}> : () -> ()
    %cst_25 = arith.constant dense<0.000000e+00> : vector<4x16x16xf32>
    %58 = tpu.matmul %56, %57, %cst_25 {dimension_numbers = #tpu.dot_dimension_numbers<[2], [1], [1], [2], [0, 0, 0, 1, 1, 2], [0], [0]>} : vector<4x16x16xbf16>, vector<4x16x16xbf16>, vector<4x16x16xf32> -> vector<4x16x16xf32>
    "tpu.trace_stop"() : () -> ()
    %59 = vector.extract_strided_slice %30 {offsets = [0, 0, 16], sizes = [4, 16, 16], strides = [1, 1, 1]} : vector<4x16x96xf32> to vector<4x16x16xf32>
    %cst_26 = arith.constant 2.500000e-01 : f32
    %60 = vector.broadcast %cst_26 : f32 to vector<4x16x16xf32>
    %61 = arith.mulf %59, %60 : vector<4x16x16xf32>
    %62 = vector.extract_strided_slice %30 {offsets = [0, 0, 48], sizes = [4, 16, 16], strides = [1, 1, 1]} : vector<4x16x96xf32> to vector<4x16x16xf32>
    %63 = vector.extract_strided_slice %30 {offsets = [0, 0, 80], sizes = [4, 16, 16], strides = [1, 1, 1]} : vector<4x16x96xf32> to vector<4x16x16xf32>
    %64 = arith.truncf %61 : vector<4x16x16xf32> to vector<4x16x16xbf16>
    %65 = arith.truncf %62 : vector<4x16x16xf32> to vector<4x16x16xbf16>
    "tpu.trace_start"() <{level = 10 : i32, message = "wnd,wmd->wnm"}> : () -> ()
    %cst_27 = arith.constant dense<0.000000e+00> : vector<4x16x16xf32>
    %66 = tpu.matmul %64, %65, %cst_27 {dimension_numbers = #tpu.dot_dimension_numbers<[2], [2], [1], [1], [0, 0, 0, 1, 1, 1], [0], [0]>} : vector<4x16x16xbf16>, vector<4x16x16xbf16>, vector<4x16x16xf32> -> vector<4x16x16xf32>
    "tpu.trace_stop"() : () -> ()
    %c1 = arith.constant 1 : index
    %c0_28 = arith.constant 0 : index
    %c0_29 = arith.constant 0 : index
    %67 = vector.load %arg8[%c1, %c0_28, %c0_29] : memref<2x16x16xf32, #tpu.memory_space<vmem>>, vector<1x16x16xf32>
    %68 = vector.shape_cast %67 : vector<1x16x16xf32> to vector<16x16xf32>
    %69 = vector.shape_cast %68 : vector<16x16xf32> to vector<1x16x16xf32>
    %70 = vector.broadcast %69 : vector<1x16x16xf32> to vector<4x16x16xf32>
    %71 = arith.addf %66, %70 : vector<4x16x16xf32>
    %c0_30 = arith.constant 0 : index
    %c0_31 = arith.constant 0 : index
    %c0_32 = arith.constant 0 : index
    %72 = vector.load %arg9[%c0_30, %c0_31, %c0_32] : memref<4x16x16xf32, #tpu.memory_space<vmem>>, vector<4x16x16xf32>
    %73 = arith.addf %71, %72 : vector<4x16x16xf32>
    %cst_33 = arith.constant dense<0xFF800000> : vector<4x16xf32>
    %74 = vector.multi_reduction <maximumf>, %73, %cst_33 [2] : vector<4x16x16xf32> to vector<4x16xf32>
    %75 = vector.shape_cast %74 : vector<4x16xf32> to vector<4x16x1xf32>
    %76 = vector.broadcast %75 : vector<4x16x1xf32> to vector<4x16x16xf32>
    %77 = arith.subf %73, %76 : vector<4x16x16xf32>
    %78 = math.exp %77 : vector<4x16x16xf32>
    %cst_34 = arith.constant dense<0.000000e+00> : vector<4x16xf32>
    %79 = vector.multi_reduction <add>, %78, %cst_34 [2] : vector<4x16x16xf32> to vector<4x16xf32>
    %80 = vector.shape_cast %79 : vector<4x16xf32> to vector<4x16x1xf32>
    %81 = tpu.reciprocal %80 {approx = true} : vector<4x16x1xf32> -> vector<4x16x1xf32>
    %82 = vector.broadcast %81 : vector<4x16x1xf32> to vector<4x16x16xf32>
    %83 = arith.mulf %78, %82 : vector<4x16x16xf32>
    %84 = arith.truncf %83 : vector<4x16x16xf32> to vector<4x16x16xbf16>
    %85 = arith.truncf %63 : vector<4x16x16xf32> to vector<4x16x16xbf16>
    "tpu.trace_start"() <{level = 10 : i32, message = "wnm,wmd->wnd"}> : () -> ()
    %cst_35 = arith.constant dense<0.000000e+00> : vector<4x16x16xf32>
    %86 = tpu.matmul %84, %85, %cst_35 {dimension_numbers = #tpu.dot_dimension_numbers<[2], [1], [1], [2], [0, 0, 0, 1, 1, 2], [0], [0]>} : vector<4x16x16xbf16>, vector<4x16x16xbf16>, vector<4x16x16xf32> -> vector<4x16x16xf32>
    "tpu.trace_stop"() : () -> ()
    %87 = tpu.concatenate %58, %86 in 2 : vector<4x16x16xf32>, vector<4x16x16xf32> -> vector<4x16x32xf32>
    %88 = vector.shape_cast %87 : vector<4x16x32xf32> to vector<64x32xf32>
    %89 = arith.truncf %88 : vector<64x32xf32> to vector<64x32xbf16>
    %c0_36 = arith.constant 0 : index
    %c0_37 = arith.constant 0 : index
    %90 = vector.load %arg6[%c0_36, %c0_37] : memref<32x32xbf16, #tpu.memory_space<vmem>>, vector<32x32xbf16>
    %cst_38 = arith.constant dense<0.000000e+00> : vector<64x32xf32>
    %91 = tpu.matmul %89, %90, %cst_38 {dimension_numbers = #tpu.dot_dimension_numbers<[1], [0], [0], [1], [0, 0, 1, 1], [], []>} : vector<64x32xbf16>, vector<32x32xbf16>, vector<64x32xf32> -> vector<64x32xf32>
    %c0_39 = arith.constant 0 : index
    %c0_40 = arith.constant 0 : index
    %92 = vector.load %arg7[%c0_39, %c0_40] : memref<1x32xf32, #tpu.memory_space<vmem>>, vector<1x32xf32>
    %93 = vector.broadcast %92 : vector<1x32xf32> to vector<64x32xf32>
    %94 = arith.addf %91, %93 : vector<64x32xf32>
    %95 = vector.shape_cast %94 : vector<64x32xf32> to vector<4x16x32xf32>
    %96 = arith.addf %0, %95 : vector<4x16x32xf32>
    %c0_41 = arith.constant 0 : index
    %c0_42 = arith.constant 0 : index
    %c0_43 = arith.constant 0 : index
    %97 = vector.load %arg10[%c0_41, %c0_42, %c0_43] : memref<4x16x32xf32, #tpu.memory_space<vmem>>, vector<4x16x32xf32>
    tpu.vector_store %arg10[%c0_41, %c0_42, %c0_43], %96 {strides = array<i32>} : memref<4x16x32xf32, #tpu.memory_space<vmem>>, vector<4x16x32xf32>,
    return
  }
  func.func @transform_0(%arg0: i32) -> (i32, i32, i32) {
    %c0_i32 = arith.constant 0 : i32
    %c0_i32_0 = arith.constant 0 : i32
    %c0_i32_1 = arith.constant 0 : i32
    return %arg0, %c0_i32, %c0_i32_0 : i32, i32, i32
  }
  func.func @transform_1(%arg0: i32) -> (i32, i32) {
    %c0_i32 = arith.constant 0 : i32
    %c0_i32_0 = arith.constant 0 : i32
    %c0_i32_1 = arith.constant 0 : i32
    return %c0_i32, %c0_i32_0 : i32, i32
  }
  func.func @transform_2(%arg0: i32) -> (i32, i32) {
    %c0_i32 = arith.constant 0 : i32
    %c0_i32_0 = arith.constant 0 : i32
    %c0_i32_1 = arith.constant 0 : i32
    return %c0_i32, %c0_i32_0 : i32, i32
  }
  func.func @transform_3(%arg0: i32) -> (i32, i32) {
    %c0_i32 = arith.constant 0 : i32
    %c0_i32_0 = arith.constant 0 : i32
    %c0_i32_1 = arith.constant 0 : i32
    return %c0_i32, %c0_i32_0 : i32, i32
  }
  func.func @transform_4(%arg0: i32) -> (i32, i32) {
    %c0_i32 = arith.constant 0 : i32
    %c0_i32_0 = arith.constant 0 : i32
    %c0_i32_1 = arith.constant 0 : i32
    return %c0_i32, %c0_i32_0 : i32, i32
  }
  func.func @transform_5(%arg0: i32) -> (i32, i32) {
    %c0_i32 = arith.constant 0 : i32
    %c0_i32_0 = arith.constant 0 : i32
    %c0_i32_1 = arith.constant 0 : i32
    return %c0_i32, %c0_i32_0 : i32, i32
  }
  func.func @transform_6(%arg0: i32) -> (i32, i32) {
    %c0_i32 = arith.constant 0 : i32
    %c0_i32_0 = arith.constant 0 : i32
    %c0_i32_1 = arith.constant 0 : i32
    return %c0_i32, %c0_i32_0 : i32, i32
  }
  func.func @transform_7(%arg0: i32) -> (i32, i32, i32) {
    %c0_i32 = arith.constant 0 : i32
    %c0_i32_0 = arith.constant 0 : i32
    %c0_i32_1 = arith.constant 0 : i32
    %c0_i32_2 = arith.constant 0 : i32
    return %c0_i32, %c0_i32_0, %c0_i32_1 : i32, i32, i32
  }
  func.func @transform_8(%arg0: i32) -> (i32, i32, i32) {
    %c1_i32 = arith.constant 1 : i32
    %c0_i32 = arith.constant 0 : i32
    %0 = arith.cmpi eq, %c1_i32, %c0_i32 : i32
    %c1_i32_0 = arith.constant 1 : i32
    %1 = arith.select %0, %c1_i32_0, %c1_i32 : i32
    %2 = arith.remsi %arg0, %1 : i32
    %c0_i32_1 = arith.constant 0 : i32
    %3 = arith.cmpi ne, %2, %c0_i32_1 : i32
    %c0_i32_2 = arith.constant 0 : i32
    %4 = arith.cmpi slt, %2, %c0_i32_2 : i32
    %c0_i32_3 = arith.constant 0 : i32
    %5 = arith.cmpi slt, %1, %c0_i32_3 : i32
    %6 = arith.xori %4, %5 : i1
    %7 = arith.andi %6, %3 : i1
    %8 = arith.addi %2, %1 : i32
    %9 = arith.select %7, %8, %2 : i32
    %c0_i32_4 = arith.constant 0 : i32
    %c0_i32_5 = arith.constant 0 : i32
    %c0_i32_6 = arith.constant 0 : i32
    return %9, %c0_i32_4, %c0_i32_5 : i32, i32, i32
  }
  func.func @transform_9(%arg0: i32) -> (i32, i32, i32) {
    %c0_i32 = arith.constant 0 : i32
    %c0_i32_0 = arith.constant 0 : i32
    %c0_i32_1 = arith.constant 0 : i32
    return %arg0, %c0_i32, %c0_i32_0 : i32, i32, i32
  }
}

module attributes {stable_mosaic.version = 11 : i64} {
  func.func @_patch_merge_kernel(%arg0: i32, %arg1: memref<32x128xf32, #tpu.memory_space<vmem>>, %arg2: memref<1x128xf32, #tpu.memory_space<vmem>>, %arg3: memref<1x128xf32, #tpu.memory_space<vmem>>, %arg4: memref<128x64xbf16, #tpu.memory_space<vmem>>, %arg5: memref<32x64xf32, #tpu.memory_space<vmem>>) attributes {dimension_semantics = [#tpu.dimension_semantics<parallel>], iteration_bounds = array<i64: 1>, scalar_prefetch = 0 : i64, scratch_operands = 0 : i64, tpu.core_type = #tpu.core_type<tc>, window_params = [{transform_indices = @transform_0, window_bounds = array<i64: 32, 128>}, {pipeline_mode = #tpu.pipeline_mode<synchronous>, transform_indices = @transform_1, window_bounds = array<i64: 1, 128>}, {pipeline_mode = #tpu.pipeline_mode<synchronous>, transform_indices = @transform_2, window_bounds = array<i64: 1, 128>}, {pipeline_mode = #tpu.pipeline_mode<synchronous>, transform_indices = @transform_3, window_bounds = array<i64: 128, 64>}, {transform_indices = @transform_4, window_bounds = array<i64: 32, 64>}]} {
    %c0 = arith.constant 0 : index
    %c0_0 = arith.constant 0 : index
    %0 = vector.load %arg1[%c0, %c0_0] : memref<32x128xf32, #tpu.memory_space<vmem>>, vector<32x128xf32>
    %c0_1 = arith.constant 0 : index
    %c0_2 = arith.constant 0 : index
    %1 = vector.load %arg2[%c0_1, %c0_2] : memref<1x128xf32, #tpu.memory_space<vmem>>, vector<1x128xf32>
    %c0_3 = arith.constant 0 : index
    %c0_4 = arith.constant 0 : index
    %2 = vector.load %arg3[%c0_3, %c0_4] : memref<1x128xf32, #tpu.memory_space<vmem>>, vector<1x128xf32>
    %cst = arith.constant dense<0.000000e+00> : vector<32xf32>
    %3 = vector.multi_reduction <add>, %0, %cst [1] : vector<32x128xf32> to vector<32xf32>
    %4 = vector.shape_cast %3 : vector<32xf32> to vector<32x1xf32>
    %cst_5 = arith.constant 1.280000e+02 : f32
    %5 = vector.broadcast %cst_5 : f32 to vector<32x1xf32>
    %6 = arith.divf %4, %5 : vector<32x1xf32>
    %7 = vector.broadcast %6 : vector<32x1xf32> to vector<32x128xf32>
    %8 = arith.subf %0, %7 : vector<32x128xf32>
    %9 = arith.mulf %8, %8 : vector<32x128xf32>
    %cst_6 = arith.constant dense<0.000000e+00> : vector<32xf32>
    %10 = vector.multi_reduction <add>, %9, %cst_6 [1] : vector<32x128xf32> to vector<32xf32>
    %11 = vector.shape_cast %10 : vector<32xf32> to vector<32x1xf32>
    %cst_7 = arith.constant 1.280000e+02 : f32
    %12 = vector.broadcast %cst_7 : f32 to vector<32x1xf32>
    %13 = arith.divf %11, %12 : vector<32x1xf32>
    %cst_8 = arith.constant 9.99999974E-6 : f32
    %14 = vector.broadcast %cst_8 : f32 to vector<32x1xf32>
    %15 = arith.addf %13, %14 : vector<32x1xf32>
    %16 = math.rsqrt %15 : vector<32x1xf32>
    %17 = vector.broadcast %16 : vector<32x1xf32> to vector<32x128xf32>
    %18 = arith.mulf %8, %17 : vector<32x128xf32>
    %19 = vector.broadcast %1 : vector<1x128xf32> to vector<32x128xf32>
    %20 = arith.mulf %18, %19 : vector<32x128xf32>
    %21 = vector.broadcast %2 : vector<1x128xf32> to vector<32x128xf32>
    %22 = arith.addf %20, %21 : vector<32x128xf32>
    %23 = arith.truncf %22 : vector<32x128xf32> to vector<32x128xbf16>
    %c0_9 = arith.constant 0 : index
    %c0_10 = arith.constant 0 : index
    %24 = vector.load %arg4[%c0_9, %c0_10] : memref<128x64xbf16, #tpu.memory_space<vmem>>, vector<128x64xbf16>
    %cst_11 = arith.constant dense<0.000000e+00> : vector<32x64xf32>
    %25 = tpu.matmul %23, %24, %cst_11 {dimension_numbers = #tpu.dot_dimension_numbers<[1], [0], [0], [1], [0, 0, 1, 1], [], []>} : vector<32x128xbf16>, vector<128x64xbf16>, vector<32x64xf32> -> vector<32x64xf32>
    %c0_12 = arith.constant 0 : index
    %c0_13 = arith.constant 0 : index
    %26 = vector.load %arg5[%c0_12, %c0_13] : memref<32x64xf32, #tpu.memory_space<vmem>>, vector<32x64xf32>
    tpu.vector_store %arg5[%c0_12, %c0_13], %25 {strides = array<i32>} : memref<32x64xf32, #tpu.memory_space<vmem>>, vector<32x64xf32>,
    return
  }
  func.func @transform_0(%arg0: i32) -> (i32, i32) {
    %c0_i32 = arith.constant 0 : i32
    %c0_i32_0 = arith.constant 0 : i32
    return %arg0, %c0_i32 : i32, i32
  }
  func.func @transform_1(%arg0: i32) -> (i32, i32) {
    %c0_i32 = arith.constant 0 : i32
    %c0_i32_0 = arith.constant 0 : i32
    %c0_i32_1 = arith.constant 0 : i32
    return %c0_i32, %c0_i32_0 : i32, i32
  }
  func.func @transform_2(%arg0: i32) -> (i32, i32) {
    %c0_i32 = arith.constant 0 : i32
    %c0_i32_0 = arith.constant 0 : i32
    %c0_i32_1 = arith.constant 0 : i32
    return %c0_i32, %c0_i32_0 : i32, i32
  }
  func.func @transform_3(%arg0: i32) -> (i32, i32) {
    %c0_i32 = arith.constant 0 : i32
    %c0_i32_0 = arith.constant 0 : i32
    %c0_i32_1 = arith.constant 0 : i32
    return %c0_i32, %c0_i32_0 : i32, i32
  }
  func.func @transform_4(%arg0: i32) -> (i32, i32) {
    %c0_i32 = arith.constant 0 : i32
    %c0_i32_0 = arith.constant 0 : i32
    return %arg0, %c0_i32 : i32, i32
  }
}

module attributes {stable_mosaic.version = 11 : i64} {
  func.func @_window_attn_kernel(%arg0: i32, %arg1: memref<1x16x64xf32, #tpu.memory_space<vmem>>, %arg2: memref<1x64xf32, #tpu.memory_space<vmem>>, %arg3: memref<1x64xf32, #tpu.memory_space<vmem>>, %arg4: memref<64x192xbf16, #tpu.memory_space<vmem>>, %arg5: memref<1x192xf32, #tpu.memory_space<vmem>>, %arg6: memref<64x64xbf16, #tpu.memory_space<vmem>>, %arg7: memref<1x64xf32, #tpu.memory_space<vmem>>, %arg8: memref<4x16x16xf32, #tpu.memory_space<vmem>>, %arg9: memref<1x16x64xf32, #tpu.memory_space<vmem>>) attributes {dimension_semantics = [#tpu.dimension_semantics<parallel>], iteration_bounds = array<i64: 2>, scalar_prefetch = 0 : i64, scratch_operands = 0 : i64, tpu.core_type = #tpu.core_type<tc>, window_params = [{transform_indices = @transform_0, window_bounds = array<i64: 1, 16, 64>}, {pipeline_mode = #tpu.pipeline_mode<synchronous>, transform_indices = @transform_1, window_bounds = array<i64: 1, 64>}, {pipeline_mode = #tpu.pipeline_mode<synchronous>, transform_indices = @transform_2, window_bounds = array<i64: 1, 64>}, {pipeline_mode = #tpu.pipeline_mode<synchronous>, transform_indices = @transform_3, window_bounds = array<i64: 64, 192>}, {pipeline_mode = #tpu.pipeline_mode<synchronous>, transform_indices = @transform_4, window_bounds = array<i64: 1, 192>}, {pipeline_mode = #tpu.pipeline_mode<synchronous>, transform_indices = @transform_5, window_bounds = array<i64: 64, 64>}, {pipeline_mode = #tpu.pipeline_mode<synchronous>, transform_indices = @transform_6, window_bounds = array<i64: 1, 64>}, {pipeline_mode = #tpu.pipeline_mode<synchronous>, transform_indices = @transform_7, window_bounds = array<i64: 4, 16, 16>}, {transform_indices = @transform_8, window_bounds = array<i64: 1, 16, 64>}]} {
    %c0 = arith.constant 0 : index
    %c0_0 = arith.constant 0 : index
    %c0_1 = arith.constant 0 : index
    %0 = vector.load %arg1[%c0, %c0_0, %c0_1] : memref<1x16x64xf32, #tpu.memory_space<vmem>>, vector<1x16x64xf32>
    %1 = vector.shape_cast %0 : vector<1x16x64xf32> to vector<16x64xf32>
    %c0_2 = arith.constant 0 : index
    %c0_3 = arith.constant 0 : index
    %2 = vector.load %arg2[%c0_2, %c0_3] : memref<1x64xf32, #tpu.memory_space<vmem>>, vector<1x64xf32>
    %c0_4 = arith.constant 0 : index
    %c0_5 = arith.constant 0 : index
    %3 = vector.load %arg3[%c0_4, %c0_5] : memref<1x64xf32, #tpu.memory_space<vmem>>, vector<1x64xf32>
    %cst = arith.constant dense<0.000000e+00> : vector<16xf32>
    %4 = vector.multi_reduction <add>, %1, %cst [1] : vector<16x64xf32> to vector<16xf32>
    %5 = vector.shape_cast %4 : vector<16xf32> to vector<16x1xf32>
    %cst_6 = arith.constant 6.400000e+01 : f32
    %6 = vector.broadcast %cst_6 : f32 to vector<16x1xf32>
    %7 = arith.divf %5, %6 : vector<16x1xf32>
    %8 = vector.broadcast %7 : vector<16x1xf32> to vector<16x64xf32>
    %9 = arith.subf %1, %8 : vector<16x64xf32>
    %10 = arith.mulf %9, %9 : vector<16x64xf32>
    %cst_7 = arith.constant dense<0.000000e+00> : vector<16xf32>
    %11 = vector.multi_reduction <add>, %10, %cst_7 [1] : vector<16x64xf32> to vector<16xf32>
    %12 = vector.shape_cast %11 : vector<16xf32> to vector<16x1xf32>
    %cst_8 = arith.constant 6.400000e+01 : f32
    %13 = vector.broadcast %cst_8 : f32 to vector<16x1xf32>
    %14 = arith.divf %12, %13 : vector<16x1xf32>
    %cst_9 = arith.constant 9.99999974E-6 : f32
    %15 = vector.broadcast %cst_9 : f32 to vector<16x1xf32>
    %16 = arith.addf %14, %15 : vector<16x1xf32>
    %17 = math.rsqrt %16 : vector<16x1xf32>
    %18 = vector.broadcast %17 : vector<16x1xf32> to vector<16x64xf32>
    %19 = arith.mulf %9, %18 : vector<16x64xf32>
    %20 = vector.broadcast %2 : vector<1x64xf32> to vector<16x64xf32>
    %21 = arith.mulf %19, %20 : vector<16x64xf32>
    %22 = vector.broadcast %3 : vector<1x64xf32> to vector<16x64xf32>
    %23 = arith.addf %21, %22 : vector<16x64xf32>
    %24 = arith.truncf %23 : vector<16x64xf32> to vector<16x64xbf16>
    %c0_10 = arith.constant 0 : index
    %c0_11 = arith.constant 0 : index
    %25 = vector.load %arg4[%c0_10, %c0_11] : memref<64x192xbf16, #tpu.memory_space<vmem>>, vector<64x192xbf16>
    %cst_12 = arith.constant dense<0.000000e+00> : vector<16x192xf32>
    %26 = tpu.matmul %24, %25, %cst_12 {dimension_numbers = #tpu.dot_dimension_numbers<[1], [0], [0], [1], [0, 0, 1, 1], [], []>} : vector<16x64xbf16>, vector<64x192xbf16>, vector<16x192xf32> -> vector<16x192xf32>
    %c0_13 = arith.constant 0 : index
    %c0_14 = arith.constant 0 : index
    %27 = vector.load %arg5[%c0_13, %c0_14] : memref<1x192xf32, #tpu.memory_space<vmem>>, vector<1x192xf32>
    %28 = vector.broadcast %27 : vector<1x192xf32> to vector<16x192xf32>
    %29 = arith.addf %26, %28 : vector<16x192xf32>
    %30 = vector.shape_cast %29 : vector<16x192xf32> to vector<1x16x192xf32>
    %31 = vector.extract_strided_slice %30 {offsets = [0, 0, 0], sizes = [1, 16, 16], strides = [1, 1, 1]} : vector<1x16x192xf32> to vector<1x16x16xf32>
    %cst_15 = arith.constant 2.500000e-01 : f32
    %32 = vector.broadcast %cst_15 : f32 to vector<1x16x16xf32>
    %33 = arith.mulf %31, %32 : vector<1x16x16xf32>
    %34 = vector.extract_strided_slice %30 {offsets = [0, 0, 64], sizes = [1, 16, 16], strides = [1, 1, 1]} : vector<1x16x192xf32> to vector<1x16x16xf32>
    %35 = vector.extract_strided_slice %30 {offsets = [0, 0, 128], sizes = [1, 16, 16], strides = [1, 1, 1]} : vector<1x16x192xf32> to vector<1x16x16xf32>
    %36 = arith.truncf %33 : vector<1x16x16xf32> to vector<1x16x16xbf16>
    %37 = arith.truncf %34 : vector<1x16x16xf32> to vector<1x16x16xbf16>
    "tpu.trace_start"() <{level = 10 : i32, message = "wnd,wmd->wnm"}> : () -> ()
    %cst_16 = arith.constant dense<0.000000e+00> : vector<1x16x16xf32>
    %38 = tpu.matmul %36, %37, %cst_16 {dimension_numbers = #tpu.dot_dimension_numbers<[2], [2], [1], [1], [0, 0, 0, 1, 1, 1], [0], [0]>} : vector<1x16x16xbf16>, vector<1x16x16xbf16>, vector<1x16x16xf32> -> vector<1x16x16xf32>
    "tpu.trace_stop"() : () -> ()
    %c0_17 = arith.constant 0 : index
    %c0_18 = arith.constant 0 : index
    %c0_19 = arith.constant 0 : index
    %39 = vector.load %arg8[%c0_17, %c0_18, %c0_19] : memref<4x16x16xf32, #tpu.memory_space<vmem>>, vector<1x16x16xf32>
    %40 = vector.shape_cast %39 : vector<1x16x16xf32> to vector<16x16xf32>
    %41 = vector.shape_cast %40 : vector<16x16xf32> to vector<1x16x16xf32>
    %42 = arith.addf %38, %41 : vector<1x16x16xf32>
    %cst_20 = arith.constant dense<0xFF800000> : vector<1x16xf32>
    %43 = vector.multi_reduction <maximumf>, %42, %cst_20 [2] : vector<1x16x16xf32> to vector<1x16xf32>
    %44 = vector.shape_cast %43 : vector<1x16xf32> to vector<1x16x1xf32>
    %45 = vector.broadcast %44 : vector<1x16x1xf32> to vector<1x16x16xf32>
    %46 = arith.subf %42, %45 : vector<1x16x16xf32>
    %47 = math.exp %46 : vector<1x16x16xf32>
    %cst_21 = arith.constant dense<0.000000e+00> : vector<1x16xf32>
    %48 = vector.multi_reduction <add>, %47, %cst_21 [2] : vector<1x16x16xf32> to vector<1x16xf32>
    %49 = vector.shape_cast %48 : vector<1x16xf32> to vector<1x16x1xf32>
    %50 = tpu.reciprocal %49 {approx = true} : vector<1x16x1xf32> -> vector<1x16x1xf32>
    %51 = vector.broadcast %50 : vector<1x16x1xf32> to vector<1x16x16xf32>
    %52 = arith.mulf %47, %51 : vector<1x16x16xf32>
    %53 = arith.truncf %52 : vector<1x16x16xf32> to vector<1x16x16xbf16>
    %54 = arith.truncf %35 : vector<1x16x16xf32> to vector<1x16x16xbf16>
    "tpu.trace_start"() <{level = 10 : i32, message = "wnm,wmd->wnd"}> : () -> ()
    %cst_22 = arith.constant dense<0.000000e+00> : vector<1x16x16xf32>
    %55 = tpu.matmul %53, %54, %cst_22 {dimension_numbers = #tpu.dot_dimension_numbers<[2], [1], [1], [2], [0, 0, 0, 1, 1, 2], [0], [0]>} : vector<1x16x16xbf16>, vector<1x16x16xbf16>, vector<1x16x16xf32> -> vector<1x16x16xf32>
    "tpu.trace_stop"() : () -> ()
    %56 = vector.extract_strided_slice %30 {offsets = [0, 0, 16], sizes = [1, 16, 16], strides = [1, 1, 1]} : vector<1x16x192xf32> to vector<1x16x16xf32>
    %cst_23 = arith.constant 2.500000e-01 : f32
    %57 = vector.broadcast %cst_23 : f32 to vector<1x16x16xf32>
    %58 = arith.mulf %56, %57 : vector<1x16x16xf32>
    %59 = vector.extract_strided_slice %30 {offsets = [0, 0, 80], sizes = [1, 16, 16], strides = [1, 1, 1]} : vector<1x16x192xf32> to vector<1x16x16xf32>
    %60 = vector.extract_strided_slice %30 {offsets = [0, 0, 144], sizes = [1, 16, 16], strides = [1, 1, 1]} : vector<1x16x192xf32> to vector<1x16x16xf32>
    %61 = arith.truncf %58 : vector<1x16x16xf32> to vector<1x16x16xbf16>
    %62 = arith.truncf %59 : vector<1x16x16xf32> to vector<1x16x16xbf16>
    "tpu.trace_start"() <{level = 10 : i32, message = "wnd,wmd->wnm"}> : () -> ()
    %cst_24 = arith.constant dense<0.000000e+00> : vector<1x16x16xf32>
    %63 = tpu.matmul %61, %62, %cst_24 {dimension_numbers = #tpu.dot_dimension_numbers<[2], [2], [1], [1], [0, 0, 0, 1, 1, 1], [0], [0]>} : vector<1x16x16xbf16>, vector<1x16x16xbf16>, vector<1x16x16xf32> -> vector<1x16x16xf32>
    "tpu.trace_stop"() : () -> ()
    %c1 = arith.constant 1 : index
    %c0_25 = arith.constant 0 : index
    %c0_26 = arith.constant 0 : index
    %64 = vector.load %arg8[%c1, %c0_25, %c0_26] : memref<4x16x16xf32, #tpu.memory_space<vmem>>, vector<1x16x16xf32>
    %65 = vector.shape_cast %64 : vector<1x16x16xf32> to vector<16x16xf32>
    %66 = vector.shape_cast %65 : vector<16x16xf32> to vector<1x16x16xf32>
    %67 = arith.addf %63, %66 : vector<1x16x16xf32>
    %cst_27 = arith.constant dense<0xFF800000> : vector<1x16xf32>
    %68 = vector.multi_reduction <maximumf>, %67, %cst_27 [2] : vector<1x16x16xf32> to vector<1x16xf32>
    %69 = vector.shape_cast %68 : vector<1x16xf32> to vector<1x16x1xf32>
    %70 = vector.broadcast %69 : vector<1x16x1xf32> to vector<1x16x16xf32>
    %71 = arith.subf %67, %70 : vector<1x16x16xf32>
    %72 = math.exp %71 : vector<1x16x16xf32>
    %cst_28 = arith.constant dense<0.000000e+00> : vector<1x16xf32>
    %73 = vector.multi_reduction <add>, %72, %cst_28 [2] : vector<1x16x16xf32> to vector<1x16xf32>
    %74 = vector.shape_cast %73 : vector<1x16xf32> to vector<1x16x1xf32>
    %75 = tpu.reciprocal %74 {approx = true} : vector<1x16x1xf32> -> vector<1x16x1xf32>
    %76 = vector.broadcast %75 : vector<1x16x1xf32> to vector<1x16x16xf32>
    %77 = arith.mulf %72, %76 : vector<1x16x16xf32>
    %78 = arith.truncf %77 : vector<1x16x16xf32> to vector<1x16x16xbf16>
    %79 = arith.truncf %60 : vector<1x16x16xf32> to vector<1x16x16xbf16>
    "tpu.trace_start"() <{level = 10 : i32, message = "wnm,wmd->wnd"}> : () -> ()
    %cst_29 = arith.constant dense<0.000000e+00> : vector<1x16x16xf32>
    %80 = tpu.matmul %78, %79, %cst_29 {dimension_numbers = #tpu.dot_dimension_numbers<[2], [1], [1], [2], [0, 0, 0, 1, 1, 2], [0], [0]>} : vector<1x16x16xbf16>, vector<1x16x16xbf16>, vector<1x16x16xf32> -> vector<1x16x16xf32>
    "tpu.trace_stop"() : () -> ()
    %81 = vector.extract_strided_slice %30 {offsets = [0, 0, 32], sizes = [1, 16, 16], strides = [1, 1, 1]} : vector<1x16x192xf32> to vector<1x16x16xf32>
    %cst_30 = arith.constant 2.500000e-01 : f32
    %82 = vector.broadcast %cst_30 : f32 to vector<1x16x16xf32>
    %83 = arith.mulf %81, %82 : vector<1x16x16xf32>
    %84 = vector.extract_strided_slice %30 {offsets = [0, 0, 96], sizes = [1, 16, 16], strides = [1, 1, 1]} : vector<1x16x192xf32> to vector<1x16x16xf32>
    %85 = vector.extract_strided_slice %30 {offsets = [0, 0, 160], sizes = [1, 16, 16], strides = [1, 1, 1]} : vector<1x16x192xf32> to vector<1x16x16xf32>
    %86 = arith.truncf %83 : vector<1x16x16xf32> to vector<1x16x16xbf16>
    %87 = arith.truncf %84 : vector<1x16x16xf32> to vector<1x16x16xbf16>
    "tpu.trace_start"() <{level = 10 : i32, message = "wnd,wmd->wnm"}> : () -> ()
    %cst_31 = arith.constant dense<0.000000e+00> : vector<1x16x16xf32>
    %88 = tpu.matmul %86, %87, %cst_31 {dimension_numbers = #tpu.dot_dimension_numbers<[2], [2], [1], [1], [0, 0, 0, 1, 1, 1], [0], [0]>} : vector<1x16x16xbf16>, vector<1x16x16xbf16>, vector<1x16x16xf32> -> vector<1x16x16xf32>
    "tpu.trace_stop"() : () -> ()
    %c2 = arith.constant 2 : index
    %c0_32 = arith.constant 0 : index
    %c0_33 = arith.constant 0 : index
    %89 = vector.load %arg8[%c2, %c0_32, %c0_33] : memref<4x16x16xf32, #tpu.memory_space<vmem>>, vector<1x16x16xf32>
    %90 = vector.shape_cast %89 : vector<1x16x16xf32> to vector<16x16xf32>
    %91 = vector.shape_cast %90 : vector<16x16xf32> to vector<1x16x16xf32>
    %92 = arith.addf %88, %91 : vector<1x16x16xf32>
    %cst_34 = arith.constant dense<0xFF800000> : vector<1x16xf32>
    %93 = vector.multi_reduction <maximumf>, %92, %cst_34 [2] : vector<1x16x16xf32> to vector<1x16xf32>
    %94 = vector.shape_cast %93 : vector<1x16xf32> to vector<1x16x1xf32>
    %95 = vector.broadcast %94 : vector<1x16x1xf32> to vector<1x16x16xf32>
    %96 = arith.subf %92, %95 : vector<1x16x16xf32>
    %97 = math.exp %96 : vector<1x16x16xf32>
    %cst_35 = arith.constant dense<0.000000e+00> : vector<1x16xf32>
    %98 = vector.multi_reduction <add>, %97, %cst_35 [2] : vector<1x16x16xf32> to vector<1x16xf32>
    %99 = vector.shape_cast %98 : vector<1x16xf32> to vector<1x16x1xf32>
    %100 = tpu.reciprocal %99 {approx = true} : vector<1x16x1xf32> -> vector<1x16x1xf32>
    %101 = vector.broadcast %100 : vector<1x16x1xf32> to vector<1x16x16xf32>
    %102 = arith.mulf %97, %101 : vector<1x16x16xf32>
    %103 = arith.truncf %102 : vector<1x16x16xf32> to vector<1x16x16xbf16>
    %104 = arith.truncf %85 : vector<1x16x16xf32> to vector<1x16x16xbf16>
    "tpu.trace_start"() <{level = 10 : i32, message = "wnm,wmd->wnd"}> : () -> ()
    %cst_36 = arith.constant dense<0.000000e+00> : vector<1x16x16xf32>
    %105 = tpu.matmul %103, %104, %cst_36 {dimension_numbers = #tpu.dot_dimension_numbers<[2], [1], [1], [2], [0, 0, 0, 1, 1, 2], [0], [0]>} : vector<1x16x16xbf16>, vector<1x16x16xbf16>, vector<1x16x16xf32> -> vector<1x16x16xf32>
    "tpu.trace_stop"() : () -> ()
    %106 = vector.extract_strided_slice %30 {offsets = [0, 0, 48], sizes = [1, 16, 16], strides = [1, 1, 1]} : vector<1x16x192xf32> to vector<1x16x16xf32>
    %cst_37 = arith.constant 2.500000e-01 : f32
    %107 = vector.broadcast %cst_37 : f32 to vector<1x16x16xf32>
    %108 = arith.mulf %106, %107 : vector<1x16x16xf32>
    %109 = vector.extract_strided_slice %30 {offsets = [0, 0, 112], sizes = [1, 16, 16], strides = [1, 1, 1]} : vector<1x16x192xf32> to vector<1x16x16xf32>
    %110 = vector.extract_strided_slice %30 {offsets = [0, 0, 176], sizes = [1, 16, 16], strides = [1, 1, 1]} : vector<1x16x192xf32> to vector<1x16x16xf32>
    %111 = arith.truncf %108 : vector<1x16x16xf32> to vector<1x16x16xbf16>
    %112 = arith.truncf %109 : vector<1x16x16xf32> to vector<1x16x16xbf16>
    "tpu.trace_start"() <{level = 10 : i32, message = "wnd,wmd->wnm"}> : () -> ()
    %cst_38 = arith.constant dense<0.000000e+00> : vector<1x16x16xf32>
    %113 = tpu.matmul %111, %112, %cst_38 {dimension_numbers = #tpu.dot_dimension_numbers<[2], [2], [1], [1], [0, 0, 0, 1, 1, 1], [0], [0]>} : vector<1x16x16xbf16>, vector<1x16x16xbf16>, vector<1x16x16xf32> -> vector<1x16x16xf32>
    "tpu.trace_stop"() : () -> ()
    %c3 = arith.constant 3 : index
    %c0_39 = arith.constant 0 : index
    %c0_40 = arith.constant 0 : index
    %114 = vector.load %arg8[%c3, %c0_39, %c0_40] : memref<4x16x16xf32, #tpu.memory_space<vmem>>, vector<1x16x16xf32>
    %115 = vector.shape_cast %114 : vector<1x16x16xf32> to vector<16x16xf32>
    %116 = vector.shape_cast %115 : vector<16x16xf32> to vector<1x16x16xf32>
    %117 = arith.addf %113, %116 : vector<1x16x16xf32>
    %cst_41 = arith.constant dense<0xFF800000> : vector<1x16xf32>
    %118 = vector.multi_reduction <maximumf>, %117, %cst_41 [2] : vector<1x16x16xf32> to vector<1x16xf32>
    %119 = vector.shape_cast %118 : vector<1x16xf32> to vector<1x16x1xf32>
    %120 = vector.broadcast %119 : vector<1x16x1xf32> to vector<1x16x16xf32>
    %121 = arith.subf %117, %120 : vector<1x16x16xf32>
    %122 = math.exp %121 : vector<1x16x16xf32>
    %cst_42 = arith.constant dense<0.000000e+00> : vector<1x16xf32>
    %123 = vector.multi_reduction <add>, %122, %cst_42 [2] : vector<1x16x16xf32> to vector<1x16xf32>
    %124 = vector.shape_cast %123 : vector<1x16xf32> to vector<1x16x1xf32>
    %125 = tpu.reciprocal %124 {approx = true} : vector<1x16x1xf32> -> vector<1x16x1xf32>
    %126 = vector.broadcast %125 : vector<1x16x1xf32> to vector<1x16x16xf32>
    %127 = arith.mulf %122, %126 : vector<1x16x16xf32>
    %128 = arith.truncf %127 : vector<1x16x16xf32> to vector<1x16x16xbf16>
    %129 = arith.truncf %110 : vector<1x16x16xf32> to vector<1x16x16xbf16>
    "tpu.trace_start"() <{level = 10 : i32, message = "wnm,wmd->wnd"}> : () -> ()
    %cst_43 = arith.constant dense<0.000000e+00> : vector<1x16x16xf32>
    %130 = tpu.matmul %128, %129, %cst_43 {dimension_numbers = #tpu.dot_dimension_numbers<[2], [1], [1], [2], [0, 0, 0, 1, 1, 2], [0], [0]>} : vector<1x16x16xbf16>, vector<1x16x16xbf16>, vector<1x16x16xf32> -> vector<1x16x16xf32>
    "tpu.trace_stop"() : () -> ()
    %131 = tpu.concatenate %55, %80, %105, %130 in 2 : vector<1x16x16xf32>, vector<1x16x16xf32>, vector<1x16x16xf32>, vector<1x16x16xf32> -> vector<1x16x64xf32>
    %132 = vector.shape_cast %131 : vector<1x16x64xf32> to vector<16x64xf32>
    %133 = arith.truncf %132 : vector<16x64xf32> to vector<16x64xbf16>
    %c0_44 = arith.constant 0 : index
    %c0_45 = arith.constant 0 : index
    %134 = vector.load %arg6[%c0_44, %c0_45] : memref<64x64xbf16, #tpu.memory_space<vmem>>, vector<64x64xbf16>
    %cst_46 = arith.constant dense<0.000000e+00> : vector<16x64xf32>
    %135 = tpu.matmul %133, %134, %cst_46 {dimension_numbers = #tpu.dot_dimension_numbers<[1], [0], [0], [1], [0, 0, 1, 1], [], []>} : vector<16x64xbf16>, vector<64x64xbf16>, vector<16x64xf32> -> vector<16x64xf32>
    %c0_47 = arith.constant 0 : index
    %c0_48 = arith.constant 0 : index
    %136 = vector.load %arg7[%c0_47, %c0_48] : memref<1x64xf32, #tpu.memory_space<vmem>>, vector<1x64xf32>
    %137 = vector.broadcast %136 : vector<1x64xf32> to vector<16x64xf32>
    %138 = arith.addf %135, %137 : vector<16x64xf32>
    %139 = vector.shape_cast %138 : vector<16x64xf32> to vector<1x16x64xf32>
    %140 = arith.addf %0, %139 : vector<1x16x64xf32>
    %c0_49 = arith.constant 0 : index
    %c0_50 = arith.constant 0 : index
    %c0_51 = arith.constant 0 : index
    %141 = vector.load %arg9[%c0_49, %c0_50, %c0_51] : memref<1x16x64xf32, #tpu.memory_space<vmem>>, vector<1x16x64xf32>
    tpu.vector_store %arg9[%c0_49, %c0_50, %c0_51], %140 {strides = array<i32>} : memref<1x16x64xf32, #tpu.memory_space<vmem>>, vector<1x16x64xf32>,
    return
  }
  func.func @transform_0(%arg0: i32) -> (i32, i32, i32) {
    %c0_i32 = arith.constant 0 : i32
    %c0_i32_0 = arith.constant 0 : i32
    %c0_i32_1 = arith.constant 0 : i32
    return %arg0, %c0_i32, %c0_i32_0 : i32, i32, i32
  }
  func.func @transform_1(%arg0: i32) -> (i32, i32) {
    %c0_i32 = arith.constant 0 : i32
    %c0_i32_0 = arith.constant 0 : i32
    %c0_i32_1 = arith.constant 0 : i32
    return %c0_i32, %c0_i32_0 : i32, i32
  }
  func.func @transform_2(%arg0: i32) -> (i32, i32) {
    %c0_i32 = arith.constant 0 : i32
    %c0_i32_0 = arith.constant 0 : i32
    %c0_i32_1 = arith.constant 0 : i32
    return %c0_i32, %c0_i32_0 : i32, i32
  }
  func.func @transform_3(%arg0: i32) -> (i32, i32) {
    %c0_i32 = arith.constant 0 : i32
    %c0_i32_0 = arith.constant 0 : i32
    %c0_i32_1 = arith.constant 0 : i32
    return %c0_i32, %c0_i32_0 : i32, i32
  }
  func.func @transform_4(%arg0: i32) -> (i32, i32) {
    %c0_i32 = arith.constant 0 : i32
    %c0_i32_0 = arith.constant 0 : i32
    %c0_i32_1 = arith.constant 0 : i32
    return %c0_i32, %c0_i32_0 : i32, i32
  }
  func.func @transform_5(%arg0: i32) -> (i32, i32) {
    %c0_i32 = arith.constant 0 : i32
    %c0_i32_0 = arith.constant 0 : i32
    %c0_i32_1 = arith.constant 0 : i32
    return %c0_i32, %c0_i32_0 : i32, i32
  }
  func.func @transform_6(%arg0: i32) -> (i32, i32) {
    %c0_i32 = arith.constant 0 : i32
    %c0_i32_0 = arith.constant 0 : i32
    %c0_i32_1 = arith.constant 0 : i32
    return %c0_i32, %c0_i32_0 : i32, i32
  }
  func.func @transform_7(%arg0: i32) -> (i32, i32, i32) {
    %c0_i32 = arith.constant 0 : i32
    %c0_i32_0 = arith.constant 0 : i32
    %c0_i32_1 = arith.constant 0 : i32
    %c0_i32_2 = arith.constant 0 : i32
    return %c0_i32, %c0_i32_0, %c0_i32_1 : i32, i32, i32
  }
  func.func @transform_8(%arg0: i32) -> (i32, i32, i32) {
    %c0_i32 = arith.constant 0 : i32
    %c0_i32_0 = arith.constant 0 : i32
    %c0_i32_1 = arith.constant 0 : i32
    return %arg0, %c0_i32, %c0_i32_0 : i32, i32, i32
  }
}

module attributes {stable_mosaic.version = 11 : i64} {
  func.func @_mlp_kernel(%arg0: i32, %arg1: memref<32x64xf32, #tpu.memory_space<vmem>>, %arg2: memref<1x64xf32, #tpu.memory_space<vmem>>, %arg3: memref<1x64xf32, #tpu.memory_space<vmem>>, %arg4: memref<64x256xbf16, #tpu.memory_space<vmem>>, %arg5: memref<1x256xf32, #tpu.memory_space<vmem>>, %arg6: memref<256x64xbf16, #tpu.memory_space<vmem>>, %arg7: memref<1x64xf32, #tpu.memory_space<vmem>>, %arg8: memref<32x64xf32, #tpu.memory_space<vmem>>) attributes {dimension_semantics = [#tpu.dimension_semantics<parallel>], iteration_bounds = array<i64: 1>, scalar_prefetch = 0 : i64, scratch_operands = 0 : i64, tpu.core_type = #tpu.core_type<tc>, window_params = [{transform_indices = @transform_0, window_bounds = array<i64: 32, 64>}, {pipeline_mode = #tpu.pipeline_mode<synchronous>, transform_indices = @transform_1, window_bounds = array<i64: 1, 64>}, {pipeline_mode = #tpu.pipeline_mode<synchronous>, transform_indices = @transform_2, window_bounds = array<i64: 1, 64>}, {pipeline_mode = #tpu.pipeline_mode<synchronous>, transform_indices = @transform_3, window_bounds = array<i64: 64, 256>}, {pipeline_mode = #tpu.pipeline_mode<synchronous>, transform_indices = @transform_4, window_bounds = array<i64: 1, 256>}, {pipeline_mode = #tpu.pipeline_mode<synchronous>, transform_indices = @transform_5, window_bounds = array<i64: 256, 64>}, {pipeline_mode = #tpu.pipeline_mode<synchronous>, transform_indices = @transform_6, window_bounds = array<i64: 1, 64>}, {transform_indices = @transform_7, window_bounds = array<i64: 32, 64>}]} {
    %c0 = arith.constant 0 : index
    %c0_0 = arith.constant 0 : index
    %0 = vector.load %arg1[%c0, %c0_0] : memref<32x64xf32, #tpu.memory_space<vmem>>, vector<32x64xf32>
    %c0_1 = arith.constant 0 : index
    %c0_2 = arith.constant 0 : index
    %1 = vector.load %arg2[%c0_1, %c0_2] : memref<1x64xf32, #tpu.memory_space<vmem>>, vector<1x64xf32>
    %c0_3 = arith.constant 0 : index
    %c0_4 = arith.constant 0 : index
    %2 = vector.load %arg3[%c0_3, %c0_4] : memref<1x64xf32, #tpu.memory_space<vmem>>, vector<1x64xf32>
    %cst = arith.constant dense<0.000000e+00> : vector<32xf32>
    %3 = vector.multi_reduction <add>, %0, %cst [1] : vector<32x64xf32> to vector<32xf32>
    %4 = vector.shape_cast %3 : vector<32xf32> to vector<32x1xf32>
    %cst_5 = arith.constant 6.400000e+01 : f32
    %5 = vector.broadcast %cst_5 : f32 to vector<32x1xf32>
    %6 = arith.divf %4, %5 : vector<32x1xf32>
    %7 = vector.broadcast %6 : vector<32x1xf32> to vector<32x64xf32>
    %8 = arith.subf %0, %7 : vector<32x64xf32>
    %9 = arith.mulf %8, %8 : vector<32x64xf32>
    %cst_6 = arith.constant dense<0.000000e+00> : vector<32xf32>
    %10 = vector.multi_reduction <add>, %9, %cst_6 [1] : vector<32x64xf32> to vector<32xf32>
    %11 = vector.shape_cast %10 : vector<32xf32> to vector<32x1xf32>
    %cst_7 = arith.constant 6.400000e+01 : f32
    %12 = vector.broadcast %cst_7 : f32 to vector<32x1xf32>
    %13 = arith.divf %11, %12 : vector<32x1xf32>
    %cst_8 = arith.constant 9.99999974E-6 : f32
    %14 = vector.broadcast %cst_8 : f32 to vector<32x1xf32>
    %15 = arith.addf %13, %14 : vector<32x1xf32>
    %16 = math.rsqrt %15 : vector<32x1xf32>
    %17 = vector.broadcast %16 : vector<32x1xf32> to vector<32x64xf32>
    %18 = arith.mulf %8, %17 : vector<32x64xf32>
    %19 = vector.broadcast %1 : vector<1x64xf32> to vector<32x64xf32>
    %20 = arith.mulf %18, %19 : vector<32x64xf32>
    %21 = vector.broadcast %2 : vector<1x64xf32> to vector<32x64xf32>
    %22 = arith.addf %20, %21 : vector<32x64xf32>
    %23 = arith.truncf %22 : vector<32x64xf32> to vector<32x64xbf16>
    %c0_9 = arith.constant 0 : index
    %c0_10 = arith.constant 0 : index
    %24 = vector.load %arg4[%c0_9, %c0_10] : memref<64x256xbf16, #tpu.memory_space<vmem>>, vector<64x256xbf16>
    %cst_11 = arith.constant dense<0.000000e+00> : vector<32x256xf32>
    %25 = tpu.matmul %23, %24, %cst_11 {dimension_numbers = #tpu.dot_dimension_numbers<[1], [0], [0], [1], [0, 0, 1, 1], [], []>} : vector<32x64xbf16>, vector<64x256xbf16>, vector<32x256xf32> -> vector<32x256xf32>
    %c0_12 = arith.constant 0 : index
    %c0_13 = arith.constant 0 : index
    %26 = vector.load %arg5[%c0_12, %c0_13] : memref<1x256xf32, #tpu.memory_space<vmem>>, vector<1x256xf32>
    %27 = vector.broadcast %26 : vector<1x256xf32> to vector<32x256xf32>
    %28 = arith.addf %25, %27 : vector<32x256xf32>
    %cst_14 = arith.constant 0.707106769 : f32
    %29 = vector.broadcast %cst_14 : f32 to vector<32x256xf32>
    %30 = arith.mulf %28, %29 : vector<32x256xf32>
    %31 = math.absf %30 : vector<32x256xf32>
    %cst_15 = arith.constant 0.327591091 : f32
    %32 = vector.broadcast %cst_15 : f32 to vector<32x256xf32>
    %33 = arith.mulf %32, %31 : vector<32x256xf32>
    %cst_16 = arith.constant 1.000000e+00 : f32
    %34 = vector.broadcast %cst_16 : f32 to vector<32x256xf32>
    %35 = arith.addf %34, %33 : vector<32x256xf32>
    %cst_17 = arith.constant 1.000000e+00 : f32
    %36 = vector.broadcast %cst_17 : f32 to vector<32x256xf32>
    %37 = arith.divf %36, %35 : vector<32x256xf32>
    %cst_18 = arith.constant 1.06140542 : f32
    %38 = vector.broadcast %cst_18 : f32 to vector<32x256xf32>
    %39 = arith.mulf %38, %37 : vector<32x256xf32>
    %cst_19 = arith.constant -1.45315206 : f32
    %40 = vector.broadcast %cst_19 : f32 to vector<32x256xf32>
    %41 = arith.addf %39, %40 : vector<32x256xf32>
    %42 = arith.mulf %41, %37 : vector<32x256xf32>
    %cst_20 = arith.constant 1.42141378 : f32
    %43 = vector.broadcast %cst_20 : f32 to vector<32x256xf32>
    %44 = arith.addf %42, %43 : vector<32x256xf32>
    %45 = arith.mulf %44, %37 : vector<32x256xf32>
    %cst_21 = arith.constant -0.284496725 : f32
    %46 = vector.broadcast %cst_21 : f32 to vector<32x256xf32>
    %47 = arith.addf %45, %46 : vector<32x256xf32>
    %48 = arith.mulf %47, %37 : vector<32x256xf32>
    %cst_22 = arith.constant 0.254829586 : f32
    %49 = vector.broadcast %cst_22 : f32 to vector<32x256xf32>
    %50 = arith.addf %48, %49 : vector<32x256xf32>
    %51 = arith.mulf %50, %37 : vector<32x256xf32>
    %cst_23 = arith.constant 0.000000e+00 : f32
    %52 = vector.broadcast %cst_23 : f32 to vector<32x256xf32>
    %53 = arith.subf %52, %31 : vector<32x256xf32>
    %54 = arith.mulf %53, %31 : vector<32x256xf32>
    %55 = math.exp %54 : vector<32x256xf32>
    %56 = arith.mulf %51, %55 : vector<32x256xf32>
    %cst_24 = arith.constant 1.000000e+00 : f32
    %57 = vector.broadcast %cst_24 : f32 to vector<32x256xf32>
    %58 = arith.subf %57, %56 : vector<32x256xf32>
    %cst_25 = arith.constant 0.000000e+00 : f32
    %59 = vector.broadcast %cst_25 : f32 to vector<32x256xf32>
    %60 = arith.cmpf oge, %30, %59 : vector<32x256xf32>
    %cst_26 = arith.constant 0.000000e+00 : f32
    %61 = vector.broadcast %cst_26 : f32 to vector<32x256xf32>
    %62 = arith.subf %61, %58 : vector<32x256xf32>
    %63 = arith.select %60, %58, %62 : vector<32x256xi1>, vector<32x256xf32>
    %cst_27 = arith.constant 5.000000e-01 : f32
    %64 = vector.broadcast %cst_27 : f32 to vector<32x256xf32>
    %65 = arith.mulf %64, %28 : vector<32x256xf32>
    %cst_28 = arith.constant 1.000000e+00 : f32
    %66 = vector.broadcast %cst_28 : f32 to vector<32x256xf32>
    %67 = arith.addf %66, %63 : vector<32x256xf32>
    %68 = arith.mulf %65, %67 : vector<32x256xf32>
    %69 = arith.truncf %68 : vector<32x256xf32> to vector<32x256xbf16>
    %c0_29 = arith.constant 0 : index
    %c0_30 = arith.constant 0 : index
    %70 = vector.load %arg6[%c0_29, %c0_30] : memref<256x64xbf16, #tpu.memory_space<vmem>>, vector<256x64xbf16>
    %cst_31 = arith.constant dense<0.000000e+00> : vector<32x64xf32>
    %71 = tpu.matmul %69, %70, %cst_31 {dimension_numbers = #tpu.dot_dimension_numbers<[1], [0], [0], [1], [0, 0, 1, 1], [], []>} : vector<32x256xbf16>, vector<256x64xbf16>, vector<32x64xf32> -> vector<32x64xf32>
    %c0_32 = arith.constant 0 : index
    %c0_33 = arith.constant 0 : index
    %72 = vector.load %arg7[%c0_32, %c0_33] : memref<1x64xf32, #tpu.memory_space<vmem>>, vector<1x64xf32>
    %73 = vector.broadcast %72 : vector<1x64xf32> to vector<32x64xf32>
    %74 = arith.addf %71, %73 : vector<32x64xf32>
    %75 = arith.addf %0, %74 : vector<32x64xf32>
    %c0_34 = arith.constant 0 : index
    %c0_35 = arith.constant 0 : index
    %76 = vector.load %arg8[%c0_34, %c0_35] : memref<32x64xf32, #tpu.memory_space<vmem>>, vector<32x64xf32>
    tpu.vector_store %arg8[%c0_34, %c0_35], %75 {strides = array<i32>} : memref<32x64xf32, #tpu.memory_space<vmem>>, vector<32x64xf32>,
    return
  }
  func.func @transform_0(%arg0: i32) -> (i32, i32) {
    %c0_i32 = arith.constant 0 : i32
    %c0_i32_0 = arith.constant 0 : i32
    return %arg0, %c0_i32 : i32, i32
  }
  func.func @transform_1(%arg0: i32) -> (i32, i32) {
    %c0_i32 = arith.constant 0 : i32
    %c0_i32_0 = arith.constant 0 : i32
    %c0_i32_1 = arith.constant 0 : i32
    return %c0_i32, %c0_i32_0 : i32, i32
  }
  func.func @transform_2(%arg0: i32) -> (i32, i32) {
    %c0_i32 = arith.constant 0 : i32
    %c0_i32_0 = arith.constant 0 : i32
    %c0_i32_1 = arith.constant 0 : i32
    return %c0_i32, %c0_i32_0 : i32, i32
  }
  func.func @transform_3(%arg0: i32) -> (i32, i32) {
    %c0_i32 = arith.constant 0 : i32
    %c0_i32_0 = arith.constant 0 : i32
    %c0_i32_1 = arith.constant 0 : i32
    return %c0_i32, %c0_i32_0 : i32, i32
  }
  func.func @transform_4(%arg0: i32) -> (i32, i32) {
    %c0_i32 = arith.constant 0 : i32
    %c0_i32_0 = arith.constant 0 : i32
    %c0_i32_1 = arith.constant 0 : i32
    return %c0_i32, %c0_i32_0 : i32, i32
  }
  func.func @transform_5(%arg0: i32) -> (i32, i32) {
    %c0_i32 = arith.constant 0 : i32
    %c0_i32_0 = arith.constant 0 : i32
    %c0_i32_1 = arith.constant 0 : i32
    return %c0_i32, %c0_i32_0 : i32, i32
  }
  func.func @transform_6(%arg0: i32) -> (i32, i32) {
    %c0_i32 = arith.constant 0 : i32
    %c0_i32_0 = arith.constant 0 : i32
    %c0_i32_1 = arith.constant 0 : i32
    return %c0_i32, %c0_i32_0 : i32, i32
  }
  func.func @transform_7(%arg0: i32) -> (i32, i32) {
    %c0_i32 = arith.constant 0 : i32
    %c0_i32_0 = arith.constant 0 : i32
    return %arg0, %c0_i32 : i32, i32
  }
}

module attributes {stable_mosaic.version = 11 : i64} {
  func.func @_head_kernel(%arg0: i32, %arg1: memref<2x16x64xf32, #tpu.memory_space<vmem>>, %arg2: memref<1x64xf32, #tpu.memory_space<vmem>>, %arg3: memref<1x64xf32, #tpu.memory_space<vmem>>, %arg4: memref<64x8xf32, #tpu.memory_space<vmem>>, %arg5: memref<1x8xf32, #tpu.memory_space<vmem>>, %arg6: memref<2x8xf32, #tpu.memory_space<vmem>>) attributes {dimension_semantics = [#tpu.dimension_semantics<arbitrary>], iteration_bounds = array<i64: 1>, scalar_prefetch = 0 : i64, scratch_operands = 0 : i64, tpu.core_type = #tpu.core_type<tc>, window_params = [{pipeline_mode = #tpu.pipeline_mode<synchronous>, transform_indices = @transform_0, window_bounds = array<i64: 2, 16, 64>}, {pipeline_mode = #tpu.pipeline_mode<synchronous>, transform_indices = @transform_1, window_bounds = array<i64: 1, 64>}, {pipeline_mode = #tpu.pipeline_mode<synchronous>, transform_indices = @transform_2, window_bounds = array<i64: 1, 64>}, {pipeline_mode = #tpu.pipeline_mode<synchronous>, transform_indices = @transform_3, window_bounds = array<i64: 64, 8>}, {pipeline_mode = #tpu.pipeline_mode<synchronous>, transform_indices = @transform_4, window_bounds = array<i64: 1, 8>}, {pipeline_mode = #tpu.pipeline_mode<synchronous>, transform_indices = @transform_5, window_bounds = array<i64: 2, 8>}]} {
    %c0 = arith.constant 0 : index
    %c0_0 = arith.constant 0 : index
    %c0_1 = arith.constant 0 : index
    %0 = vector.load %arg1[%c0, %c0_0, %c0_1] : memref<2x16x64xf32, #tpu.memory_space<vmem>>, vector<2x16x64xf32>
    %c0_2 = arith.constant 0 : index
    %c0_3 = arith.constant 0 : index
    %1 = vector.load %arg2[%c0_2, %c0_3] : memref<1x64xf32, #tpu.memory_space<vmem>>, vector<1x64xf32>
    %c0_4 = arith.constant 0 : index
    %c0_5 = arith.constant 0 : index
    %2 = vector.load %arg3[%c0_4, %c0_5] : memref<1x64xf32, #tpu.memory_space<vmem>>, vector<1x64xf32>
    %cst = arith.constant dense<0.000000e+00> : vector<2x16xf32>
    %3 = vector.multi_reduction <add>, %0, %cst [2] : vector<2x16x64xf32> to vector<2x16xf32>
    %4 = vector.shape_cast %3 : vector<2x16xf32> to vector<2x16x1xf32>
    %cst_6 = arith.constant 6.400000e+01 : f32
    %5 = vector.broadcast %cst_6 : f32 to vector<2x16x1xf32>
    %6 = arith.divf %4, %5 : vector<2x16x1xf32>
    %7 = vector.broadcast %6 : vector<2x16x1xf32> to vector<2x16x64xf32>
    %8 = arith.subf %0, %7 : vector<2x16x64xf32>
    %9 = arith.mulf %8, %8 : vector<2x16x64xf32>
    %cst_7 = arith.constant dense<0.000000e+00> : vector<2x16xf32>
    %10 = vector.multi_reduction <add>, %9, %cst_7 [2] : vector<2x16x64xf32> to vector<2x16xf32>
    %11 = vector.shape_cast %10 : vector<2x16xf32> to vector<2x16x1xf32>
    %cst_8 = arith.constant 6.400000e+01 : f32
    %12 = vector.broadcast %cst_8 : f32 to vector<2x16x1xf32>
    %13 = arith.divf %11, %12 : vector<2x16x1xf32>
    %cst_9 = arith.constant 9.99999974E-6 : f32
    %14 = vector.broadcast %cst_9 : f32 to vector<2x16x1xf32>
    %15 = arith.addf %13, %14 : vector<2x16x1xf32>
    %16 = math.rsqrt %15 : vector<2x16x1xf32>
    %17 = vector.broadcast %16 : vector<2x16x1xf32> to vector<2x16x64xf32>
    %18 = arith.mulf %8, %17 : vector<2x16x64xf32>
    %19 = vector.shape_cast %1 : vector<1x64xf32> to vector<1x1x64xf32>
    %20 = vector.broadcast %19 : vector<1x1x64xf32> to vector<2x16x64xf32>
    %21 = arith.mulf %18, %20 : vector<2x16x64xf32>
    %22 = vector.shape_cast %2 : vector<1x64xf32> to vector<1x1x64xf32>
    %23 = vector.broadcast %22 : vector<1x1x64xf32> to vector<2x16x64xf32>
    %24 = arith.addf %21, %23 : vector<2x16x64xf32>
    %cst_10 = arith.constant dense<0.000000e+00> : vector<2x64xf32>
    %25 = vector.multi_reduction <add>, %24, %cst_10 [1] : vector<2x16x64xf32> to vector<2x64xf32>
    %cst_11 = arith.constant 1.600000e+01 : f32
    %26 = vector.broadcast %cst_11 : f32 to vector<2x64xf32>
    %27 = arith.divf %25, %26 : vector<2x64xf32>
    %c0_12 = arith.constant 0 : index
    %c0_13 = arith.constant 0 : index
    %28 = vector.load %arg4[%c0_12, %c0_13] : memref<64x8xf32, #tpu.memory_space<vmem>>, vector<64x8xf32>
    %cst_14 = arith.constant dense<0.000000e+00> : vector<2x8xf32>
    %29 = tpu.matmul %27, %28, %cst_14 {dimension_numbers = #tpu.dot_dimension_numbers<[1], [0], [0], [1], [0, 0, 1, 1], [], []>} : vector<2x64xf32>, vector<64x8xf32>, vector<2x8xf32> -> vector<2x8xf32>
    %c0_15 = arith.constant 0 : index
    %c0_16 = arith.constant 0 : index
    %30 = vector.load %arg5[%c0_15, %c0_16] : memref<1x8xf32, #tpu.memory_space<vmem>>, vector<1x8xf32>
    %31 = vector.broadcast %30 : vector<1x8xf32> to vector<2x8xf32>
    %32 = arith.addf %29, %31 : vector<2x8xf32>
    %c0_17 = arith.constant 0 : index
    %c0_18 = arith.constant 0 : index
    %33 = vector.load %arg6[%c0_17, %c0_18] : memref<2x8xf32, #tpu.memory_space<vmem>>, vector<2x8xf32>
    tpu.vector_store %arg6[%c0_17, %c0_18], %32 {strides = array<i32>} : memref<2x8xf32, #tpu.memory_space<vmem>>, vector<2x8xf32>,
    return
  }
  func.func @transform_0(%arg0: i32) -> (i32, i32, i32) {
    %c0_i32 = arith.constant 0 : i32
    %c0_i32_0 = arith.constant 0 : i32
    %c0_i32_1 = arith.constant 0 : i32
    %c0_i32_2 = arith.constant 0 : i32
    return %c0_i32, %c0_i32_0, %c0_i32_1 : i32, i32, i32
  }
  func.func @transform_1(%arg0: i32) -> (i32, i32) {
    %c0_i32 = arith.constant 0 : i32
    %c0_i32_0 = arith.constant 0 : i32
    %c0_i32_1 = arith.constant 0 : i32
    return %c0_i32, %c0_i32_0 : i32, i32
  }
  func.func @transform_2(%arg0: i32) -> (i32, i32) {
    %c0_i32 = arith.constant 0 : i32
    %c0_i32_0 = arith.constant 0 : i32
    %c0_i32_1 = arith.constant 0 : i32
    return %c0_i32, %c0_i32_0 : i32, i32
  }
  func.func @transform_3(%arg0: i32) -> (i32, i32) {
    %c0_i32 = arith.constant 0 : i32
    %c0_i32_0 = arith.constant 0 : i32
    %c0_i32_1 = arith.constant 0 : i32
    return %c0_i32, %c0_i32_0 : i32, i32
  }
  func.func @transform_4(%arg0: i32) -> (i32, i32) {
    %c0_i32 = arith.constant 0 : i32
    %c0_i32_0 = arith.constant 0 : i32
    %c0_i32_1 = arith.constant 0 : i32
    return %c0_i32, %c0_i32_0 : i32, i32
  }
  func.func @transform_5(%arg0: i32) -> (i32, i32) {
    %c0_i32 = arith.constant 0 : i32
    %c0_i32_0 = arith.constant 0 : i32
    %c0_i32_1 = arith.constant 0 : i32
    return %c0_i32, %c0_i32_0 : i32, i32
  }
}

</mosaic_0001>

<bundles_post_ra>
// kernel: swin_forward.11
= control target key start
LH: loop header
LB: loop body
LE: loop exit
PB: predicated region body
PF: predicated region fallthrough
CT: control target
= control target key end

     0   :  { %vm105_vm0 = vcmask 392192   ;;  %vm181_vm1 = vcmask 261120   ;;  %v709_v60 = vmov 32.0   ;;  %s1208_s1 = inlined_call_operand.vmem [shape: bf16[48,32], index: 1, kind: input, shape index: {}]   ;;  %s1209_s2 = inlined_call_operand.vmem [shape: f32[1,32], index: 2, kind: input, shape index: {}]   ;;  %s1210_s0 = inlined_call_operand.vmem [shape: bf16[128,48], index: 0, kind: input, shape index: {}]   ;;  %s1211_s3 = inlined_call_operand.vmem [shape: f32[1,32], index: 3, kind: input, shape index: {}]   ;;  %s1212_s4 = inlined_call_operand.vmem [shape: f32[1,32], index: 4, kind: input, shape index: {}]   ;;  %s1213_s5 = inlined_call_operand.vmem [shape: f32[128,32], index: 5, kind: output, shape index: {}]  }
   0x1   :  { %v661_v0 = vld [vmem:[%s1208_s1 + $0x10] sm:$0xff]  ;;  %v660_v1 = vld [vmem:[%s1208_s1 + $0x8] sm:$0xff]  ;;  %v659_v2 = vld [vmem:[%s1208_s1] sm:$0xff]  ;;  %675 = vrcp.f32 %v709_v60 }
   0x2   :  { %135 = vmatpush.bf16.msra.mxu0 %v661_v0  ;;  %662 = vmatpush.bf16.msra.mxu1 %v661_v0  ;;  %v651_v3 = vld [vmem:[%s1210_s0] sm:$0xff]  ;;  %v653_v4 = vld [vmem:[%s1210_s0 + $0x10] sm:$0xff]  ;;  %v652_v7 = vld [vmem:[%s1210_s0 + $0x8] sm:$0xff] }
   0x3   :  { %663 = vmatpush.bf16.msra.mxu2 %v661_v0  ;;  %664 = vmatpush.bf16.msra.mxu3 %v661_v0  ;;  %v655_v5 = vld [vmem:[%s1210_s0 + $0x20] sm:$0xff]  ;;  %v657_v6 = vld [vmem:[%s1210_s0 + $0x30] sm:$0xff]  ;;  %v654_v8 = vld [vmem:[%s1210_s0 + $0x18] sm:$0xff] }
   0x4   :  { %v656_v9 = vld [vmem:[%s1210_s0 + $0x28] sm:$0xff]  ;;  %v658_v10 = vld [vmem:[%s1210_s0 + $0x38] sm:$0xff]  ;;  %v784_v11 = vld [vmem:[%s1209_s2] ss:$0 sm:$0xff] }
   0x6   :  { %136 = vmatpush.bf16.msra.mxu0 %v660_v1  ;;  %665 = vmatpush.bf16.msra.mxu1 %v660_v1 }
   0x7   :  { %666 = vmatpush.bf16.msra.mxu2 %v660_v1  ;;  %667 = vmatpush.bf16.msra.mxu3 %v660_v1  ;;  %v676_v61 = vpop.eup %675 }
   0x8   :  { %v231_v62 = vmul.f32 32.0, %v676_v61  ;;  %vm235_vm2 = vweird.f32 %v676_v61 }
   0xa   :  { %137 = vmatpush.bf16.msra.mxu0 %v659_v2  ;;  %668 = vmatpush.bf16.msra.mxu1 %v659_v2  ;;  %v232_v63 = vsub.f32 1.0, %v231_v62 }
   0xb   :  { %669 = vmatpush.bf16.msra.mxu2 %v659_v2  ;;  %670 = vmatpush.bf16.msra.mxu3 %v659_v2 }
   0xc   :  { %v233_v0 = vmul.f32 %v676_v61, %v232_v63 }
   0xd   :  { %643 = vmatmul.msk.bf16.vlgmr.msra.gmra.mxu0 %vm105_vm0, %v651_v3  ;;  %645 = vmatmul.msk.bf16.vlgmr.msra.gmra.mxu1 %vm105_vm0, %v653_v4 }
   0xe   :  { %647 = vmatmul.msk.bf16.vlgmr.msra.gmra.mxu2 %vm105_vm0, %v655_v5  ;;  %649 = vmatmul.msk.bf16.vlgmr.msra.gmra.mxu3 %vm105_vm0, %v657_v6  ;;  %v234_v1 = vadd.f32 %v676_v61, %v233_v0 }
  0x10   :  { %v866_v2 = vsel %vm235_vm2, %v676_v61, %v234_v1 }
  0x1d   :  { %644 = vmatmul.msk.bf16.gmra.mxu0 %vm105_vm0, %v652_v7  ;;  %646 = vmatmul.msk.bf16.gmra.mxu1 %vm105_vm0, %v654_v8 }
  0x1e   :  { %648 = vmatmul.msk.bf16.gmra.mxu2 %vm105_vm0, %v656_v9  ;;  %650 = vmatmul.msk.bf16.gmra.mxu3 %vm105_vm0, %v658_v10 }
  0x8a   :  { %v139_v12 = vpop.f32.mrf.mxu0  ;;  %v149_v13 = vpop.f32.mrf.mxu1 }
  0x8b   :  { %v787_v14 = vadd.f32 %v784_v11, %v139_v12  ;;  %v790_v15 = vadd.f32 %v784_v11, %v149_v13 }
  0x8d   :  { %v194_v16 = vsel %vm181_vm1, %v790_v15, 0.0  ;;  %v182_v17 = vsel %vm181_vm1, %v787_v14, 0.0 }
  0x8e   :  { %195 = vadd.xlane.f32.xlu2 %v194_v16  ;;  %183 = vadd.xlane.f32.xlu0 %v182_v17 }
  0x91   :  { %v159_v18 = vpop.f32.mrf.mxu2  ;;  %v169_v19 = vpop.f32.mrf.mxu3 }
  0x92   :  { %v797_v20 = vadd.f32 %v784_v11, %v159_v18  ;;  %v800_v21 = vadd.f32 %v784_v11, %v169_v19  ;;  %v141_v22 = vpop.f32.mrf.mxu0  ;;  %v151_v25 = vpop.f32.mrf.mxu1 }
  0x93   :  { %v807_v26 = vadd.f32 %v784_v11, %v141_v22  ;;  %v810_v27 = vadd.f32 %v784_v11, %v151_v25 }
  0x94   :  { %v206_v23 = vsel %vm181_vm1, %v797_v20, 0.0  ;;  %v218_v24 = vsel %vm181_vm1, %v800_v21, 0.0 }
  0x95   :  { %v197_v33 = vsel %vm181_vm1, %v810_v27, 0.0  ;;  %v185_v34 = vsel %vm181_vm1, %v807_v26, 0.0 }
  0x96   :  { %207 = vadd.xlane.f32.xlu2 %v206_v23  ;;  %219 = vadd.xlane.f32.xlu0 %v218_v24 }
  0x99   :  { %v161_v28 = vpop.f32.mrf.mxu2  ;;  %v171_v29 = vpop.f32.mrf.mxu3 }
  0x9a   :  { %v813_v30 = vadd.f32 %v784_v11, %v171_v29  ;;  %v144_v32 = vpop.f32.mrf.mxu0  ;;  %v825_v36 = vadd.f32 %v784_v11, %v161_v28  ;;  %v154_v42 = vpop.f32.mrf.mxu1 }
  0x9b   :  { %v822_v35 = vadd.f32 %v784_v11, %v144_v32  ;;  %v835_v43 = vadd.f32 %v784_v11, %v154_v42 }
  0x9c   :  { %v221_v31 = vsel %vm181_vm1, %v813_v30, 0.0  ;;  %v209_v40 = vsel %vm181_vm1, %v825_v36, 0.0 }
  0x9d   :  { %222 = vadd.xlane.f32.xlu1 %v221_v31  ;;  %v188_v38 = vsel %vm181_vm1, %v822_v35, 0.0  ;;  %v200_v47 = vsel %vm181_vm1, %v835_v43, 0.0 }
  0x9e   :  { %198 = vadd.xlane.f32.xlu2 %v197_v33  ;;  %186 = vadd.xlane.f32.xlu0 %v185_v34 }
  0xa1   :  { %v164_v37 = vpop.f32.mrf.mxu2  ;;  %v174_v39 = vpop.f32.mrf.mxu3 }
  0xa2   :  { %v832_v41 = vadd.f32 %v784_v11, %v164_v37  ;;  %v146_v50 = vpop.f32.mrf.mxu0  ;;  %v847_v51 = vadd.f32 %v784_v11, %v174_v39  ;;  %v156_v57 = vpop.f32.mrf.mxu1 }
  0xa3   :  { %v853_v53 = vadd.f32 %v784_v11, %v146_v50  ;;  %v862_v58 = vadd.f32 %v784_v11, %v156_v57 }
  0xa4   :  { %v212_v46 = vsel %vm181_vm1, %v832_v41, 0.0  ;;  %v224_v54 = vsel %vm181_vm1, %v847_v51, 0.0 }
  0xa5   :  { %189 = vadd.xlane.f32.xlu1 %v188_v38  ;;  %v191_v56 = vsel %vm181_vm1, %v853_v53, 0.0  ;;  %v203_v59 = vsel %vm181_vm1, %v862_v58, 0.0 }
  0xa6   :  { %210 = vadd.xlane.f32.xlu0 %v209_v40 }
  0xa9   :  { %v166_v44 = vpop.f32.mrf.mxu2  ;;  %v176_v49 = vpop.f32.mrf.mxu3 }
  0xaa   :  { %v838_v45 = vadd.f32 %v784_v11, %v166_v44  ;;  %v850_v52 = vadd.f32 %v784_v11, %v176_v49 }
  0xac   :  { %v215_v48 = vsel %vm181_vm1, %v838_v45, 0.0  ;;  %v227_v55 = vsel %vm181_vm1, %v850_v52, 0.0 }
  0xad   :  { %216 = vadd.xlane.f32.xlu2 %v215_v48  ;;  %213 = vadd.xlane.f32.xlu1 %v212_v46 }
  0xae   :  { %201 = vadd.xlane.f32.xlu0 %v200_v47 }
  0xb5   :  { %225 = vadd.xlane.f32.xlu2 %v224_v54  ;;  %192 = vadd.xlane.f32.xlu1 %v191_v56 }
  0xb6   :  { %228 = vadd.xlane.f32.xlu0 %v227_v55 }
  0xbd   :  { %204 = vadd.xlane.f32.xlu1 %v203_v59 }
 0x101   :  { %v196_v3 = vpop.xlane.xlu2 %195  ;;  %v184_v4 = vpop.xlane.xlu0 %183 }
 0x102   :  { %v241_v5 = vmul.f32 %v866_v2, %v196_v3  ;;  %v237_v6 = vmul.f32 %v866_v2, %v184_v4 }
 0x104   :  { %v871_v7 = vsub.f32 %v790_v15, %v241_v5  ;;  %v874_v8 = vsub.f32 %v787_v14, %v237_v6 }
 0x106   :  { %v273_v9 = vmul.f32 %v871_v7, %v871_v7  ;;  %v269_v10 = vmul.f32 %v874_v8, %v874_v8 }
 0x108   :  { %v297_v11 = vsel %vm181_vm1, %v273_v9, 0.0  ;;  %v285_v12 = vsel %vm181_vm1, %v269_v10, 0.0 }
 0x109   :  { %298 = vadd.xlane.f32.xlu2 %v297_v11  ;;  %v208_v13 = vpop.xlane.xlu2 %207  ;;  %286 = vadd.xlane.f32.xlu1 %v285_v12  ;;  %v220_v16 = vpop.xlane.xlu0 %219 }
 0x10a   :  { %v245_v15 = vmul.f32 %v866_v2, %v208_v13  ;;  %v249_v17 = vmul.f32 %v866_v2, %v220_v16 }
 0x10c   :  { %v885_v14 = vsub.f32 %v797_v20, %v245_v15  ;;  %v888_v18 = vsub.f32 %v800_v21, %v249_v17 }
 0x10e   :  { %v277_v19 = vmul.f32 %v885_v14, %v885_v14  ;;  %v281_v22 = vmul.f32 %v888_v18, %v888_v18 }
 0x110   :  { %v894_v23 = vpop.xlane.xlu1 %222  ;;  %v309_v24 = vsel %vm181_vm1, %v277_v19, 0.0  ;;  %v321_v25 = vsel %vm181_vm1, %v281_v22, 0.0 }
 0x111   :  { %v199_v28 = vpop.xlane.xlu2 %198  ;;  %310 = vadd.xlane.f32.xlu0 %v309_v24  ;;  %322 = vadd.xlane.f32.xlu1 %v321_v25  ;;  %v187_v20 = vpop.xlane.xlu0 %186 }
 0x112   :  { %v242_v29 = vmul.f32 %v866_v2, %v199_v28  ;;  %v238_v21 = vmul.f32 %v866_v2, %v187_v20 }
 0x114   :  { %v901_v31 = vsub.f32 %v810_v27, %v242_v29  ;;  %v904_v32 = vsub.f32 %v807_v26, %v238_v21 }
 0x116   :  { %v274_v33 = vmul.f32 %v901_v31, %v901_v31  ;;  %v270_v34 = vmul.f32 %v904_v32, %v904_v32 }
 0x118   :  { %v190_v37 = vpop.xlane.xlu1 %189  ;;  %v300_v38 = vsel %vm181_vm1, %v274_v33, 0.0  ;;  %v288_v39 = vsel %vm181_vm1, %v270_v34, 0.0 }
 0x119   :  { %v239_v40 = vmul.f32 %v866_v2, %v190_v37  ;;  %301 = vadd.xlane.f32.xlu0 %v300_v38  ;;  %289 = vadd.xlane.f32.xlu2 %v288_v39  ;;  %v211_v27 = vpop.xlane.xlu0 %210 }
 0x11a   :  { %v246_v42 = vmul.f32 %v866_v2, %v211_v27 }
 0x11b   :  { %v915_v26 = vsub.f32 %v822_v35, %v239_v40 }
 0x11c   :  { %v918_v44 = vsub.f32 %v825_v36, %v246_v42 }
 0x11d   :  { %v271_v46 = vmul.f32 %v915_v26, %v915_v26 }
 0x11e   :  { %v278_v47 = vmul.f32 %v918_v44, %v918_v44 }
 0x11f   :  { %v291_v50 = vsel %vm181_vm1, %v271_v46, 0.0 }
 0x120   :  { %v217_v48 = vpop.xlane.xlu2 %216  ;;  %v214_v49 = vpop.xlane.xlu1 %213  ;;  %v312_v54 = vsel %vm181_vm1, %v278_v47, 0.0 }
 0x121   :  { %v248_v55 = vmul.f32 %v866_v2, %v217_v48  ;;  %v247_v35 = vmul.f32 %v866_v2, %v214_v49  ;;  %292 = vadd.xlane.f32.xlu0 %v291_v50  ;;  %313 = vadd.xlane.f32.xlu1 %v312_v54  ;;  %v202_v36 = vpop.xlane.xlu0 %201 }
 0x122   :  { %v243_v56 = vmul.f32 %v866_v2, %v202_v36 }
 0x123   :  { %v930_v57 = vsub.f32 %v838_v45, %v248_v55  ;;  %v933_v59 = vsub.f32 %v832_v41, %v247_v35 }
 0x124   :  { %v936_v60 = vsub.f32 %v835_v43, %v243_v56 }
 0x125   :  { %v279_v61 = vmul.f32 %v933_v59, %v933_v59  ;;  %v280_v62 = vmul.f32 %v930_v57, %v930_v57 }
 0x126   :  { %v275_v63 = vmul.f32 %v936_v60, %v936_v60 }
 0x127   :  { %v315_v0 = vsel %vm181_vm1, %v279_v61, 0.0  ;;  %v318_v41 = vsel %vm181_vm1, %v280_v62, 0.0 }
 0x128   :  { %v226_v1 = vpop.xlane.xlu2 %225  ;;  %v193_v45 = vpop.xlane.xlu1 %192  ;;  %316 = vadd.xlane.f32.xlu2 %v315_v0  ;;  %v303_v3 = vsel %vm181_vm1, %v275_v63, 0.0 }
 0x129   :  { %v251_v43 = vmul.f32 %v866_v2, %v226_v1  ;;  %v240_v4 = vmul.f32 %v866_v2, %v193_v45  ;;  %319 = vadd.xlane.f32.xlu0 %v318_v41  ;;  %304 = vadd.xlane.f32.xlu1 %v303_v3  ;;  %v229_v5 = vpop.xlane.xlu0 %228 }
 0x12a   :  { %v252_v10 = vmul.f32 %v866_v2, %v229_v5  ;;  %v1003_v5 = vld [vmem:[%s1211_s3] ss:$0 sm:$0xff] }
 0x12b   :  { %v950_v6 = vsub.f32 %v847_v51, %v251_v43  ;;  %v953_v9 = vsub.f32 %v853_v53, %v240_v4  ;;  %v250_v53 = vmul.f32 %v866_v2, %v894_v23 }
 0x12c   :  { %v961_v13 = vsub.f32 %v850_v52, %v252_v10 }
 0x12d   :  { %v283_v11 = vmul.f32 %v950_v6, %v950_v6  ;;  %v272_v12 = vmul.f32 %v953_v9, %v953_v9  ;;  %v976_v24 = vsub.f32 %v813_v30, %v250_v53 }
 0x12e   :  { %v284_v22 = vmul.f32 %v961_v13, %v961_v13 }
 0x12f   :  { %v327_v15 = vsel %vm181_vm1, %v283_v11, 0.0  ;;  %v294_v51 = vsel %vm181_vm1, %v272_v12, 0.0  ;;  %v282_v23 = vmul.f32 %v976_v24, %v976_v24 }
 0x130   :  { %v205_v16 = vpop.xlane.xlu1 %204  ;;  %v330_v28 = vsel %vm181_vm1, %v284_v22, 0.0 }
 0x131   :  { %v244_v17 = vmul.f32 %v866_v2, %v205_v16  ;;  %328 = vadd.xlane.f32.xlu0 %v327_v15  ;;  %295 = vadd.xlane.f32.xlu1 %v294_v51  ;;  %v1011_v15 = vld [vmem:[%s1212_s4] ss:$0 sm:$0xff] }
 0x133   :  { %v969_v19 = vsub.f32 %v862_v58, %v244_v17  ;;  %v324_v58 = vsel %vm181_vm1, %v282_v23, 0.0 }
 0x135   :  { %v276_v52 = vmul.f32 %v969_v19, %v969_v19 }
 0x137   :  { %v306_v25 = vsel %vm181_vm1, %v276_v52, 0.0 }
 0x138   :  { %307 = vadd.xlane.f32.xlu2 %v306_v25 }
 0x139   :  { %331 = vadd.xlane.f32.xlu1 %v330_v28 }
 0x140   :  { %325 = vadd.xlane.f32.xlu2 %v324_v58 }
 0x17c   :  { %v299_v20 = vpop.xlane.xlu2 %298  ;;  %v287_v29 = vpop.xlane.xlu1 %286 }
 0x17d   :  { %v337_v21 = vmul.f32 %v299_v20, %v866_v2  ;;  %v333_v33 = vmul.f32 %v287_v29, %v866_v2 }
 0x17f   :  { %v353_v30 = vadd.f32 1e-05, %v337_v21  ;;  %v349_v34 = vadd.f32 1e-05, %v333_v33 }
 0x181   :  { %677 = vrsqrt.f32 %v353_v30  ;;  %vm411_vm5 = vweird.f32 %v353_v30  ;;  %vm371_vm7 = vweird.f32 %v349_v34 }
 0x182   :  { %679 = vrsqrt.f32 %v349_v34 }
 0x184   :  { %v323_v37 = vpop.xlane.xlu1 %322  ;;  %v311_v38 = vpop.xlane.xlu0 %310 }
 0x185   :  { %v345_v39 = vmul.f32 %v323_v37, %v866_v2  ;;  %v341_v40 = vmul.f32 %v311_v38, %v866_v2 }
 0x187   :  { %v678_v27 = vpop.eup %677  ;;  %v987_v42 = vadd.f32 1e-05, %v345_v39  ;;  %v989_v46 = vadd.f32 1e-05, %v341_v40 }
 0x188   :  { %v680_v47 = vpop.eup %679  ;;  %v406_v48 = vmul.f32 %v678_v27, %v353_v30  ;;  %vm412_vm3 = vweird.f32 %v678_v27 }
 0x189   :  { %v366_v49 = vmul.f32 %v680_v47, %v349_v34  ;;  %681 = vrsqrt.f32 %v987_v42  ;;  %vm372_vm4 = vweird.f32 %v680_v47  ;;  %vm413_vm6 = vmor %vm411_vm5, %vm412_vm3  ;;  %vm491_vm11 = vweird.f32 %v987_v42 }
 0x18a   :  { %v407_v50 = vmul.f32 %v678_v27, %v406_v48  ;;  %683 = vrsqrt.f32 %v989_v46  ;;  %vm373_vm8 = vmor %vm371_vm7, %vm372_vm4  ;;  %vm451_vm13 = vweird.f32 %v989_v46 }
 0x18b   :  { %v367_v54 = vmul.f32 %v680_v47, %v366_v49 }
 0x18c   :  { %v408_v55 = vmul.f32 0.5, %v407_v50  ;;  %v290_v35 = vpop.xlane.xlu2 %289  ;;  %v302_v36 = vpop.xlane.xlu0 %301 }
 0x18d   :  { %v368_v56 = vmul.f32 0.5, %v367_v54  ;;  %v334_v61 = vmul.f32 %v290_v35, %v866_v2  ;;  %v338_v62 = vmul.f32 %v302_v36, %v866_v2 }
 0x18e   :  { %v409_v63 = vsub.f32 1.5, %v408_v55 }
 0x18f   :  { %v682_v0 = vpop.eup %681  ;;  %v369_v1 = vsub.f32 1.5, %v368_v56  ;;  %v995_v45 = vadd.f32 1e-05, %v334_v61  ;;  %v997_v41 = vadd.f32 1e-05, %v338_v62 }
 0x190   :  { %v684_v3 = vpop.eup %683  ;;  %v410_v43 = vmul.f32 %v678_v27, %v409_v63  ;;  %v486_v4 = vmul.f32 %v682_v0, %v987_v42  ;;  %vm492_vm9 = vweird.f32 %v682_v0 }
 0x191   :  { %v370_v10 = vmul.f32 %v680_v47, %v369_v1  ;;  %v446_v11 = vmul.f32 %v684_v3, %v989_v46  ;;  %685 = vrsqrt.f32 %v995_v45  ;;  %vm452_vm10 = vweird.f32 %v684_v3  ;;  %vm493_vm12 = vmor %vm491_vm11, %vm492_vm9 }
 0x192   :  { %v414_v12 = vsel %vm413_vm6, %v678_v27, %v410_v43  ;;  %v487_v16 = vmul.f32 %v682_v0, %v486_v4  ;;  %687 = vrsqrt.f32 %v997_v41  ;;  %vm453_vm14 = vmor %vm451_vm13, %vm452_vm10  ;;  %vm381_vm15 = vweird.f32 %v995_v45 }
 0x193   :  { %v529_v51 = vmul.f32 %v414_v12, %v871_v7  ;;  %v374_v17 = vsel %vm373_vm8, %v680_v47, %v370_v10  ;;  %v447_v53 = vmul.f32 %v684_v3, %v446_v11  ;;  %vm421_vm4 = vweird.f32 %v997_v41 }
 0x194   :  { %v525_v22 = vmul.f32 %v374_v17, %v874_v8  ;;  %v488_v52 = vmul.f32 0.5, %v487_v16  ;;  %v314_v25 = vpop.xlane.xlu1 %313  ;;  %v293_v28 = vpop.xlane.xlu0 %292 }
 0x195   :  { %v548_v23 = vmul.f32 %v1003_v5, %v529_v51  ;;  %v448_v58 = vmul.f32 0.5, %v447_v53  ;;  %v342_v20 = vmul.f32 %v314_v25, %v866_v2  ;;  %v335_v29 = vmul.f32 %v293_v28, %v866_v2 }
 0x196   :  { %v544_v21 = vmul.f32 %v1003_v5, %v525_v22  ;;  %v489_v33 = vsub.f32 1.5, %v488_v52 }
 0x197   :  { %v686_v7 = vpop.eup %685  ;;  %v567_v30 = vadd.f32 %v1011_v15, %v548_v23  ;;  %v449_v34 = vsub.f32 1.5, %v448_v58  ;;  %v1020_v8 = vadd.f32 1e-05, %v342_v20  ;;  %v1022_v37 = vadd.f32 1e-05, %v335_v29 }
 0x198   :  { %v688_v38 = vpop.eup %687  ;;  %v563_v39 = vadd.f32 %v1011_v15, %v544_v21  ;;  %v490_v40 = vmul.f32 %v682_v0, %v489_v33  ;;  %v376_v27 = vmul.f32 %v686_v7, %v995_v45  ;;  %vm382_vm0 = vweird.f32 %v686_v7 }
 0x199   :  { %583 = vst.msk [vmem:[%s1213_s5 + $0x20] sm:$0xff] %vm181_vm1, %v567_v30  ;;  %v450_v47 = vmul.f32 %v684_v3, %v449_v34  ;;  %v416_v48 = vmul.f32 %v688_v38, %v997_v41  ;;  %689 = vrsqrt.f32 %v1020_v8  ;;  %vm422_vm2 = vweird.f32 %v688_v38  ;;  %vm383_vm3 = vmor %vm381_vm15, %vm382_vm0 }
 0x19a   :  { %579 = vst.msk [vmem:[%s1213_s5] sm:$0xff] %vm181_vm1, %v563_v39  ;;  %v494_v42 = vsel %vm493_vm12, %v682_v0, %v490_v40  ;;  %v377_v49 = vmul.f32 %v686_v7, %v376_v27  ;;  %691 = vrsqrt.f32 %v1022_v37  ;;  %vm423_vm5 = vmor %vm421_vm4, %vm422_vm2  ;;  %vm461_vm8 = vweird.f32 %v1020_v8 }
 0x19b   :  { %v537_v50 = vmul.f32 %v494_v42, %v888_v18  ;;  %v454_v54 = vsel %vm453_vm14, %v684_v3, %v450_v47  ;;  %v417_v55 = vmul.f32 %v688_v38, %v416_v48  ;;  %v317_v46 = vpop.xlane.xlu2 %316  ;;  %vm391_vm10 = vweird.f32 %v1022_v37 }
 0x19c   :  { %v533_v35 = vmul.f32 %v454_v54, %v885_v14  ;;  %v378_v36 = vmul.f32 0.5, %v377_v49  ;;  %v343_v56 = vmul.f32 %v317_v46, %v866_v2  ;;  %v305_v61 = vpop.xlane.xlu1 %304  ;;  %v320_v62 = vpop.xlane.xlu0 %319 }
 0x19d   :  { %v556_v63 = vmul.f32 %v1003_v5, %v537_v50  ;;  %v418_v0 = vmul.f32 0.5, %v417_v55  ;;  %v339_v1 = vmul.f32 %v305_v61, %v866_v2  ;;  %v344_v43 = vmul.f32 %v320_v62, %v866_v2 }
 0x19e   :  { %v552_v18 = vmul.f32 %v1003_v5, %v533_v35  ;;  %v379_v3 = vsub.f32 1.5, %v378_v36  ;;  %v1048_v4 = vadd.f32 1e-05, %v343_v56 }
 0x19f   :  { %v690_v14 = vpop.eup %689  ;;  %v575_v10 = vadd.f32 %v1011_v15, %v556_v63  ;;  %v419_v11 = vsub.f32 1.5, %v418_v0  ;;  %v1051_v12 = vadd.f32 1e-05, %v339_v1  ;;  %v1055_v22 = vadd.f32 1e-05, %v344_v43 }
 0x1a0   :  { %v692_v16 = vpop.eup %691  ;;  %v571_v51 = vadd.f32 %v1011_v15, %v552_v18  ;;  %v380_v17 = vmul.f32 %v686_v7, %v379_v3  ;;  %v456_v53 = vmul.f32 %v690_v14, %v1020_v8  ;;  %693 = vrsqrt.f32 %v1048_v4 }
 0x1a1   :  { %591 = vst.msk [vmem:[%s1213_s5 + $0x60] sm:$0xff] %vm181_vm1, %v575_v10  ;;  %v420_v52 = vmul.f32 %v688_v38, %v419_v11  ;;  %v386_v25 = vmul.f32 %v692_v16, %v1022_v37  ;;  %695 = vrsqrt.f32 %v1051_v12  ;;  %vm462_vm6 = vweird.f32 %v690_v14 }
 0x1a2   :  { %587 = vst.msk [vmem:[%s1213_s5 + $0x40] sm:$0xff] %vm181_vm1, %v571_v51  ;;  %v384_v28 = vsel %vm383_vm3, %v686_v7, %v380_v17  ;;  %v457_v23 = vmul.f32 %v690_v14, %v456_v53  ;;  %697 = vrsqrt.f32 %v1055_v22  ;;  %vm392_vm7 = vweird.f32 %v692_v16  ;;  %vm463_vm9 = vmor %vm461_vm8, %vm462_vm6 }
 0x1a3   :  { %v526_v45 = vmul.f32 %v384_v28, %v904_v32  ;;  %v424_v58 = vsel %vm423_vm5, %v688_v38, %v420_v52  ;;  %v387_v20 = vmul.f32 %v692_v16, %v386_v25  ;;  %vm393_vm11 = vmor %vm391_vm10, %vm392_vm7  ;;  %vm471_vm12 = vweird.f32 %v1048_v4 }
 0x1a4   :  { %v530_v41 = vmul.f32 %v424_v58, %v901_v31  ;;  %v458_v29 = vmul.f32 0.5, %v457_v23  ;;  %v296_v21 = vpop.xlane.xlu1 %295  ;;  %v329_v33 = vpop.xlane.xlu0 %328  ;;  %vm431_vm13 = vweird.f32 %v1051_v12  ;;  %vm481_vm4 = vweird.f32 %v1055_v22 }
 0x1a5   :  { %v545_v30 = vmul.f32 %v1003_v5, %v526_v45  ;;  %v388_v34 = vmul.f32 0.5, %v387_v20  ;;  %v336_v7 = vmul.f32 %v296_v21, %v866_v2  ;;  %v347_v39 = vmul.f32 %v329_v33, %v866_v2 }
 0x1a6   :  { %v549_v40 = vmul.f32 %v1003_v5, %v530_v41  ;;  %v459_v27 = vsub.f32 1.5, %v458_v29  ;;  %v1079_v32 = vpop.eup %693 }
 0x1a7   :  { %v564_v31 = vadd.f32 %v1011_v15, %v545_v30  ;;  %v389_v38 = vsub.f32 1.5, %v388_v34  ;;  %v1082_v47 = vadd.f32 1e-05, %v336_v7  ;;  %v1084_v48 = vadd.f32 1e-05, %v347_v39  ;;  %v1086_v42 = vpop.eup %695 }
 0x1a8   :  { %v568_v49 = vadd.f32 %v1011_v15, %v549_v40  ;;  %v460_v50 = vmul.f32 %v690_v14, %v459_v27  ;;  %v466_v54 = vmul.f32 %v1079_v32, %v1048_v4  ;;  %v426_v46 = vmul.f32 %v1086_v42, %v1051_v12  ;;  %v698_v35 = vpop.eup %697 }
 0x1a9   :  { %580 = vst.msk [vmem:[%s1213_s5 + $0x8] sm:$0xff] %vm181_vm1, %v564_v31  ;;  %v390_v55 = vmul.f32 %v692_v16, %v389_v38  ;;  %699 = vrsqrt.f32 %v1082_v47  ;;  %v476_v62 = vmul.f32 %v698_v35, %v1055_v22  ;;  %vm472_vm14 = vweird.f32 %v1079_v32 }
 0x1aa   :  { %584 = vst.msk [vmem:[%s1213_s5 + $0x28] sm:$0xff] %vm181_vm1, %v568_v49  ;;  %v464_v8 = vsel %vm463_vm9, %v690_v14, %v460_v50  ;;  %v467_v36 = vmul.f32 %v1079_v32, %v466_v54  ;;  %701 = vrsqrt.f32 %v1084_v48  ;;  %v427_v61 = vmul.f32 %v1086_v42, %v426_v46  ;;  %vm473_vm0 = vmor %vm471_vm12, %vm472_vm14 }
 0x1ab   :  { %v534_v37 = vmul.f32 %v464_v8, %v918_v44  ;;  %v394_v56 = vsel %vm393_vm11, %v692_v16, %v390_v55  ;;  %v308_v63 = vpop.xlane.xlu2 %307  ;;  %v477_v3 = vmul.f32 %v698_v35, %v476_v62  ;;  %vm432_vm15 = vweird.f32 %v1086_v42 }
 0x1ac   :  { %v527_v0 = vmul.f32 %v394_v56, %v915_v26  ;;  %v468_v1 = vmul.f32 0.5, %v467_v36  ;;  %v428_v18 = vmul.f32 0.5, %v427_v61  ;;  %v340_v14 = vmul.f32 %v308_v63, %v866_v2  ;;  %v332_v44 = vpop.xlane.xlu1 %331  ;;  %vm433_vm3 = vmor %vm431_vm13, %vm432_vm15 }
 0x1ad   :  { %v553_v43 = vmul.f32 %v1003_v5, %v534_v37  ;;  %v478_v17 = vmul.f32 0.5, %v477_v3  ;;  %v348_v45 = vmul.f32 %v332_v44, %v866_v2  ;;  %vm482_vm2 = vweird.f32 %v698_v35 }
 0x1ae   :  { %v546_v10 = vmul.f32 %v1003_v5, %v527_v0  ;;  %v469_v11 = vsub.f32 1.5, %v468_v1  ;;  %v429_v51 = vsub.f32 1.5, %v428_v18  ;;  %v1119_v53 = vadd.f32 1e-05, %v340_v14  ;;  %vm483_vm5 = vmor %vm481_vm4, %vm482_vm2 }
 0x1af   :  { %v700_v26 = vpop.eup %699  ;;  %v572_v16 = vadd.f32 %v1011_v15, %v553_v43  ;;  %v479_v20 = vsub.f32 1.5, %v478_v17  ;;  %v364_v27 = vadd.f32 1e-05, %v348_v45  ;;  %vm401_vm8 = vweird.f32 %v1082_v47 }
 0x1b0   :  { %v702_v52 = vpop.eup %701  ;;  %v565_v25 = vadd.f32 %v1011_v15, %v546_v10  ;;  %v470_v28 = vmul.f32 %v1079_v32, %v469_v11  ;;  %v396_v23 = vmul.f32 %v700_v26, %v1082_v47  ;;  %v430_v58 = vmul.f32 %v1086_v42, %v429_v51 }
 0x1b1   :  { %588 = vst.msk [vmem:[%s1213_s5 + $0x48] sm:$0xff] %vm181_vm1, %v572_v16  ;;  %v506_v41 = vmul.f32 %v702_v52, %v1084_v48  ;;  %703 = vrsqrt.f32 %v1119_v53  ;;  %v480_v30 = vmul.f32 %v698_v35, %v479_v20  ;;  %vm402_vm6 = vweird.f32 %v700_v26 }
 0x1b2   :  { %581 = vst.msk [vmem:[%s1213_s5 + $0x10] sm:$0xff] %vm181_vm1, %v565_v25  ;;  %v474_v29 = vsel %vm473_vm0, %v1079_v32, %v470_v28  ;;  %v397_v4 = vmul.f32 %v700_v26, %v396_v23  ;;  %v434_v33 = vsel %vm433_vm3, %v1086_v42, %v430_v58  ;;  %705 = vrsqrt.f32 %v364_v27  ;;  %vm403_vm9 = vmor %vm401_vm8, %vm402_vm6 }
 0x1b3   :  { %v535_v21 = vmul.f32 %v474_v29, %v933_v59  ;;  %v507_v34 = vmul.f32 %v702_v52, %v506_v41  ;;  %v326_v7 = vpop.xlane.xlu2 %325  ;;  %v531_v39 = vmul.f32 %v434_v33, %v936_v60  ;;  %v484_v22 = vsel %vm483_vm5, %v698_v35, %v480_v30 }
 0x1b4   :  { %v398_v40 = vmul.f32 0.5, %v397_v4  ;;  %v346_v12 = vmul.f32 %v326_v7, %v866_v2  ;;  %v536_v59 = vmul.f32 %v484_v22, %v930_v57  ;;  %vm512_vm7 = vweird.f32 %v702_v52 }
 0x1b5   :  { %v554_v32 = vmul.f32 %v1003_v5, %v535_v21  ;;  %v508_v31 = vmul.f32 0.5, %v507_v34  ;;  %v550_v38 = vmul.f32 %v1003_v5, %v531_v39  ;;  %vm511_vm10 = vweird.f32 %v1084_v48 }
 0x1b6   :  { %v399_v42 = vsub.f32 1.5, %v398_v40  ;;  %v362_v60 = vadd.f32 1e-05, %v346_v12  ;;  %v555_v2 = vmul.f32 %v1003_v5, %v536_v59  ;;  %vm513_vm11 = vmor %vm511_vm10, %vm512_vm7  ;;  %vm441_vm13 = vweird.f32 %v1119_v53 }
 0x1b7   :  { %v573_v49 = vadd.f32 %v1011_v15, %v554_v32  ;;  %v509_v50 = vsub.f32 1.5, %v508_v31  ;;  %v704_v54 = vpop.eup %703  ;;  %v569_v55 = vadd.f32 %v1011_v15, %v550_v38  ;;  %vm521_vm0 = vweird.f32 %v364_v27 }
 0x1b8   :  { %v400_v46 = vmul.f32 %v700_v26, %v399_v42  ;;  %v436_v35 = vmul.f32 %v704_v54, %v1119_v53  ;;  %707 = vrsqrt.f32 %v362_v60  ;;  %v574_v47 = vadd.f32 %v1011_v15, %v555_v2  ;;  %v706_v61 = vpop.eup %705 }
 0x1b9   :  { %589 = vst.msk [vmem:[%s1213_s5 + $0x50] sm:$0xff] %vm181_vm1, %v573_v49  ;;  %v510_v57 = vmul.f32 %v702_v52, %v509_v50  ;;  %v516_v0 = vmul.f32 %v706_v61, %v364_v27  ;;  %vm442_vm12 = vweird.f32 %v704_v54  ;;  %vm522_vm15 = vweird.f32 %v706_v61 }
 0x1ba   :  { %585 = vst.msk [vmem:[%s1213_s5 + $0x30] sm:$0xff] %vm181_vm1, %v569_v55  ;;  %v404_v8 = vsel %vm403_vm9, %v700_v26, %v400_v46  ;;  %v437_v56 = vmul.f32 %v704_v54, %v436_v35  ;;  %vm443_vm14 = vmor %vm441_vm13, %vm442_vm12  ;;  %vm501_vm4 = vweird.f32 %v362_v60 }
 0x1bb   :  { %v528_v36 = vmul.f32 %v404_v8, %v953_v9  ;;  %v514_v37 = vsel %vm513_vm11, %v702_v52, %v510_v57  ;;  %590 = vst.msk [vmem:[%s1213_s5 + $0x58] sm:$0xff] %vm181_vm1, %v574_v47  ;;  %v517_v3 = vmul.f32 %v706_v61, %v516_v0  ;;  %vm523_vm2 = vmor %vm521_vm0, %vm522_vm15 }
 0x1bc   :  { %v539_v48 = vmul.f32 %v514_v37, %v950_v6  ;;  %v438_v63 = vmul.f32 0.5, %v437_v56 }
 0x1bd   :  { %v547_v62 = vmul.f32 %v1003_v5, %v528_v36  ;;  %v518_v10 = vmul.f32 0.5, %v517_v3 }
 0x1be   :  { %v558_v1 = vmul.f32 %v1003_v5, %v539_v48  ;;  %v708_v43 = vpop.eup %707  ;;  %v439_v9 = vsub.f32 1.5, %v438_v63 }
 0x1bf   :  { %v566_v18 = vadd.f32 %v1011_v15, %v547_v62  ;;  %v496_v44 = vmul.f32 %v708_v43, %v362_v60  ;;  %v519_v16 = vsub.f32 1.5, %v518_v10  ;;  %vm502_vm3 = vweird.f32 %v708_v43 }
 0x1c0   :  { %v577_v14 = vadd.f32 %v1011_v15, %v558_v1  ;;  %v440_v6 = vmul.f32 %v704_v54, %v439_v9  ;;  %vm503_vm5 = vmor %vm501_vm4, %vm502_vm3 }
 0x1c1   :  { %582 = vst.msk [vmem:[%s1213_s5 + $0x18] sm:$0xff] %vm181_vm1, %v566_v18  ;;  %v497_v11 = vmul.f32 %v708_v43, %v496_v44  ;;  %v520_v52 = vmul.f32 %v706_v61, %v519_v16 }
 0x1c2   :  { %593 = vst.msk [vmem:[%s1213_s5 + $0x70] sm:$0xff] %vm181_vm1, %v577_v14  ;;  %v444_v26 = vsel %vm443_vm14, %v704_v54, %v440_v6 }
 0x1c3   :  { %v532_v51 = vmul.f32 %v444_v26, %v969_v19  ;;  %v498_v17 = vmul.f32 0.5, %v497_v11  ;;  %v524_v28 = vsel %vm523_vm2, %v706_v61, %v520_v52 }
 0x1c4   :  { %v540_v45 = vmul.f32 %v524_v28, %v961_v13 }
 0x1c5   :  { %v551_v25 = vmul.f32 %v1003_v5, %v532_v51  ;;  %v499_v53 = vsub.f32 1.5, %v498_v17 }
 0x1c6   :  { %v559_v19 = vmul.f32 %v1003_v5, %v540_v45 }
 0x1c7   :  { %v570_v23 = vadd.f32 %v1011_v15, %v551_v25  ;;  %v500_v58 = vmul.f32 %v708_v43, %v499_v53 }
 0x1c8   :  { %v578_v29 = vadd.f32 %v1011_v15, %v559_v19 }
 0x1c9   :  { %586 = vst.msk [vmem:[%s1213_s5 + $0x38] sm:$0xff] %vm181_vm1, %v570_v23  ;;  %v504_v20 = vsel %vm503_vm5, %v708_v43, %v500_v58 }
 0x1ca   :  { %v538_v41 = vmul.f32 %v504_v20, %v976_v24  ;;  %594 = vst.msk [vmem:[%s1213_s5 + $0x78] sm:$0xff] %vm181_vm1, %v578_v29 }
 0x1cc   :  { %v557_v4 = vmul.f32 %v1003_v5, %v538_v41 }
 0x1ce   :  { %v576_v13 = vadd.f32 %v1011_v15, %v557_v4 }
 0x1d0   :  { %592 = vst.msk [vmem:[%s1213_s5 + $0x68] sm:$0xff] %vm181_vm1, %v576_v13 }

// kernel: swin_forward.12
= control target key start
LH: loop header
LB: loop body
LE: loop exit
PB: predicated region body
PF: predicated region fallthrough
CT: control target
= control target key end

     0   :  { %s1677_s27 = smov 0   ;;  %s2112_s0 = inlined_call_operand.vmem [shape: f32[8,16,32], index: 0, kind: input, shape index: {}]   ;;  %s2113_s1 = inlined_call_operand.vmem [shape: f32[1,32], index: 1, kind: input, shape index: {}]   ;;  %s2114_s2 = inlined_call_operand.vmem [shape: f32[1,32], index: 2, kind: input, shape index: {}]   ;;  %s2115_s3 = inlined_call_operand.vmem [shape: bf16[32,96], index: 3, kind: input, shape index: {}]   ;;  %s2116_s4 = inlined_call_operand.vmem [shape: f32[1,96], index: 4, kind: input, shape index: {}]   ;;  %s2117_s5 = inlined_call_operand.vmem [shape: bf16[32,32], index: 5, kind: input, shape index: {}]   ;;  %s2118_s6 = inlined_call_operand.vmem [shape: f32[1,32], index: 6, kind: input, shape index: {}]   ;;  %s2119_s7 = inlined_call_operand.vmem [shape: f32[2,16,16], index: 7, kind: input, shape index: {}]   ;;  %s2120_s8 = inlined_call_operand.vmem [shape: f32[8,16,32], index: 8, kind: output, shape index: {}]  }
   0x1 LB: > { %s1421_s28 = sadd.s32 4294967295, %s1623_s27   ;;  %p1425_p0 = scmp.ge.s32.totalorder %s1623_s27, 1  ;;  %s1623_s27 = sphi %s1677_s27, %s18_s27  }
   0x2   : > { %p264_p1 = scmp.lt.s32.totalorder %s1623_s27, 3 }
   0x4   : > { %p265_p2 = pnand %p1425_p0, %p264_p1 }
   0x5   : > { %s1426_s29 = sshll.u32 (!%p265_p2), %s1421_s28, 2  ;;  %s1626_s22 = smov (!%p265_p2), 96  }
   0x6   : > { %268 = sbr.rel (%p265_p2) target bundleno = 1872 (0x750), region = 52  ;;  %p301_p3 = scmp.lt.s32.totalorder (!%p265_p2), %s1426_s29, 7 }
   0x7   : > { %s1627_s28 = smov (!%p265_p2), 64   ;;  %s1628_s9 = smov (!%p265_p2), 80  }
   0x8   : > { %s1629_s10 = smov (!%p265_p2), 112   ;;  %s1630_s16 = smov (!%p265_p2), 48  }
   0x9   : > { %s1631_s17 = smov (!%p265_p2), 16  }
   0xb   : > { %s2128_s29 = smov (!%p301_p3, %s1426_s29), 7  ;;  %vm325_vm0 = vcmask 261120   ;;  %v1625_v16 = vmov 32.0  }
   0xc   : > { %s1476_s30 = sshll.u32 %s2128_s29, 4  ;;  %1527 = vrcp.f32 %v1625_v16 }
   0xd   : > { %s1693_s11 = scalar_lea.vmem %s2112_s0, %s1476_s30  ;;  %s2083_s26 = scalar_lea.vmem %s2120_s8, %s1476_s30 }
   0xe   : > { %v319_v0 = vld [vmem:[%s1693_s11 + $0x20] sm:$0xff]  ;;  %v317_v1 = vld [vmem:[%s1693_s11 + $0x10] sm:$0xff]  ;;  %v320_v6 = vld [vmem:[%s1693_s11 + $0x28] sm:$0xff] }
   0xf   : > { %v315_v2 = vld [vmem:[%s1693_s11] sm:$0xff]  ;;  %v338_v3 = vsel %vm325_vm0, %v319_v0, 0.0  ;;  %v332_v4 = vsel %vm325_vm0, %v317_v1, 0.0  ;;  %v318_v7 = vld [vmem:[%s1693_s11 + $0x18] sm:$0xff]  ;;  %v316_v8 = vld [vmem:[%s1693_s11 + $0x8] sm:$0xff]  ;;  %v341_v9 = vsel %vm325_vm0, %v320_v6, 0.0 }
  0x10   : > { %v326_v5 = vsel %vm325_vm0, %v315_v2, 0.0  ;;  %339 = vadd.xlane.f32.xlu2 %v338_v3  ;;  %333 = vadd.xlane.f32.xlu0 %v332_v4  ;;  %v335_v10 = vsel %vm325_vm0, %v318_v7, 0.0  ;;  %v329_v11 = vsel %vm325_vm0, %v316_v8, 0.0  ;;  %v321_v12 = vld [vmem:[%s1693_s11 + $0x30] sm:$0xff]  ;;  %v322_v13 = vld [vmem:[%s1693_s11 + $0x38] sm:$0xff] }
  0x11   : > { %327 = vadd.xlane.f32.xlu1 %v326_v5  ;;  %v344_v14 = vsel %vm325_vm0, %v321_v12, 0.0  ;;  %v347_v15 = vsel %vm325_vm0, %v322_v13, 0.0 }
  0x12   : > { %v1528_v17 = vpop.eup %1527 }
  0x13   : > { %v351_v18 = vmul.f32 32.0, %v1528_v17  ;;  %vm355_vm1 = vweird.f32 %v1528_v17 }
  0x15   : > { %v352_v19 = vsub.f32 1.0, %v351_v18 }
  0x17   : > { %v353_v20 = vmul.f32 %v1528_v17, %v352_v19 }
  0x18   : > { %342 = vadd.xlane.f32.xlu2 %v341_v9  ;;  %336 = vadd.xlane.f32.xlu0 %v335_v10 }
  0x19   : > { %330 = vadd.xlane.f32.xlu1 %v329_v11  ;;  %v354_v21 = vadd.f32 %v1528_v17, %v353_v20 }
  0x1b   : > { %v1711_v22 = vsel %vm355_vm1, %v1528_v17, %v354_v21 }
  0x20   : > { %345 = vadd.xlane.f32.xlu0 %v344_v14 }
  0x21   : > { %348 = vadd.xlane.f32.xlu1 %v347_v15 }
  0x83   : > { %v340_v23 = vpop.xlane.xlu2 %339  ;;  %v334_v24 = vpop.xlane.xlu0 %333 }
  0x84   : > { %v359_v25 = vmul.f32 %v1711_v22, %v334_v24  ;;  %v328_v26 = vpop.xlane.xlu1 %327  ;;  %v361_v40 = vmul.f32 %v1711_v22, %v340_v23 }
  0x85   : > { %v357_v27 = vmul.f32 %v1711_v22, %v328_v26 }
  0x86   : > { %v1715_v28 = vsub.f32 %v317_v1, %v359_v25  ;;  %v1741_v47 = vsub.f32 %v319_v0, %v361_v40 }
  0x87   : > { %v1717_v29 = vsub.f32 %v315_v2, %v357_v27  ;;  %v1479_v2 = vld [vmem:[%s2115_s3 + $0x8] sm:$0xff] }
  0x88   : > { %v375_v30 = vmul.f32 %v1715_v28, %v1715_v28  ;;  %v377_v56 = vmul.f32 %v1741_v47, %v1741_v47  ;;  %573 = vmatpush.bf16.msra.mxu0 %v1479_v2  ;;  %1482 = vmatpush.bf16.msra.mxu1 %v1479_v2 }
  0x89   : > { %v373_v31 = vmul.f32 %v1717_v29, %v1717_v29  ;;  %1483 = vmatpush.bf16.msra.mxu2 %v1479_v2  ;;  %1484 = vmatpush.bf16.msra.mxu3 %v1479_v2 }
  0x8a   : > { %v387_v32 = vsel %vm325_vm0, %v375_v30, 0.0  ;;  %v393_v59 = vsel %vm325_vm0, %v377_v56, 0.0 }
  0x8b   : > { %v343_v33 = vpop.xlane.xlu2 %342  ;;  %388 = vadd.xlane.f32.xlu2 %v387_v32  ;;  %v337_v34 = vpop.xlane.xlu0 %336  ;;  %v381_v35 = vsel %vm325_vm0, %v373_v31, 0.0 }
  0x8c   : > { %v362_v36 = vmul.f32 %v1711_v22, %v343_v33  ;;  %v360_v37 = vmul.f32 %v1711_v22, %v337_v34  ;;  %382 = vadd.xlane.f32.xlu1 %v381_v35  ;;  %v331_v38 = vpop.xlane.xlu1 %330 }
  0x8d   : > { %v358_v39 = vmul.f32 %v1711_v22, %v331_v38 }
  0x8e   : > { %v1729_v41 = vsub.f32 %v320_v6, %v362_v36  ;;  %v1731_v42 = vsub.f32 %v318_v7, %v360_v37  ;;  %v1478_v6 = vld [vmem:[%s2115_s3] sm:$0xff] }
  0x8f   : > { %v1733_v43 = vsub.f32 %v316_v8, %v358_v39  ;;  %574 = vmatpush.bf16.msra.mxu0 %v1478_v6  ;;  %1485 = vmatpush.bf16.msra.mxu1 %v1478_v6 }
  0x90   : > { %v376_v44 = vmul.f32 %v1731_v42, %v1731_v42  ;;  %v378_v45 = vmul.f32 %v1729_v41, %v1729_v41  ;;  %1486 = vmatpush.bf16.msra.mxu2 %v1478_v6  ;;  %1487 = vmatpush.bf16.msra.mxu3 %v1478_v6 }
  0x91   : > { %v374_v46 = vmul.f32 %v1733_v43, %v1733_v43 }
  0x92   : > { %v390_v48 = vsel %vm325_vm0, %v376_v44, 0.0  ;;  %v396_v49 = vsel %vm325_vm0, %v378_v45, 0.0 }
  0x93   : > { %391 = vadd.xlane.f32.xlu0 %v390_v48  ;;  %v346_v50 = vpop.xlane.xlu0 %345  ;;  %v384_v51 = vsel %vm325_vm0, %v374_v46, 0.0 }
  0x94   : > { %v363_v52 = vmul.f32 %v1711_v22, %v346_v50  ;;  %397 = vadd.xlane.f32.xlu1 %v396_v49  ;;  %385 = vadd.xlane.f32.xlu2 %v384_v51  ;;  %v349_v53 = vpop.xlane.xlu1 %348 }
  0x95   : > { %v364_v54 = vmul.f32 %v1711_v22, %v349_v53 }
  0x96   : > { %v1748_v55 = vsub.f32 %v321_v12, %v363_v52 }
  0x97   : > { %v1754_v58 = vsub.f32 %v322_v13, %v364_v54 }
  0x98   : > { %v379_v57 = vmul.f32 %v1748_v55, %v1748_v55 }
  0x99   : > { %v380_v61 = vmul.f32 %v1754_v58, %v1754_v58 }
  0x9a   : > { %v399_v60 = vsel %vm325_vm0, %v379_v57, 0.0 }
  0x9b   : > { %394 = vadd.xlane.f32.xlu0 %v393_v59  ;;  %v402_v62 = vsel %vm325_vm0, %v380_v61, 0.0 }
  0x9c   : > { %400 = vadd.xlane.f32.xlu2 %v399_v60 }
  0xa3   : > { %403 = vadd.xlane.f32.xlu0 %v402_v62 }
  0xfe   : > { %v389_v63 = vpop.xlane.xlu2 %388 }
  0xff   : > { %v407_v0 = vmul.f32 %v389_v63, %v1711_v22  ;;  %v383_v1 = vpop.xlane.xlu1 %382  ;;  %v1810_v63 = vld [vmem:[%s2113_s1] ss:$0 sm:$0xff] }
 0x100   : > { %v405_v3 = vmul.f32 %v383_v1, %v1711_v22 }
 0x101   : > { %v415_v4 = vadd.f32 1e-05, %v407_v0 }
 0x102   : > { %v413_v5 = vadd.f32 1e-05, %v405_v3 }
 0x103   : > { %1529 = vrsqrt.f32 %v415_v4  ;;  %vm447_vm2 = vweird.f32 %v415_v4 }
 0x104   : > { %1531 = vrsqrt.f32 %v413_v5  ;;  %vm427_vm4 = vweird.f32 %v413_v5 }
 0x106   : > { %v392_v7 = vpop.xlane.xlu0 %391 }
 0x107   : > { %v408_v8 = vmul.f32 %v392_v7, %v1711_v22  ;;  %v386_v9 = vpop.xlane.xlu2 %385  ;;  %v398_v10 = vpop.xlane.xlu1 %397 }
 0x108   : > { %v406_v11 = vmul.f32 %v386_v9, %v1711_v22  ;;  %v410_v12 = vmul.f32 %v398_v10, %v1711_v22 }
 0x109   : > { %v1530_v13 = vpop.eup %1529  ;;  %v1772_v14 = vadd.f32 1e-05, %v408_v8 }
 0x10a   : > { %v1532_v15 = vpop.eup %1531  ;;  %v442_v16 = vmul.f32 %v1530_v13, %v415_v4  ;;  %v414_v17 = vadd.f32 1e-05, %v406_v11  ;;  %v1774_v18 = vadd.f32 1e-05, %v410_v12  ;;  %vm448_vm3 = vweird.f32 %v1530_v13 }
 0x10b   : > { %v422_v19 = vmul.f32 %v1532_v15, %v413_v5  ;;  %1533 = vrsqrt.f32 %v1772_v14  ;;  %vm428_vm5 = vweird.f32 %v1532_v15  ;;  %vm1788_vm6 = vmor %vm447_vm2, %vm448_vm3  ;;  %vm457_vm7 = vweird.f32 %v1772_v14 }
 0x10c   : > { %v443_v20 = vmul.f32 %v1530_v13, %v442_v16  ;;  %1535 = vrsqrt.f32 %v414_v17  ;;  %vm1797_vm8 = vmor %vm427_vm4, %vm428_vm5  ;;  %vm437_vm9 = vweird.f32 %v414_v17  ;;  %vm477_vm12 = vweird.f32 %v1774_v18 }
 0x10d   : > { %v423_v21 = vmul.f32 %v1532_v15, %v422_v19  ;;  %1537 = vrsqrt.f32 %v1774_v18 }
 0x10e   : > { %v444_v23 = vmul.f32 0.5, %v443_v20  ;;  %v395_v24 = vpop.xlane.xlu0 %394 }
 0x10f   : > { %v424_v25 = vmul.f32 0.5, %v423_v21  ;;  %v409_v26 = vmul.f32 %v395_v24, %v1711_v22  ;;  %v401_v27 = vpop.xlane.xlu2 %400 }
 0x110   : > { %v445_v30 = vsub.f32 1.5, %v444_v23  ;;  %v411_v31 = vmul.f32 %v401_v27, %v1711_v22 }
 0x111   : > { %v1534_v32 = vpop.eup %1533  ;;  %v425_v33 = vsub.f32 1.5, %v424_v25  ;;  %v1780_v34 = vadd.f32 1e-05, %v409_v26 }
 0x112   : > { %v1536_v35 = vpop.eup %1535  ;;  %v446_v36 = vmul.f32 %v1530_v13, %v445_v30  ;;  %v452_v37 = vmul.f32 %v1534_v32, %v1772_v14  ;;  %v1783_v38 = vadd.f32 1e-05, %v411_v31  ;;  %vm458_vm11 = vweird.f32 %v1534_v32 }
 0x113   : > { %v1785_v39 = vpop.eup %1537  ;;  %v426_v40 = vmul.f32 %v1532_v15, %v425_v33  ;;  %v432_v44 = vmul.f32 %v1536_v35, %v414_v17  ;;  %1539 = vrsqrt.f32 %v1780_v34  ;;  %vm438_vm10 = vweird.f32 %v1536_v35  ;;  %vm459_vm15 = vmor %vm457_vm7, %vm458_vm11 }
 0x114   : > { %v453_v46 = vmul.f32 %v1534_v32, %v452_v37  ;;  %v472_v48 = vmul.f32 %v1785_v39, %v1774_v18  ;;  %v450_v49 = vsel %vm1788_vm6, %v1530_v13, %v446_v36  ;;  %1541 = vrsqrt.f32 %v1783_v38  ;;  %vm1816_vm14 = vmor %vm437_vm9, %vm438_vm10 }
 0x115   : > { %v433_v50 = vmul.f32 %v1536_v35, %v432_v44  ;;  %v430_v56 = vsel %vm1797_vm8, %v1532_v15, %v426_v40  ;;  %v503_v60 = vmul.f32 %v450_v49, %v1715_v28  ;;  %vm478_vm13 = vweird.f32 %v1785_v39 }
 0x116   : > { %v454_v52 = vmul.f32 0.5, %v453_v46  ;;  %v473_v53 = vmul.f32 %v1785_v39, %v472_v48  ;;  %v404_v54 = vpop.xlane.xlu0 %403  ;;  %v501_v3 = vmul.f32 %v430_v56, %v1717_v29  ;;  %v1524_v29 = vld [vmem:[%s2114_s2] ss:$0 sm:$0xff]  ;;  %vm479_vm1 = vmor %vm477_vm12, %vm478_vm13  ;;  %vm467_vm2 = vweird.f32 %v1780_v34 }
 0x117   : > { %v434_v57 = vmul.f32 0.5, %v433_v50  ;;  %v412_v59 = vmul.f32 %v404_v54, %v1711_v22  ;;  %v514_v11 = vmul.f32 %v1810_v63, %v503_v60  ;;  %vm487_vm3 = vweird.f32 %v1783_v38 }
 0x118   : > { %v455_v61 = vsub.f32 1.5, %v454_v52  ;;  %v474_v62 = vmul.f32 0.5, %v473_v53  ;;  %v512_v19 = vmul.f32 %v1810_v63, %v501_v3  ;;  %vm634_vm11 = vcmask 130048  }
 0x119   : > { %v1540_v0 = vpop.eup %1539  ;;  %v435_v1 = vsub.f32 1.5, %v434_v57  ;;  %v420_v2 = vadd.f32 1e-05, %v412_v59  ;;  %v525_v23 = vadd.f32 %v1524_v29, %v514_v11 }
 0x11a   : > { %v456_v22 = vmul.f32 %v1534_v32, %v455_v61  ;;  %v475_v4 = vsub.f32 1.5, %v474_v62  ;;  %v462_v5 = vmul.f32 %v1540_v0, %v1780_v34  ;;  %v1542_v7 = vpop.eup %1541  ;;  %vm468_vm4 = vweird.f32 %v1540_v0 }
 0x11b   : > { %v436_v6 = vmul.f32 %v1536_v35, %v435_v1  ;;  %1543 = vrsqrt.f32 %v420_v2  ;;  %v482_v14 = vmul.f32 %v1542_v7, %v1783_v38  ;;  %vm488_vm5 = vweird.f32 %v1542_v7  ;;  %vm469_vm6 = vmor %vm467_vm2, %vm468_vm4 }
 0x11c   : > { %v460_v8 = vsel %vm459_vm15, %v1534_v32, %v456_v22  ;;  %v476_v9 = vmul.f32 %v1785_v39, %v475_v4  ;;  %v463_v10 = vmul.f32 %v1540_v0, %v462_v5  ;;  %v523_v31 = vadd.f32 %v1524_v29, %v512_v19  ;;  %vm489_vm7 = vmor %vm487_vm3, %vm488_vm5 }
 0x11d   : > { %v504_v12 = vmul.f32 %v460_v8, %v1731_v42  ;;  %v440_v13 = vsel %vm1816_vm14, %v1536_v35, %v436_v6  ;;  %v483_v42 = vmul.f32 %v1542_v7, %v482_v14  ;;  %vm497_vm8 = vweird.f32 %v420_v2 }
 0x11e   : > { %v502_v15 = vmul.f32 %v440_v13, %v1733_v43  ;;  %v480_v16 = vsel %vm479_vm1, %v1785_v39, %v476_v9  ;;  %v464_v17 = vmul.f32 0.5, %v463_v10 }
 0x11f   : > { %v515_v20 = vmul.f32 %v1810_v63, %v504_v12  ;;  %v506_v43 = vmul.f32 %v480_v16, %v1729_v41  ;;  %v484_v25 = vmul.f32 0.5, %v483_v42 }
 0x120   : > { %v465_v21 = vsub.f32 1.5, %v464_v17  ;;  %v513_v18 = vmul.f32 %v1810_v63, %v502_v15 }
 0x121   : > { %v1544_v24 = vpop.eup %1543  ;;  %v526_v26 = vadd.f32 %v1524_v29, %v515_v20  ;;  %v485_v33 = vsub.f32 1.5, %v484_v25  ;;  %v517_v44 = vmul.f32 %v1810_v63, %v506_v43 }
 0x122   : > { %v466_v27 = vmul.f32 %v1540_v0, %v465_v21  ;;  %v492_v30 = vmul.f32 %v1544_v24, %v420_v2  ;;  %v524_v32 = vadd.f32 %v1524_v29, %v513_v18  ;;  %vm498_vm9 = vweird.f32 %v1544_v24 }
 0x123   : > { %v532_v35 = vpack.c.bf16 %v526_v26, %v525_v23  ;;  %v486_v40 = vmul.f32 %v1542_v7, %v485_v33  ;;  %vm499_vm10 = vmor %vm497_vm8, %vm498_vm9  ;;  %v528_v50 = vadd.f32 %v1524_v29, %v517_v44 }
 0x124   : > { %v470_v36 = vsel %vm469_vm6, %v1540_v0, %v466_v27  ;;  %v493_v37 = vmul.f32 %v1544_v24, %v492_v30  ;;  %v531_v39 = vpack.c.bf16 %v524_v32, %v523_v31 }
 0x125   : > { %v505_v41 = vmul.f32 %v470_v36, %v1741_v47  ;;  %1441 = vmatmul.msk.bf16.vlgmr.msra.gmra.mxu1 %vm325_vm0, %v532_v35  ;;  %v490_v34 = vsel %vm489_vm7, %v1542_v7, %v486_v40 }
 0x126   : > { %v494_v45 = vmul.f32 0.5, %v493_v37  ;;  %1440 = vmatmul.msk.bf16.vlgmr.msra.gmra.mxu0 %vm325_vm0, %v531_v39  ;;  %v507_v38 = vmul.f32 %v490_v34, %v1748_v55  ;;  %v1525_v55 = vld [vmem:[%s2116_s4] ss:$0 sm:$0xff] }
 0x127   : > { %v516_v46 = vmul.f32 %v1810_v63, %v505_v41 }
 0x128   : > { %v495_v48 = vsub.f32 1.5, %v494_v45  ;;  %v518_v54 = vmul.f32 %v1810_v63, %v507_v38 }
 0x129   : > { %v527_v49 = vadd.f32 %v1524_v29, %v516_v46 }
 0x12a   : > { %v496_v47 = vmul.f32 %v1544_v24, %v495_v48  ;;  %v529_v57 = vadd.f32 %v1524_v29, %v518_v54 }
 0x12b   : > { %v533_v51 = vpack.c.bf16 %v528_v50, %v527_v49 }
 0x12c   : > { %v500_v52 = vsel %vm499_vm10, %v1544_v24, %v496_v47 }
 0x12d   : > { %v508_v53 = vmul.f32 %v500_v52, %v1754_v58  ;;  %1442 = vmatmul.msk.bf16.vlgmr.msra.gmra.mxu2 %vm325_vm0, %v533_v51 }
 0x12f   : > { %v519_v56 = vmul.f32 %v1810_v63, %v508_v53 }
 0x131   : > { %v530_v59 = vadd.f32 %v1524_v29, %v519_v56 }
 0x133   : > { %v534_v60 = vpack.c.bf16 %v530_v59, %v529_v57 }
 0x135   : > { %1443 = vmatmul.msk.bf16.vlgmr.msra.gmra.mxu3 %vm325_vm0, %v534_v60 }
 0x1a2   : > { %v581_v61 = vpop.f32.mrf.mxu1 }
 0x1a3   : > { %v576_v62 = vpop.f32.mrf.mxu0  ;;  %v582_v0 = vadd.f32 %v1525_v55, %v581_v61 }
 0x1a4   : > { %v577_v1 = vadd.f32 %v1525_v55, %v576_v62 }
 0x1a5   : > { %v598_v58 = vmul.f32 0.25, %v582_v0  ;;  %v614_v22 = vpack.c.bf16 %v582_v0, %v582_v0 }
 0x1a6   : > { %v596_v2 = vmul.f32 0.25, %v577_v1  ;;  %v612_v63 = vpack.c.bf16 %v577_v1, %v577_v1 }
 0x1a7   : > { %v606_v6 = vpack.c.bf16 %v598_v58, %v598_v58  ;;  %v662_v11 = vunpack.c.l.b16 %v614_v22 }
 0x1a8   : > { %v604_v9 = vpack.c.bf16 %v596_v2, %v596_v2  ;;  %v629_v14 = vunpack.c.l.b16 %v612_v63 }
 0x1a9   : > { %v657_v19 = vunpack.c.l.b16 %v606_v6 }
 0x1aa   : > { %v583_v3 = vpop.f32.mrf.mxu1  ;;  %v624_v21 = vunpack.c.l.b16 %v604_v9  ;;  %v621_v9 = vld [vmem:[%s2119_s7 + $0x8] sm:$0xff] }
 0x1ab   : > { %v578_v28 = vpop.f32.mrf.mxu0  ;;  %v584_v4 = vadd.f32 %v1525_v55, %v583_v3 }
 0x1ac   : > { %v579_v5 = vadd.f32 %v1525_v55, %v578_v28  ;;  %v620_v28 = vld [vmem:[%s2119_s7] sm:$0xff] }
 0x1ad   : > { %v599_v7 = vmul.f32 0.25, %v584_v4  ;;  %v615_v8 = vpack.c.bf16 %v584_v4, %v584_v4 }
 0x1ae   : > { %v597_v10 = vmul.f32 0.25, %v579_v5  ;;  %v613_v29 = vpack.c.bf16 %v579_v5, %v579_v5 }
 0x1af   : > { %v607_v12 = vpack.c.bf16 %v599_v7, %v599_v7  ;;  %v663_v13 = vunpack.c.l.b16 %v615_v8 }
 0x1b0   : > { %v605_v15 = vpack.c.bf16 %v597_v10, %v597_v10  ;;  %v630_v16 = vunpack.c.l.b16 %v613_v29  ;;  %v586_v17 = vpop.f32.mrf.mxu2 }
 0x1b1   : > { %v658_v42 = vunpack.c.l.b16 %v607_v12  ;;  %v1862_v20 = vpack.c.b16 %v663_v13, %v662_v11  ;;  %v587_v43 = vadd.f32 %v1525_v55, %v586_v17 }
 0x1b2   : > { %v625_v18 = vunpack.c.l.b16 %v605_v15  ;;  %v1864_v23 = vpack.c.b16 %v630_v16, %v629_v14 }
 0x1b3   : > { %v1866_v24 = vpack.c.b16 %v658_v42, %v657_v19  ;;  %665 = vrot.lane.b32.xlu1 %v1862_v20, %s1626_s22  ;;  %v600_v26 = vmul.f32 0.25, %v587_v43  ;;  %v616_v31 = vpack.c.bf16 %v587_v43, %v587_v43 }
 0x1b4   : > { %v1870_v25 = vpack.c.b16 %v625_v18, %v624_v21  ;;  %632 = vrot.lane.b32.xlu2 %v1864_v23, %s1626_s22 }
 0x1b5   : > { %v608_v33 = vpack.c.bf16 %v600_v26, %v600_v26  ;;  %v694_v39 = vunpack.c.l.b16 %v616_v31 }
 0x1b7   : > { %v689_v44 = vunpack.c.l.b16 %v608_v33 }
 0x1b8   : > { %v588_v27 = vpop.f32.mrf.mxu2  ;;  %v591_v30 = vpop.f32.mrf.mxu3 }
 0x1b9   : > { %v589_v32 = vadd.f32 %v1525_v55, %v588_v27  ;;  %v592_v37 = vadd.f32 %v1525_v55, %v591_v30 }
 0x1bb   : > { %v601_v35 = vmul.f32 0.25, %v589_v32  ;;  %v617_v36 = vpack.c.bf16 %v589_v32, %v589_v32  ;;  %v602_v46 = vmul.f32 0.25, %v592_v37  ;;  %v618_v49 = vpack.c.bf16 %v592_v37, %v592_v37 }
 0x1bd   : > { %v609_v41 = vpack.c.bf16 %v601_v35, %v601_v35  ;;  %v695_v40 = vunpack.c.l.b16 %v617_v36  ;;  %v610_v47 = vpack.c.bf16 %v602_v46, %v602_v46  ;;  %v726_v53 = vunpack.c.l.b16 %v618_v49 }
 0x1bf   : > { %v690_v45 = vunpack.c.l.b16 %v609_v41  ;;  %v1874_v34 = vpack.c.b16 %v695_v40, %v694_v39  ;;  %v721_v57 = vunpack.c.l.b16 %v610_v47 }
 0x1c0   : > { %v593_v48 = vpop.f32.mrf.mxu3 }
 0x1c1   : > { %v1876_v38 = vpack.c.b16 %v690_v45, %v689_v44  ;;  %v594_v50 = vadd.f32 %v1525_v55, %v593_v48  ;;  %697 = vrot.lane.b32.xlu0 %v1874_v34, %s1626_s22 }
 0x1c3   : > { %v603_v51 = vmul.f32 0.25, %v594_v50  ;;  %v619_v52 = vpack.c.bf16 %v594_v50, %v594_v50 }
 0x1c5   : > { %v611_v54 = vpack.c.bf16 %v603_v51, %v603_v51  ;;  %v727_v56 = vunpack.c.l.b16 %v619_v52 }
 0x1c7   : > { %v722_v59 = vunpack.c.l.b16 %v611_v54  ;;  %v1880_v60 = vpack.c.b16 %v727_v56, %v726_v53 }
 0x1c9   : > { %v1882_v61 = vpack.c.b16 %v722_v59, %v721_v57  ;;  %729 = vrot.lane.b32.xlu2 %v1880_v60, %s1626_s22 }
 0x20e   : > { %v633_v55 = vpop.permute.xlu2 %632 }
 0x20f   : > { %v639_v62 = vsel %vm634_vm11, %v633_v55, 0 }
 0x210   : > { %648 = vmatpush.bf16.xpose.msrb.mxu1 %v639_v62 }
 0x217   : > { %1444 = vmatmul.msk.bf16.vlgmr.msrb.gmra.mxu1 %vm634_vm11, %v1870_v25 }
 0x223   : > { %v730_v0 = vpop.permute.xlu2 %729 }
 0x224   : > { %v735_v1 = vsel %vm634_vm11, %v730_v0, 0 }
 0x225   : > { %744 = vmatpush.bf16.xpose.msra.mxu1 %v735_v1  ;;  %v666_v58 = vpop.permute.xlu1 %665 }
 0x226   : > { %v671_v2 = vsel %vm634_vm11, %v666_v58, 0 }
 0x227   : > { %680 = vmatpush.bf16.xpose.msrb.mxu2 %v671_v2 }
 0x22c   : > { %1447 = vmatmul.msk.bf16.vlgmr.msra.gmra.mxu1 %vm634_vm11, %v1882_v61 }
 0x22e   : > { %1445 = vmatmul.msk.bf16.vlgmr.msrb.gmra.mxu2 %vm634_vm11, %v1866_v24 }
 0x233   : > { %v698_v3 = vpop.permute.xlu0 %697 }
 0x234   : > { %v703_v22 = vsel %vm634_vm11, %v698_v3, 0 }
 0x235   : > { %712 = vmatpush.bf16.xpose.msrb.mxu3 %v703_v22 }
 0x23c   : > { %1446 = vmatmul.msk.bf16.vlgmr.msrb.gmra.mxu3 %vm634_vm11, %v1876_v38 }
 0x294   : > { %v650_v4 = vpop.f32.mrf.mxu1 }
 0x295   : > { %v651_v63 = vadd.f32 %v650_v4, %v620_v28 }
 0x297   : > { %v751_v5 = vsel %vm634_vm11, %v651_v63, -inf }
 0x298   : > { %752 = vmax.xlane.f32.xlu2 %v751_v5 }
 0x29c   : > { %v652_v10 = vpop.f32.mrf.mxu1 }
 0x29d   : > { %v653_v29 = vadd.f32 %v652_v10, %v621_v9 }
 0x29f   : > { %v754_v11 = vsel %vm634_vm11, %v653_v29, -inf }
 0x2a9   : > { %v746_v12 = vpop.f32.mrf.mxu1 }
 0x2aa   : > { %v1907_v14 = vadd.f32 %v746_v12, %v620_v28 }
 0x2ac   : > { %v769_v19 = vsel %vm634_vm11, %v1907_v14, -inf }
 0x2b1   : > { %v682_v6 = vpop.f32.mrf.mxu2  ;;  %v748_v27 = vpop.f32.mrf.mxu1 }
 0x2b2   : > { %v683_v7 = vadd.f32 %v682_v6, %v620_v28  ;;  %v749_v30 = vadd.f32 %v748_v27, %v621_v9 }
 0x2b4   : > { %v757_v8 = vsel %vm634_vm11, %v683_v7, -inf  ;;  %v772_v31 = vsel %vm634_vm11, %v749_v30, -inf }
 0x2b5   : > { %758 = vmax.xlane.f32.xlu1 %v757_v8 }
 0x2b9   : > { %v684_v17 = vpop.f32.mrf.mxu2 }
 0x2ba   : > { %v685_v42 = vadd.f32 %v684_v17, %v621_v9 }
 0x2bc   : > { %v760_v26 = vsel %vm634_vm11, %v685_v42, -inf }
 0x2bd   : > { %755 = vmax.xlane.f32.xlu1 %v754_v11 }
 0x2bf   : > { %v714_v13 = vpop.f32.mrf.mxu3 }
 0x2c0   : > { %v715_v15 = vadd.f32 %v714_v13, %v620_v28 }
 0x2c2   : > { %v763_v16 = vsel %vm634_vm11, %v715_v15, -inf }
 0x2c3   : > { %764 = vmax.xlane.f32.xlu0 %v763_v16 }
 0x2c5   : > { %770 = vmax.xlane.f32.xlu1 %v769_v19 }
 0x2c7   : > { %v716_v21 = vpop.f32.mrf.mxu3 }
 0x2c8   : > { %v717_v18 = vadd.f32 %v716_v21, %v621_v9 }
 0x2ca   : > { %v766_v43 = vsel %vm634_vm11, %v717_v18, -inf }
 0x2cb   : > { %767 = vmax.xlane.f32.xlu2 %v766_v43  ;;  %761 = vmax.xlane.f32.xlu0 %v760_v26 }
 0x2d3   : > { %773 = vmax.xlane.f32.xlu0 %v772_v31 }
 0x2de   : > { %877 = vrot.lane.b32.xlu1 %v1862_v20, %s1627_s28 }
 0x2e3   : > { %952 = vrot.lane.b32.xlu2 %v1864_v23, %s1628_s9 }
 0x2e7   : > { %852 = vrot.lane.b32.xlu0 %v1864_v23, %s1627_s28 }
 0x2eb   : > { %950 = vrot.lane.b32.xlu2 %v1870_v25, %s1629_s10 }
 0x2f3   : > { %902 = vrot.lane.b32.xlu2 %v1874_v34, %s1627_s28 }
 0x2fb   : > { %927 = vrot.lane.b32.xlu2 %v1880_v60, %s1627_s28 }
 0x303   : > { %976 = vrot.lane.b32.xlu2 %v1862_v20, %s1628_s9 }
 0x30b   : > { %v753_v32 = vpop.xlane.xlu2 %752 }
 0x30c   : > { %v775_v33 = vsub.f32 %v651_v63, %v753_v32 }
 0x30e   : > { %v783_v35 = vmul.f32 1.442695, %v775_v33 }
 0x310   : > { %1545 = vpow2.f32 %v783_v35 }
 0x316   : > { %v1925_v36 = vpop.eup %1545 }
 0x317   : > { %v799_v37 = vsel %vm634_vm11, %v1925_v36, 0.0 }
 0x318   : > { %800 = vadd.xlane.f32.xlu0 %v799_v37 }
 0x328   : > { %v759_v39 = vpop.xlane.xlu1 %758 }
 0x329   : > { %v777_v41 = vsub.f32 %v683_v7, %v759_v39 }
 0x32b   : > { %v787_v25 = vmul.f32 1.442695, %v777_v41 }
 0x32d   : > { %1547 = vpow2.f32 %v787_v25 }
 0x330   : > { %v756_v40 = vpop.xlane.xlu1 %755 }
 0x331   : > { %v776_v44 = vsub.f32 %v653_v29, %v756_v40 }
 0x333   : > { %v1929_v45 = vpop.eup %1547  ;;  %v785_v46 = vmul.f32 1.442695, %v776_v44 }
 0x334   : > { %v805_v48 = vsel %vm634_vm11, %v1929_v45, 0.0 }
 0x335   : > { %1549 = vpow2.f32 %v785_v46  ;;  %806 = vadd.xlane.f32.xlu2 %v805_v48 }
 0x336   : > { %v765_v49 = vpop.xlane.xlu0 %764 }
 0x337   : > { %v779_v50 = vsub.f32 %v715_v15, %v765_v49 }
 0x338   : > { %v771_v56 = vpop.xlane.xlu1 %770 }
 0x339   : > { %v791_v47 = vmul.f32 1.442695, %v779_v50  ;;  %v781_v1 = vsub.f32 %v1907_v14, %v771_v56 }
 0x33b   : > { %v1933_v51 = vpop.eup %1549  ;;  %1551 = vpow2.f32 %v791_v47  ;;  %v795_v2 = vmul.f32 1.442695, %v781_v1 }
 0x33c   : > { %v802_v52 = vsel %vm634_vm11, %v1933_v51, 0.0 }
 0x33d   : > { %803 = vadd.xlane.f32.xlu2 %v802_v52 }
 0x33e   : > { %v768_v53 = vpop.xlane.xlu2 %767  ;;  %v762_v54 = vpop.xlane.xlu0 %761 }
 0x33f   : > { %v780_v57 = vsub.f32 %v717_v18, %v768_v53  ;;  %v778_v59 = vsub.f32 %v685_v42, %v762_v54 }
 0x341   : > { %v1937_v55 = vpop.eup %1551  ;;  %v793_v62 = vmul.f32 1.442695, %v780_v57  ;;  %v789_v0 = vmul.f32 1.442695, %v778_v59 }
 0x342   : > { %v811_v58 = vsel %vm634_vm11, %v1937_v55, 0.0 }
 0x343   : > { %1553 = vpow2.f32 %v793_v62  ;;  %812 = vadd.xlane.f32.xlu0 %v811_v58 }
 0x344   : > { %1555 = vpow2.f32 %v789_v0 }
 0x345   : > { %1557 = vpow2.f32 %v795_v2 }
 0x346   : > { %v953_v3 = vpop.permute.xlu2 %952  ;;  %v774_v22 = vpop.xlane.xlu0 %773 }
 0x347   : > { %v782_v28 = vsub.f32 %v749_v30, %v774_v22  ;;  %v958_v11 = vsel %vm634_vm11, %v953_v3, 0 }
 0x349   : > { %v1942_v4 = vpop.eup %1553  ;;  %v797_v63 = vmul.f32 1.442695, %v782_v28 }
 0x34a   : > { %v1944_v5 = vpop.eup %1555  ;;  %v814_v6 = vsel %vm634_vm11, %v1942_v4, 0.0 }
 0x34b   : > { %1559 = vpow2.f32 %v797_v63  ;;  %v808_v7 = vsel %vm634_vm11, %v1944_v5, 0.0  ;;  %815 = vadd.xlane.f32.xlu2 %v814_v6  ;;  %v1952_v9 = vpop.eup %1557 }
 0x34c   : > { %809 = vadd.xlane.f32.xlu1 %v808_v7  ;;  %v817_v13 = vsel %vm634_vm11, %v1952_v9, 0.0 }
 0x34e   : > { %v1950_v8 = vpop.permute.xlu2 %950 }
 0x350   : > { %v878_v10 = vpop.permute.xlu1 %877 }
 0x351   : > { %v1954_v29 = vpop.eup %1559  ;;  %890 = vmatpush.bf16.msra.mxu3 %v878_v10 }
 0x352   : > { %v820_v12 = vsel %vm634_vm11, %v1954_v29, 0.0 }
 0x353   : > { %821 = vadd.xlane.f32.xlu0 %v820_v12 }
 0x354   : > { %818 = vadd.xlane.f32.xlu1 %v817_v13 }
 0x355   : > { %967 = vmatpush.bf16.xpose.msrb.mxu3 %v958_v11 }
 0x356   : > { %v903_v14 = vpop.permute.xlu2 %902 }
 0x357   : > { %915 = vmatpush.bf16.msrb.mxu1 %v903_v14 }
 0x359   : > { %v853_v15 = vpop.permute.xlu0 %852 }
 0x35a   : > { %865 = vmatpush.bf16.msra.mxu2 %v853_v15 }
 0x35e   : > { %v928_v16 = vpop.permute.xlu2 %927 }
 0x35f   : > { %940 = vmatpush.bf16.msrb.mxu2 %v928_v16 }
 0x363   : > { %974 = vrot.lane.b32.xlu2 %v1866_v24, %s1629_s10 }
 0x366   : > { %v977_v17 = vpop.permute.xlu2 %976 }
 0x367   : > { %v982_v19 = vsel %vm634_vm11, %v977_v17, 0  ;;  %998 = vrot.lane.b32.xlu0 %v1876_v38, %s1629_s10 }
 0x368   : > { %991 = vmatpush.bf16.xpose.msra.mxu1 %v982_v19 }
 0x36b   : > { %1024 = vrot.lane.b32.xlu2 %v1880_v60, %s1628_s9 }
 0x36d   : > { %1000 = vrot.lane.b32.xlu1 %v1874_v34, %s1628_s9 }
 0x373   : > { %1022 = vrot.lane.b32.xlu2 %v1882_v61, %s1629_s10 }
 0x38b   : > { %v801_v42 = vpop.xlane.xlu0 %800 }
 0x38c   : > { %1561 = vrcp.f32 %v801_v42 }
 0x392   : > { %v1562_v18 = vpop.eup %1561 }
 0x393   : > { %v831_v43 = vmul.f32 %v1562_v18, %v1925_v36 }
 0x395   : > { %v839_v27 = vpack.c.bf16 %v831_v43, %v831_v43 }
 0x397   : > { %v849_v32 = vunpack.c.l.b16 %v839_v27 }
 0x3a8   : > { %v807_v21 = vpop.xlane.xlu2 %806 }
 0x3b0   : > { %v804_v24 = vpop.xlane.xlu2 %803 }
 0x3b1   : > { %1563 = vrcp.f32 %v804_v24 }
 0x3b6   : > { %v813_v26 = vpop.xlane.xlu0 %812 }
 0x3b7   : > { %v1564_v38 = vpop.eup %1563  ;;  %1565 = vrcp.f32 %v813_v26 }
 0x3b8   : > { %v832_v30 = vmul.f32 %v1564_v38, %v1933_v51  ;;  %1567 = vrcp.f32 %v807_v21  ;;  %v1453_v38 = vld [vmem:[%s2119_s7 + $0x18] sm:$0xff] }
 0x3ba   : > { %v840_v31 = vpack.c.bf16 %v832_v30, %v832_v30 }
 0x3bc   : > { %v850_v33 = vunpack.c.l.b16 %v840_v31 }
 0x3bd   : > { %v1566_v37 = vpop.eup %1565 }
 0x3be   : > { %v851_v35 = vpack.c.b16 %v850_v33, %v849_v32  ;;  %v816_v61 = vpop.xlane.xlu2 %815  ;;  %v1568_v41 = vpop.eup %1567  ;;  %v835_v36 = vmul.f32 %v1566_v37, %v1937_v55 }
 0x3bf   : > { %1569 = vrcp.f32 %v816_v61  ;;  %v810_v39 = vpop.xlane.xlu1 %809  ;;  %v833_v25 = vmul.f32 %v1568_v41, %v1929_v45 }
 0x3c0   : > { %1571 = vrcp.f32 %v810_v39  ;;  %1448 = vmatmul.msk.bf16.vlgmr.msra.gmra.mxu2 %vm634_vm11, %v851_v35  ;;  %v843_v46 = vpack.c.bf16 %v835_v36, %v835_v36 }
 0x3c1   : > { %v841_v47 = vpack.c.bf16 %v833_v25, %v833_v25 }
 0x3c2   : > { %v899_v56 = vunpack.c.l.b16 %v843_v46 }
 0x3c3   : > { %v874_v59 = vunpack.c.l.b16 %v841_v47 }
 0x3c5   : > { %v1570_v40 = vpop.eup %1569 }
 0x3c6   : > { %v1572_v44 = vpop.eup %1571  ;;  %v836_v48 = vmul.f32 %v1570_v40, %v1942_v4  ;;  %v822_v49 = vpop.xlane.xlu0 %821 }
 0x3c7   : > { %v975_v50 = vpop.permute.xlu2 %974  ;;  %v834_v51 = vmul.f32 %v1572_v44, %v1944_v5  ;;  %1573 = vrcp.f32 %v822_v49  ;;  %v819_v52 = vpop.xlane.xlu1 %818 }
 0x3c8   : > { %v844_v53 = vpack.c.bf16 %v836_v48, %v836_v48  ;;  %1575 = vrcp.f32 %v819_v52 }
 0x3c9   : > { %v842_v54 = vpack.c.bf16 %v834_v51, %v834_v51 }
 0x3ca   : > { %v900_v57 = vunpack.c.l.b16 %v844_v53 }
 0x3cb   : > { %v875_v55 = vunpack.c.l.b16 %v842_v54 }
 0x3cc   : > { %v901_v45 = vpack.c.b16 %v900_v57, %v899_v56 }
 0x3cd   : > { %v1574_v62 = vpop.eup %1573  ;;  %v876_v0 = vpack.c.b16 %v875_v55, %v874_v59 }
 0x3ce   : > { %v1576_v1 = vpop.eup %1575  ;;  %v838_v58 = vmul.f32 %v1574_v62, %v1954_v29  ;;  %1450 = vmatmul.msk.bf16.vlgmr.msrb.gmra.mxu1 %vm634_vm11, %v901_v45 }
 0x3cf   : > { %v1025_v2 = vpop.permute.xlu2 %1024  ;;  %v837_v3 = vmul.f32 %v1576_v1, %v1952_v9  ;;  %1449 = vmatmul.msk.bf16.vlgmr.msra.gmra.mxu3 %vm634_vm11, %v876_v0 }
 0x3d0   : > { %v1030_v22 = vsel %vm634_vm11, %v1025_v2, 0  ;;  %v846_v28 = vpack.c.bf16 %v838_v58, %v838_v58 }
 0x3d1   : > { %1039 = vmatpush.bf16.xpose.msra.mxu3 %v1030_v22  ;;  %v845_v4 = vpack.c.bf16 %v837_v3, %v837_v3 }
 0x3d2   : > { %v925_v63 = vunpack.c.l.b16 %v846_v28 }
 0x3d3   : > { %v924_v5 = vunpack.c.l.b16 %v845_v4 }
 0x3d5   : > { %v926_v6 = vpack.c.b16 %v925_v63, %v924_v5 }
 0x3d7   : > { %1451 = vmatmul.msk.bf16.vlgmr.msrb.gmra.mxu2 %vm634_vm11, %v926_v6  ;;  %v1023_v29 = vpop.permute.xlu2 %1022 }
 0x3d9   : > { %v999_v10 = vpop.permute.xlu0 %998 }
 0x3de   : > { %1455 = vmatmul.msk.bf16.vlgmr.msra.gmra.mxu1 %vm634_vm11, %v975_v50 }
 0x3df   : > { %1454 = vmatmul.msk.bf16.vlgmr.msrb.gmra.mxu3 %vm634_vm11, %v1950_v8  ;;  %v1001_v7 = vpop.permute.xlu1 %1000  ;;  %v1452_v8 = vld [vmem:[%s2119_s7 + $0x10] sm:$0xff] }
 0x3e0   : > { %v1006_v9 = vsel %vm634_vm11, %v1001_v7, 0 }
 0x3e1   : > { %1015 = vmatpush.bf16.xpose.msra.mxu2 %v1006_v9 }
 0x3e8   : > { %1456 = vmatmul.msk.bf16.vlgmr.msra.gmra.mxu2 %vm634_vm11, %v999_v10 }
 0x3ef   : > { %1457 = vmatmul.msk.bf16.vlgmr.msra.gmra.mxu3 %vm634_vm11, %v1023_v29 }
 0x443   : > { %v1991_v11 = vpop.f32.mrf.mxu2 }
 0x44b   : > { %v1993_v12 = vpop.f32.mrf.mxu1  ;;  %v1995_v13 = vpop.f32.mrf.mxu2 }
 0x452   : > { %v1997_v14 = vpop.f32.mrf.mxu3 }
 0x453   : > { %v1999_v15 = vpop.f32.mrf.mxu1 }
 0x45a   : > { %v2004_v16 = vpop.f32.mrf.mxu3  ;;  %v2006_v17 = vpop.f32.mrf.mxu2 }
 0x45b   : > { %v993_v19 = vpop.f32.mrf.mxu1 }
 0x45c   : > { %v994_v42 = vadd.f32 %v1452_v8, %v993_v19 }
 0x45e   : > { %v1052_v21 = vsel %vm634_vm11, %v994_v42, -inf }
 0x45f   : > { %1053 = vmax.xlane.f32.xlu2 %v1052_v21 }
 0x462   : > { %v2009_v24 = vpop.f32.mrf.mxu2  ;;  %v969_v18 = vpop.f32.mrf.mxu3 }
 0x463   : > { %v970_v43 = vadd.f32 %v1452_v8, %v969_v18  ;;  %v995_v27 = vpop.f32.mrf.mxu1 }
 0x464   : > { %v996_v30 = vadd.f32 %v1453_v38, %v995_v27 }
 0x465   : > { %v1046_v26 = vsel %vm634_vm11, %v970_v43, -inf }
 0x466   : > { %1047 = vmax.xlane.f32.xlu1 %v1046_v26  ;;  %v1055_v61 = vsel %vm634_vm11, %v996_v30, -inf }
 0x46a   : > { %v971_v31 = vpop.f32.mrf.mxu3 }
 0x46b   : > { %v972_v32 = vadd.f32 %v1453_v38, %v971_v31  ;;  %v1017_v33 = vpop.f32.mrf.mxu2 }
 0x46c   : > { %v1018_v44 = vadd.f32 %v1452_v8, %v1017_v33 }
 0x46d   : > { %v1049_v35 = vsel %vm634_vm11, %v972_v32, -inf }
 0x46e   : > { %1050 = vmax.xlane.f32.xlu0 %v1049_v35  ;;  %1056 = vmax.xlane.f32.xlu1 %v1055_v61  ;;  %v1058_v46 = vsel %vm634_vm11, %v1018_v44, -inf }
 0x472   : > { %v1041_v37 = vpop.f32.mrf.mxu3 }
 0x473   : > { %v1042_v39 = vadd.f32 %v1452_v8, %v1041_v37  ;;  %v1019_v41 = vpop.f32.mrf.mxu2 }
 0x474   : > { %v1020_v36 = vadd.f32 %v1453_v38, %v1019_v41 }
 0x475   : > { %v1064_v25 = vsel %vm634_vm11, %v1042_v39, -inf }
 0x476   : > { %1065 = vmax.xlane.f32.xlu1 %v1064_v25  ;;  %v1061_v40 = vsel %vm634_vm11, %v1020_v36, -inf }
 0x477   : > { %1062 = vmax.xlane.f32.xlu2 %v1061_v40 }
 0x47a   : > { %v1043_v48 = vpop.f32.mrf.mxu3 }
 0x47b   : > { %v1044_v49 = vadd.f32 %v1453_v38, %v1043_v48 }
 0x47d   : > { %v1067_v50 = vsel %vm634_vm11, %v1044_v49, -inf }
 0x482   : > { %1147 = vrot.lane.b32.xlu0 %v1864_v23, %s1630_s16 }
 0x4ac   : > { %1059 = vmax.xlane.f32.xlu0 %v1058_v46 }
 0x4b4   : > { %1068 = vmax.xlane.f32.xlu0 %v1067_v50 }
 0x4c8   : > { %1197 = vrot.lane.b32.xlu0 %v1874_v34, %s1630_s16 }
 0x4d2   : > { %v1054_v47 = vpop.xlane.xlu2 %1053 }
 0x4d3   : > { %v1072_v53 = vsub.f32 %v994_v42, %v1054_v47 }
 0x4d5   : > { %v1082_v56 = vmul.f32 1.442695, %v1072_v53 }
 0x4d9   : > { %v1048_v51 = vpop.xlane.xlu1 %1047 }
 0x4da   : > { %v1070_v52 = vsub.f32 %v970_v43, %v1048_v51 }
 0x4dc   : > { %v1078_v54 = vmul.f32 1.442695, %v1070_v52 }
 0x4de   : > { %1577 = vpow2.f32 %v1078_v54 }
 0x4df   : > { %1579 = vpow2.f32 %v1082_v56 }
 0x4e1   : > { %v1051_v23 = vpop.xlane.xlu0 %1050  ;;  %v1057_v57 = vpop.xlane.xlu1 %1056 }
 0x4e2   : > { %v1071_v59 = vsub.f32 %v972_v32, %v1051_v23  ;;  %v1073_v62 = vsub.f32 %v996_v30, %v1057_v57 }
 0x4e4   : > { %v1578_v55 = vpop.eup %1577  ;;  %v1080_v45 = vmul.f32 1.442695, %v1071_v59  ;;  %v1084_v1 = vmul.f32 1.442695, %v1073_v62 }
 0x4e5   : > { %v1094_v0 = vsel %vm634_vm11, %v1578_v55, 0.0  ;;  %v2026_v58 = vpop.eup %1579 }
 0x4e6   : > { %1581 = vpow2.f32 %v1080_v45  ;;  %1095 = vadd.xlane.f32.xlu2 %v1094_v0  ;;  %v1100_v28 = vsel %vm634_vm11, %v2026_v58, 0.0 }
 0x4e7   : > { %1583 = vpow2.f32 %v1084_v1 }
 0x4e9   : > { %v1066_v34 = vpop.xlane.xlu1 %1065 }
 0x4ea   : > { %v1076_v3 = vsub.f32 %v1042_v39, %v1066_v34  ;;  %v1063_v63 = vpop.xlane.xlu2 %1062 }
 0x4eb   : > { %v1075_v6 = vsub.f32 %v1020_v36, %v1063_v63 }
 0x4ec   : > { %v1582_v2 = vpop.eup %1581  ;;  %v1090_v4 = vmul.f32 1.442695, %v1076_v3 }
 0x4ed   : > { %v1097_v22 = vsel %vm634_vm11, %v1582_v2, 0.0  ;;  %v1584_v5 = vpop.eup %1583  ;;  %v1088_v10 = vmul.f32 1.442695, %v1075_v6 }
 0x4ee   : > { %1098 = vadd.xlane.f32.xlu1 %v1097_v22  ;;  %1101 = vadd.xlane.f32.xlu2 %v1100_v28  ;;  %1585 = vpow2.f32 %v1090_v4  ;;  %v1103_v9 = vsel %vm634_vm11, %v1584_v5, 0.0 }
 0x4ef   : > { %1587 = vpow2.f32 %v1088_v10 }
 0x4f4   : > { %v1148_v7 = vpop.permute.xlu0 %1147  ;;  %v2032_v29 = vpop.eup %1585 }
 0x4f5   : > { %1160 = vmatpush.bf16.msrb.mxu0 %v1148_v7  ;;  %v1112_v8 = vsel %vm634_vm11, %v2032_v29, 0.0  ;;  %v1588_v19 = vpop.eup %1587 }
 0x4f6   : > { %1104 = vadd.xlane.f32.xlu1 %v1103_v9  ;;  %v1109_v42 = vsel %vm634_vm11, %v1588_v19, 0.0 }
 0x4fe   : > { %1113 = vadd.xlane.f32.xlu1 %v1112_v8 }
 0x506   : > { %1110 = vadd.xlane.f32.xlu1 %v1109_v42 }
 0x51f   : > { %v1060_v21 = vpop.xlane.xlu0 %1059  ;;  %1222 = vrot.lane.b32.xlu1 %v1880_v60, %s1630_s16 }
 0x520   : > { %v1074_v18 = vsub.f32 %v1018_v44, %v1060_v21 }
 0x522   : > { %v1086_v43 = vmul.f32 1.442695, %v1074_v18 }
 0x524   : > { %1589 = vpow2.f32 %v1086_v43 }
 0x527   : > { %v1069_v26 = vpop.xlane.xlu0 %1068 }
 0x528   : > { %v1077_v38 = vsub.f32 %v1044_v49, %v1069_v26 }
 0x52a   : > { %v1590_v27 = vpop.eup %1589  ;;  %v1092_v30 = vmul.f32 1.442695, %v1077_v38 }
 0x52b   : > { %v1106_v31 = vsel %vm634_vm11, %v1590_v27, 0.0 }
 0x52c   : > { %1591 = vpow2.f32 %v1092_v30  ;;  %1107 = vadd.xlane.f32.xlu2 %v1106_v31 }
 0x532   : > { %v1592_v32 = vpop.eup %1591 }
 0x533   : > { %v1115_v33 = vsel %vm634_vm11, %v1592_v32, 0.0 }
 0x534   : > { %1116 = vadd.xlane.f32.xlu0 %v1115_v33  ;;  %v1480_v33 = vld [vmem:[%s2117_s5] sm:$0xff] }
 0x53a   : > { %v1198_v35 = vpop.permute.xlu0 %1197 }
 0x53b   : > { %1210 = vmatpush.bf16.msrb.mxu2 %v1198_v35 }
 0x544   : > { %1172 = vrot.lane.b32.xlu2 %v1862_v20, %s1630_s16 }
 0x559   : > { %v1096_v60 = vpop.xlane.xlu2 %1095 }
 0x55a   : > { %1593 = vrcp.f32 %v1096_v60 }
 0x560   : > { %v1594_v37 = vpop.eup %1593 }
 0x561   : > { %v1099_v61 = vpop.xlane.xlu1 %1098  ;;  %v1126_v39 = vmul.f32 %v1594_v37, %v1578_v55  ;;  %v1102_v20 = vpop.xlane.xlu2 %1101 }
 0x562   : > { %1595 = vrcp.f32 %v1099_v61 }
 0x563   : > { %v1134_v36 = vpack.c.bf16 %v1126_v39, %v1126_v39 }
 0x565   : > { %v1144_v44 = vunpack.c.l.b16 %v1134_v36 }
 0x568   : > { %v1596_v41 = vpop.eup %1595 }
 0x569   : > { %v1127_v25 = vmul.f32 %v1596_v41, %v1582_v2  ;;  %v1105_v49 = vpop.xlane.xlu1 %1104 }
 0x56a   : > { %1597 = vrcp.f32 %v1105_v49 }
 0x56b   : > { %v1135_v40 = vpack.c.bf16 %v1127_v25, %v1127_v25  ;;  %1599 = vrcp.f32 %v1102_v20 }
 0x56d   : > { %v1145_v46 = vunpack.c.l.b16 %v1135_v40 }
 0x56f   : > { %v1146_v48 = vpack.c.b16 %v1145_v46, %v1144_v44 }
 0x570   : > { %v1598_v52 = vpop.eup %1597 }
 0x571   : > { %1458 = vmatmul.msk.bf16.vlgmr.msrb.gmra.mxu0 %vm634_vm11, %v1146_v48  ;;  %v1114_v50 = vpop.xlane.xlu1 %1113  ;;  %v1600_v53 = vpop.eup %1599  ;;  %v1129_v54 = vmul.f32 %v1598_v52, %v1584_v5 }
 0x572   : > { %v1128_v56 = vmul.f32 %v1600_v53, %v2026_v58 }
 0x573   : > { %v1137_v59 = vpack.c.bf16 %v1129_v54, %v1129_v54 }
 0x574   : > { %v1136_v55 = vpack.c.bf16 %v1128_v56, %v1128_v56 }
 0x575   : > { %v1170_v62 = vunpack.c.l.b16 %v1137_v59 }
 0x576   : > { %v1169_v1 = vunpack.c.l.b16 %v1136_v55 }
 0x578   : > { %v1171_v4 = vpack.c.b16 %v1170_v62, %v1169_v1  ;;  %v1610_v1 = vld [vmem:[%s1693_s11 + $0x8] sm:$0xff] }
 0x579   : > { %v1111_v47 = vpop.xlane.xlu1 %1110 }
 0x57a   : > { %1601 = vrcp.f32 %v1111_v47 }
 0x580   : > { %v1602_v57 = vpop.eup %1601 }
 0x581   : > { %v1131_v45 = vmul.f32 %v1602_v57, %v1588_v19 }
 0x583   : > { %v1139_v34 = vpack.c.bf16 %v1131_v45, %v1131_v45 }
 0x585   : > { %v1195_v5 = vunpack.c.l.b16 %v1139_v34 }
 0x591   : > { %v1223_v51 = vpop.permute.xlu1 %1222 }
 0x592   : > { %1235 = vmatpush.bf16.msrb.mxu3 %v1223_v51 }
 0x59f   : > { %v1108_v23 = vpop.xlane.xlu2 %1107 }
 0x5a0   : > { %1603 = vrcp.f32 %v1108_v23 }
 0x5a1   : > { %1605 = vrcp.f32 %v1114_v50 }
 0x5a6   : > { %v1604_v0 = vpop.eup %1603 }
 0x5a7   : > { %v1130_v2 = vmul.f32 %v1604_v0, %v1590_v27  ;;  %v1117_v3 = vpop.xlane.xlu0 %1116  ;;  %v1173_v22 = vpop.permute.xlu2 %1172 }
 0x5a8   : > { %v1606_v28 = vpop.eup %1605  ;;  %1607 = vrcp.f32 %v1117_v3  ;;  %1185 = vmatpush.bf16.msrb.mxu1 %v1173_v22  ;;  %v1611_v22 = vld [vmem:[%s1693_s11 + $0x10] sm:$0xff] }
 0x5a9   : > { %v1138_v63 = vpack.c.bf16 %v1130_v2, %v1130_v2  ;;  %v1132_v58 = vmul.f32 %v1606_v28, %v2032_v29  ;;  %v1481_v29 = vld [vmem:[%s2117_s5 + $0x8] sm:$0xff] }
 0x5aa   : > { %1324 = vmatpush.bf16.msra.mxu0 %v1481_v29 }
 0x5ab   : > { %v1194_v6 = vunpack.c.l.b16 %v1138_v63  ;;  %1459 = vmatmul.msk.bf16.vlgmr.msrb.gmra.mxu1 %vm634_vm11, %v1171_v4  ;;  %v1140_v10 = vpack.c.bf16 %v1132_v58, %v1132_v58  ;;  %v1612_v58 = vld [vmem:[%s1693_s11 + $0x18] sm:$0xff] }
 0x5ad   : > { %v1196_v7 = vpack.c.b16 %v1195_v5, %v1194_v6  ;;  %v1219_v42 = vunpack.c.l.b16 %v1140_v10 }
 0x5ae   : > { %v1608_v9 = vpop.eup %1607  ;;  %1325 = vmatpush.bf16.msra.mxu0 %v1480_v33 }
 0x5af   : > { %v1133_v8 = vmul.f32 %v1608_v9, %v1592_v32  ;;  %1460 = vmatmul.msk.bf16.vlgmr.msrb.gmra.mxu2 %vm634_vm11, %v1196_v7  ;;  %v1613_v9 = vld [vmem:[%s1693_s11 + $0x20] sm:$0xff] }
 0x5b1   : > { %v1141_v19 = vpack.c.bf16 %v1133_v8, %v1133_v8 }
 0x5b3   : > { %v1220_v21 = vunpack.c.l.b16 %v1141_v19 }
 0x5b5   : > { %v1221_v18 = vpack.c.b16 %v1220_v21, %v1219_v42  ;;  %v1614_v42 = vld [vmem:[%s1693_s11 + $0x28] sm:$0xff] }
 0x5b7   : > { %1461 = vmatmul.msk.bf16.vlgmr.msrb.gmra.mxu3 %vm634_vm11, %v1221_v18 }
 0x5ee   : > { %v1162_v43 = vpop.f32.mrf.mxu0 }
 0x5f6   : > { %v1164_v26 = vpop.f32.mrf.mxu0 }
 0x5f7   : > { %v1503_v38 = vpack.i.bf16 %v1164_v26, %v1162_v43  ;;  %v1615_v26 = vld [vmem:[%s1693_s11 + $0x30] sm:$0xff] }
 0x5f9   : > { %1504 = vrot.lane.b32.xlu2 %v1503_v38, %s1631_s17 }
 0x628   : > { %v1187_v27 = vpop.f32.mrf.mxu1 }
 0x630   : > { %v1189_v30 = vpop.f32.mrf.mxu1 }
 0x631   : > { %v1508_v31 = vpack.i.bf16 %v1189_v30, %v1187_v27  ;;  %v1616_v30 = vld [vmem:[%s1693_s11 + $0x38] sm:$0xff] }
 0x632   : > { %v1212_v32 = vpop.f32.mrf.mxu2 }
 0x633   : > { %1509 = vrot.lane.b32.xlu2 %v1508_v31, %s1631_s17 }
 0x63a   : > { %v1214_v35 = vpop.f32.mrf.mxu2  ;;  %v1237_v60 = vpop.f32.mrf.mxu3 }
 0x63b   : > { %v1513_v61 = vpack.i.bf16 %v1214_v35, %v1212_v32 }
 0x63d   : > { %1514 = vrot.lane.b32.xlu1 %v1513_v61, %s1631_s17 }
 0x642   : > { %v1239_v37 = vpop.f32.mrf.mxu3 }
 0x643   : > { %v1518_v39 = vpack.i.bf16 %v1239_v37, %v1237_v60 }
 0x645   : > { %1519 = vrot.lane.b32.xlu2 %v1518_v39, %s1631_s17 }
 0x653   : > { %v1505_v41 = vpop.permute.xlu2 %1504 }
 0x654   : > { %v1507_v36 = vunpack.i.h.bf16 %v1505_v41  ;;  %v1506_v25 = vunpack.i.l.bf16 %v1505_v41 }
 0x656   : > { %v1275_v40 = vsel %vm634_vm11, %v1995_v13, %v1507_v36  ;;  %v1274_v44 = vsel %vm634_vm11, %v1991_v11, %v1506_v25 }
 0x657   : > { %v1282_v46 = vpack.c.bf16 %v1275_v40, %v1274_v44 }
 0x659   : > { %1470 = vmatmul.msk.bf16.vlgmr.msra.gmra.mxu0 %vm325_vm0, %v1282_v46 }
 0x68d   : > { %v1510_v48 = vpop.permute.xlu2 %1509 }
 0x68e   : > { %v1512_v49 = vunpack.i.h.bf16 %v1510_v48  ;;  %v1511_v50 = vunpack.i.l.bf16 %v1510_v48 }
 0x690   : > { %v1276_v47 = vsel %vm634_vm11, %v1997_v14, %v1511_v50  ;;  %v1277_v51 = vsel %vm634_vm11, %v2004_v16, %v1512_v49 }
 0x691   : > { %v1283_v20 = vpack.c.bf16 %v1277_v51, %v1276_v47 }
 0x693   : > { %1471 = vmatmul.msk.bf16.gmra.mxu0 %vm325_vm0, %v1283_v20 }
 0x69f   : > { %v1520_v14 = vpop.permute.xlu2 %1519 }
 0x6a0   : > { %v1522_v16 = vunpack.i.h.bf16 %v1520_v14  ;;  %v1521_v23 = vunpack.i.l.bf16 %v1520_v14 }
 0x6a2   : > { %v1280_v57 = vsel %vm634_vm11, %v2006_v17, %v1521_v23  ;;  %v1281_v59 = vsel %vm634_vm11, %v2009_v24, %v1522_v16  ;;  %v1609_v17 = vld [vmem:[%s1693_s11] sm:$0xff] }
 0x6a3   : > { %v1285_v55 = vpack.c.bf16 %v1281_v59, %v1280_v57 }
 0x6af   : > { %v1515_v52 = vpop.permute.xlu1 %1514 }
 0x6b0   : > { %v1517_v13 = vunpack.i.h.bf16 %v1515_v52  ;;  %v1516_v53 = vunpack.i.l.bf16 %v1515_v52 }
 0x6b2   : > { %v1278_v11 = vsel %vm634_vm11, %v1993_v12, %v1516_v53  ;;  %v1279_v54 = vsel %vm634_vm11, %v1999_v15, %v1517_v13  ;;  %v1526_v12 = vld [vmem:[%s2118_s6] ss:$0 sm:$0xff] }
 0x6b3   : > { %v1284_v56 = vpack.c.bf16 %v1279_v54, %v1278_v11 }
 0x6b5   : > { %1472 = vmatmul.msk.bf16.gmra.mxu0 %vm325_vm0, %v1284_v56 }
 0x6c5   : > { %1473 = vmatmul.msk.bf16.gmra.mxu0 %vm325_vm0, %v1285_v55 }
 0x6d6   : > { %v1327_v15 = vpop.f32.mrf.mxu0 }
 0x6d7   : > { %v1328_v45 = vadd.f32 %v1526_v12, %v1327_v15 }
 0x6d9   : > { %v1347_v24 = vadd.f32 %v1609_v17, %v1328_v45 }
 0x6db   : > { %1355 = vst.msk [vmem:[%s2083_s26] sm:$0xff] %vm325_vm0, %v1347_v24 }
 0x6de   : > { %v1329_v62 = vpop.f32.mrf.mxu0 }
 0x6df   : > { %v1330_v0 = vadd.f32 %v1526_v12, %v1329_v62 }
 0x6e1   : > { %v1348_v34 = vadd.f32 %v1610_v1, %v1330_v0 }
 0x6e3   : > { %1356 = vst.msk [vmem:[%s2083_s26 + $0x8] sm:$0xff] %vm325_vm0, %v1348_v34 }
 0x710   : > { %v1332_v2 = vpop.f32.mrf.mxu0 }
 0x711   : > { %v1333_v3 = vadd.f32 %v1526_v12, %v1332_v2 }
 0x713   : > { %v1349_v28 = vadd.f32 %v1611_v22, %v1333_v3 }
 0x715   : > { %1357 = vst.msk [vmem:[%s2083_s26 + $0x10] sm:$0xff] %vm325_vm0, %v1349_v28 }
 0x718   : > { %v1334_v4 = vpop.f32.mrf.mxu0 }
 0x719   : > { %v1335_v63 = vadd.f32 %v1526_v12, %v1334_v4 }
 0x71b   : > { %v1350_v5 = vadd.f32 %v1612_v58, %v1335_v63 }
 0x71d   : > { %1358 = vst.msk [vmem:[%s2083_s26 + $0x18] sm:$0xff] %vm325_vm0, %v1350_v5 }
 0x732   : > { %v1337_v6 = vpop.f32.mrf.mxu0 }
 0x733   : > { %v1338_v7 = vadd.f32 %v1526_v12, %v1337_v6 }
 0x735   : > { %v1351_v10 = vadd.f32 %v1613_v9, %v1338_v7 }
 0x737   : > { %1359 = vst.msk [vmem:[%s2083_s26 + $0x20] sm:$0xff] %vm325_vm0, %v1351_v10 }
 0x73a   : > { %v1339_v8 = vpop.f32.mrf.mxu0 }
 0x73b   : > { %v1340_v19 = vadd.f32 %v1526_v12, %v1339_v8 }
 0x73d   : > { %v1352_v21 = vadd.f32 %v1614_v42, %v1340_v19 }
 0x73f   : > { %1360 = vst.msk [vmem:[%s2083_s26 + $0x28] sm:$0xff] %vm325_vm0, %v1352_v21 }
 0x742   : > { %v1342_v18 = vpop.f32.mrf.mxu0 }
 0x743   : > { %v1343_v43 = vadd.f32 %v1526_v12, %v1342_v18 }
 0x745   : > { %v1353_v38 = vadd.f32 %v1615_v26, %v1343_v43 }
 0x747   : > { %1361 = vst.msk [vmem:[%s2083_s26 + $0x30] sm:$0xff] %vm325_vm0, %v1353_v38 }
 0x74a   : > { %v1344_v29 = vpop.f32.mrf.mxu0 }
 0x74b   : > { %v1345_v27 = vadd.f32 %v1526_v12, %v1344_v29 }
 0x74d   : > { %v1354_v31 = vadd.f32 %v1616_v30, %v1345_v27 }
 0x74f   : > { %1362 = vst.msk [vmem:[%s2083_s26 + $0x38] sm:$0xff] %vm325_vm0, %v1354_v31 }
 0x750 PF: > { %s18_s27 = sadd.s32 1, %s1623_s27  }
 0x751   : > { %p15_p4 = scmp.ge.s32.totalorder %s18_s27, 4  }
 0x753   :  { %17 = sbr.rel (!%p15_p4) target bundleno = 1 (0x1), region = 83 }

// kernel: swin_forward.13
= control target key start
LH: loop header
LB: loop body
LE: loop exit
PB: predicated region body
PF: predicated region fallthrough
CT: control target
= control target key end

     0   :  { %vm45_vm0 = vcmask 261120   ;;  %v1533_v14 = vmov 32.0   ;;  %s2859_s0 = inlined_call_operand.vmem [shape: f32[128,32], index: 0, kind: input, shape index: {}]   ;;  %s2860_s1 = inlined_call_operand.vmem [shape: f32[1,32], index: 1, kind: input, shape index: {}]   ;;  %s2861_s2 = inlined_call_operand.vmem [shape: f32[1,32], index: 2, kind: input, shape index: {}]   ;;  %s2862_s3 = inlined_call_operand.vmem [shape: bf16[32,128], index: 3, kind: input, shape index: {}]   ;;  %s2863_s4 = inlined_call_operand.vmem [shape: f32[1,128], index: 4, kind: input, shape index: {}]   ;;  %s2864_s5 = inlined_call_operand.vmem [shape: bf16[128,32], index: 5, kind: input, shape index: {}]   ;;  %s2865_s6 = inlined_call_operand.vmem [shape: f32[1,32], index: 6, kind: input, shape index: {}]   ;;  %s2866_s7 = inlined_call_operand.vmem [shape: f32[128,32], index: 7, kind: output, shape index: {}]  }
   0x1   :  { %v29_v0 = vld [vmem:[%s2859_s0 + $0x10] sm:$0xff]  ;;  %v27_v1 = vld [vmem:[%s2859_s0] sm:$0xff]  ;;  %v30_v6 = vld [vmem:[%s2859_s0 + $0x18] sm:$0xff]  ;;  %1418 = vrcp.f32 %v1533_v14 }
   0x2   :  { %v52_v2 = vsel %vm45_vm0, %v29_v0, 0.0  ;;  %v46_v3 = vsel %vm45_vm0, %v27_v1, 0.0  ;;  %v1585_v4 = vld [vmem:[%s2859_s0 + $0x20] sm:$0xff]  ;;  %v28_v7 = vld [vmem:[%s2859_s0 + $0x8] sm:$0xff]  ;;  %v55_v9 = vsel %vm45_vm0, %v30_v6, 0.0  ;;  %v33_v12 = vld [vmem:[%s2859_s0 + $0x30] sm:$0xff] }
   0x3   :  { %53 = vadd.xlane.f32.xlu1 %v52_v2  ;;  %47 = vadd.xlane.f32.xlu0 %v46_v3  ;;  %v58_v5 = vsel %vm45_vm0, %v1585_v4, 0.0  ;;  %v32_v8 = vld [vmem:[%s2859_s0 + $0x28] sm:$0xff]  ;;  %v49_v10 = vsel %vm45_vm0, %v28_v7, 0.0  ;;  %v64_v13 = vsel %vm45_vm0, %v33_v12, 0.0  ;;  %v1619_v33 = vld [vmem:[%s2859_s0 + $0x38] sm:$0xff]  ;;  %v1639_v44 = vld [vmem:[%s2859_s0 + $0x50] sm:$0xff] }
   0x4   :  { %59 = vadd.xlane.f32.xlu2 %v58_v5  ;;  %v61_v11 = vsel %vm45_vm0, %v32_v8, 0.0  ;;  %v67_v38 = vsel %vm45_vm0, %v1619_v33, 0.0  ;;  %v1644_v45 = vld [vmem:[%s2859_s0 + $0x40] sm:$0xff]  ;;  %v76_v48 = vsel %vm45_vm0, %v1639_v44, 0.0  ;;  %v1662_v55 = vld [vmem:[%s2859_s0 + $0x58] sm:$0xff]  ;;  %v1667_v56 = vld [vmem:[%s2859_s0 + $0x48] sm:$0xff] }
   0x5   :  { %v70_v49 = vsel %vm45_vm0, %v1644_v45, 0.0  ;;  %v79_v59 = vsel %vm45_vm0, %v1662_v55, 0.0  ;;  %v73_v61 = vsel %vm45_vm0, %v1667_v56, 0.0  ;;  %v1684_v63 = vld [vmem:[%s2859_s0 + $0x60] sm:$0xff]  ;;  %v1700_v5 = vld [vmem:[%s2859_s0 + $0x68] sm:$0xff] }
   0x6   :  { %v82_v2 = vsel %vm45_vm0, %v1684_v63, 0.0  ;;  %v1393_v14 = vld [vmem:[%s2862_s3] sm:$0xff] }
   0x7   :  { %v1419_v15 = vpop.eup %1418 }
   0x8   :  { %v95_v16 = vmul.f32 32.0, %v1419_v15  ;;  %vm99_vm1 = vweird.f32 %v1419_v15 }
   0xa   :  { %v96_v17 = vsub.f32 1.0, %v95_v16 }
   0xb   :  { %56 = vadd.xlane.f32.xlu1 %v55_v9  ;;  %50 = vadd.xlane.f32.xlu0 %v49_v10  ;;  %v1394_v10 = vld [vmem:[%s2862_s3 + $0x8] sm:$0xff] }
   0xc   :  { %62 = vadd.xlane.f32.xlu2 %v61_v11  ;;  %v97_v18 = vmul.f32 %v1419_v15, %v96_v17  ;;  %501 = vmatpush.bf16.msra.mxu0 %v1394_v10 }
   0xd   :  { %1403 = vmatpush.bf16.msra.mxu3 %v1394_v10 }
   0xe   :  { %v98_v19 = vadd.f32 %v1419_v15, %v97_v18 }
  0x10   :  { %v1605_v20 = vsel %vm99_vm1, %v1419_v15, %v98_v19  ;;  %502 = vmatpush.bf16.msra.mxu0 %v1393_v14 }
  0x11   :  { %1404 = vmatpush.bf16.msra.mxu3 %v1393_v14 }
  0x14   :  { %65 = vadd.xlane.f32.xlu2 %v64_v13 }
  0x76   :  { %v54_v21 = vpop.xlane.xlu1 %53  ;;  %v48_v22 = vpop.xlane.xlu0 %47 }
  0x77   :  { %v101_v23 = vmul.f32 %v1605_v20, %v48_v22  ;;  %v60_v24 = vpop.xlane.xlu2 %59  ;;  %v103_v32 = vmul.f32 %v1605_v20, %v54_v21 }
  0x78   :  { %v105_v54 = vmul.f32 %v1605_v20, %v60_v24 }
  0x79   :  { %v1608_v25 = vsub.f32 %v27_v1, %v101_v23  ;;  %v1631_v40 = vsub.f32 %v29_v0, %v103_v32 }
  0x7a   :  { %v1675_v60 = vsub.f32 %v1585_v4, %v105_v54  ;;  %v1695_v4 = vld [vmem:[%s2859_s0 + $0x78] sm:$0xff] }
  0x7b   :  { %v133_v26 = vmul.f32 %v1608_v25, %v1608_v25  ;;  %v135_v46 = vmul.f32 %v1631_v40, %v1631_v40 }
  0x7c   :  { %v137_v0 = vmul.f32 %v1675_v60, %v1675_v60 }
  0x7d   :  { %v149_v27 = vsel %vm45_vm0, %v133_v26, 0.0  ;;  %v155_v50 = vsel %vm45_vm0, %v135_v46, 0.0 }
  0x7e   :  { %v57_v28 = vpop.xlane.xlu1 %56  ;;  %150 = vadd.xlane.f32.xlu0 %v149_v27  ;;  %v51_v29 = vpop.xlane.xlu0 %50  ;;  %v161_v3 = vsel %vm45_vm0, %v137_v0, 0.0 }
  0x7f   :  { %v104_v30 = vmul.f32 %v1605_v20, %v57_v28  ;;  %v102_v31 = vmul.f32 %v1605_v20, %v51_v29  ;;  %v63_v36 = vpop.xlane.xlu2 %62 }
  0x80   :  { %v106_v43 = vmul.f32 %v1605_v20, %v63_v36 }
  0x81   :  { %v1621_v34 = vsub.f32 %v30_v6, %v104_v30  ;;  %v1623_v35 = vsub.f32 %v28_v7, %v102_v31  ;;  %v91_v6 = vsel %vm45_vm0, %v1695_v4, 0.0  ;;  %v85_v7 = vsel %vm45_vm0, %v1700_v5, 0.0 }
  0x82   :  { %v1648_v47 = vsub.f32 %v32_v8, %v106_v43  ;;  %v1709_v8 = vld [vmem:[%s2859_s0 + $0x70] sm:$0xff] }
  0x83   :  { %v136_v37 = vmul.f32 %v1621_v34, %v1621_v34  ;;  %v134_v39 = vmul.f32 %v1623_v35, %v1623_v35  ;;  %v88_v9 = vsel %vm45_vm0, %v1709_v8, 0.0 }
  0x84   :  { %v138_v53 = vmul.f32 %v1648_v47, %v1648_v47 }
  0x85   :  { %v158_v41 = vsel %vm45_vm0, %v136_v37, 0.0  ;;  %v152_v42 = vsel %vm45_vm0, %v134_v39, 0.0 }
  0x86   :  { %159 = vadd.xlane.f32.xlu2 %v158_v41  ;;  %68 = vadd.xlane.f32.xlu0 %v67_v38  ;;  %v164_v58 = vsel %vm45_vm0, %v138_v53, 0.0 }
  0x87   :  { %153 = vadd.xlane.f32.xlu1 %v152_v42  ;;  %v66_v51 = vpop.xlane.xlu2 %65 }
  0x88   :  { %v107_v52 = vmul.f32 %v1605_v20, %v66_v51 }
  0x8a   :  { %v1669_v57 = vsub.f32 %v33_v12, %v107_v52 }
  0x8c   :  { %v139_v62 = vmul.f32 %v1669_v57, %v1669_v57 }
  0x8e   :  { %77 = vadd.xlane.f32.xlu2 %v76_v48  ;;  %71 = vadd.xlane.f32.xlu0 %v70_v49  ;;  %v167_v1 = vsel %vm45_vm0, %v139_v62, 0.0 }
  0x8f   :  { %156 = vadd.xlane.f32.xlu1 %v155_v50 }
  0x96   :  { %165 = vadd.xlane.f32.xlu2 %v164_v58  ;;  %80 = vadd.xlane.f32.xlu0 %v79_v59 }
  0x97   :  { %74 = vadd.xlane.f32.xlu1 %v73_v61 }
  0x9e   :  { %168 = vadd.xlane.f32.xlu2 %v167_v1  ;;  %83 = vadd.xlane.f32.xlu0 %v82_v2 }
  0x9f   :  { %162 = vadd.xlane.f32.xlu1 %v161_v3 }
  0xa6   :  { %92 = vadd.xlane.f32.xlu2 %v91_v6 }
  0xa7   :  { %86 = vadd.xlane.f32.xlu1 %v85_v7 }
  0xaf   :  { %89 = vadd.xlane.f32.xlu1 %v88_v9 }
  0xf1   :  { %v151_v11 = vpop.xlane.xlu0 %150 }
  0xf2   :  { %v197_v12 = vmul.f32 %v151_v11, %v1605_v20 }
  0xf4   :  { %v213_v13 = vadd.f32 1e-05, %v197_v12 }
  0xf6   :  { %1420 = vrsqrt.f32 %v213_v13  ;;  %vm235_vm3 = vweird.f32 %v213_v13 }
  0xf9   :  { %v160_v15 = vpop.xlane.xlu2 %159  ;;  %v69_v16 = vpop.xlane.xlu0 %68 }
  0xfa   :  { %v200_v17 = vmul.f32 %v160_v15, %v1605_v20  ;;  %v154_v18 = vpop.xlane.xlu1 %153  ;;  %v108_v19 = vmul.f32 %v1605_v20, %v69_v16  ;;  %v1776_v16 = vld [vmem:[%s2860_s1] ss:$0 sm:$0xff] }
  0xfb   :  { %v198_v21 = vmul.f32 %v154_v18, %v1605_v20 }
  0xfc   :  { %v1421_v22 = vpop.eup %1420  ;;  %v1723_v23 = vadd.f32 1e-05, %v200_v17  ;;  %v1726_v24 = vsub.f32 %v1619_v33, %v108_v19 }
  0xfd   :  { %v230_v26 = vmul.f32 %v1421_v22, %v213_v13  ;;  %v214_v27 = vadd.f32 1e-05, %v198_v21  ;;  %vm236_vm2 = vweird.f32 %v1421_v22 }
  0xfe   :  { %1422 = vrsqrt.f32 %v1723_v23  ;;  %v140_v28 = vmul.f32 %v1726_v24, %v1726_v24  ;;  %vm1752_vm4 = vmor %vm235_vm3, %vm236_vm2  ;;  %vm265_vm8 = vweird.f32 %v1723_v23 }
  0xff   :  { %v231_v29 = vmul.f32 %v1421_v22, %v230_v26  ;;  %1424 = vrsqrt.f32 %v214_v27  ;;  %vm245_vm6 = vweird.f32 %v214_v27 }
 0x100   :  { %v170_v30 = vsel %vm45_vm0, %v140_v28, 0.0 }
 0x101   :  { %v232_v31 = vmul.f32 0.5, %v231_v29  ;;  %v78_v32 = vpop.xlane.xlu2 %77  ;;  %171 = vadd.xlane.f32.xlu0 %v170_v30  ;;  %v72_v36 = vpop.xlane.xlu0 %71 }
 0x102   :  { %v111_v37 = vmul.f32 %v1605_v20, %v78_v32  ;;  %v157_v38 = vpop.xlane.xlu1 %156  ;;  %v109_v33 = vmul.f32 %v1605_v20, %v72_v36 }
 0x103   :  { %v233_v39 = vsub.f32 1.5, %v232_v31  ;;  %v199_v41 = vmul.f32 %v157_v38, %v1605_v20  ;;  %v1793_v31 = vld [vmem:[%s2861_s2] ss:$0 sm:$0xff] }
 0x104   :  { %v1735_v42 = vpop.eup %1422  ;;  %v1738_v43 = vsub.f32 %v1639_v44, %v111_v37  ;;  %v1741_v46 = vsub.f32 %v1644_v45, %v109_v33 }
 0x105   :  { %v1425_v48 = vpop.eup %1424  ;;  %v234_v49 = vmul.f32 %v1421_v22, %v233_v39  ;;  %v1743_v50 = vadd.f32 1e-05, %v199_v41  ;;  %v260_v51 = vmul.f32 %v1735_v42, %v1723_v23  ;;  %vm266_vm9 = vweird.f32 %v1735_v42 }
 0x106   :  { %v240_v52 = vmul.f32 %v1425_v48, %v214_v27  ;;  %v143_v53 = vmul.f32 %v1738_v43, %v1738_v43  ;;  %v141_v54 = vmul.f32 %v1741_v46, %v1741_v46  ;;  %vm246_vm5 = vweird.f32 %v1425_v48  ;;  %vm1809_vm12 = vmor %vm265_vm8, %vm266_vm9 }
 0x107   :  { %1426 = vrsqrt.f32 %v1743_v50  ;;  %v238_v61 = vsel %vm1752_vm4, %v1421_v22, %v234_v49  ;;  %v261_v1 = vmul.f32 %v1735_v42, %v260_v51  ;;  %vm247_vm7 = vmor %vm245_vm6, %vm246_vm5  ;;  %vm255_vm11 = vweird.f32 %v1743_v50 }
 0x108   :  { %v241_v45 = vmul.f32 %v1425_v48, %v240_v52  ;;  %v179_v58 = vsel %vm45_vm0, %v143_v53, 0.0  ;;  %v173_v59 = vsel %vm45_vm0, %v141_v54, 0.0  ;;  %v389_v14 = vmul.f32 %v238_v61, %v1608_v25 }
 0x109   :  { %180 = vadd.xlane.f32.xlu2 %v179_v58  ;;  %v166_v62 = vpop.xlane.xlu2 %165  ;;  %174 = vadd.xlane.f32.xlu0 %v173_v59  ;;  %v81_v0 = vpop.xlane.xlu0 %80  ;;  %v262_v17 = vmul.f32 0.5, %v261_v1 }
 0x10a   :  { %v242_v2 = vmul.f32 0.5, %v241_v45  ;;  %v202_v3 = vmul.f32 %v166_v62, %v1605_v20  ;;  %v75_v6 = vpop.xlane.xlu1 %74  ;;  %v112_v7 = vmul.f32 %v1605_v20, %v81_v0  ;;  %v408_v30 = vmul.f32 %v1776_v16, %v389_v14 }
 0x10b   :  { %v110_v9 = vmul.f32 %v1605_v20, %v75_v6  ;;  %v263_v32 = vsub.f32 1.5, %v262_v17 }
 0x10c   :  { %v243_v10 = vsub.f32 1.5, %v242_v2  ;;  %v1764_v11 = vadd.f32 1e-05, %v202_v3  ;;  %v1767_v12 = vsub.f32 %v1662_v55, %v112_v7  ;;  %v427_v51 = vadd.f32 %v1793_v31, %v408_v30 }
 0x10d   :  { %v1427_v13 = vpop.eup %1426  ;;  %v1771_v15 = vsub.f32 %v1667_v56, %v110_v9  ;;  %v264_v52 = vmul.f32 %v1735_v42, %v263_v32 }
 0x10e   :  { %v244_v18 = vmul.f32 %v1425_v48, %v243_v10  ;;  %v250_v19 = vmul.f32 %v1427_v13, %v1743_v50  ;;  %1428 = vrsqrt.f32 %v1764_v11  ;;  %v144_v25 = vmul.f32 %v1767_v12, %v1767_v12 }
 0x10f   :  { %v142_v55 = vmul.f32 %v1771_v15, %v1771_v15  ;;  %vm256_vm10 = vweird.f32 %v1427_v13  ;;  %v268_v61 = vsel %vm1809_vm12, %v1735_v42, %v264_v52  ;;  %vm285_vm14 = vweird.f32 %v1764_v11 }
 0x110   :  { %v248_v56 = vsel %vm247_vm7, %v1425_v48, %v244_v18  ;;  %v251_v21 = vmul.f32 %v1427_v13, %v250_v19  ;;  %v182_v28 = vsel %vm45_vm0, %v144_v25, 0.0  ;;  %vm257_vm13 = vmor %vm255_vm11, %vm256_vm10  ;;  %v392_v9 = vmul.f32 %v268_v61, %v1621_v34 }
 0x111   :  { %v390_v22 = vmul.f32 %v248_v56, %v1623_v35  ;;  %v1785_v26 = vpop.xlane.xlu2 %168  ;;  %v176_v27 = vsel %vm45_vm0, %v142_v55, 0.0  ;;  %v84_v29 = vpop.xlane.xlu0 %83  ;;  %183 = vadd.xlane.f32.xlu0 %v182_v28 }
 0x112   :  { %v252_v36 = vmul.f32 0.5, %v251_v21  ;;  %177 = vadd.xlane.f32.xlu1 %v176_v27  ;;  %v163_v37 = vpop.xlane.xlu1 %162  ;;  %v113_v35 = vmul.f32 %v1605_v20, %v84_v29  ;;  %v411_v34 = vmul.f32 %v1776_v16, %v392_v9  ;;  %v203_v52 = vmul.f32 %v1785_v26, %v1605_v20 }
 0x113   :  { %v201_v38 = vmul.f32 %v163_v37, %v1605_v20  ;;  %v409_v33 = vmul.f32 %v1776_v16, %v390_v22 }
 0x114   :  { %v1800_v39 = vpop.eup %1428  ;;  %v253_v41 = vsub.f32 1.5, %v252_v36  ;;  %v1803_v48 = vsub.f32 %v1684_v63, %v113_v35  ;;  %v430_v28 = vadd.f32 %v1793_v31, %v411_v34 }
 0x115   :  { %v217_v49 = vadd.f32 1e-05, %v201_v38  ;;  %v428_v23 = vadd.f32 %v1793_v31, %v409_v33  ;;  %v280_v44 = vmul.f32 %v1800_v39, %v1764_v11  ;;  %vm286_vm15 = vweird.f32 %v1800_v39 }
 0x116   :  { %v254_v54 = vmul.f32 %v1427_v13, %v253_v41  ;;  %v145_v63 = vmul.f32 %v1803_v48, %v1803_v48  ;;  %vm287_vm3 = vmor %vm285_vm14, %vm286_vm15 }
 0x117   :  { %1430 = vrsqrt.f32 %v217_v49  ;;  %v443_v50 = vpack.c.bf16 %v428_v23, %v427_v51  ;;  %v281_v62 = vmul.f32 %v1800_v39, %v280_v44  ;;  %vm275_vm1 = vweird.f32 %v217_v49 }
 0x118   :  { %v258_v45 = vsel %vm257_vm13, %v1427_v13, %v254_v54  ;;  %v185_v58 = vsel %vm45_vm0, %v145_v63, 0.0 }
 0x119   :  { %1353 = vmatmul.msk.bf16.vlgmr.msra.gmra.mxu0 %vm45_vm0, %v443_v50  ;;  %v93_v59 = vpop.xlane.xlu2 %92  ;;  %v391_v2 = vmul.f32 %v258_v45, %v1631_v40  ;;  %v282_v42 = vmul.f32 0.5, %v281_v62 }
 0x11a   :  { %v116_v0 = vmul.f32 %v1605_v20, %v93_v59  ;;  %v87_v1 = vpop.xlane.xlu1 %86  ;;  %186 = vadd.xlane.f32.xlu1 %v185_v58 }
 0x11b   :  { %v114_v3 = vmul.f32 %v1605_v20, %v87_v1  ;;  %v410_v40 = vmul.f32 %v1776_v16, %v391_v2  ;;  %v283_v55 = vsub.f32 1.5, %v282_v42 }
 0x11c   :  { %v1827_v6 = vsub.f32 %v1695_v4, %v116_v0 }
 0x11d   :  { %v1431_v7 = vpop.eup %1430  ;;  %v1831_v10 = vsub.f32 %v1700_v5, %v114_v3  ;;  %v429_v21 = vadd.f32 %v1793_v31, %v410_v40  ;;  %v284_v29 = vmul.f32 %v1800_v39, %v283_v55 }
 0x11e   :  { %v270_v13 = vmul.f32 %v1431_v7, %v217_v49  ;;  %v148_v14 = vmul.f32 %v1827_v6, %v1827_v6  ;;  %vm276_vm2 = vweird.f32 %v1431_v7 }
 0x11f   :  { %v146_v17 = vmul.f32 %v1831_v10, %v1831_v10  ;;  %vm277_vm4 = vmor %vm275_vm1, %vm276_vm2  ;;  %v444_v11 = vpack.c.bf16 %v430_v28, %v429_v21  ;;  %v288_v35 = vsel %vm287_vm3, %v1800_v39, %v284_v29  ;;  %v219_v39 = vadd.f32 1e-05, %v203_v52 }
 0x120   :  { %v271_v18 = vmul.f32 %v1431_v7, %v270_v13  ;;  %v194_v4 = vsel %vm45_vm0, %v148_v14, 0.0  ;;  %v394_v38 = vmul.f32 %v288_v35, %v1648_v47 }
 0x121   :  { %v188_v19 = vsel %vm45_vm0, %v146_v17, 0.0  ;;  %1432 = vrsqrt.f32 %v219_v39  ;;  %vm295_vm5 = vweird.f32 %v219_v39 }
 0x122   :  { %v272_v5 = vmul.f32 0.5, %v271_v18  ;;  %189 = vadd.xlane.f32.xlu2 %v188_v19  ;;  %v90_v25 = vpop.xlane.xlu1 %89  ;;  %195 = vadd.xlane.f32.xlu1 %v194_v4  ;;  %v413_v41 = vmul.f32 %v1776_v16, %v394_v38 }
 0x123   :  { %v115_v56 = vmul.f32 %v1605_v20, %v90_v25 }
 0x124   :  { %v273_v22 = vsub.f32 1.5, %v272_v5  ;;  %v432_v51 = vadd.f32 %v1793_v31, %v413_v41 }
 0x125   :  { %v1846_v27 = vsub.f32 %v1709_v8, %v115_v56 }
 0x126   :  { %v274_v30 = vmul.f32 %v1431_v7, %v273_v22 }
 0x127   :  { %v147_v32 = vmul.f32 %v1846_v27, %v1846_v27  ;;  %v1433_v53 = vpop.eup %1432 }
 0x128   :  { %v278_v36 = vsel %vm277_vm4, %v1431_v7, %v274_v30  ;;  %vm296_vm6 = vweird.f32 %v1433_v53 }
 0x129   :  { %1354 = vmatmul.msk.bf16.gmra.mxu0 %vm45_vm0, %v444_v11  ;;  %v191_v37 = vsel %vm45_vm0, %v147_v32, 0.0  ;;  %v393_v8 = vmul.f32 %v278_v36, %v1675_v60  ;;  %v290_v60 = vmul.f32 %v1433_v53, %v219_v39  ;;  %vm297_vm7 = vmor %vm295_vm5, %vm296_vm6 }
 0x12a   :  { %192 = vadd.xlane.f32.xlu0 %v191_v37 }
 0x12b   :  { %v412_v33 = vmul.f32 %v1776_v16, %v393_v8  ;;  %v291_v54 = vmul.f32 %v1433_v53, %v290_v60  ;;  %v1903_v60 = vld [vmem:[%s2863_s4] ss:$0 sm:$0xff] }
 0x12d   :  { %v431_v49 = vadd.f32 %v1793_v31, %v412_v33  ;;  %v292_v50 = vmul.f32 0.5, %v291_v54 }
 0x12f   :  { %v445_v23 = vpack.c.bf16 %v432_v51, %v431_v49  ;;  %v293_v45 = vsub.f32 1.5, %v292_v50 }
 0x131   :  { %v294_v2 = vmul.f32 %v1433_v53, %v293_v45 }
 0x133   :  { %v298_v9 = vsel %vm297_vm7, %v1433_v53, %v294_v2 }
 0x134   :  { %v395_v19 = vmul.f32 %v298_v9, %v1669_v57 }
 0x136   :  { %v414_v30 = vmul.f32 %v1776_v16, %v395_v19 }
 0x138   :  { %v433_v8 = vadd.f32 %v1793_v31, %v414_v30 }
 0x139   :  { %1355 = vmatmul.msk.bf16.gmra.mxu0 %vm45_vm0, %v445_v23 }
 0x174   :  { %v172_v47 = vpop.xlane.xlu0 %171 }
 0x175   :  { %v204_v44 = vmul.f32 %v172_v47, %v1605_v20 }
 0x177   :  { %v220_v63 = vadd.f32 1e-05, %v204_v44 }
 0x179   :  { %1434 = vrsqrt.f32 %v220_v63  ;;  %vm305_vm9 = vweird.f32 %v220_v63 }
 0x17c   :  { %v181_v58 = vpop.xlane.xlu2 %180  ;;  %v175_v59 = vpop.xlane.xlu0 %174 }
 0x17d   :  { %v207_v61 = vmul.f32 %v181_v58, %v1605_v20  ;;  %v205_v62 = vmul.f32 %v175_v59, %v1605_v20 }
 0x17f   :  { %v1435_v26 = vpop.eup %1434  ;;  %v1867_v0 = vadd.f32 1e-05, %v207_v61  ;;  %v1869_v1 = vadd.f32 1e-05, %v205_v62 }
 0x180   :  { %v300_v3 = vmul.f32 %v1435_v26, %v220_v63  ;;  %vm306_vm8 = vweird.f32 %v1435_v26 }
 0x181   :  { %1436 = vrsqrt.f32 %v1867_v0  ;;  %vm307_vm10 = vmor %vm305_vm9, %vm306_vm8  ;;  %vm335_vm11 = vweird.f32 %v1867_v0  ;;  %vm315_vm13 = vweird.f32 %v1869_v1 }
 0x182   :  { %v301_v7 = vmul.f32 %v1435_v26, %v300_v3  ;;  %1438 = vrsqrt.f32 %v1869_v1 }
 0x184   :  { %v302_v42 = vmul.f32 0.5, %v301_v7  ;;  %v184_v14 = vpop.xlane.xlu0 %183 }
 0x185   :  { %v178_v13 = vpop.xlane.xlu1 %177  ;;  %v208_v18 = vmul.f32 %v184_v14, %v1605_v20 }
 0x186   :  { %v303_v17 = vsub.f32 1.5, %v302_v42  ;;  %v206_v40 = vmul.f32 %v178_v13, %v1605_v20 }
 0x187   :  { %v1875_v4 = vpop.eup %1436  ;;  %v1884_v21 = vadd.f32 1e-05, %v208_v18 }
 0x188   :  { %v1878_v34 = vpop.eup %1438  ;;  %v304_v55 = vmul.f32 %v1435_v26, %v303_v17  ;;  %v330_v5 = vmul.f32 %v1875_v4, %v1867_v0  ;;  %v222_v25 = vadd.f32 1e-05, %v206_v40  ;;  %vm336_vm12 = vweird.f32 %v1875_v4 }
 0x189   :  { %v310_v56 = vmul.f32 %v1878_v34, %v1869_v1  ;;  %vm316_vm14 = vweird.f32 %v1878_v34  ;;  %vm1915_vm1 = vmor %vm335_vm11, %vm336_vm12  ;;  %vm345_vm3 = vweird.f32 %v1884_v21 }
 0x18a   :  { %v308_v22 = vsel %vm307_vm10, %v1435_v26, %v304_v55  ;;  %v331_v28 = vmul.f32 %v1875_v4, %v330_v5  ;;  %1440 = vrsqrt.f32 %v222_v25  ;;  %vm325_vm15 = vweird.f32 %v222_v25  ;;  %vm1929_vm4 = vmor %vm315_vm13, %vm316_vm14 }
 0x18b   :  { %v396_v57 = vmul.f32 %v308_v22, %v1726_v24  ;;  %v311_v29 = vmul.f32 %v1878_v34, %v310_v56  ;;  %1442 = vrsqrt.f32 %v1884_v21 }
 0x18c   :  { %v332_v37 = vmul.f32 0.5, %v331_v28 }
 0x18d   :  { %v312_v11 = vmul.f32 0.5, %v311_v29  ;;  %v187_v32 = vpop.xlane.xlu1 %186  ;;  %v415_v36 = vmul.f32 %v1776_v16, %v396_v57 }
 0x18e   :  { %v209_v35 = vmul.f32 %v187_v32, %v1605_v20  ;;  %v333_v52 = vsub.f32 1.5, %v332_v37 }
 0x18f   :  { %v434_v38 = vadd.f32 %v1793_v31, %v415_v36  ;;  %v313_v49 = vsub.f32 1.5, %v312_v11 }
 0x190   :  { %v1441_v33 = vpop.eup %1440  ;;  %v1895_v41 = vadd.f32 1e-05, %v209_v35  ;;  %v334_v45 = vmul.f32 %v1875_v4, %v333_v52 }
 0x191   :  { %v1443_v24 = vpop.eup %1442  ;;  %v320_v51 = vmul.f32 %v1441_v33, %v222_v25  ;;  %v446_v23 = vpack.c.bf16 %v434_v38, %v433_v8  ;;  %v314_v47 = vmul.f32 %v1878_v34, %v313_v49  ;;  %vm326_vm2 = vweird.f32 %v1441_v33 }
 0x192   :  { %v340_v39 = vmul.f32 %v1443_v24, %v1884_v21  ;;  %1444 = vrsqrt.f32 %v1895_v41  ;;  %vm346_vm5 = vweird.f32 %v1443_v24  ;;  %v338_v18 = vsel %vm1915_vm1, %v1875_v4, %v334_v45  ;;  %vm327_vm6 = vmor %vm325_vm15, %vm326_vm2 }
 0x193   :  { %v321_v53 = vmul.f32 %v1441_v33, %v320_v51  ;;  %1356 = vmatmul.msk.bf16.gmra.mxu0 %vm45_vm0, %v446_v23  ;;  %v318_v14 = vsel %vm1929_vm4, %v1878_v34, %v314_v47  ;;  %vm347_vm7 = vmor %vm345_vm3, %vm346_vm5  ;;  %v399_v29 = vmul.f32 %v338_v18, %v1738_v43  ;;  %vm355_vm8 = vweird.f32 %v1895_v41  ;;  %v1400_v18 = vld [vmem:[%s2864_s5 + $0x28] sm:$0xff] }
 0x194   :  { %v341_v54 = vmul.f32 %v1443_v24, %v340_v39  ;;  %v397_v56 = vmul.f32 %v318_v14, %v1741_v46 }
 0x195   :  { %v322_v44 = vmul.f32 0.5, %v321_v53  ;;  %v190_v63 = vpop.xlane.xlu2 %189  ;;  %v196_v50 = vpop.xlane.xlu1 %195 }
 0x196   :  { %v342_v58 = vmul.f32 0.5, %v341_v54  ;;  %v210_v59 = vmul.f32 %v190_v63, %v1605_v20  ;;  %v212_v61 = vmul.f32 %v196_v50, %v1605_v20  ;;  %v504_v62 = vpop.f32.mrf.mxu0 }
 0x197   :  { %v323_v2 = vsub.f32 1.5, %v322_v44  ;;  %v1921_v3 = vadd.f32 %v1903_v60, %v504_v62 }
 0x198   :  { %v1923_v7 = vpop.eup %1444  ;;  %v343_v0 = vsub.f32 1.5, %v342_v58  ;;  %v1933_v42 = vadd.f32 1e-05, %v210_v59  ;;  %v1935_v13 = vadd.f32 1e-05, %v212_v61 }
 0x199   :  { %v324_v17 = vmul.f32 %v1441_v33, %v323_v2  ;;  %v350_v40 = vmul.f32 %v1923_v7, %v1895_v41  ;;  %v1943_v1 = vmul.f32 0.70710677, %v1921_v3  ;;  %vm356_vm9 = vweird.f32 %v1923_v7  ;;  %v1401_v41 = vld [vmem:[%s2864_s5 + $0x30] sm:$0xff] }
 0x19a   :  { %v344_v19 = vmul.f32 %v1443_v24, %v343_v0  ;;  %1446 = vrsqrt.f32 %v1933_v42  ;;  %vm1996_vm10 = vmor %vm355_vm8, %vm356_vm9  ;;  %vm365_vm11 = vweird.f32 %v1933_v42  ;;  %vm385_vm14 = vweird.f32 %v1935_v13 }
 0x19b   :  { %v328_v55 = vsel %vm327_vm6, %v1441_v33, %v324_v17  ;;  %v351_v34 = vmul.f32 %v1923_v7, %v350_v40  ;;  %1448 = vrsqrt.f32 %v1935_v13  ;;  %v1955_v5 = vand.u32 2147483647, %v1943_v1 }
 0x19c   :  { %v398_v4 = vmul.f32 %v328_v55, %v1771_v15  ;;  %v348_v25 = vsel %vm347_vm7, %v1443_v24, %v344_v19  ;;  %v416_v15 = vmul.f32 %v1776_v16, %v397_v56  ;;  %v418_v24 = vmul.f32 %v1776_v16, %v399_v29 }
 0x19d   :  { %v352_v22 = vmul.f32 0.5, %v351_v34  ;;  %v576_v28 = vmul.f32 0.3275911, %v1955_v5  ;;  %v193_v57 = vpop.xlane.xlu0 %192  ;;  %v400_v21 = vmul.f32 %v348_v25, %v1767_v12  ;;  %v992_v34 = vsub.f32 0.0, %v1955_v5 }
 0x19e   :  { %v211_v30 = vmul.f32 %v193_v57, %v1605_v20  ;;  %v506_v11 = vpop.f32.mrf.mxu0  ;;  %v417_v32 = vmul.f32 %v1776_v16, %v398_v4  ;;  %v1402_v20 = vld [vmem:[%s2864_s5 + $0x38] sm:$0xff]  ;;  %v435_v52 = vadd.f32 %v1793_v31, %v416_v15  ;;  %v437_v63 = vadd.f32 %v1793_v31, %v418_v24  ;;  %v1399_v57 = vld [vmem:[%s2864_s5 + $0x20] sm:$0xff] }
 0x19f   :  { %v1964_v36 = vadd.f32 1.0, %v576_v28  ;;  %v353_v8 = vsub.f32 1.5, %v352_v22  ;;  %v1974_v43 = vadd.f32 %v1903_v60, %v506_v11  ;;  %v419_v49 = vmul.f32 %v1776_v16, %v400_v21  ;;  %1260 = vmatpush.bf16.msra.mxu1 %v1402_v20  ;;  %1405 = vmatpush.bf16.msra.mxu2 %v1402_v20  ;;  %v1398_v24 = vld [vmem:[%s2864_s5 + $0x18] sm:$0xff] }
 0x1a0   :  { %v1447_v37 = vpop.eup %1446  ;;  %v1966_v46 = vadd.f32 1e-05, %v211_v30  ;;  %v436_v33 = vadd.f32 %v1793_v31, %v417_v32  ;;  %v1008_v32 = vmul.f32 %v992_v34, %v1955_v5 }
 0x1a1   :  { %v1969_v35 = vpop.eup %1448  ;;  %v360_v38 = vmul.f32 %v1447_v37, %v1933_v42  ;;  %1450 = vrcp.f32 %v1964_v36  ;;  %v354_v39 = vmul.f32 %v1923_v7, %v353_v8  ;;  %v1991_v54 = vmul.f32 0.70710677, %v1974_v43 }
 0x1a2   :  { %v380_v12 = vmul.f32 %v1969_v35, %v1935_v13  ;;  %1452 = vrsqrt.f32 %v1966_v46  ;;  %v447_v44 = vpack.c.bf16 %v436_v33, %v435_v52  ;;  %v438_v50 = vadd.f32 %v1793_v31, %v419_v49 }
 0x1a3   :  { %v361_v51 = vmul.f32 %v1447_v37, %v360_v38  ;;  %vm366_vm12 = vweird.f32 %v1447_v37  ;;  %v2006_v61 = vand.u32 2147483647, %v1991_v54  ;;  %1261 = vmatpush.bf16.msra.mxu1 %v1401_v41  ;;  %1406 = vmatpush.bf16.msra.mxu2 %v1401_v41  ;;  %v358_v0 = vsel %vm1996_vm10, %v1923_v7, %v354_v39 }
 0x1a4   :  { %v381_v23 = vmul.f32 %v1969_v35, %v380_v12  ;;  %1357 = vmatmul.msk.bf16.gmra.mxu0 %vm45_vm0, %v447_v44  ;;  %v448_v2 = vpack.c.bf16 %v438_v50, %v437_v63  ;;  %vm367_vm13 = vmor %vm365_vm11, %vm366_vm12  ;;  %v401_v42 = vmul.f32 %v358_v0, %v1803_v48  ;;  %vm386_vm15 = vweird.f32 %v1969_v35  ;;  %v1397_v63 = vld [vmem:[%s2864_s5 + $0x10] sm:$0xff] }
 0x1a5   :  { %v362_v53 = vmul.f32 0.5, %v361_v51  ;;  %v577_v17 = vmul.f32 0.3275911, %v2006_v61  ;;  %v619_v11 = vand.u32 2147483648, %v1964_v36  ;;  %vm2058_vm1 = vmor %vm385_vm14, %vm386_vm15  ;;  %vm613_vm2 = vweird.f32 %v1964_v36 }
 0x1a6   :  { %v509_v45 = vpop.f32.mrf.mxu0  ;;  %v382_v26 = vmul.f32 0.5, %v381_v23  ;;  %1358 = vmatmul.msk.bf16.vlgmr.msra.gmra.mxu3 %vm45_vm0, %v448_v2  ;;  %v420_v38 = vmul.f32 %v1776_v16, %v401_v42  ;;  %v993_v5 = vsub.f32 0.0, %v2006_v61  ;;  %vm375_vm3 = vweird.f32 %v1966_v46 }
 0x1a7   :  { %v2003_v58 = vpop.eup %1450  ;;  %v363_v59 = vsub.f32 1.5, %v362_v53  ;;  %v2009_v62 = vadd.f32 %v1903_v60, %v509_v45  ;;  %v2032_v56 = vadd.f32 1.0, %v577_v17  ;;  %1262 = vmatpush.bf16.msra.mxu1 %v1400_v18  ;;  %1407 = vmatpush.bf16.msra.mxu2 %v1400_v18  ;;  %v620_v51 = vor.u32 1.1754944e-38, %v619_v11 }
 0x1a8   :  { %v2012_v9 = vpop.eup %1452  ;;  %v609_v19 = vmul.f32 %v2003_v58, %v1964_v36  ;;  %v383_v25 = vsub.f32 1.5, %v382_v26  ;;  %v1024_v23 = vmul.f32 1.442695, %v1008_v32  ;;  %v439_v44 = vadd.f32 %v1793_v31, %v420_v38 }
 0x1a9   :  { %v364_v14 = vmul.f32 %v1447_v37, %v363_v59  ;;  %v2019_v40 = vmul.f32 0.70710677, %v2009_v62  ;;  %v370_v55 = vmul.f32 %v2012_v9, %v1966_v46  ;;  %1454 = vrcp.f32 %v2032_v56 }
 0x1aa   :  { %v610_v29 = vsub.f32 1.0, %v609_v19  ;;  %vm376_vm4 = vweird.f32 %v2012_v9  ;;  %vm614_vm5 = vweird.f32 %v2003_v58  ;;  %v634_v2 = vand.u32 2147483648, %v2032_v56 }
 0x1ab   :  { %v368_v7 = vsel %vm367_vm13, %v1447_v37, %v364_v14  ;;  %v2035_v4 = vand.u32 2147483647, %v2019_v40  ;;  %v371_v22 = vmul.f32 %v2012_v9, %v370_v55  ;;  %1263 = vmatpush.bf16.msra.mxu1 %v1399_v57  ;;  %1408 = vmatpush.bf16.msra.mxu2 %v1399_v57  ;;  %v384_v37 = vmul.f32 %v1969_v35, %v383_v25  ;;  %vm2096_vm6 = vmor %vm375_vm3, %vm376_vm4 }
 0x1ac   :  { %v402_v28 = vmul.f32 %v368_v7, %v1831_v10  ;;  %v611_v49 = vmul.f32 %v2003_v58, %v610_v29  ;;  %vm628_vm7 = vweird.f32 %v2032_v56  ;;  %v617_v34 = vand.u32 2147483647, %v1964_v36  ;;  %vm2126_vm8 = vmor %vm613_vm2, %vm614_vm5 }
 0x1ad   :  { %v372_v21 = vmul.f32 0.5, %v371_v22  ;;  %v578_v30 = vmul.f32 0.3275911, %v2035_v4  ;;  %v388_v53 = vsel %vm2058_vm1, %v1969_v35, %v384_v37  ;;  %v1009_v35 = vmul.f32 %v993_v5, %v2006_v61  ;;  %v1396_v61 = vld [vmem:[%s2864_s5 + $0x8] sm:$0xff] }
 0x1ae   :  { %v511_v48 = vpop.f32.mrf.mxu0  ;;  %v421_v33 = vmul.f32 %v1776_v16, %v402_v28  ;;  %v994_v45 = vsub.f32 0.0, %v2035_v4  ;;  %v612_v17 = vadd.f32 %v2003_v58, %v611_v49  ;;  %v404_v18 = vmul.f32 %v388_v53, %v1827_v6 }
 0x1af   :  { %v2050_v10 = vadd.f32 %v1903_v60, %v511_v48  ;;  %v373_v15 = vsub.f32 1.5, %v372_v21  ;;  %v2053_v8 = vadd.f32 1.0, %v578_v30  ;;  %v2075_v13 = vpop.eup %1454  ;;  %1264 = vmatpush.bf16.msra.mxu1 %v1398_v24  ;;  %1409 = vmatpush.bf16.msra.mxu2 %v1398_v24  ;;  %v1026_v25 = vmul.f32 1.442695, %v1009_v35  ;;  %v1395_v48 = vld [vmem:[%s2864_s5] sm:$0xff] }
 0x1b0   :  { %v440_v39 = vadd.f32 %v1793_v31, %v421_v33  ;;  %v624_v47 = vmul.f32 %v2075_v13, %v2032_v56  ;;  %v635_v28 = vor.u32 1.1754944e-38, %v634_v2  ;;  %v616_v36 = vsel %vm2126_vm8, %v2003_v58, %v612_v17 }
 0x1b1   :  { %v2065_v12 = vmul.f32 0.70710677, %v2050_v10  ;;  %1456 = vrcp.f32 %v2053_v8  ;;  %v374_v41 = vmul.f32 %v2012_v9, %v373_v15  ;;  %v649_v57 = vand.u32 2147483648, %v2053_v8 }
 0x1b2   :  { %v625_v26 = vsub.f32 1.0, %v624_v47  ;;  %v449_v0 = vpack.c.bf16 %v440_v39, %v439_v44  ;;  %1458 = vpow2.f32 %v1024_v23  ;;  %vm629_vm9 = vweird.f32 %v2075_v13 }
 0x1b3   :  { %v2078_v52 = vand.u32 2147483647, %v2065_v12  ;;  %1265 = vmatpush.bf16.msra.mxu1 %v1397_v63  ;;  %1410 = vmatpush.bf16.msra.mxu2 %v1397_v63  ;;  %v378_v7 = vsel %vm2096_vm6, %v2012_v9, %v374_v41  ;;  %v1010_v9 = vmul.f32 %v994_v45, %v2035_v4  ;;  %v423_v32 = vmul.f32 %v1776_v16, %v404_v18  ;;  %vm2165_vm12 = vmor %vm628_vm7, %vm629_vm9 }
 0x1b4   :  { %v626_v6 = vmul.f32 %v2075_v13, %v625_v26  ;;  %v403_v21 = vmul.f32 %v378_v7, %v1846_v27  ;;  %vm618_vm10 = vcmp.eq.f32.partialorder %v617_v34, 8.507059e+37  ;;  %vm643_vm11 = vweird.f32 %v2053_v8 }
 0x1b5   :  { %v579_v59 = vmul.f32 0.3275911, %v2078_v52  ;;  %v995_v4 = vsub.f32 0.0, %v2078_v52  ;;  %v1028_v15 = vmul.f32 1.442695, %v1010_v9  ;;  %v2156_v38 = vsel %vm618_vm10, %v620_v51, %v616_v36 }
 0x1b6   :  { %v514_v14 = vpop.f32.mrf.mxu0  ;;  %1359 = vmatmul.msk.bf16.gmra.mxu3 %vm45_vm0, %v449_v0  ;;  %v627_v58 = vadd.f32 %v2075_v13, %v626_v6  ;;  %v650_v20 = vor.u32 1.1754944e-38, %v649_v57  ;;  %v632_v24 = vand.u32 2147483647, %v2032_v56  ;;  %v422_v53 = vmul.f32 %v1776_v16, %v403_v21 }
 0x1b7   :  { %v2106_v46 = vadd.f32 1.0, %v579_v59  ;;  %v2109_v19 = vadd.f32 %v1903_v60, %v514_v14  ;;  %v2114_v55 = vpop.eup %1456  ;;  %1266 = vmatpush.bf16.msra.mxu1 %v1396_v61  ;;  %1411 = vmatpush.bf16.msra.mxu2 %v1396_v61  ;;  %v1011_v51 = vmul.f32 %v995_v4, %v2078_v52  ;;  %v848_v41 = vmul.f32 1.0614054, %v2156_v38 }
 0x1b8   :  { %v639_v22 = vmul.f32 %v2114_v55, %v2053_v8  ;;  %v2153_v27 = vpop.eup %1458  ;;  %v442_v56 = vadd.f32 %v1793_v31, %v423_v32  ;;  %v631_v63 = vsel %vm2165_vm12, %v2075_v13, %v627_v58  ;;  %vm644_vm13 = vweird.f32 %v2114_v55 }
 0x1b9   :  { %1460 = vrcp.f32 %v2106_v46  ;;  %v2137_v29 = vmul.f32 0.70710677, %v2109_v19  ;;  %v864_v16 = vadd.f32 -1.4531521, %v848_v41  ;;  %vm633_vm14 = vcmp.eq.f32.partialorder %v632_v24, 8.507059e+37  ;;  %vm2200_vm1 = vmor %vm643_vm11, %vm644_vm13 }
 0x1ba   :  { %v640_v30 = vsub.f32 1.0, %v639_v22  ;;  %1462 = vpow2.f32 %v1026_v25  ;;  %v647_v45 = vand.u32 2147483647, %v2053_v8  ;;  %vm658_vm15 = vweird.f32 %v2106_v46 }
 0x1bb   :  { %v2149_v11 = vand.u32 2147483647, %v2137_v29  ;;  %1267 = vmatpush.bf16.msra.mxu1 %v1395_v48  ;;  %1412 = vmatpush.bf16.msra.mxu2 %v1395_v48  ;;  %v441_v26 = vadd.f32 %v1793_v31, %v422_v53  ;;  %v2196_v2 = vsel %vm633_vm14, %v635_v28, %v631_v63  ;;  %v880_v18 = vmul.f32 %v864_v16, %v2156_v38 }
 0x1bc   :  { %v641_v37 = vmul.f32 %v2114_v55, %v640_v30  ;;  %v849_v17 = vmul.f32 1.0614054, %v2196_v2  ;;  %v664_v61 = vand.u32 2147483648, %v2106_v46  ;;  %v1030_v7 = vmul.f32 1.442695, %v1011_v51 }
 0x1bd   :  { %v580_v5 = vmul.f32 0.3275911, %v2149_v11  ;;  %v896_v34 = vadd.f32 1.4214138, %v880_v18  ;;  %vm648_vm3 = vcmp.eq.f32.partialorder %v647_v45, 8.507059e+37  ;;  %v450_v9 = vpack.c.bf16 %v442_v56, %v441_v26 }
 0x1be   :  { %v516_v33 = vpop.f32.mrf.mxu0  ;;  %v642_v50 = vadd.f32 %v2114_v55, %v641_v37  ;;  %v865_v8 = vadd.f32 -1.4531521, %v849_v17  ;;  %v662_v57 = vand.u32 2147483647, %v2106_v46  ;;  %v665_v48 = vor.u32 1.1754944e-38, %v664_v61 }
 0x1bf   :  { %v1461_v49 = vpop.eup %1460  ;;  %v2171_v39 = vadd.f32 %v1903_v60, %v516_v33  ;;  %v2176_v44 = vadd.f32 1.0, %v580_v5  ;;  %v912_v21 = vmul.f32 %v896_v34, %v2156_v38  ;;  %v996_v41 = vsub.f32 0.0, %v2149_v11 }
 0x1c0   :  { %v654_v47 = vmul.f32 %v1461_v49, %v2106_v46  ;;  %v2189_v59 = vpop.eup %1462  ;;  %vm659_vm2 = vweird.f32 %v1461_v49  ;;  %v646_v31 = vsel %vm2200_vm1, %v2114_v55, %v642_v50  ;;  %v881_v55 = vmul.f32 %v865_v8, %v2196_v2 }
 0x1c1   :  { %v2184_v52 = vmul.f32 0.70710677, %v2171_v39  ;;  %1464 = vrcp.f32 %v2176_v44  ;;  %vm2213_vm4 = vmor %vm658_vm15, %vm659_vm2  ;;  %v2219_v28 = vsel %vm648_vm3, %v650_v20, %v646_v31  ;;  %v679_v58 = vand.u32 2147483648, %v2176_v44 }
 0x1c2   :  { %v655_v35 = vsub.f32 1.0, %v654_v47  ;;  %v850_v4 = vmul.f32 1.0614054, %v2219_v28  ;;  %v897_v46 = vadd.f32 1.4214138, %v881_v55  ;;  %vm663_vm5 = vcmp.eq.f32.partialorder %v662_v57, 8.507059e+37 }
 0x1c3   :  { %v2193_v13 = vand.u32 2147483647, %v2184_v52  ;;  %v928_v20 = vadd.f32 -0.28449672, %v912_v21  ;;  %v677_v53 = vand.u32 2147483647, %v2176_v44  ;;  %vm673_vm7 = vweird.f32 %v2176_v44 }
 0x1c4   :  { %v656_v14 = vmul.f32 %v1461_v49, %v655_v35  ;;  %v866_v33 = vadd.f32 -1.4531521, %v850_v4  ;;  %v913_v24 = vmul.f32 %v897_v46, %v2196_v2  ;;  %v680_v16 = vor.u32 1.1754944e-38, %v679_v58 }
 0x1c5   :  { %v581_v6 = vmul.f32 0.3275911, %v2193_v13  ;;  %vm1088_vm8 = vcmp.ge.f32.partialorder %v1943_v1, 0.0  ;;  %vm678_vm10 = vcmp.eq.f32.partialorder %v677_v53, 8.507059e+37  ;;  %vm1089_vm15 = vcmp.ge.f32.partialorder %v1991_v54, 0.0 }
 0x1c6   :  { %v657_v42 = vadd.f32 %v1461_v49, %v656_v14  ;;  %1360 = vmatmul.msk.bf16.gmra.mxu3 %vm45_vm0, %v450_v9  ;;  %v882_v51 = vmul.f32 %v866_v33, %v2219_v28  ;;  %v929_v47 = vadd.f32 -0.28449672, %v913_v24  ;;  %vm1091_vm1 = vcmp.ge.f32.partialorder %v2065_v12, 0.0 }
 0x1c7   :  { %v2217_v22 = vadd.f32 1.0, %v581_v6  ;;  %v1465_v36 = vpop.eup %1464  ;;  %vm1090_vm2 = vcmp.ge.f32.partialorder %v2019_v40, 0.0  ;;  %vm1093_vm3 = vcmp.ge.f32.partialorder %v2184_v52, 0.0 }
 0x1c8   :  { %v661_v30 = vsel %vm2213_vm4, %v1461_v49, %v657_v42  ;;  %v669_v32 = vmul.f32 %v1465_v36, %v2176_v44  ;;  %vm674_vm6 = vweird.f32 %v1465_v36  ;;  %v898_v35 = vadd.f32 1.4214138, %v882_v51 }
 0x1c9   :  { %1466 = vrcp.f32 %v2217_v22  ;;  %v2231_v5 = vsel %vm663_vm5, %v665_v48, %v661_v30  ;;  %vm675_vm9 = vmor %vm673_vm7, %vm674_vm6  ;;  %v694_v14 = vand.u32 2147483648, %v2217_v22  ;;  %v945_v44 = vmul.f32 %v929_v47, %v2196_v2 }
 0x1ca   :  { %1468 = vpow2.f32 %v1028_v15  ;;  %v670_v37 = vsub.f32 1.0, %v669_v32  ;;  %v851_v49 = vmul.f32 1.0614054, %v2231_v5  ;;  %v944_v15 = vmul.f32 %v928_v20, %v2156_v38 }
 0x1cb   :  { %1470 = vpow2.f32 %v1030_v7  ;;  %v914_v61 = vmul.f32 %v898_v35, %v2219_v28  ;;  %v961_v8 = vadd.f32 0.2548296, %v945_v44  ;;  %v692_v57 = vand.u32 2147483647, %v2217_v22 }
 0x1cc   :  { %v671_v23 = vmul.f32 %v1465_v36, %v670_v37  ;;  %v867_v56 = vadd.f32 -1.4531521, %v851_v49  ;;  %v960_v50 = vadd.f32 0.2548296, %v944_v15  ;;  %v997_v30 = vsub.f32 0.0, %v2193_v13 }
 0x1cd   :  { %v930_v9 = vadd.f32 -0.28449672, %v914_v61  ;;  %vm688_vm12 = vweird.f32 %v2217_v22  ;;  %v695_v37 = vor.u32 1.1754944e-38, %v694_v14  ;;  %vm693_vm14 = vcmp.eq.f32.partialorder %v692_v57, 8.507059e+37 }
 0x1ce   :  { %v672_v45 = vadd.f32 %v1465_v36, %v671_v23  ;;  %v883_v17 = vmul.f32 %v867_v56, %v2231_v5  ;;  %v976_v18 = vmul.f32 %v960_v50, %v2156_v38  ;;  %v977_v38 = vmul.f32 %v961_v8, %v2196_v2 }
 0x1cf   :  { %v1467_v63 = vpop.eup %1466  ;;  %v946_v48 = vmul.f32 %v930_v9, %v2219_v28  ;;  %v1013_v44 = vmul.f32 %v997_v30, %v2193_v13  ;;  %vm1092_vm4 = vcmp.ge.f32.partialorder %v2137_v29, 0.0 }
 0x1d0   :  { %v1469_v26 = vpop.eup %1468  ;;  %v684_v0 = vmul.f32 %v1467_v63, %v2217_v22  ;;  %v676_v7 = vsel %vm675_vm9, %v1465_v36, %v672_v45  ;;  %v899_v34 = vadd.f32 1.4214138, %v883_v17  ;;  %v1056_v25 = vmul.f32 %v2153_v27, %v976_v18 }
 0x1d1   :  { %v1471_v6 = vpop.eup %1470  ;;  %v2248_v42 = vsel %vm678_vm10, %v680_v16, %v676_v7  ;;  %vm689_vm11 = vweird.f32 %v1467_v63  ;;  %v1057_v27 = vmul.f32 %v2189_v59, %v977_v38  ;;  %v962_v33 = vadd.f32 0.2548296, %v946_v48 }
 0x1d2   :  { %v685_v31 = vsub.f32 1.0, %v684_v0  ;;  %v852_v55 = vmul.f32 1.0614054, %v2248_v42  ;;  %v915_v36 = vmul.f32 %v899_v34, %v2231_v5  ;;  %v1072_v4 = vsub.f32 1.0, %v1056_v25  ;;  %vm690_vm13 = vmor %vm688_vm12, %vm689_vm11 }
 0x1d3   :  { %v1073_v24 = vsub.f32 1.0, %v1057_v27  ;;  %v978_v22 = vmul.f32 %v962_v33, %v2219_v28  ;;  %v1012_v16 = vmul.f32 %v996_v41, %v2149_v11  ;;  %v1137_v28 = vmul.f32 0.5, %v1974_v43 }
 0x1d4   :  { %v686_v21 = vmul.f32 %v1467_v63, %v685_v31  ;;  %v868_v32 = vadd.f32 -1.4531521, %v852_v55  ;;  %v931_v58 = vadd.f32 -0.28449672, %v915_v36  ;;  %v1104_v20 = vsub.f32 0.0, %v1072_v4 }
 0x1d5   :  { %v1105_v53 = vsub.f32 0.0, %v1073_v24  ;;  %v1058_v35 = vmul.f32 %v1469_v26, %v978_v22  ;;  %v1032_v11 = vmul.f32 1.442695, %v1012_v16  ;;  %v1034_v34 = vmul.f32 1.442695, %v1013_v44 }
 0x1d6   :  { %v687_v46 = vadd.f32 %v1467_v63, %v686_v21  ;;  %v884_v2 = vmul.f32 %v868_v32, %v2248_v42  ;;  %v947_v49 = vmul.f32 %v931_v58, %v2231_v5  ;;  %v1120_v15 = vsel %vm1088_vm8, %v1072_v4, %v1104_v20 }
 0x1d7   :  { %v1152_v50 = vadd.f32 1.0, %v1120_v15  ;;  %v1121_v0 = vsel %vm1089_vm15, %v1073_v24, %v1105_v53  ;;  %v1074_v61 = vsub.f32 1.0, %v1058_v35  ;;  %1472 = vpow2.f32 %v1032_v11 }
 0x1d8   :  { %v691_v23 = vsel %vm690_vm13, %v1467_v63, %v687_v46  ;;  %v900_v59 = vadd.f32 1.4214138, %v884_v2  ;;  %v963_v47 = vadd.f32 0.2548296, %v947_v49  ;;  %v1136_v63 = vmul.f32 0.5, %v1921_v3 }
 0x1d9   :  { %v696_v51 = vsel %vm693_vm14, %v695_v37, %v691_v23  ;;  %v1153_v54 = vadd.f32 1.0, %v1121_v0  ;;  %1474 = vpow2.f32 %v1034_v34  ;;  %v1139_v48 = vmul.f32 0.5, %v2050_v10 }
 0x1da   :  { %v853_v56 = vmul.f32 1.0614054, %v696_v51  ;;  %v916_v45 = vmul.f32 %v900_v59, %v2248_v42  ;;  %v979_v1 = vmul.f32 %v963_v47, %v2231_v5  ;;  %v1168_v41 = vmul.f32 %v1152_v50, %v1136_v63 }
 0x1db   :  { %v1169_v26 = vmul.f32 %v1153_v54, %v1137_v28  ;;  %v1106_v5 = vsub.f32 0.0, %v1074_v61  ;;  %v1138_v46 = vmul.f32 0.5, %v2009_v62  ;;  %v1141_v22 = vmul.f32 0.5, %v2171_v39 }
 0x1dc   :  { %v869_v14 = vadd.f32 -1.4531521, %v853_v56  ;;  %v932_v17 = vadd.f32 -0.28449672, %v916_v45  ;;  %v1059_v18 = vmul.f32 %v1471_v6, %v979_v1  ;;  %v1140_v62 = vmul.f32 0.5, %v2109_v19 }
 0x1dd   :  { %v1184_v25 = vpack.c.bf16 %v1169_v26, %v1168_v41  ;;  %v1122_v55 = vsel %vm1090_vm2, %v1074_v61, %v1106_v5  ;;  %v1473_v4 = vpop.eup %1472 }
 0x1de   :  { %v885_v7 = vmul.f32 %v869_v14, %v696_v51  ;;  %v948_v31 = vmul.f32 %v932_v17, %v2248_v42  ;;  %v1075_v8 = vsub.f32 1.0, %v1059_v18  ;;  %v1154_v32 = vadd.f32 1.0, %v1122_v55 }
 0x1df   :  { %1268 = vmatmul.bf16.vlgmr.msra.gmra.mxu1 %v1184_v25  ;;  %v1475_v12 = vpop.eup %1474 }
 0x1e0   :  { %v901_v3 = vadd.f32 1.4214138, %v885_v7  ;;  %v1107_v9 = vsub.f32 0.0, %v1075_v8  ;;  %v964_v43 = vadd.f32 0.2548296, %v948_v31  ;;  %v1170_v33 = vmul.f32 %v1154_v32, %v1138_v46 }
 0x1e2   :  { %v917_v57 = vmul.f32 %v901_v3, %v696_v51  ;;  %v1123_v13 = vsel %vm1091_vm1, %v1075_v8, %v1107_v9  ;;  %v980_v38 = vmul.f32 %v964_v43, %v2248_v42 }
 0x1e3   :  { %v1155_v36 = vadd.f32 1.0, %v1123_v13 }
 0x1e4   :  { %v933_v6 = vadd.f32 -0.28449672, %v917_v57  ;;  %v1060_v58 = vmul.f32 %v1473_v4, %v980_v38 }
 0x1e5   :  { %v1171_v37 = vmul.f32 %v1155_v36, %v1139_v48 }
 0x1e6   :  { %v949_v21 = vmul.f32 %v933_v6, %v696_v51  ;;  %v1076_v40 = vsub.f32 1.0, %v1060_v58 }
 0x1e7   :  { %v1185_v24 = vpack.c.bf16 %v1171_v37, %v1170_v33 }
 0x1e8   :  { %v965_v30 = vadd.f32 0.2548296, %v949_v21  ;;  %v1108_v23 = vsub.f32 0.0, %v1076_v40 }
 0x1ea   :  { %v981_v27 = vmul.f32 %v965_v30, %v696_v51  ;;  %v1124_v10 = vsel %vm1092_vm4, %v1076_v40, %v1108_v23 }
 0x1eb   :  { %v1156_v51 = vadd.f32 1.0, %v1124_v10 }
 0x1ec   :  { %v1061_v20 = vmul.f32 %v1475_v12, %v981_v27 }
 0x1ed   :  { %v1172_v53 = vmul.f32 %v1156_v51, %v1140_v62 }
 0x1ee   :  { %v1077_v2 = vsub.f32 1.0, %v1061_v20 }
 0x1ef   :  { %1273 = vmatmul.bf16.gmra.mxu1 %v1185_v24 }
 0x1f0   :  { %v1109_v49 = vsub.f32 0.0, %v1077_v2 }
 0x1f2   :  { %v1125_v42 = vsel %vm1093_vm3, %v1077_v2, %v1109_v49 }
 0x1f3   :  { %v1157_v15 = vadd.f32 1.0, %v1125_v42 }
 0x1f5   :  { %v1173_v59 = vmul.f32 %v1157_v15, %v1141_v22 }
 0x1f7   :  { %v1186_v47 = vpack.c.bf16 %v1173_v59, %v1172_v53 }
 0x1ff   :  { %1278 = vmatmul.bf16.gmra.mxu1 %v1186_v47 }
 0x210   :  { %v519_v56 = vpop.f32.mrf.mxu0 }
 0x211   :  { %v2282_v16 = vadd.f32 %v1903_v60, %v519_v56 }
 0x213   :  { %v2285_v52 = vmul.f32 0.70710677, %v2282_v16 }
 0x215   :  { %v566_v29 = vand.u32 2147483647, %v2285_v52 }
 0x217   :  { %v582_v50 = vmul.f32 0.3275911, %v566_v29  ;;  %v998_v38 = vsub.f32 0.0, %v566_v29 }
 0x218   :  { %v521_v35 = vpop.f32.mrf.mxu0 }
 0x219   :  { %v598_v45 = vadd.f32 1.0, %v582_v50  ;;  %v2289_v39 = vadd.f32 %v1903_v60, %v521_v35  ;;  %v1014_v12 = vmul.f32 %v998_v38, %v566_v29 }
 0x21b   :  { %1476 = vrcp.f32 %v598_v45  ;;  %v2292_v19 = vmul.f32 0.70710677, %v2289_v39  ;;  %v709_v54 = vand.u32 2147483648, %v598_v45  ;;  %v707_v7 = vand.u32 2147483647, %v598_v45 }
 0x21c   :  { %vm703_vm6 = vweird.f32 %v598_v45  ;;  %v1036_v51 = vmul.f32 1.442695, %v1014_v12 }
 0x21d   :  { %v567_v63 = vand.u32 2147483647, %v2292_v19  ;;  %v710_v26 = vor.u32 1.1754944e-38, %v709_v54  ;;  %vm708_vm8 = vcmp.eq.f32.partialorder %v707_v7, 8.507059e+37 }
 0x21f   :  { %v583_v0 = vmul.f32 0.3275911, %v567_v63  ;;  %v999_v4 = vsub.f32 0.0, %v567_v63 }
 0x221   :  { %v1477_v1 = vpop.eup %1476  ;;  %v599_v28 = vadd.f32 1.0, %v583_v0  ;;  %v524_v17 = vpop.f32.mrf.mxu0  ;;  %v1015_v20 = vmul.f32 %v999_v4, %v567_v63  ;;  %v2346_v0 = vmul.f32 0.5, %v2282_v16 }
 0x222   :  { %v699_v14 = vmul.f32 %v1477_v1, %v598_v45  ;;  %vm704_vm5 = vweird.f32 %v1477_v1  ;;  %v2296_v61 = vadd.f32 %v1903_v60, %v524_v17 }
 0x223   :  { %1478 = vrcp.f32 %v599_v28  ;;  %vm705_vm7 = vmor %vm703_vm6, %vm704_vm5  ;;  %v724_v46 = vand.u32 2147483648, %v599_v28  ;;  %vm718_vm10 = vweird.f32 %v599_v28  ;;  %v722_v33 = vand.u32 2147483647, %v599_v28 }
 0x224   :  { %v700_v44 = vsub.f32 1.0, %v699_v14  ;;  %v2299_v11 = vmul.f32 0.70710677, %v2296_v61  ;;  %v1038_v59 = vmul.f32 1.442695, %v1015_v20  ;;  %v2359_v16 = vmul.f32 0.5, %v2296_v61 }
 0x225   :  { %v725_v62 = vor.u32 1.1754944e-38, %v724_v46  ;;  %vm723_vm12 = vcmp.eq.f32.partialorder %v722_v33, 8.507059e+37  ;;  %vm1094_vm5 = vcmp.ge.f32.partialorder %v2285_v52, 0.0 }
 0x226   :  { %v701_v18 = vmul.f32 %v1477_v1, %v700_v44  ;;  %v568_v8 = vand.u32 2147483647, %v2299_v11 }
 0x228   :  { %v702_v41 = vadd.f32 %v1477_v1, %v701_v18  ;;  %v584_v5 = vmul.f32 0.3275911, %v568_v8  ;;  %v1000_v10 = vsub.f32 0.0, %v568_v8 }
 0x229   :  { %v1479_v31 = vpop.eup %1478  ;;  %v529_v43 = vpop.f32.mrf.mxu3 }
 0x22a   :  { %v706_v3 = vsel %vm705_vm7, %v1477_v1, %v702_v41  ;;  %v714_v34 = vmul.f32 %v1479_v31, %v599_v28  ;;  %v526_v13 = vpop.f32.mrf.mxu0  ;;  %v2305_v6 = vadd.f32 1.0, %v584_v5  ;;  %v2308_v55 = vadd.f32 %v1903_v60, %v529_v43 }
 0x22b   :  { %v2302_v25 = vsel %vm708_vm8, %v710_v26, %v706_v3  ;;  %v527_v21 = vadd.f32 %v1903_v60, %v526_v13  ;;  %vm719_vm9 = vweird.f32 %v1479_v31  ;;  %v1016_v45 = vmul.f32 %v1000_v10, %v568_v8 }
 0x22c   :  { %v854_v9 = vmul.f32 1.0614054, %v2302_v25  ;;  %v715_v57 = vsub.f32 1.0, %v714_v34  ;;  %1480 = vrcp.f32 %v2305_v6  ;;  %v2313_v48 = vmul.f32 0.70710677, %v2308_v55  ;;  %vm2319_vm11 = vmor %vm718_vm10, %vm719_vm9 }
 0x22d   :  { %v2315_v32 = vmul.f32 0.70710677, %v527_v21  ;;  %v2349_v1 = vmul.f32 0.5, %v2289_v39  ;;  %v739_v7 = vand.u32 2147483648, %v2305_v6  ;;  %v1040_v41 = vmul.f32 1.442695, %v1016_v45 }
 0x22e   :  { %v716_v36 = vmul.f32 %v1479_v31, %v715_v57  ;;  %v870_v30 = vadd.f32 -1.4531521, %v854_v9  ;;  %v570_v2 = vand.u32 2147483647, %v2313_v48  ;;  %vm733_vm13 = vweird.f32 %v2305_v6 }
 0x22f   :  { %v569_v37 = vand.u32 2147483647, %v2315_v32  ;;  %v2366_v5 = vmul.f32 0.5, %v527_v21  ;;  %vm1095_vm8 = vcmp.ge.f32.partialorder %v2292_v19, 0.0 }
 0x230   :  { %v717_v27 = vadd.f32 %v1479_v31, %v716_v36  ;;  %v886_v58 = vmul.f32 %v870_v30, %v2302_v25  ;;  %v586_v29 = vmul.f32 0.3275911, %v570_v2  ;;  %v1002_v54 = vsub.f32 0.0, %v570_v2 }
 0x231   :  { %v585_v24 = vmul.f32 0.3275911, %v569_v37  ;;  %v531_v49 = vpop.f32.mrf.mxu3  ;;  %v1001_v26 = vsub.f32 0.0, %v569_v37  ;;  %v740_v36 = vor.u32 1.1754944e-38, %v739_v7 }
 0x232   :  { %v902_v23 = vadd.f32 1.4214138, %v886_v58  ;;  %v2324_v42 = vpop.eup %1480  ;;  %v2327_v15 = vadd.f32 %v1903_v60, %v531_v49  ;;  %v721_v22 = vsel %vm2319_vm11, %v1479_v31, %v717_v27  ;;  %v2352_v44 = vadd.f32 1.0, %v586_v29 }
 0x233   :  { %v2331_v53 = vadd.f32 1.0, %v585_v24  ;;  %v729_v56 = vmul.f32 %v2324_v42, %v2305_v6  ;;  %v2338_v50 = vsel %vm723_vm12, %v725_v62, %v721_v22  ;;  %v1018_v43 = vmul.f32 %v1002_v54, %v570_v2 }
 0x234   :  { %v2334_v47 = vmul.f32 0.70710677, %v2327_v15  ;;  %v918_v35 = vmul.f32 %v902_v23, %v2302_v25  ;;  %v855_v14 = vmul.f32 1.0614054, %v2338_v50  ;;  %v1017_v21 = vmul.f32 %v1001_v26, %v569_v37 }
 0x235   :  { %1482 = vrcp.f32 %v2331_v53  ;;  %v730_v28 = vsub.f32 1.0, %v729_v56  ;;  %vm734_vm14 = vweird.f32 %v2324_v42  ;;  %v769_v46 = vand.u32 2147483648, %v2352_v44 }
 0x236   :  { %1484 = vpow2.f32 %v1036_v51  ;;  %v2343_v63 = vand.u32 2147483647, %v2334_v47  ;;  %v934_v18 = vadd.f32 -0.28449672, %v918_v35  ;;  %v871_v8 = vadd.f32 -1.4531521, %v855_v14  ;;  %vm2416_vm1 = vmor %vm733_vm13, %vm734_vm14 }
 0x237   :  { %1486 = vpow2.f32 %v1038_v59  ;;  %v731_v61 = vmul.f32 %v2324_v42, %v730_v28  ;;  %v1044_v37 = vmul.f32 1.442695, %v1018_v43  ;;  %v754_v10 = vand.u32 2147483648, %v2331_v53  ;;  %v2400_v51 = vld [vmem:[%s2863_s4] ss:$0 sm:$0xff] }
 0x238   :  { %v587_v39 = vmul.f32 0.3275911, %v2343_v63  ;;  %v950_v3 = vmul.f32 %v934_v18, %v2302_v25  ;;  %1488 = vrcp.f32 %v2352_v44  ;;  %v887_v58 = vmul.f32 %v871_v8, %v2338_v50 }
 0x239   :  { %v534_v17 = vpop.f32.mrf.mxu3  ;;  %1490 = vpow2.f32 %v1040_v41  ;;  %v732_v49 = vadd.f32 %v2324_v42, %v731_v61  ;;  %v1042_v56 = vmul.f32 1.442695, %v1017_v21  ;;  %v2420_v14 = vor.u32 1.1754944e-38, %v769_v46 }
 0x23a   :  { %v2356_v31 = vadd.f32 %v1903_v60, %v534_v17  ;;  %v737_v60 = vand.u32 2147483647, %v2305_v6  ;;  %v2381_v27 = vadd.f32 1.0, %v587_v39  ;;  %v966_v12 = vadd.f32 0.2548296, %v950_v3 }
 0x23b   :  { %v2363_v34 = vpop.eup %1482  ;;  %v903_v2 = vadd.f32 1.4214138, %v887_v58  ;;  %vm748_vm2 = vweird.f32 %v2331_v53  ;;  %v752_v28 = vand.u32 2147483647, %v2331_v53  ;;  %v736_v6 = vsel %vm2416_vm1, %v2324_v42, %v732_v49 }
 0x23c   :  { %v2369_v9 = vmul.f32 0.70710677, %v2356_v31  ;;  %v1485_v57 = vpop.eup %1484  ;;  %v744_v13 = vmul.f32 %v2363_v34, %v2331_v53  ;;  %vm2387_vm15 = vcmp.eq.f32.partialorder %v737_v60, 8.507059e+37  ;;  %v982_v24 = vmul.f32 %v966_v12, %v2302_v25 }
 0x23d   :  { %v2376_v38 = vpop.eup %1486  ;;  %1492 = vrcp.f32 %v2381_v27  ;;  %v1003_v25 = vsub.f32 0.0, %v2343_v63  ;;  %v919_v29 = vmul.f32 %v903_v2, %v2338_v50  ;;  %vm749_vm3 = vweird.f32 %v2363_v34 }
 0x23e   :  { %v2379_v30 = vand.u32 2147483647, %v2369_v9  ;;  %v745_v4 = vsub.f32 1.0, %v744_v13  ;;  %v2405_v59 = vpop.eup %1488  ;;  %v1062_v17 = vmul.f32 %v1485_v57, %v982_v24  ;;  %vm2435_vm4 = vmor %vm748_vm2, %vm749_vm3  ;;  %v755_v53 = vor.u32 1.1754944e-38, %v754_v10 }
 0x23f   :  { %v2410_v35 = vpop.eup %1490  ;;  %v759_v18 = vmul.f32 %v2405_v59, %v2352_v44  ;;  %v935_v7 = vadd.f32 -0.28449672, %v919_v29  ;;  %v1019_v39 = vmul.f32 %v1003_v25, %v2343_v63  ;;  %v2446_v60 = vsel %vm2387_vm15, %v740_v36, %v736_v6 }
 0x240   :  { %v588_v20 = vmul.f32 0.3275911, %v2379_v30  ;;  %v746_v23 = vmul.f32 %v2363_v34, %v745_v4  ;;  %v1004_v42 = vsub.f32 0.0, %v2379_v30  ;;  %v1078_v13 = vsub.f32 1.0, %v1062_v17 }
 0x241   :  { %v536_v40 = vpop.f32.mrf.mxu3  ;;  %v951_v3 = vmul.f32 %v935_v7, %v2338_v50  ;;  %vm753_vm6 = vcmp.eq.f32.partialorder %v752_v28, 8.507059e+37  ;;  %v767_v21 = vand.u32 2147483647, %v2352_v44  ;;  %v760_v4 = vsub.f32 1.0, %v759_v18 }
 0x242   :  { %v2395_v22 = vadd.f32 1.0, %v588_v20  ;;  %v2403_v62 = vadd.f32 %v2400_v51, %v536_v40  ;;  %v747_v41 = vadd.f32 %v2363_v34, %v746_v23  ;;  %vm764_vm7 = vweird.f32 %v2405_v59 }
 0x243   :  { %v2451_v61 = vpop.eup %1492  ;;  %v967_v12 = vadd.f32 0.2548296, %v951_v3  ;;  %v1046_v20 = vmul.f32 1.442695, %v1019_v39  ;;  %v1020_v24 = vmul.f32 %v1004_v42, %v2379_v30  ;;  %vm763_vm9 = vweird.f32 %v2352_v44 }
 0x244   :  { %1494 = vrcp.f32 %v2395_v22  ;;  %v2427_v54 = vmul.f32 0.70710677, %v2403_v62  ;;  %v751_v57 = vsel %vm2435_vm4, %v2363_v34, %v747_v41  ;;  %v784_v34 = vand.u32 2147483648, %v2381_v27  ;;  %vm2522_vm12 = vmor %vm763_vm9, %vm764_vm7 }
 0x245   :  { %1496 = vpow2.f32 %v1044_v37  ;;  %v2457_v46 = vsel %vm753_vm6, %v755_v53, %v751_v57  ;;  %v856_v37 = vmul.f32 1.0614054, %v2446_v60  ;;  %v774_v2 = vmul.f32 %v2451_v61, %v2381_v27 }
 0x246   :  { %1498 = vpow2.f32 %v1042_v56  ;;  %v573_v8 = vand.u32 2147483647, %v2427_v54  ;;  %v983_v23 = vmul.f32 %v967_v12, %v2338_v50  ;;  %v1110_v25 = vsub.f32 0.0, %v1078_v13 }
 0x247   :  { %v857_v29 = vmul.f32 1.0614054, %v2457_v46  ;;  %v761_v45 = vmul.f32 %v2405_v59, %v760_v4  ;;  %v2488_v17 = vor.u32 1.1754944e-38, %v784_v34  ;;  %v799_v6 = vand.u32 2147483648, %v2395_v22 }
 0x248   :  { %v589_v43 = vmul.f32 0.3275911, %v573_v8  ;;  %v1005_v56 = vsub.f32 0.0, %v573_v8  ;;  %v1063_v50 = vmul.f32 %v2376_v38, %v983_v23  ;;  %v872_v18 = vadd.f32 -1.4531521, %v856_v37 }
 0x249   :  { %v539_v63 = vpop.f32.mrf.mxu3  ;;  %v775_v7 = vsub.f32 1.0, %v774_v2  ;;  %v1048_v41 = vmul.f32 1.442695, %v1020_v24  ;;  %v1126_v3 = vsel %vm1094_vm5, %v1078_v13, %v1110_v25  ;;  %v873_v57 = vadd.f32 -1.4531521, %v857_v29 }
 0x24a   :  { %v2455_v58 = vadd.f32 %v2400_v51, %v539_v63  ;;  %v2459_v36 = vpop.eup %1494  ;;  %v2463_v33 = vadd.f32 1.0, %v589_v43  ;;  %v1079_v53 = vsub.f32 1.0, %v1063_v50  ;;  %v1021_v39 = vmul.f32 %v1005_v56, %v573_v8 }
 0x24b   :  { %v2466_v40 = vpop.eup %1496  ;;  %v789_v30 = vmul.f32 %v2459_v36, %v2395_v22  ;;  %v888_v43 = vmul.f32 %v872_v18, %v2446_v60  ;;  %vm778_vm10 = vweird.f32 %v2381_v27  ;;  %v762_v13 = vadd.f32 %v2405_v59, %v761_v45 }
 0x24c   :  { %v2472_v49 = vmul.f32 0.70710677, %v2455_v58  ;;  %v2475_v10 = vpop.eup %1498  ;;  %1500 = vrcp.f32 %v2463_v33  ;;  %v1111_v12 = vsub.f32 0.0, %v1079_v53  ;;  %v814_v8 = vand.u32 2147483648, %v2463_v33 }
 0x24d   :  { %1502 = vpow2.f32 %v1046_v20  ;;  %v790_v38 = vsub.f32 1.0, %v789_v30  ;;  %v889_v20 = vmul.f32 %v873_v57, %v2457_v46  ;;  %v904_v52 = vadd.f32 1.4214138, %v888_v43 }
 0x24e   :  { %v2485_v28 = vand.u32 2147483647, %v2472_v49  ;;  %v776_v37 = vmul.f32 %v2451_v61, %v775_v7  ;;  %vm779_vm11 = vweird.f32 %v2451_v61  ;;  %v2508_v2 = vor.u32 1.1754944e-38, %v799_v6 }
 0x24f   :  { %v1158_v56 = vadd.f32 1.0, %v1126_v3  ;;  %v2526_v29 = vmul.f32 1.442695, %v1021_v39  ;;  %v1127_v45 = vsel %vm1095_vm8, %v1079_v53, %v1111_v12  ;;  %v905_v30 = vadd.f32 1.4214138, %v889_v20  ;;  %vm2564_vm1 = vmor %vm778_vm10, %vm779_vm11 }
 0x250   :  { %v590_v26 = vmul.f32 0.3275911, %v2485_v28  ;;  %v920_v50 = vmul.f32 %v904_v52, %v2446_v60  ;;  %v791_v6 = vmul.f32 %v2459_v36, %v790_v38  ;;  %vm794_vm13 = vweird.f32 %v2459_v36  ;;  %v2554_v38 = vld [vmem:[%s2865_s6] ss:$0 sm:$0xff] }
 0x251   :  { %v541_v42 = vpop.f32.mrf.mxu3  ;;  %v2533_v18 = vor.u32 1.1754944e-38, %v814_v8  ;;  %v921_v19 = vmul.f32 %v905_v30, %v2457_v46  ;;  %v777_v39 = vadd.f32 %v2451_v61, %v776_v37  ;;  %vm793_vm14 = vweird.f32 %v2395_v22 }
 0x252   :  { %v2496_v63 = vadd.f32 1.0, %v590_v26  ;;  %v2499_v4 = vadd.f32 %v2400_v51, %v541_v42  ;;  %v2501_v34 = vpop.eup %1500  ;;  %v1159_v26 = vadd.f32 1.0, %v1127_v45  ;;  %v936_v53 = vadd.f32 -0.28449672, %v920_v50  ;;  %vm2609_vm8 = vmor %vm793_vm14, %vm794_vm13 }
 0x253   :  { %v2511_v51 = vpop.eup %1502  ;;  %v804_v24 = vmul.f32 %v2501_v34, %v2463_v33  ;;  %v1174_v57 = vmul.f32 %v1158_v56, %v2346_v0  ;;  %vm768_vm15 = vcmp.eq.f32.partialorder %v767_v21, 8.507059e+37  ;;  %v937_v12 = vadd.f32 -0.28449672, %v921_v19 }
 0x254   :  { %1504 = vrcp.f32 %v2496_v63  ;;  %v2516_v23 = vmul.f32 0.70710677, %v2499_v4  ;;  %v952_v8 = vmul.f32 %v936_v53, %v2446_v60  ;;  %v782_v20 = vand.u32 2147483647, %v2381_v27 }
 0x255   :  { %1506 = vpow2.f32 %v1048_v41  ;;  %v766_v41 = vsel %vm2522_vm12, %v2405_v59, %v762_v13  ;;  %v805_v42 = vsub.f32 1.0, %v804_v24  ;;  %v1175_v59 = vmul.f32 %v1159_v26, %v2349_v1 }
 0x256   :  { %v2536_v7 = vand.u32 2147483647, %v2516_v23  ;;  %v829_v44 = vand.u32 2147483648, %v2496_v63  ;;  %v2574_v13 = vsel %vm768_vm15, %v2420_v14, %v766_v41  ;;  %vm808_vm2 = vweird.f32 %v2463_v33 }
 0x257   :  { %v1187_v37 = vpack.c.bf16 %v1175_v59, %v1174_v57  ;;  %v953_v27 = vmul.f32 %v937_v12, %v2457_v46  ;;  %v968_v56 = vadd.f32 0.2548296, %v952_v8  ;;  %v781_v25 = vsel %vm2564_vm1, %v2451_v61, %v777_v39 }
 0x258   :  { %v591_v3 = vmul.f32 0.3275911, %v2536_v7  ;;  %vm1096_vm3 = vcmp.ge.f32.partialorder %v2299_v11, 0.0  ;;  %v806_v45 = vmul.f32 %v2501_v34, %v805_v42  ;;  %vm809_vm4 = vweird.f32 %v2501_v34 }
 0x259   :  { %1283 = vmatmul.bf16.gmra.mxu1 %v1187_v37  ;;  %v969_v50 = vadd.f32 0.2548296, %v953_v27  ;;  %v984_v41 = vmul.f32 %v968_v56, %v2446_v60  ;;  %vm783_vm5 = vcmp.eq.f32.partialorder %v782_v20, 8.507059e+37  ;;  %vm1097_vm6 = vcmp.ge.f32.partialorder %v2315_v32, 0.0  ;;  %v1517_v60 = vld [vmem:[%s2859_s0] sm:$0xff]  ;;  %vm2635_vm13 = vmor %vm808_vm2, %vm809_vm4 }
 0x25a   :  { %v2548_v43 = vpop.eup %1504  ;;  %v2571_v21 = vadd.f32 1.0, %v591_v3  ;;  %v2588_v26 = vor.u32 1.1754944e-38, %v829_v44  ;;  %v2592_v19 = vsel %vm783_vm5, %v2488_v17, %v781_v25  ;;  %v858_v53 = vmul.f32 1.0614054, %v2574_v13 }
 0x25b   :  { %v2558_v52 = vpop.eup %1506  ;;  %v819_v1 = vmul.f32 %v2548_v43, %v2496_v63  ;;  %vm824_vm7 = vweird.f32 %v2548_v43  ;;  %v985_v3 = vmul.f32 %v969_v50, %v2457_v46  ;;  %v1064_v57 = vmul.f32 %v2410_v35, %v984_v41 }
 0x25c   :  { %v1269_v24 = vpop.f32.mrf.mxu1  ;;  %1508 = vrcp.f32 %v2571_v21  ;;  %v844_v61 = vand.u32 2147483648, %v2571_v21  ;;  %v859_v59 = vmul.f32 1.0614054, %v2592_v19  ;;  %v874_v12 = vadd.f32 -1.4531521, %v858_v53 }
 0x25d   :  { %v820_v30 = vsub.f32 1.0, %v819_v1  ;;  %v1270_v14 = vadd.f32 %v2554_v38, %v1269_v24  ;;  %v792_v17 = vadd.f32 %v2459_v36, %v791_v6  ;;  %v797_v8 = vand.u32 2147483647, %v2395_v22 }
 0x25e   :  { %vm823_vm9 = vweird.f32 %v2496_v63  ;;  %v1065_v35 = vmul.f32 %v2475_v10, %v985_v3  ;;  %v1080_v46 = vsub.f32 1.0, %v1064_v57  ;;  %v807_v6 = vadd.f32 %v2501_v34, %v806_v45 }
 0x25f   :  { %v821_v39 = vmul.f32 %v2548_v43, %v820_v30  ;;  %v1309_v42 = vadd.f32 %v1517_v60, %v1270_v14  ;;  %v812_v0 = vand.u32 2147483647, %v2463_v33  ;;  %v875_v22 = vadd.f32 -1.4531521, %v859_v59  ;;  %v1518_v60 = vld [vmem:[%s2859_s0 + $0x8] sm:$0xff]  ;;  %vm2672_vm15 = vmor %vm823_vm9, %vm824_vm7 }
 0x260   :  { %v890_v44 = vmul.f32 %v874_v12, %v2574_v13  ;;  %v796_v37 = vsel %vm2609_vm8, %v2459_v36, %v792_v17  ;;  %vm798_vm10 = vcmp.eq.f32.partialorder %v797_v8, 8.507059e+37  ;;  %vm838_vm11 = vweird.f32 %v2571_v21 }
 0x261   :  { %1325 = vst.msk [vmem:[%s2866_s7] sm:$0xff] %vm45_vm0, %v1309_v42  ;;  %v1081_v27 = vsub.f32 1.0, %v1065_v35  ;;  %v1112_v56 = vsub.f32 0.0, %v1080_v46  ;;  %v891_v45 = vmul.f32 %v875_v22, %v2592_v19  ;;  %v2642_v14 = vsel %vm798_vm10, %v2508_v2, %v796_v37 }
 0x262   :  { %v2621_v1 = vpop.eup %1508  ;;  %v906_v30 = vadd.f32 1.4214138, %v890_v44  ;;  %v811_v33 = vsel %vm2635_vm13, %v2501_v34, %v807_v6  ;;  %vm813_vm14 = vcmp.eq.f32.partialorder %v812_v0, 8.507059e+37  ;;  %v860_v11 = vmul.f32 1.0614054, %v2642_v14 }
 0x263   :  { %v834_v24 = vmul.f32 %v2621_v1, %v2571_v21  ;;  %vm839_vm12 = vweird.f32 %v2621_v1  ;;  %v1113_v41 = vsub.f32 0.0, %v1081_v27  ;;  %v1128_v53 = vsel %vm1096_vm3, %v1080_v46, %v1112_v56 }
 0x264   :  { %v1271_v10 = vpop.f32.mrf.mxu1  ;;  %v1160_v3 = vadd.f32 1.0, %v1128_v53  ;;  %v907_v57 = vadd.f32 1.4214138, %v891_v45  ;;  %v922_v59 = vmul.f32 %v906_v30, %v2574_v13  ;;  %v2664_v35 = vsel %vm813_vm14, %v2533_v18, %v811_v33  ;;  %vm2688_vm2 = vmor %vm838_vm11, %vm839_vm12 }
 0x265   :  { %v1272_v36 = vadd.f32 %v2554_v38, %v1271_v10  ;;  %v835_v50 = vsub.f32 1.0, %v834_v24  ;;  %v1129_v12 = vsel %vm1097_vm6, %v1081_v27, %v1113_v41  ;;  %v876_v46 = vadd.f32 -1.4531521, %v860_v11 }
 0x266   :  { %v1161_v34 = vadd.f32 1.0, %v1129_v12  ;;  %v1176_v17 = vmul.f32 %v1160_v3, %v2359_v16  ;;  %v923_v8 = vmul.f32 %v907_v57, %v2592_v19  ;;  %v938_v20 = vadd.f32 -0.28449672, %v922_v59 }
 0x267   :  { %v1310_v42 = vadd.f32 %v1518_v60, %v1272_v36  ;;  %v836_v2 = vmul.f32 %v2621_v1, %v835_v50  ;;  %v822_v32 = vadd.f32 %v2548_v43, %v821_v39  ;;  %v827_v6 = vand.u32 2147483647, %v2496_v63  ;;  %v1519_v50 = vld [vmem:[%s2859_s0 + $0x10] sm:$0xff] }
 0x268   :  { %v1177_v16 = vmul.f32 %v1161_v34, %v2366_v5  ;;  %v939_v22 = vadd.f32 -0.28449672, %v923_v8  ;;  %v954_v44 = vmul.f32 %v938_v20, %v2574_v13  ;;  %v861_v18 = vmul.f32 1.0614054, %v2664_v35 }
 0x269   :  { %1326 = vst.msk [vmem:[%s2866_s7 + $0x8] sm:$0xff] %vm45_vm0, %v1310_v42  ;;  %v892_v39 = vmul.f32 %v876_v46, %v2642_v14  ;;  %v826_v24 = vsel %vm2672_vm15, %v2548_v43, %v822_v32  ;;  %vm828_vm1 = vcmp.eq.f32.partialorder %v827_v6, 8.507059e+37  ;;  %v837_v63 = vadd.f32 %v2621_v1, %v836_v2 }
 0x26a   :  { %v1188_v10 = vpack.c.bf16 %v1177_v16, %v1176_v17  ;;  %v955_v56 = vmul.f32 %v939_v22, %v2592_v19  ;;  %v970_v25 = vadd.f32 0.2548296, %v954_v44  ;;  %vm1098_vm3 = vcmp.ge.f32.partialorder %v2313_v48, 0.0 }
 0x26b   :  { %v877_v43 = vadd.f32 -1.4531521, %v861_v18  ;;  %v908_v36 = vadd.f32 1.4214138, %v892_v39  ;;  %v2696_v45 = vsel %vm828_vm1, %v2588_v26, %v826_v24  ;;  %v841_v30 = vsel %vm2688_vm2, %v2621_v1, %v837_v63  ;;  %v1520_v18 = vld [vmem:[%s2859_s0 + $0x18] sm:$0xff] }
 0x26c   :  { %v1274_v37 = vpop.f32.mrf.mxu1  ;;  %1288 = vmatmul.bf16.vlgmr.msra.gmra.mxu2 %v1188_v10  ;;  %v971_v53 = vadd.f32 0.2548296, %v955_v56  ;;  %v986_v33 = vmul.f32 %v970_v25, %v2574_v13  ;;  %v842_v60 = vand.u32 2147483647, %v2571_v21  ;;  %vm1099_vm4 = vcmp.ge.f32.partialorder %v2334_v47, 0.0 }
 0x26d   :  { %v1275_v27 = vadd.f32 %v2554_v38, %v1274_v37  ;;  %v845_v26 = vor.u32 1.1754944e-38, %v844_v61  ;;  %v893_v42 = vmul.f32 %v877_v43, %v2664_v35  ;;  %v924_v1 = vmul.f32 %v908_v36, %v2642_v14 }
 0x26e   :  { %v862_v3 = vmul.f32 1.0614054, %v2696_v45  ;;  %v1007_v57 = vsub.f32 0.0, %v2536_v7  ;;  %v987_v13 = vmul.f32 %v971_v53, %v2592_v19  ;;  %v1066_v59 = vmul.f32 %v2466_v40, %v986_v33 }
 0x26f   :  { %v1311_v41 = vadd.f32 %v1519_v50, %v1275_v27  ;;  %vm843_vm5 = vcmp.eq.f32.partialorder %v842_v60, 8.507059e+37  ;;  %v909_v21 = vadd.f32 1.4214138, %v893_v42  ;;  %v940_v61 = vadd.f32 -0.28449672, %v924_v1 }
 0x270   :  { %v2719_v2 = vsel %vm843_vm5, %v845_v26, %v841_v30  ;;  %v878_v12 = vadd.f32 -1.4531521, %v862_v3  ;;  %1510 = vpow2.f32 %v2526_v29  ;;  %v1067_v11 = vmul.f32 %v2511_v51, %v987_v13 }
 0x271   :  { %1327 = vst.msk [vmem:[%s2866_s7 + $0x10] sm:$0xff] %vm45_vm0, %v1311_v41  ;;  %v1082_v34 = vsub.f32 1.0, %v1066_v59  ;;  %v863_v17 = vmul.f32 1.0614054, %v2719_v2  ;;  %v1006_v8 = vsub.f32 0.0, %v2485_v28  ;;  %v925_v19 = vmul.f32 %v909_v21, %v2664_v35 }
 0x272   :  { %v956_v40 = vmul.f32 %v940_v61, %v2642_v14  ;;  %v894_v46 = vmul.f32 %v878_v12, %v2696_v45  ;;  %v1083_v6 = vsub.f32 1.0, %v1067_v11  ;;  %v1023_v29 = vmul.f32 %v1007_v57, %v2536_v7 }
 0x273   :  { %v1114_v0 = vsub.f32 0.0, %v1082_v34  ;;  %v879_v16 = vadd.f32 -1.4531521, %v863_v17  ;;  %v941_v51 = vadd.f32 -0.28449672, %v925_v19  ;;  %v1146_v25 = vmul.f32 0.5, %v2308_v55 }
 0x274   :  { %v1276_v20 = vpop.f32.mrf.mxu1  ;;  %v972_v22 = vadd.f32 0.2548296, %v956_v40  ;;  %v910_v44 = vadd.f32 1.4214138, %v894_v46  ;;  %v1115_v39 = vsub.f32 0.0, %v1083_v6  ;;  %v1147_v43 = vmul.f32 0.5, %v2327_v15 }
 0x275   :  { %v1277_v32 = vadd.f32 %v2554_v38, %v1276_v20  ;;  %v1130_v24 = vsel %vm1098_vm3, %v1082_v34, %v1114_v0  ;;  %v895_v63 = vmul.f32 %v879_v16, %v2719_v2  ;;  %v957_v10 = vmul.f32 %v941_v51, %v2664_v35  ;;  %v1522_v16 = vld [vmem:[%s2859_s0 + $0x28] sm:$0xff] }
 0x276   :  { %v1162_v5 = vadd.f32 1.0, %v1130_v24  ;;  %v988_v27 = vmul.f32 %v972_v22, %v2642_v14  ;;  %v926_v7 = vmul.f32 %v910_v44, %v2696_v45  ;;  %v1511_v56 = vpop.eup %1510  ;;  %v1131_v48 = vsel %vm1099_vm4, %v1083_v6, %v1115_v39 }
 0x277   :  { %v1312_v37 = vadd.f32 %v1520_v18, %v1277_v32  ;;  %v911_v36 = vadd.f32 1.4214138, %v895_v63  ;;  %v1022_v30 = vmul.f32 %v1006_v8, %v2485_v28  ;;  %v1163_v50 = vadd.f32 1.0, %v1131_v48 }
 0x278   :  { %v973_v14 = vadd.f32 0.2548296, %v957_v10  ;;  %v1068_v41 = vmul.f32 %v2558_v52, %v988_v27  ;;  %v942_v55 = vadd.f32 -0.28449672, %v926_v7  ;;  %v1054_v33 = vmul.f32 1.442695, %v1023_v29 }
 0x279   :  { %1328 = vst.msk [vmem:[%s2866_s7 + $0x18] sm:$0xff] %vm45_vm0, %v1312_v37  ;;  %v927_v53 = vmul.f32 %v911_v36, %v2719_v2  ;;  %v1178_v15 = vmul.f32 %v1162_v5, %v1146_v25  ;;  %v1179_v60 = vmul.f32 %v1163_v50, %v1147_v43  ;;  %v1052_v28 = vmul.f32 1.442695, %v1022_v30  ;;  %v1521_v52 = vld [vmem:[%s2859_s0 + $0x20] sm:$0xff] }
 0x27a   :  { %v989_v42 = vmul.f32 %v973_v14, %v2664_v35  ;;  %v1084_v47 = vsub.f32 1.0, %v1068_v41  ;;  %v958_v57 = vmul.f32 %v942_v55, %v2696_v45  ;;  %1512 = vpow2.f32 %v1054_v33  ;;  %v1525_v55 = vld [vmem:[%s2859_s0 + $0x40] sm:$0xff] }
 0x27b   :  { %v943_v3 = vadd.f32 -0.28449672, %v927_v53  ;;  %v1189_v13 = vpack.c.bf16 %v1179_v60, %v1178_v15  ;;  %1514 = vpow2.f32 %v1052_v28  ;;  %vm1101_vm6 = vcmp.ge.f32.partialorder %v2427_v54, 0.0 }
 0x27c   :  { %v1279_v26 = vpop.f32.mrf.mxu1  ;;  %v1069_v59 = vmul.f32 %v1511_v56, %v989_v42  ;;  %v1116_v35 = vsub.f32 0.0, %v1084_v47  ;;  %v974_v11 = vadd.f32 0.2548296, %v958_v57  ;;  %vm1100_vm7 = vcmp.ge.f32.partialorder %v2369_v9, 0.0 }
 0x27d   :  { %v1280_v1 = vadd.f32 %v2554_v38, %v1279_v26  ;;  %v959_v61 = vmul.f32 %v943_v3, %v2719_v2  ;;  %1293 = vmatmul.bf16.gmra.mxu2 %v1189_v13  ;;  %vm1103_vm8 = vcmp.ge.f32.partialorder %v2516_v23, 0.0  ;;  %vm1102_vm9 = vcmp.ge.f32.partialorder %v2472_v49, 0.0  ;;  %v1523_v23 = vld [vmem:[%s2859_s0 + $0x30] sm:$0xff]  ;;  %v1526_v26 = vld [vmem:[%s2859_s0 + $0x48] sm:$0xff] }
 0x27e   :  { %v1085_v12 = vsub.f32 1.0, %v1069_v59  ;;  %v1132_v46 = vsel %vm1100_vm7, %v1084_v47, %v1116_v35  ;;  %v990_v32 = vmul.f32 %v974_v11, %v2696_v45  ;;  %v1148_v45 = vmul.f32 0.5, %v2356_v31  ;;  %v1527_v3 = vld [vmem:[%s2859_s0 + $0x50] sm:$0xff]  ;;  %v1528_v59 = vld [vmem:[%s2859_s0 + $0x58] sm:$0xff] }
 0x27f   :  { %v1313_v21 = vadd.f32 %v1521_v52, %v1280_v1  ;;  %v975_v34 = vadd.f32 0.2548296, %v959_v61  ;;  %v1164_v22 = vadd.f32 1.0, %v1132_v46  ;;  %v1151_v7 = vmul.f32 0.5, %v2499_v4  ;;  %v1524_v4 = vld [vmem:[%s2859_s0 + $0x38] sm:$0xff] }
 0x280   :  { %v1117_v17 = vsub.f32 0.0, %v1085_v12  ;;  %v1513_v6 = vpop.eup %1512  ;;  %v1150_v31 = vmul.f32 0.5, %v2455_v58 }
 0x281   :  { %1329 = vst.msk [vmem:[%s2866_s7 + $0x20] sm:$0xff] %vm45_vm0, %v1313_v21  ;;  %v991_v8 = vmul.f32 %v975_v34, %v2719_v2  ;;  %v1515_v54 = vpop.eup %1514  ;;  %v1149_v2 = vmul.f32 0.5, %v2403_v62  ;;  %v1180_v37 = vmul.f32 %v1164_v22, %v1148_v45 }
 0x282   :  { %v1133_v19 = vsel %vm1101_vm6, %v1085_v12, %v1117_v17  ;;  %v1070_v9 = vmul.f32 %v1515_v54, %v990_v32  ;;  %v1529_v12 = vld [vmem:[%s2859_s0 + $0x60] sm:$0xff]  ;;  %v1530_v17 = vld [vmem:[%s2859_s0 + $0x68] sm:$0xff] }
 0x283   :  { %v1165_v0 = vadd.f32 1.0, %v1133_v19  ;;  %v1071_v51 = vmul.f32 %v1513_v6, %v991_v8 }
 0x284   :  { %v1281_v20 = vpop.f32.mrf.mxu1  ;;  %v1086_v39 = vsub.f32 1.0, %v1070_v9 }
 0x285   :  { %v1282_v40 = vadd.f32 %v2554_v38, %v1281_v20  ;;  %v1181_v44 = vmul.f32 %v1165_v0, %v1149_v2  ;;  %v1087_v18 = vsub.f32 1.0, %v1071_v51  ;;  %v1532_v0 = vld [vmem:[%s2859_s0 + $0x78] sm:$0xff] }
 0x286   :  { %v1118_v5 = vsub.f32 0.0, %v1086_v39 }
 0x287   :  { %v1314_v29 = vadd.f32 %v1522_v16, %v1282_v40  ;;  %v1190_v24 = vpack.c.bf16 %v1181_v44, %v1180_v37  ;;  %v1119_v63 = vsub.f32 0.0, %v1087_v18  ;;  %v1531_v40 = vld [vmem:[%s2859_s0 + $0x70] sm:$0xff] }
 0x288   :  { %v1134_v10 = vsel %vm1102_vm9, %v1086_v39, %v1118_v5 }
 0x289   :  { %1330 = vst.msk [vmem:[%s2866_s7 + $0x28] sm:$0xff] %vm45_vm0, %v1314_v29  ;;  %v1135_v62 = vsel %vm1103_vm8, %v1087_v18, %v1119_v63  ;;  %v1166_v56 = vadd.f32 1.0, %v1134_v10 }
 0x28a   :  { %v1167_v27 = vadd.f32 1.0, %v1135_v62 }
 0x28b   :  { %v1182_v43 = vmul.f32 %v1166_v56, %v1150_v31 }
 0x28c   :  { %v1183_v25 = vmul.f32 %v1167_v27, %v1151_v7 }
 0x28d   :  { %1298 = vmatmul.bf16.gmra.mxu2 %v1190_v24 }
 0x28e   :  { %v1191_v48 = vpack.c.bf16 %v1183_v25, %v1182_v43 }
 0x29d   :  { %1303 = vmatmul.bf16.gmra.mxu2 %v1191_v48 }
 0x2d6   :  { %v1284_v36 = vpop.f32.mrf.mxu1 }
 0x2d7   :  { %v1285_v30 = vadd.f32 %v2554_v38, %v1284_v36 }
 0x2d9   :  { %v1315_v50 = vadd.f32 %v1523_v23, %v1285_v30 }
 0x2db   :  { %1331 = vst.msk [vmem:[%s2866_s7 + $0x30] sm:$0xff] %vm45_vm0, %v1315_v50 }
 0x2de   :  { %v1286_v49 = vpop.f32.mrf.mxu1 }
 0x2df   :  { %v1287_v58 = vadd.f32 %v2554_v38, %v1286_v49 }
 0x2e1   :  { %v1316_v14 = vadd.f32 %v1524_v4, %v1287_v58 }
 0x2e3   :  { %1332 = vst.msk [vmem:[%s2866_s7 + $0x38] sm:$0xff] %vm45_vm0, %v1316_v14 }
 0x2ef   :  { %v1289_v41 = vpop.f32.mrf.mxu2 }
 0x2f0   :  { %v1290_v53 = vadd.f32 %v2554_v38, %v1289_v41 }
 0x2f2   :  { %v1317_v33 = vadd.f32 %v1525_v55, %v1290_v53 }
 0x2f4   :  { %1333 = vst.msk [vmem:[%s2866_s7 + $0x40] sm:$0xff] %vm45_vm0, %v1317_v33 }
 0x2f7   :  { %v1291_v15 = vpop.f32.mrf.mxu2 }
 0x2f8   :  { %v1292_v60 = vadd.f32 %v2554_v38, %v1291_v15 }
 0x2fa   :  { %v1318_v42 = vadd.f32 %v1526_v26, %v1292_v60 }
 0x2fc   :  { %1334 = vst.msk [vmem:[%s2866_s7 + $0x48] sm:$0xff] %vm45_vm0, %v1318_v42 }
 0x300   :  { %v1294_v1 = vpop.f32.mrf.mxu2 }
 0x301   :  { %v1295_v47 = vadd.f32 %v2554_v38, %v1294_v1 }
 0x303   :  { %v1319_v57 = vadd.f32 %v1527_v3, %v1295_v47 }
 0x305   :  { %1335 = vst.msk [vmem:[%s2866_s7 + $0x50] sm:$0xff] %vm45_vm0, %v1319_v57 }
 0x308   :  { %v1296_v28 = vpop.f32.mrf.mxu2 }
 0x309   :  { %v1297_v13 = vadd.f32 %v2554_v38, %v1296_v28 }
 0x30b   :  { %v1320_v52 = vadd.f32 %v1528_v59, %v1297_v13 }
 0x30d   :  { %1336 = vst.msk [vmem:[%s2866_s7 + $0x58] sm:$0xff] %vm45_vm0, %v1320_v52 }
 0x310   :  { %v1299_v21 = vpop.f32.mrf.mxu2 }
 0x311   :  { %v1300_v61 = vadd.f32 %v2554_v38, %v1299_v21 }
 0x313   :  { %v1321_v35 = vadd.f32 %v1529_v12, %v1300_v61 }
 0x315   :  { %1337 = vst.msk [vmem:[%s2866_s7 + $0x60] sm:$0xff] %vm45_vm0, %v1321_v35 }
 0x318   :  { %v1301_v11 = vpop.f32.mrf.mxu2 }
 0x319   :  { %v1302_v34 = vadd.f32 %v2554_v38, %v1301_v11 }
 0x31b   :  { %v1322_v8 = vadd.f32 %v1530_v17, %v1302_v34 }
 0x31d   :  { %1338 = vst.msk [vmem:[%s2866_s7 + $0x68] sm:$0xff] %vm45_vm0, %v1322_v8 }
 0x320   :  { %v1304_v20 = vpop.f32.mrf.mxu2 }
 0x321   :  { %v1305_v19 = vadd.f32 %v2554_v38, %v1304_v20 }
 0x323   :  { %v1323_v46 = vadd.f32 %v1531_v40, %v1305_v19 }
 0x325   :  { %1339 = vst.msk [vmem:[%s2866_s7 + $0x70] sm:$0xff] %vm45_vm0, %v1323_v46 }
 0x328   :  { %v1306_v32 = vpop.f32.mrf.mxu2 }
 0x329   :  { %v1307_v6 = vadd.f32 %v2554_v38, %v1306_v32 }
 0x32b   :  { %v1324_v16 = vadd.f32 %v1532_v0, %v1307_v6 }
 0x32d   :  { %1340 = vst.msk [vmem:[%s2866_s7 + $0x78] sm:$0xff] %vm45_vm0, %v1324_v16 }

// kernel: swin_forward.14
= control target key start
LH: loop header
LB: loop body
LE: loop exit
PB: predicated region body
PF: predicated region fallthrough
CT: control target
= control target key end

     0   :  { %s1741_s30 = smov 0   ;;  %s2232_s0 = inlined_call_operand.vmem [shape: f32[8,16,32], index: 0, kind: input, shape index: {}]   ;;  %s2233_s1 = inlined_call_operand.vmem [shape: f32[1,32], index: 1, kind: input, shape index: {}]   ;;  %s2234_s2 = inlined_call_operand.vmem [shape: f32[1,32], index: 2, kind: input, shape index: {}]   ;;  %s2235_s3 = inlined_call_operand.vmem [shape: bf16[32,96], index: 3, kind: input, shape index: {}]   ;;  %s2236_s4 = inlined_call_operand.vmem [shape: f32[1,96], index: 4, kind: input, shape index: {}]   ;;  %s2237_s5 = inlined_call_operand.vmem [shape: bf16[32,32], index: 5, kind: input, shape index: {}]   ;;  %s2238_s6 = inlined_call_operand.vmem [shape: f32[1,32], index: 6, kind: input, shape index: {}]   ;;  %s2239_s7 = inlined_call_operand.vmem [shape: f32[2,16,16], index: 7, kind: input, shape index: {}]   ;;  %s2240_s8 = inlined_call_operand.vmem [shape: f32[4,16,16], index: 8, kind: input, shape index: {}]   ;;  %s2241_s9 = inlined_call_operand.vmem [shape: f32[8,16,32], index: 9, kind: output, shape index: {}]  }
   0x1 LB: > { %s1480_s10 = sadd.s32 4294967295, %s1682_s30   ;;  %p1484_p0 = scmp.ge.s32.totalorder %s1682_s30, 1  ;;  %s1682_s30 = sphi %s1741_s30, %s19_s30  }
   0x2   : > { %p289_p1 = scmp.lt.s32.totalorder %s1682_s30, 3 }
   0x4   : > { %p290_p2 = pnand %p1484_p0, %p289_p1 }
   0x5   : > { %s1485_s11 = sshll.u32 (!%p290_p2), %s1480_s10, 2  ;;  %s1685_s26 = smov (!%p290_p2), 96  }
   0x6   : > { %293 = sbr.rel (%p290_p2) target bundleno = 1876 (0x754), region = 56  ;;  %p328_p3 = scmp.lt.s32.totalorder (!%p290_p2), %s1485_s11, 7 }
   0x7   : > { %s1686_s10 = smov (!%p290_p2), 64   ;;  %s1687_s13 = smov (!%p290_p2), 80  }
   0x8   : > { %s1688_s14 = smov (!%p290_p2), 112   ;;  %s1689_s20 = smov (!%p290_p2), 48  }
   0x9   : > { %s1690_s21 = smov (!%p290_p2), 16  }
   0xb   : > { %s2249_s11 = smov (!%p328_p3, %s1485_s11), 7  ;;  %vm352_vm0 = vcmask 261120   ;;  %v1684_v16 = vmov 32.0  }
   0xc   : > { %s1535_s12 = sshll.u32 %s2249_s11, 4  ;;  %1586 = vrcp.f32 %v1684_v16 }
   0xd   : > { %s1757_s15 = scalar_lea.vmem %s2232_s0, %s1535_s12 }
   0xe   : > { %v346_v0 = vld [vmem:[%s1757_s15 + $0x20] sm:$0xff]  ;;  %v344_v1 = vld [vmem:[%s1757_s15 + $0x10] sm:$0xff]  ;;  %v347_v6 = vld [vmem:[%s1757_s15 + $0x28] sm:$0xff] }
   0xf   : > { %v342_v2 = vld [vmem:[%s1757_s15] sm:$0xff]  ;;  %v365_v3 = vsel %vm352_vm0, %v346_v0, 0.0  ;;  %v359_v4 = vsel %vm352_vm0, %v344_v1, 0.0  ;;  %v345_v7 = vld [vmem:[%s1757_s15 + $0x18] sm:$0xff]  ;;  %v343_v8 = vld [vmem:[%s1757_s15 + $0x8] sm:$0xff]  ;;  %v368_v9 = vsel %vm352_vm0, %v347_v6, 0.0 }
  0x10   : > { %v353_v5 = vsel %vm352_vm0, %v342_v2, 0.0  ;;  %366 = vadd.xlane.f32.xlu2 %v365_v3  ;;  %360 = vadd.xlane.f32.xlu0 %v359_v4  ;;  %v362_v10 = vsel %vm352_vm0, %v345_v7, 0.0  ;;  %v356_v11 = vsel %vm352_vm0, %v343_v8, 0.0  ;;  %v348_v12 = vld [vmem:[%s1757_s15 + $0x30] sm:$0xff]  ;;  %v349_v13 = vld [vmem:[%s1757_s15 + $0x38] sm:$0xff] }
  0x11   : > { %354 = vadd.xlane.f32.xlu1 %v353_v5  ;;  %v371_v14 = vsel %vm352_vm0, %v348_v12, 0.0  ;;  %v374_v15 = vsel %vm352_vm0, %v349_v13, 0.0 }
  0x12   : > { %v1587_v17 = vpop.eup %1586 }
  0x13   : > { %v378_v18 = vmul.f32 32.0, %v1587_v17  ;;  %vm382_vm1 = vweird.f32 %v1587_v17 }
  0x15   : > { %v379_v19 = vsub.f32 1.0, %v378_v18 }
  0x17   : > { %v380_v20 = vmul.f32 %v1587_v17, %v379_v19 }
  0x18   : > { %369 = vadd.xlane.f32.xlu2 %v368_v9  ;;  %363 = vadd.xlane.f32.xlu0 %v362_v10 }
  0x19   : > { %357 = vadd.xlane.f32.xlu1 %v356_v11  ;;  %v381_v21 = vadd.f32 %v1587_v17, %v380_v20 }
  0x1b   : > { %v1775_v22 = vsel %vm382_vm1, %v1587_v17, %v381_v21 }
  0x20   : > { %372 = vadd.xlane.f32.xlu0 %v371_v14 }
  0x21   : > { %375 = vadd.xlane.f32.xlu1 %v374_v15 }
  0x83   : > { %v367_v23 = vpop.xlane.xlu2 %366  ;;  %v361_v24 = vpop.xlane.xlu0 %360 }
  0x84   : > { %v386_v25 = vmul.f32 %v1775_v22, %v361_v24  ;;  %v355_v26 = vpop.xlane.xlu1 %354  ;;  %v388_v40 = vmul.f32 %v1775_v22, %v367_v23 }
  0x85   : > { %v384_v27 = vmul.f32 %v1775_v22, %v355_v26 }
  0x86   : > { %v1779_v28 = vsub.f32 %v344_v1, %v386_v25  ;;  %v1805_v47 = vsub.f32 %v346_v0, %v388_v40 }
  0x87   : > { %v1781_v29 = vsub.f32 %v342_v2, %v384_v27  ;;  %v1538_v2 = vld [vmem:[%s2235_s3 + $0x8] sm:$0xff] }
  0x88   : > { %v402_v30 = vmul.f32 %v1779_v28, %v1779_v28  ;;  %v404_v56 = vmul.f32 %v1805_v47, %v1805_v47  ;;  %600 = vmatpush.bf16.msra.mxu0 %v1538_v2  ;;  %1541 = vmatpush.bf16.msra.mxu1 %v1538_v2 }
  0x89   : > { %v400_v31 = vmul.f32 %v1781_v29, %v1781_v29  ;;  %1542 = vmatpush.bf16.msra.mxu2 %v1538_v2  ;;  %1543 = vmatpush.bf16.msra.mxu3 %v1538_v2 }
  0x8a   : > { %v414_v32 = vsel %vm352_vm0, %v402_v30, 0.0  ;;  %v420_v59 = vsel %vm352_vm0, %v404_v56, 0.0 }
  0x8b   : > { %v370_v33 = vpop.xlane.xlu2 %369  ;;  %415 = vadd.xlane.f32.xlu2 %v414_v32  ;;  %v364_v34 = vpop.xlane.xlu0 %363  ;;  %v408_v35 = vsel %vm352_vm0, %v400_v31, 0.0 }
  0x8c   : > { %v389_v36 = vmul.f32 %v1775_v22, %v370_v33  ;;  %v387_v37 = vmul.f32 %v1775_v22, %v364_v34  ;;  %409 = vadd.xlane.f32.xlu1 %v408_v35  ;;  %v358_v38 = vpop.xlane.xlu1 %357 }
  0x8d   : > { %v385_v39 = vmul.f32 %v1775_v22, %v358_v38 }
  0x8e   : > { %v1793_v41 = vsub.f32 %v347_v6, %v389_v36  ;;  %v1795_v42 = vsub.f32 %v345_v7, %v387_v37  ;;  %v1537_v6 = vld [vmem:[%s2235_s3] sm:$0xff] }
  0x8f   : > { %v1797_v43 = vsub.f32 %v343_v8, %v385_v39  ;;  %601 = vmatpush.bf16.msra.mxu0 %v1537_v6  ;;  %1544 = vmatpush.bf16.msra.mxu1 %v1537_v6 }
  0x90   : > { %v403_v44 = vmul.f32 %v1795_v42, %v1795_v42  ;;  %v405_v45 = vmul.f32 %v1793_v41, %v1793_v41  ;;  %1545 = vmatpush.bf16.msra.mxu2 %v1537_v6  ;;  %1546 = vmatpush.bf16.msra.mxu3 %v1537_v6 }
  0x91   : > { %v401_v46 = vmul.f32 %v1797_v43, %v1797_v43 }
  0x92   : > { %v417_v48 = vsel %vm352_vm0, %v403_v44, 0.0  ;;  %v423_v49 = vsel %vm352_vm0, %v405_v45, 0.0 }
  0x93   : > { %418 = vadd.xlane.f32.xlu0 %v417_v48  ;;  %v373_v50 = vpop.xlane.xlu0 %372  ;;  %v411_v51 = vsel %vm352_vm0, %v401_v46, 0.0 }
  0x94   : > { %v390_v52 = vmul.f32 %v1775_v22, %v373_v50  ;;  %424 = vadd.xlane.f32.xlu1 %v423_v49  ;;  %412 = vadd.xlane.f32.xlu2 %v411_v51  ;;  %v376_v53 = vpop.xlane.xlu1 %375 }
  0x95   : > { %v391_v54 = vmul.f32 %v1775_v22, %v376_v53 }
  0x96   : > { %v1812_v55 = vsub.f32 %v348_v12, %v390_v52 }
  0x97   : > { %v1818_v58 = vsub.f32 %v349_v13, %v391_v54 }
  0x98   : > { %v406_v57 = vmul.f32 %v1812_v55, %v1812_v55 }
  0x99   : > { %v407_v61 = vmul.f32 %v1818_v58, %v1818_v58 }
  0x9a   : > { %v426_v60 = vsel %vm352_vm0, %v406_v57, 0.0 }
  0x9b   : > { %421 = vadd.xlane.f32.xlu0 %v420_v59  ;;  %v429_v62 = vsel %vm352_vm0, %v407_v61, 0.0 }
  0x9c   : > { %427 = vadd.xlane.f32.xlu2 %v426_v60 }
  0xa3   : > { %430 = vadd.xlane.f32.xlu0 %v429_v62 }
  0xfe   : > { %v416_v63 = vpop.xlane.xlu2 %415 }
  0xff   : > { %v434_v0 = vmul.f32 %v416_v63, %v1775_v22  ;;  %v410_v1 = vpop.xlane.xlu1 %409  ;;  %v1874_v63 = vld [vmem:[%s2233_s1] ss:$0 sm:$0xff] }
 0x100   : > { %v432_v3 = vmul.f32 %v410_v1, %v1775_v22 }
 0x101   : > { %v442_v4 = vadd.f32 1e-05, %v434_v0 }
 0x102   : > { %v440_v5 = vadd.f32 1e-05, %v432_v3 }
 0x103   : > { %1588 = vrsqrt.f32 %v442_v4  ;;  %vm474_vm2 = vweird.f32 %v442_v4 }
 0x104   : > { %1590 = vrsqrt.f32 %v440_v5  ;;  %vm454_vm4 = vweird.f32 %v440_v5 }
 0x106   : > { %v419_v7 = vpop.xlane.xlu0 %418 }
 0x107   : > { %v435_v8 = vmul.f32 %v419_v7, %v1775_v22  ;;  %v413_v9 = vpop.xlane.xlu2 %412  ;;  %v425_v10 = vpop.xlane.xlu1 %424 }
 0x108   : > { %v433_v11 = vmul.f32 %v413_v9, %v1775_v22  ;;  %v437_v12 = vmul.f32 %v425_v10, %v1775_v22 }
 0x109   : > { %v1589_v13 = vpop.eup %1588  ;;  %v1836_v14 = vadd.f32 1e-05, %v435_v8 }
 0x10a   : > { %v1591_v15 = vpop.eup %1590  ;;  %v469_v16 = vmul.f32 %v1589_v13, %v442_v4  ;;  %v441_v17 = vadd.f32 1e-05, %v433_v11  ;;  %v1838_v18 = vadd.f32 1e-05, %v437_v12  ;;  %vm475_vm3 = vweird.f32 %v1589_v13 }
 0x10b   : > { %v449_v19 = vmul.f32 %v1591_v15, %v440_v5  ;;  %1592 = vrsqrt.f32 %v1836_v14  ;;  %vm455_vm5 = vweird.f32 %v1591_v15  ;;  %vm1852_vm6 = vmor %vm474_vm2, %vm475_vm3  ;;  %vm484_vm7 = vweird.f32 %v1836_v14 }
 0x10c   : > { %v470_v20 = vmul.f32 %v1589_v13, %v469_v16  ;;  %1594 = vrsqrt.f32 %v441_v17  ;;  %vm1861_vm8 = vmor %vm454_vm4, %vm455_vm5  ;;  %vm464_vm9 = vweird.f32 %v441_v17  ;;  %vm504_vm12 = vweird.f32 %v1838_v18 }
 0x10d   : > { %v450_v21 = vmul.f32 %v1591_v15, %v449_v19  ;;  %1596 = vrsqrt.f32 %v1838_v18 }
 0x10e   : > { %v471_v23 = vmul.f32 0.5, %v470_v20  ;;  %v422_v24 = vpop.xlane.xlu0 %421 }
 0x10f   : > { %v451_v25 = vmul.f32 0.5, %v450_v21  ;;  %v436_v26 = vmul.f32 %v422_v24, %v1775_v22  ;;  %v428_v27 = vpop.xlane.xlu2 %427 }
 0x110   : > { %v472_v30 = vsub.f32 1.5, %v471_v23  ;;  %v438_v31 = vmul.f32 %v428_v27, %v1775_v22 }
 0x111   : > { %v1593_v32 = vpop.eup %1592  ;;  %v452_v33 = vsub.f32 1.5, %v451_v25  ;;  %v1844_v34 = vadd.f32 1e-05, %v436_v26 }
 0x112   : > { %v1595_v35 = vpop.eup %1594  ;;  %v473_v36 = vmul.f32 %v1589_v13, %v472_v30  ;;  %v479_v37 = vmul.f32 %v1593_v32, %v1836_v14  ;;  %v1847_v38 = vadd.f32 1e-05, %v438_v31  ;;  %vm485_vm11 = vweird.f32 %v1593_v32 }
 0x113   : > { %v1849_v39 = vpop.eup %1596  ;;  %v453_v40 = vmul.f32 %v1591_v15, %v452_v33  ;;  %v459_v44 = vmul.f32 %v1595_v35, %v441_v17  ;;  %1598 = vrsqrt.f32 %v1844_v34  ;;  %vm465_vm10 = vweird.f32 %v1595_v35  ;;  %vm486_vm15 = vmor %vm484_vm7, %vm485_vm11 }
 0x114   : > { %v480_v46 = vmul.f32 %v1593_v32, %v479_v37  ;;  %v499_v48 = vmul.f32 %v1849_v39, %v1838_v18  ;;  %v477_v49 = vsel %vm1852_vm6, %v1589_v13, %v473_v36  ;;  %1600 = vrsqrt.f32 %v1847_v38  ;;  %vm1880_vm14 = vmor %vm464_vm9, %vm465_vm10 }
 0x115   : > { %v460_v50 = vmul.f32 %v1595_v35, %v459_v44  ;;  %v457_v56 = vsel %vm1861_vm8, %v1591_v15, %v453_v40  ;;  %v530_v60 = vmul.f32 %v477_v49, %v1779_v28  ;;  %vm505_vm13 = vweird.f32 %v1849_v39 }
 0x116   : > { %v481_v52 = vmul.f32 0.5, %v480_v46  ;;  %v500_v53 = vmul.f32 %v1849_v39, %v499_v48  ;;  %v431_v54 = vpop.xlane.xlu0 %430  ;;  %v528_v3 = vmul.f32 %v457_v56, %v1781_v29  ;;  %v1583_v29 = vld [vmem:[%s2234_s2] ss:$0 sm:$0xff]  ;;  %vm506_vm1 = vmor %vm504_vm12, %vm505_vm13  ;;  %vm494_vm2 = vweird.f32 %v1844_v34 }
 0x117   : > { %v461_v57 = vmul.f32 0.5, %v460_v50  ;;  %v439_v59 = vmul.f32 %v431_v54, %v1775_v22  ;;  %v541_v11 = vmul.f32 %v1874_v63, %v530_v60  ;;  %vm514_vm3 = vweird.f32 %v1847_v38 }
 0x118   : > { %v482_v61 = vsub.f32 1.5, %v481_v52  ;;  %v501_v62 = vmul.f32 0.5, %v500_v53  ;;  %v539_v19 = vmul.f32 %v1874_v63, %v528_v3  ;;  %vm661_vm11 = vcmask 130048  }
 0x119   : > { %v1599_v0 = vpop.eup %1598  ;;  %v462_v1 = vsub.f32 1.5, %v461_v57  ;;  %v447_v2 = vadd.f32 1e-05, %v439_v59  ;;  %v552_v23 = vadd.f32 %v1583_v29, %v541_v11 }
 0x11a   : > { %v483_v22 = vmul.f32 %v1593_v32, %v482_v61  ;;  %v502_v4 = vsub.f32 1.5, %v501_v62  ;;  %v489_v5 = vmul.f32 %v1599_v0, %v1844_v34  ;;  %v1601_v7 = vpop.eup %1600  ;;  %vm495_vm4 = vweird.f32 %v1599_v0 }
 0x11b   : > { %v463_v6 = vmul.f32 %v1595_v35, %v462_v1  ;;  %1602 = vrsqrt.f32 %v447_v2  ;;  %v509_v14 = vmul.f32 %v1601_v7, %v1847_v38  ;;  %vm515_vm5 = vweird.f32 %v1601_v7  ;;  %vm496_vm6 = vmor %vm494_vm2, %vm495_vm4 }
 0x11c   : > { %v487_v8 = vsel %vm486_vm15, %v1593_v32, %v483_v22  ;;  %v503_v9 = vmul.f32 %v1849_v39, %v502_v4  ;;  %v490_v10 = vmul.f32 %v1599_v0, %v489_v5  ;;  %v550_v31 = vadd.f32 %v1583_v29, %v539_v19  ;;  %vm516_vm7 = vmor %vm514_vm3, %vm515_vm5 }
 0x11d   : > { %v531_v12 = vmul.f32 %v487_v8, %v1795_v42  ;;  %v467_v13 = vsel %vm1880_vm14, %v1595_v35, %v463_v6  ;;  %v510_v42 = vmul.f32 %v1601_v7, %v509_v14  ;;  %vm524_vm8 = vweird.f32 %v447_v2 }
 0x11e   : > { %v529_v15 = vmul.f32 %v467_v13, %v1797_v43  ;;  %v507_v16 = vsel %vm506_vm1, %v1849_v39, %v503_v9  ;;  %v491_v17 = vmul.f32 0.5, %v490_v10 }
 0x11f   : > { %v542_v20 = vmul.f32 %v1874_v63, %v531_v12  ;;  %v533_v43 = vmul.f32 %v507_v16, %v1793_v41  ;;  %v511_v25 = vmul.f32 0.5, %v510_v42 }
 0x120   : > { %v492_v21 = vsub.f32 1.5, %v491_v17  ;;  %v540_v18 = vmul.f32 %v1874_v63, %v529_v15 }
 0x121   : > { %v1603_v24 = vpop.eup %1602  ;;  %v553_v26 = vadd.f32 %v1583_v29, %v542_v20  ;;  %v512_v33 = vsub.f32 1.5, %v511_v25  ;;  %v544_v44 = vmul.f32 %v1874_v63, %v533_v43 }
 0x122   : > { %v493_v27 = vmul.f32 %v1599_v0, %v492_v21  ;;  %v519_v30 = vmul.f32 %v1603_v24, %v447_v2  ;;  %v551_v32 = vadd.f32 %v1583_v29, %v540_v18  ;;  %vm525_vm9 = vweird.f32 %v1603_v24 }
 0x123   : > { %v559_v35 = vpack.c.bf16 %v553_v26, %v552_v23  ;;  %v513_v40 = vmul.f32 %v1601_v7, %v512_v33  ;;  %vm526_vm10 = vmor %vm524_vm8, %vm525_vm9  ;;  %v555_v50 = vadd.f32 %v1583_v29, %v544_v44 }
 0x124   : > { %v497_v36 = vsel %vm496_vm6, %v1599_v0, %v493_v27  ;;  %v520_v37 = vmul.f32 %v1603_v24, %v519_v30  ;;  %v558_v39 = vpack.c.bf16 %v551_v32, %v550_v31 }
 0x125   : > { %v532_v41 = vmul.f32 %v497_v36, %v1805_v47  ;;  %1500 = vmatmul.msk.bf16.vlgmr.msra.gmra.mxu1 %vm352_vm0, %v559_v35  ;;  %v517_v34 = vsel %vm516_vm7, %v1601_v7, %v513_v40 }
 0x126   : > { %v521_v45 = vmul.f32 0.5, %v520_v37  ;;  %1499 = vmatmul.msk.bf16.vlgmr.msra.gmra.mxu0 %vm352_vm0, %v558_v39  ;;  %v534_v38 = vmul.f32 %v517_v34, %v1812_v55  ;;  %v1584_v55 = vld [vmem:[%s2236_s4] ss:$0 sm:$0xff] }
 0x127   : > { %v543_v46 = vmul.f32 %v1874_v63, %v532_v41 }
 0x128   : > { %v522_v48 = vsub.f32 1.5, %v521_v45  ;;  %v545_v54 = vmul.f32 %v1874_v63, %v534_v38 }
 0x129   : > { %v554_v49 = vadd.f32 %v1583_v29, %v543_v46 }
 0x12a   : > { %v523_v47 = vmul.f32 %v1603_v24, %v522_v48  ;;  %v556_v57 = vadd.f32 %v1583_v29, %v545_v54 }
 0x12b   : > { %v560_v51 = vpack.c.bf16 %v555_v50, %v554_v49 }
 0x12c   : > { %v527_v52 = vsel %vm526_vm10, %v1603_v24, %v523_v47 }
 0x12d   : > { %v535_v53 = vmul.f32 %v527_v52, %v1818_v58  ;;  %1501 = vmatmul.msk.bf16.vlgmr.msra.gmra.mxu2 %vm352_vm0, %v560_v51 }
 0x12f   : > { %v546_v56 = vmul.f32 %v1874_v63, %v535_v53 }
 0x131   : > { %v557_v59 = vadd.f32 %v1583_v29, %v546_v56 }
 0x133   : > { %v561_v60 = vpack.c.bf16 %v557_v59, %v556_v57 }
 0x135   : > { %1502 = vmatmul.msk.bf16.vlgmr.msra.gmra.mxu3 %vm352_vm0, %v561_v60 }
 0x1a2   : > { %v608_v61 = vpop.f32.mrf.mxu1 }
 0x1a3   : > { %v603_v62 = vpop.f32.mrf.mxu0  ;;  %v609_v0 = vadd.f32 %v1584_v55, %v608_v61 }
 0x1a4   : > { %v604_v1 = vadd.f32 %v1584_v55, %v603_v62 }
 0x1a5   : > { %v625_v58 = vmul.f32 0.25, %v609_v0  ;;  %v641_v22 = vpack.c.bf16 %v609_v0, %v609_v0 }
 0x1a6   : > { %v623_v2 = vmul.f32 0.25, %v604_v1  ;;  %v639_v63 = vpack.c.bf16 %v604_v1, %v604_v1 }
 0x1a7   : > { %v633_v6 = vpack.c.bf16 %v625_v58, %v625_v58  ;;  %v689_v11 = vunpack.c.l.b16 %v641_v22 }
 0x1a8   : > { %v631_v9 = vpack.c.bf16 %v623_v2, %v623_v2  ;;  %v656_v14 = vunpack.c.l.b16 %v639_v63  ;;  %v1968_v63 = vld [vmem:[%s2240_s8] sm:$0xff] }
 0x1a9   : > { %v684_v19 = vunpack.c.l.b16 %v633_v6 }
 0x1aa   : > { %v610_v3 = vpop.f32.mrf.mxu1  ;;  %v651_v21 = vunpack.c.l.b16 %v631_v9  ;;  %v1975_v9 = vld [vmem:[%s2240_s8 + $0x10] sm:$0xff] }
 0x1ab   : > { %v605_v28 = vpop.f32.mrf.mxu0  ;;  %v611_v4 = vadd.f32 %v1584_v55, %v610_v3 }
 0x1ac   : > { %v606_v5 = vadd.f32 %v1584_v55, %v605_v28  ;;  %v647_v28 = vld [vmem:[%s2239_s7] sm:$0xff] }
 0x1ad   : > { %v626_v7 = vmul.f32 0.25, %v611_v4  ;;  %v642_v8 = vpack.c.bf16 %v611_v4, %v611_v4 }
 0x1ae   : > { %v624_v10 = vmul.f32 0.25, %v606_v5  ;;  %v640_v29 = vpack.c.bf16 %v606_v5, %v606_v5 }
 0x1af   : > { %v634_v12 = vpack.c.bf16 %v626_v7, %v626_v7  ;;  %v690_v13 = vunpack.c.l.b16 %v642_v8 }
 0x1b0   : > { %v632_v15 = vpack.c.bf16 %v624_v10, %v624_v10  ;;  %v657_v16 = vunpack.c.l.b16 %v640_v29  ;;  %v613_v17 = vpop.f32.mrf.mxu2  ;;  %v648_v29 = vld [vmem:[%s2239_s7 + $0x8] sm:$0xff] }
 0x1b1   : > { %v685_v42 = vunpack.c.l.b16 %v634_v12  ;;  %v1926_v20 = vpack.c.b16 %v690_v13, %v689_v11  ;;  %v614_v43 = vadd.f32 %v1584_v55, %v613_v17 }
 0x1b2   : > { %v652_v18 = vunpack.c.l.b16 %v632_v15  ;;  %v1928_v23 = vpack.c.b16 %v657_v16, %v656_v14  ;;  %v1985_v15 = vld [vmem:[%s2240_s8 + $0x8] sm:$0xff] }
 0x1b3   : > { %v1930_v24 = vpack.c.b16 %v685_v42, %v684_v19  ;;  %692 = vrot.lane.b32.xlu1 %v1926_v20, %s1685_s26  ;;  %v627_v26 = vmul.f32 0.25, %v614_v43  ;;  %v643_v31 = vpack.c.bf16 %v614_v43, %v614_v43  ;;  %v1997_v43 = vld [vmem:[%s2240_s8 + $0x30] sm:$0xff] }
 0x1b4   : > { %v1934_v25 = vpack.c.b16 %v652_v18, %v651_v21  ;;  %659 = vrot.lane.b32.xlu2 %v1928_v23, %s1685_s26  ;;  %v1992_v18 = vld [vmem:[%s2240_s8 + $0x20] sm:$0xff] }
 0x1b5   : > { %v635_v33 = vpack.c.bf16 %v627_v26, %v627_v26  ;;  %v721_v39 = vunpack.c.l.b16 %v643_v31 }
 0x1b7   : > { %v716_v44 = vunpack.c.l.b16 %v635_v33 }
 0x1b8   : > { %v615_v27 = vpop.f32.mrf.mxu2  ;;  %v618_v30 = vpop.f32.mrf.mxu3 }
 0x1b9   : > { %v616_v32 = vadd.f32 %v1584_v55, %v615_v27  ;;  %v619_v37 = vadd.f32 %v1584_v55, %v618_v30 }
 0x1bb   : > { %v628_v35 = vmul.f32 0.25, %v616_v32  ;;  %v644_v36 = vpack.c.bf16 %v616_v32, %v616_v32  ;;  %v629_v46 = vmul.f32 0.25, %v619_v37  ;;  %v645_v49 = vpack.c.bf16 %v619_v37, %v619_v37 }
 0x1bd   : > { %v636_v41 = vpack.c.bf16 %v628_v35, %v628_v35  ;;  %v722_v40 = vunpack.c.l.b16 %v644_v36  ;;  %v637_v47 = vpack.c.bf16 %v629_v46, %v629_v46  ;;  %v753_v53 = vunpack.c.l.b16 %v645_v49  ;;  %v2007_v35 = vld [vmem:[%s2240_s8 + $0x18] sm:$0xff] }
 0x1bf   : > { %v717_v45 = vunpack.c.l.b16 %v636_v41  ;;  %v1938_v34 = vpack.c.b16 %v722_v40, %v721_v39  ;;  %v748_v57 = vunpack.c.l.b16 %v637_v47  ;;  %v2014_v39 = vld [vmem:[%s2240_s8 + $0x28] sm:$0xff] }
 0x1c0   : > { %v620_v48 = vpop.f32.mrf.mxu3 }
 0x1c1   : > { %v1940_v38 = vpack.c.b16 %v717_v45, %v716_v44  ;;  %v621_v50 = vadd.f32 %v1584_v55, %v620_v48  ;;  %724 = vrot.lane.b32.xlu0 %v1938_v34, %s1685_s26 }
 0x1c3   : > { %v630_v51 = vmul.f32 0.25, %v621_v50  ;;  %v646_v52 = vpack.c.bf16 %v621_v50, %v621_v50  ;;  %v2023_v50 = vld [vmem:[%s2240_s8 + $0x38] sm:$0xff] }
 0x1c5   : > { %v638_v54 = vpack.c.bf16 %v630_v51, %v630_v51  ;;  %v754_v56 = vunpack.c.l.b16 %v646_v52 }
 0x1c7   : > { %v749_v59 = vunpack.c.l.b16 %v638_v54  ;;  %v1944_v60 = vpack.c.b16 %v754_v56, %v753_v53 }
 0x1c9   : > { %v1946_v61 = vpack.c.b16 %v749_v59, %v748_v57  ;;  %756 = vrot.lane.b32.xlu2 %v1944_v60, %s1685_s26 }
 0x20e   : > { %v660_v55 = vpop.permute.xlu2 %659 }
 0x20f   : > { %v666_v62 = vsel %vm661_vm11, %v660_v55, 0 }
 0x210   : > { %675 = vmatpush.bf16.xpose.msrb.mxu1 %v666_v62 }
 0x217   : > { %1503 = vmatmul.msk.bf16.vlgmr.msrb.gmra.mxu1 %vm661_vm11, %v1934_v25 }
 0x223   : > { %v757_v0 = vpop.permute.xlu2 %756 }
 0x224   : > { %v762_v1 = vsel %vm661_vm11, %v757_v0, 0 }
 0x225   : > { %771 = vmatpush.bf16.xpose.msra.mxu1 %v762_v1  ;;  %v693_v58 = vpop.permute.xlu1 %692 }
 0x226   : > { %v698_v2 = vsel %vm661_vm11, %v693_v58, 0 }
 0x227   : > { %707 = vmatpush.bf16.xpose.msrb.mxu2 %v698_v2 }
 0x22c   : > { %1506 = vmatmul.msk.bf16.vlgmr.msra.gmra.mxu1 %vm661_vm11, %v1946_v61 }
 0x22e   : > { %1504 = vmatmul.msk.bf16.vlgmr.msrb.gmra.mxu2 %vm661_vm11, %v1930_v24 }
 0x233   : > { %v725_v3 = vpop.permute.xlu0 %724 }
 0x234   : > { %v730_v22 = vsel %vm661_vm11, %v725_v3, 0 }
 0x235   : > { %739 = vmatpush.bf16.xpose.msrb.mxu3 %v730_v22 }
 0x23c   : > { %1505 = vmatmul.msk.bf16.vlgmr.msrb.gmra.mxu3 %vm661_vm11, %v1940_v38 }
 0x294   : > { %v677_v4 = vpop.f32.mrf.mxu1 }
 0x295   : > { %v678_v5 = vadd.f32 %v677_v4, %v647_v28 }
 0x297   : > { %v786_v6 = vadd.f32 %v1968_v63, %v678_v5 }
 0x299   : > { %v794_v7 = vsel %vm661_vm11, %v786_v6, -inf }
 0x29a   : > { %795 = vmax.xlane.f32.xlu2 %v794_v7 }
 0x29c   : > { %v679_v11 = vpop.f32.mrf.mxu1 }
 0x29d   : > { %v680_v13 = vadd.f32 %v679_v11, %v648_v29 }
 0x29f   : > { %v787_v16 = vadd.f32 %v1985_v15, %v680_v13 }
 0x2a1   : > { %v797_v42 = vsel %vm661_vm11, %v787_v16, -inf }
 0x2a9   : > { %v773_v17 = vpop.f32.mrf.mxu1 }
 0x2aa   : > { %v774_v19 = vadd.f32 %v773_v17, %v647_v28 }
 0x2ac   : > { %v2001_v31 = vadd.f32 %v1997_v43, %v774_v19 }
 0x2ae   : > { %v812_v36 = vsel %vm661_vm11, %v2001_v31, -inf }
 0x2b1   : > { %v709_v8 = vpop.f32.mrf.mxu2  ;;  %v775_v44 = vpop.f32.mrf.mxu1 }
 0x2b2   : > { %v710_v10 = vadd.f32 %v709_v8, %v647_v28  ;;  %v776_v46 = vadd.f32 %v775_v44, %v648_v29 }
 0x2b4   : > { %v788_v12 = vadd.f32 %v1975_v9, %v710_v10  ;;  %v793_v47 = vadd.f32 %v2023_v50, %v776_v46 }
 0x2b6   : > { %v800_v14 = vsel %vm661_vm11, %v788_v12, -inf  ;;  %v815_v51 = vsel %vm661_vm11, %v793_v47, -inf }
 0x2b7   : > { %801 = vmax.xlane.f32.xlu1 %v800_v14 }
 0x2b9   : > { %v711_v27 = vpop.f32.mrf.mxu2 }
 0x2ba   : > { %v712_v32 = vadd.f32 %v711_v27, %v648_v29 }
 0x2bc   : > { %v789_v40 = vadd.f32 %v2007_v35, %v712_v32 }
 0x2be   : > { %v803_v49 = vsel %vm661_vm11, %v789_v40, -inf }
 0x2bf   : > { %v741_v21 = vpop.f32.mrf.mxu3  ;;  %798 = vmax.xlane.f32.xlu1 %v797_v42 }
 0x2c0   : > { %v742_v26 = vadd.f32 %v741_v21, %v647_v28 }
 0x2c2   : > { %v790_v30 = vadd.f32 %v1992_v18, %v742_v26 }
 0x2c4   : > { %v806_v33 = vsel %vm661_vm11, %v790_v30, -inf }
 0x2c5   : > { %807 = vmax.xlane.f32.xlu0 %v806_v33 }
 0x2c7   : > { %v743_v37 = vpop.f32.mrf.mxu3  ;;  %813 = vmax.xlane.f32.xlu1 %v812_v36 }
 0x2c8   : > { %v744_v41 = vadd.f32 %v743_v37, %v648_v29 }
 0x2ca   : > { %v791_v45 = vadd.f32 %v2014_v39, %v744_v41 }
 0x2cc   : > { %v809_v48 = vsel %vm661_vm11, %v791_v45, -inf }
 0x2cd   : > { %810 = vmax.xlane.f32.xlu2 %v809_v48  ;;  %804 = vmax.xlane.f32.xlu0 %v803_v49 }
 0x2d5   : > { %816 = vmax.xlane.f32.xlu0 %v815_v51 }
 0x2e0   : > { %920 = vrot.lane.b32.xlu1 %v1926_v20, %s1686_s10 }
 0x2e5   : > { %995 = vrot.lane.b32.xlu2 %v1928_v23, %s1687_s13 }
 0x2e9   : > { %895 = vrot.lane.b32.xlu0 %v1928_v23, %s1686_s10 }
 0x2ed   : > { %993 = vrot.lane.b32.xlu2 %v1934_v25, %s1688_s14 }
 0x2f5   : > { %945 = vrot.lane.b32.xlu2 %v1938_v34, %s1686_s10 }
 0x2fd   : > { %970 = vrot.lane.b32.xlu2 %v1944_v60, %s1686_s10  ;;  %s2203_s10 = scalar_lea.vmem %s2241_s9, %s1535_s12 }
 0x305   : > { %1019 = vrot.lane.b32.xlu2 %v1926_v20, %s1687_s13 }
 0x30d   : > { %v796_v52 = vpop.xlane.xlu2 %795 }
 0x30e   : > { %v818_v53 = vsub.f32 %v786_v6, %v796_v52 }
 0x310   : > { %v826_v54 = vmul.f32 1.442695, %v818_v53 }
 0x312   : > { %1604 = vpow2.f32 %v826_v54 }
 0x318   : > { %v2037_v56 = vpop.eup %1604 }
 0x319   : > { %v842_v57 = vsel %vm661_vm11, %v2037_v56, 0.0 }
 0x31a   : > { %843 = vadd.xlane.f32.xlu0 %v842_v57 }
 0x32a   : > { %v802_v59 = vpop.xlane.xlu1 %801 }
 0x32b   : > { %v820_v55 = vsub.f32 %v788_v12, %v802_v59 }
 0x32d   : > { %v830_v25 = vmul.f32 1.442695, %v820_v55 }
 0x32f   : > { %1606 = vpow2.f32 %v830_v25 }
 0x332   : > { %v799_v62 = vpop.xlane.xlu1 %798 }
 0x333   : > { %v819_v0 = vsub.f32 %v787_v16, %v799_v62 }
 0x335   : > { %v2041_v1 = vpop.eup %1606  ;;  %v828_v58 = vmul.f32 1.442695, %v819_v0 }
 0x336   : > { %v848_v2 = vsel %vm661_vm11, %v2041_v1, 0.0 }
 0x337   : > { %1608 = vpow2.f32 %v828_v58  ;;  %849 = vadd.xlane.f32.xlu2 %v848_v2 }
 0x338   : > { %v808_v3 = vpop.xlane.xlu0 %807 }
 0x339   : > { %v822_v22 = vsub.f32 %v790_v30, %v808_v3 }
 0x33a   : > { %v814_v8 = vpop.xlane.xlu1 %813 }
 0x33b   : > { %v834_v28 = vmul.f32 1.442695, %v822_v22  ;;  %v824_v14 = vsub.f32 %v2001_v31, %v814_v8 }
 0x33d   : > { %v2045_v4 = vpop.eup %1608  ;;  %1610 = vpow2.f32 %v834_v28  ;;  %v838_v17 = vmul.f32 1.442695, %v824_v14 }
 0x33e   : > { %v845_v5 = vsel %vm661_vm11, %v2045_v4, 0.0 }
 0x33f   : > { %846 = vadd.xlane.f32.xlu2 %v845_v5 }
 0x340   : > { %v811_v6 = vpop.xlane.xlu2 %810  ;;  %v805_v7 = vpop.xlane.xlu0 %804 }
 0x341   : > { %v823_v10 = vsub.f32 %v791_v45, %v811_v6  ;;  %v821_v29 = vsub.f32 %v789_v40, %v805_v7 }
 0x343   : > { %v2049_v11 = vpop.eup %1610  ;;  %v836_v12 = vmul.f32 1.442695, %v823_v10  ;;  %v832_v13 = vmul.f32 1.442695, %v821_v29 }
 0x344   : > { %v854_v16 = vsel %vm661_vm11, %v2049_v11, 0.0 }
 0x345   : > { %1612 = vpow2.f32 %v836_v12  ;;  %855 = vadd.xlane.f32.xlu0 %v854_v16 }
 0x346   : > { %1614 = vpow2.f32 %v832_v13 }
 0x347   : > { %1616 = vpow2.f32 %v838_v17 }
 0x348   : > { %v996_v19 = vpop.permute.xlu2 %995  ;;  %v817_v42 = vpop.xlane.xlu0 %816 }
 0x349   : > { %v825_v21 = vsub.f32 %v793_v47, %v817_v42  ;;  %v1001_v40 = vsel %vm661_vm11, %v996_v19, 0 }
 0x34b   : > { %v2054_v26 = vpop.eup %1612  ;;  %v840_v27 = vmul.f32 1.442695, %v825_v21 }
 0x34c   : > { %v2056_v30 = vpop.eup %1614  ;;  %v857_v32 = vsel %vm661_vm11, %v2054_v26, 0.0 }
 0x34d   : > { %1618 = vpow2.f32 %v840_v27  ;;  %v851_v31 = vsel %vm661_vm11, %v2056_v30, 0.0  ;;  %858 = vadd.xlane.f32.xlu2 %v857_v32  ;;  %v2064_v36 = vpop.eup %1616 }
 0x34e   : > { %852 = vadd.xlane.f32.xlu1 %v851_v31  ;;  %v860_v45 = vsel %vm661_vm11, %v2064_v36, 0.0 }
 0x350   : > { %v2062_v33 = vpop.permute.xlu2 %993 }
 0x352   : > { %v921_v37 = vpop.permute.xlu1 %920 }
 0x353   : > { %v2066_v41 = vpop.eup %1618  ;;  %933 = vmatpush.bf16.msra.mxu3 %v921_v37 }
 0x354   : > { %v863_v44 = vsel %vm661_vm11, %v2066_v41, 0.0 }
 0x355   : > { %864 = vadd.xlane.f32.xlu0 %v863_v44 }
 0x356   : > { %861 = vadd.xlane.f32.xlu1 %v860_v45 }
 0x357   : > { %1010 = vmatpush.bf16.xpose.msrb.mxu3 %v1001_v40 }
 0x358   : > { %v946_v46 = vpop.permute.xlu2 %945 }
 0x359   : > { %958 = vmatpush.bf16.msrb.mxu1 %v946_v46 }
 0x35b   : > { %v896_v48 = vpop.permute.xlu0 %895 }
 0x35c   : > { %908 = vmatpush.bf16.msra.mxu2 %v896_v48 }
 0x360   : > { %v971_v49 = vpop.permute.xlu2 %970 }
 0x361   : > { %983 = vmatpush.bf16.msrb.mxu2 %v971_v49 }
 0x365   : > { %1017 = vrot.lane.b32.xlu2 %v1930_v24, %s1688_s14 }
 0x368   : > { %v1020_v47 = vpop.permute.xlu2 %1019 }
 0x369   : > { %v1025_v51 = vsel %vm661_vm11, %v1020_v47, 0  ;;  %1041 = vrot.lane.b32.xlu0 %v1940_v38, %s1688_s14 }
 0x36a   : > { %1034 = vmatpush.bf16.xpose.msra.mxu1 %v1025_v51 }
 0x36d   : > { %1067 = vrot.lane.b32.xlu2 %v1944_v60, %s1687_s13 }
 0x36f   : > { %1043 = vrot.lane.b32.xlu1 %v1938_v34, %s1687_s13 }
 0x375   : > { %1065 = vrot.lane.b32.xlu2 %v1946_v61, %s1688_s14 }
 0x38d   : > { %v844_v52 = vpop.xlane.xlu0 %843 }
 0x38e   : > { %1620 = vrcp.f32 %v844_v52 }
 0x394   : > { %v1621_v54 = vpop.eup %1620 }
 0x395   : > { %v874_v57 = vmul.f32 %v1621_v54, %v2037_v56 }
 0x397   : > { %v882_v55 = vpack.c.bf16 %v874_v57, %v874_v57 }
 0x399   : > { %v892_v0 = vunpack.c.l.b16 %v882_v55 }
 0x3aa   : > { %v850_v53 = vpop.xlane.xlu2 %849 }
 0x3b2   : > { %v847_v24 = vpop.xlane.xlu2 %846 }
 0x3b3   : > { %1622 = vrcp.f32 %v847_v24 }
 0x3b8   : > { %v856_v59 = vpop.xlane.xlu0 %855 }
 0x3b9   : > { %v1623_v38 = vpop.eup %1622  ;;  %1624 = vrcp.f32 %v856_v59 }
 0x3ba   : > { %v875_v25 = vmul.f32 %v1623_v38, %v2045_v4  ;;  %1626 = vrcp.f32 %v850_v53 }
 0x3bc   : > { %v883_v62 = vpack.c.bf16 %v875_v25, %v875_v25 }
 0x3be   : > { %v893_v58 = vunpack.c.l.b16 %v883_v62 }
 0x3bf   : > { %v1625_v3 = vpop.eup %1624 }
 0x3c0   : > { %v894_v2 = vpack.c.b16 %v893_v58, %v892_v0  ;;  %v859_v61 = vpop.xlane.xlu2 %858  ;;  %v1627_v28 = vpop.eup %1626  ;;  %v878_v56 = vmul.f32 %v1625_v3, %v2049_v11  ;;  %v1512_v3 = vld [vmem:[%s2239_s7 + $0x18] sm:$0xff] }
 0x3c1   : > { %1628 = vrcp.f32 %v859_v61  ;;  %v853_v22 = vpop.xlane.xlu1 %852  ;;  %v876_v5 = vmul.f32 %v1627_v28, %v2041_v1 }
 0x3c2   : > { %1630 = vrcp.f32 %v853_v22  ;;  %1507 = vmatmul.msk.bf16.vlgmr.msra.gmra.mxu2 %vm661_vm11, %v894_v2  ;;  %v886_v7 = vpack.c.bf16 %v878_v56, %v878_v56 }
 0x3c3   : > { %v884_v12 = vpack.c.bf16 %v876_v5, %v876_v5 }
 0x3c4   : > { %v942_v19 = vunpack.c.l.b16 %v886_v7 }
 0x3c5   : > { %v917_v11 = vunpack.c.l.b16 %v884_v12 }
 0x3c7   : > { %v1629_v6 = vpop.eup %1628 }
 0x3c8   : > { %v1631_v4 = vpop.eup %1630  ;;  %v879_v8 = vmul.f32 %v1629_v6, %v2054_v26  ;;  %v865_v10 = vpop.xlane.xlu0 %864 }
 0x3c9   : > { %v1018_v29 = vpop.permute.xlu2 %1017  ;;  %v877_v13 = vmul.f32 %v1631_v4, %v2056_v30  ;;  %1632 = vrcp.f32 %v865_v10  ;;  %v862_v14 = vpop.xlane.xlu1 %861 }
 0x3ca   : > { %v887_v16 = vpack.c.bf16 %v879_v8, %v879_v8  ;;  %1634 = vrcp.f32 %v862_v14 }
 0x3cb   : > { %v885_v17 = vpack.c.bf16 %v877_v13, %v877_v13 }
 0x3cc   : > { %v943_v42 = vunpack.c.l.b16 %v887_v16 }
 0x3cd   : > { %v918_v21 = vunpack.c.l.b16 %v885_v17 }
 0x3ce   : > { %v944_v1 = vpack.c.b16 %v943_v42, %v942_v19 }
 0x3cf   : > { %v1633_v27 = vpop.eup %1632  ;;  %v919_v32 = vpack.c.b16 %v918_v21, %v917_v11 }
 0x3d0   : > { %v1635_v31 = vpop.eup %1634  ;;  %v881_v26 = vmul.f32 %v1633_v27, %v2066_v41  ;;  %1509 = vmatmul.msk.bf16.vlgmr.msrb.gmra.mxu1 %vm661_vm11, %v944_v1 }
 0x3d1   : > { %v1068_v37 = vpop.permute.xlu2 %1067  ;;  %v880_v30 = vmul.f32 %v1635_v31, %v2064_v36  ;;  %1508 = vmatmul.msk.bf16.vlgmr.msra.gmra.mxu3 %vm661_vm11, %v919_v32 }
 0x3d2   : > { %v1073_v40 = vsel %vm661_vm11, %v1068_v37, 0  ;;  %v889_v44 = vpack.c.bf16 %v881_v26, %v881_v26 }
 0x3d3   : > { %1082 = vmatpush.bf16.xpose.msra.mxu3 %v1073_v40  ;;  %v888_v45 = vpack.c.bf16 %v880_v30, %v880_v30 }
 0x3d4   : > { %v968_v46 = vunpack.c.l.b16 %v889_v44 }
 0x3d5   : > { %v967_v48 = vunpack.c.l.b16 %v888_v45 }
 0x3d7   : > { %v969_v49 = vpack.c.b16 %v968_v46, %v967_v48 }
 0x3d9   : > { %1510 = vmatmul.msk.bf16.vlgmr.msrb.gmra.mxu2 %vm661_vm11, %v969_v49  ;;  %v1066_v51 = vpop.permute.xlu2 %1065 }
 0x3db   : > { %v1042_v47 = vpop.permute.xlu0 %1041 }
 0x3e0   : > { %1514 = vmatmul.msk.bf16.vlgmr.msra.gmra.mxu1 %vm661_vm11, %v1018_v29 }
 0x3e1   : > { %1513 = vmatmul.msk.bf16.vlgmr.msrb.gmra.mxu3 %vm661_vm11, %v2062_v33  ;;  %v1044_v41 = vpop.permute.xlu1 %1043  ;;  %v1511_v33 = vld [vmem:[%s2239_s7 + $0x10] sm:$0xff] }
 0x3e2   : > { %v1049_v36 = vsel %vm661_vm11, %v1044_v41, 0 }
 0x3e3   : > { %1058 = vmatpush.bf16.xpose.msra.mxu2 %v1049_v36 }
 0x3ea   : > { %1515 = vmatmul.msk.bf16.vlgmr.msra.gmra.mxu2 %vm661_vm11, %v1042_v47 }
 0x3f1   : > { %1516 = vmatmul.msk.bf16.vlgmr.msra.gmra.mxu3 %vm661_vm11, %v1066_v51 }
 0x445   : > { %v2103_v52 = vpop.f32.mrf.mxu2 }
 0x44d   : > { %v2105_v53 = vpop.f32.mrf.mxu1  ;;  %v2107_v24 = vpop.f32.mrf.mxu2 }
 0x454   : > { %v2109_v54 = vpop.f32.mrf.mxu3 }
 0x455   : > { %v2111_v57 = vpop.f32.mrf.mxu1 }
 0x45c   : > { %v2116_v59 = vpop.f32.mrf.mxu3  ;;  %v2118_v38 = vpop.f32.mrf.mxu2 }
 0x45d   : > { %v1036_v55 = vpop.f32.mrf.mxu1 }
 0x45e   : > { %v1037_v25 = vadd.f32 %v1511_v33, %v1036_v55 }
 0x460   : > { %v1099_v62 = vadd.f32 %v1037_v25, %v1975_v9 }
 0x462   : > { %v1111_v0 = vsel %vm661_vm11, %v1099_v62, -inf }
 0x463   : > { %1112 = vmax.xlane.f32.xlu2 %v1111_v0 }
 0x464   : > { %v2122_v58 = vpop.f32.mrf.mxu2  ;;  %v1012_v2 = vpop.f32.mrf.mxu3 }
 0x465   : > { %v1013_v61 = vadd.f32 %v1511_v33, %v1012_v2  ;;  %v1038_v22 = vpop.f32.mrf.mxu1 }
 0x466   : > { %v1039_v56 = vadd.f32 %v1512_v3, %v1038_v22 }
 0x467   : > { %v1097_v28 = vadd.f32 %v1013_v61, %v1968_v63 }
 0x468   : > { %v1100_v7 = vadd.f32 %v1039_v56, %v2007_v35 }
 0x469   : > { %v1105_v5 = vsel %vm661_vm11, %v1097_v28, -inf }
 0x46a   : > { %1106 = vmax.xlane.f32.xlu1 %v1105_v5  ;;  %v1114_v29 = vsel %vm661_vm11, %v1100_v7, -inf }
 0x46c   : > { %v1014_v6 = vpop.f32.mrf.mxu3 }
 0x46d   : > { %v1015_v9 = vadd.f32 %v1512_v3, %v1014_v6  ;;  %v1060_v4 = vpop.f32.mrf.mxu2 }
 0x46f   : > { %v1098_v8 = vadd.f32 %v1015_v9, %v1985_v15  ;;  %v1061_v15 = vadd.f32 %v1511_v33, %v1060_v4 }
 0x471   : > { %v1108_v10 = vsel %vm661_vm11, %v1098_v8, -inf  ;;  %v1101_v42 = vadd.f32 %v1061_v15, %v1992_v18 }
 0x472   : > { %1109 = vmax.xlane.f32.xlu0 %v1108_v10  ;;  %1115 = vmax.xlane.f32.xlu1 %v1114_v29 }
 0x473   : > { %v1117_v1 = vsel %vm661_vm11, %v1101_v42, -inf }
 0x474   : > { %v1084_v12 = vpop.f32.mrf.mxu3 }
 0x475   : > { %v1085_v13 = vadd.f32 %v1511_v33, %v1084_v12  ;;  %v1062_v63 = vpop.f32.mrf.mxu2 }
 0x476   : > { %v1063_v14 = vadd.f32 %v1512_v3, %v1062_v63 }
 0x477   : > { %v1103_v16 = vadd.f32 %v1085_v13, %v1997_v43 }
 0x478   : > { %v1102_v17 = vadd.f32 %v1063_v14, %v2014_v39 }
 0x479   : > { %v1123_v19 = vsel %vm661_vm11, %v1103_v16, -inf }
 0x47a   : > { %1124 = vmax.xlane.f32.xlu1 %v1123_v19  ;;  %v1120_v35 = vsel %vm661_vm11, %v1102_v17, -inf }
 0x47b   : > { %1121 = vmax.xlane.f32.xlu2 %v1120_v35 }
 0x47c   : > { %v1086_v11 = vpop.f32.mrf.mxu3 }
 0x47d   : > { %v1087_v21 = vadd.f32 %v1512_v3, %v1086_v11 }
 0x47f   : > { %v1104_v43 = vadd.f32 %v1087_v21, %v2023_v50 }
 0x481   : > { %v1126_v39 = vsel %vm661_vm11, %v1104_v43, -inf }
 0x486   : > { %1206 = vrot.lane.b32.xlu0 %v1928_v23, %s1689_s20 }
 0x4b0   : > { %1118 = vmax.xlane.f32.xlu0 %v1117_v1 }
 0x4b8   : > { %1127 = vmax.xlane.f32.xlu0 %v1126_v39 }
 0x4cc   : > { %1256 = vrot.lane.b32.xlu0 %v1938_v34, %s1689_s20 }
 0x4d6   : > { %v1113_v27 = vpop.xlane.xlu2 %1112 }
 0x4d7   : > { %v1131_v23 = vsub.f32 %v1099_v62, %v1113_v27 }
 0x4d9   : > { %v1141_v18 = vmul.f32 1.442695, %v1131_v23 }
 0x4dd   : > { %v1107_v32 = vpop.xlane.xlu1 %1106 }
 0x4de   : > { %v1129_v31 = vsub.f32 %v1097_v28, %v1107_v32 }
 0x4e0   : > { %v1137_v26 = vmul.f32 1.442695, %v1129_v31 }
 0x4e2   : > { %1636 = vpow2.f32 %v1137_v26 }
 0x4e3   : > { %1638 = vpow2.f32 %v1141_v18 }
 0x4e5   : > { %v1110_v37 = vpop.xlane.xlu0 %1109  ;;  %v1116_v30 = vpop.xlane.xlu1 %1115 }
 0x4e6   : > { %v1130_v40 = vsub.f32 %v1098_v8, %v1110_v37  ;;  %v1132_v50 = vsub.f32 %v1100_v7, %v1116_v30 }
 0x4e8   : > { %v1637_v44 = vpop.eup %1636  ;;  %v1139_v45 = vmul.f32 1.442695, %v1130_v40  ;;  %v1143_v48 = vmul.f32 1.442695, %v1132_v50 }
 0x4e9   : > { %v1153_v46 = vsel %vm661_vm11, %v1637_v44, 0.0  ;;  %v2146_v49 = vpop.eup %1638 }
 0x4ea   : > { %1640 = vpow2.f32 %v1139_v45  ;;  %1154 = vadd.xlane.f32.xlu2 %v1153_v46  ;;  %v1159_v51 = vsel %vm661_vm11, %v2146_v49, 0.0 }
 0x4eb   : > { %1642 = vpow2.f32 %v1143_v48 }
 0x4ed   : > { %v1125_v34 = vpop.xlane.xlu1 %1124 }
 0x4ee   : > { %v1135_v36 = vsub.f32 %v1103_v16, %v1125_v34  ;;  %v1122_v55 = vpop.xlane.xlu2 %1121 }
 0x4ef   : > { %v1134_v62 = vsub.f32 %v1102_v17, %v1122_v55 }
 0x4f0   : > { %v1641_v41 = vpop.eup %1640  ;;  %v1149_v33 = vmul.f32 1.442695, %v1135_v36 }
 0x4f1   : > { %v1156_v47 = vsel %vm661_vm11, %v1641_v41, 0.0  ;;  %v1643_v25 = vpop.eup %1642  ;;  %v1147_v61 = vmul.f32 1.442695, %v1134_v62 }
 0x4f2   : > { %1157 = vadd.xlane.f32.xlu1 %v1156_v47  ;;  %1160 = vadd.xlane.f32.xlu2 %v1159_v51  ;;  %1644 = vpow2.f32 %v1149_v33  ;;  %v1162_v2 = vsel %vm661_vm11, %v1643_v25, 0.0 }
 0x4f3   : > { %1646 = vpow2.f32 %v1147_v61 }
 0x4f8   : > { %v1207_v0 = vpop.permute.xlu0 %1206  ;;  %v2152_v3 = vpop.eup %1644 }
 0x4f9   : > { %1219 = vmatpush.bf16.msrb.mxu0 %v1207_v0  ;;  %v1171_v22 = vsel %vm661_vm11, %v2152_v3, 0.0  ;;  %v1647_v28 = vpop.eup %1646 }
 0x4fa   : > { %1163 = vadd.xlane.f32.xlu1 %v1162_v2  ;;  %v1168_v56 = vsel %vm661_vm11, %v1647_v28, 0.0 }
 0x502   : > { %1172 = vadd.xlane.f32.xlu1 %v1171_v22 }
 0x50a   : > { %1169 = vadd.xlane.f32.xlu1 %v1168_v56 }
 0x523   : > { %v1119_v5 = vpop.xlane.xlu0 %1118  ;;  %1281 = vrot.lane.b32.xlu1 %v1944_v60, %s1689_s20 }
 0x524   : > { %v1133_v6 = vsub.f32 %v1101_v42, %v1119_v5 }
 0x526   : > { %v1145_v9 = vmul.f32 1.442695, %v1133_v6 }
 0x528   : > { %1648 = vpow2.f32 %v1145_v9 }
 0x52b   : > { %v1128_v4 = vpop.xlane.xlu0 %1127 }
 0x52c   : > { %v1136_v7 = vsub.f32 %v1104_v43, %v1128_v4 }
 0x52e   : > { %v1649_v8 = vpop.eup %1648  ;;  %v1151_v10 = vmul.f32 1.442695, %v1136_v7 }
 0x52f   : > { %v1165_v29 = vsel %vm661_vm11, %v1649_v8, 0.0 }
 0x530   : > { %1650 = vpow2.f32 %v1151_v10  ;;  %1166 = vadd.xlane.f32.xlu2 %v1165_v29 }
 0x536   : > { %v1651_v12 = vpop.eup %1650 }
 0x537   : > { %v1174_v13 = vsel %vm661_vm11, %v1651_v12, 0.0 }
 0x538   : > { %1175 = vadd.xlane.f32.xlu0 %v1174_v13  ;;  %v1539_v13 = vld [vmem:[%s2237_s5] sm:$0xff] }
 0x53e   : > { %v1257_v63 = vpop.permute.xlu0 %1256 }
 0x53f   : > { %1269 = vmatpush.bf16.msrb.mxu2 %v1257_v63 }
 0x548   : > { %1231 = vrot.lane.b32.xlu2 %v1926_v20, %s1689_s20 }
 0x55d   : > { %v1155_v60 = vpop.xlane.xlu2 %1154 }
 0x55e   : > { %1652 = vrcp.f32 %v1155_v60 }
 0x564   : > { %v1653_v16 = vpop.eup %1652 }
 0x565   : > { %v1158_v14 = vpop.xlane.xlu1 %1157  ;;  %v1185_v17 = vmul.f32 %v1653_v16, %v1637_v44  ;;  %v1161_v20 = vpop.xlane.xlu2 %1160 }
 0x566   : > { %1654 = vrcp.f32 %v1158_v14 }
 0x567   : > { %v1193_v35 = vpack.c.bf16 %v1185_v17, %v1185_v17 }
 0x569   : > { %v1203_v11 = vunpack.c.l.b16 %v1193_v35 }
 0x56c   : > { %v1655_v19 = vpop.eup %1654 }
 0x56d   : > { %v1186_v15 = vmul.f32 %v1655_v19, %v1641_v41  ;;  %v1164_v43 = vpop.xlane.xlu1 %1163 }
 0x56e   : > { %1656 = vrcp.f32 %v1164_v43 }
 0x56f   : > { %v1194_v42 = vpack.c.bf16 %v1186_v15, %v1186_v15  ;;  %1658 = vrcp.f32 %v1161_v20 }
 0x571   : > { %v1204_v21 = vunpack.c.l.b16 %v1194_v42 }
 0x573   : > { %v1205_v1 = vpack.c.b16 %v1204_v21, %v1203_v11 }
 0x574   : > { %v1657_v31 = vpop.eup %1656 }
 0x575   : > { %1517 = vmatmul.msk.bf16.vlgmr.msrb.gmra.mxu0 %vm661_vm11, %v1205_v1  ;;  %v1173_v39 = vpop.xlane.xlu1 %1172  ;;  %v1659_v23 = vpop.eup %1658  ;;  %v1188_v26 = vmul.f32 %v1657_v31, %v1643_v25 }
 0x576   : > { %v1187_v18 = vmul.f32 %v1659_v23, %v2146_v49 }
 0x577   : > { %v1196_v40 = vpack.c.bf16 %v1188_v26, %v1188_v26 }
 0x578   : > { %v1195_v44 = vpack.c.bf16 %v1187_v18, %v1187_v18 }
 0x579   : > { %v1229_v50 = vunpack.c.l.b16 %v1196_v40 }
 0x57a   : > { %v1228_v48 = vunpack.c.l.b16 %v1195_v44 }
 0x57c   : > { %v1230_v33 = vpack.c.b16 %v1229_v50, %v1228_v48  ;;  %v1669_v48 = vld [vmem:[%s1757_s15 + $0x8] sm:$0xff] }
 0x57d   : > { %v1170_v27 = vpop.xlane.xlu1 %1169 }
 0x57e   : > { %1660 = vrcp.f32 %v1170_v27 }
 0x584   : > { %v1661_v30 = vpop.eup %1660 }
 0x585   : > { %v1190_v45 = vmul.f32 %v1661_v30, %v1647_v28 }
 0x587   : > { %v1198_v34 = vpack.c.bf16 %v1190_v45, %v1190_v45 }
 0x589   : > { %v1254_v25 = vunpack.c.l.b16 %v1198_v34 }
 0x595   : > { %v1282_v32 = vpop.permute.xlu1 %1281 }
 0x596   : > { %1294 = vmatpush.bf16.msrb.mxu3 %v1282_v32 }
 0x5a3   : > { %v1167_v37 = vpop.xlane.xlu2 %1166 }
 0x5a4   : > { %1662 = vrcp.f32 %v1167_v37 }
 0x5a5   : > { %1664 = vrcp.f32 %v1173_v39 }
 0x5aa   : > { %v1663_v46 = vpop.eup %1662 }
 0x5ab   : > { %v1189_v41 = vmul.f32 %v1663_v46, %v1649_v8  ;;  %v1176_v36 = vpop.xlane.xlu0 %1175  ;;  %v1232_v47 = vpop.permute.xlu2 %1231 }
 0x5ac   : > { %v1665_v51 = vpop.eup %1664  ;;  %1666 = vrcp.f32 %v1176_v36  ;;  %1244 = vmatpush.bf16.msrb.mxu1 %v1232_v47  ;;  %v1670_v47 = vld [vmem:[%s1757_s15 + $0x10] sm:$0xff] }
 0x5ad   : > { %v1197_v55 = vpack.c.bf16 %v1189_v41, %v1189_v41  ;;  %v1191_v49 = vmul.f32 %v1665_v51, %v2152_v3  ;;  %v1540_v3 = vld [vmem:[%s2237_s5 + $0x8] sm:$0xff] }
 0x5ae   : > { %1383 = vmatpush.bf16.msra.mxu0 %v1540_v3 }
 0x5af   : > { %v1253_v62 = vunpack.c.l.b16 %v1197_v55  ;;  %1518 = vmatmul.msk.bf16.vlgmr.msrb.gmra.mxu1 %vm661_vm11, %v1230_v33  ;;  %v1199_v61 = vpack.c.bf16 %v1191_v49, %v1191_v49  ;;  %v1671_v49 = vld [vmem:[%s1757_s15 + $0x18] sm:$0xff] }
 0x5b1   : > { %v1255_v0 = vpack.c.b16 %v1254_v25, %v1253_v62  ;;  %v1278_v56 = vunpack.c.l.b16 %v1199_v61 }
 0x5b2   : > { %v1667_v2 = vpop.eup %1666  ;;  %1384 = vmatpush.bf16.msra.mxu0 %v1539_v13 }
 0x5b3   : > { %v1192_v22 = vmul.f32 %v1667_v2, %v1651_v12  ;;  %1519 = vmatmul.msk.bf16.vlgmr.msrb.gmra.mxu2 %vm661_vm11, %v1255_v0  ;;  %v1672_v2 = vld [vmem:[%s1757_s15 + $0x20] sm:$0xff] }
 0x5b5   : > { %v1200_v28 = vpack.c.bf16 %v1192_v22, %v1192_v22 }
 0x5b7   : > { %v1279_v5 = vunpack.c.l.b16 %v1200_v28 }
 0x5b9   : > { %v1280_v6 = vpack.c.b16 %v1279_v5, %v1278_v56  ;;  %v1673_v56 = vld [vmem:[%s1757_s15 + $0x28] sm:$0xff] }
 0x5bb   : > { %1520 = vmatmul.msk.bf16.vlgmr.msrb.gmra.mxu3 %vm661_vm11, %v1280_v6 }
 0x5f2   : > { %v1221_v9 = vpop.f32.mrf.mxu0 }
 0x5fa   : > { %v1223_v4 = vpop.f32.mrf.mxu0 }
 0x5fb   : > { %v1562_v7 = vpack.i.bf16 %v1223_v4, %v1221_v9  ;;  %v1674_v4 = vld [vmem:[%s1757_s15 + $0x30] sm:$0xff] }
 0x5fd   : > { %1563 = vrot.lane.b32.xlu2 %v1562_v7, %s1690_s21 }
 0x62c   : > { %v1246_v8 = vpop.f32.mrf.mxu1 }
 0x634   : > { %v1248_v10 = vpop.f32.mrf.mxu1 }
 0x635   : > { %v1567_v29 = vpack.i.bf16 %v1248_v10, %v1246_v8  ;;  %v1675_v10 = vld [vmem:[%s1757_s15 + $0x38] sm:$0xff] }
 0x636   : > { %v1271_v12 = vpop.f32.mrf.mxu2 }
 0x637   : > { %1568 = vrot.lane.b32.xlu2 %v1567_v29, %s1690_s21 }
 0x63e   : > { %v1273_v63 = vpop.f32.mrf.mxu2  ;;  %v1296_v60 = vpop.f32.mrf.mxu3 }
 0x63f   : > { %v1572_v14 = vpack.i.bf16 %v1273_v63, %v1271_v12 }
 0x641   : > { %1573 = vrot.lane.b32.xlu1 %v1572_v14, %s1690_s21 }
 0x646   : > { %v1298_v16 = vpop.f32.mrf.mxu3 }
 0x647   : > { %v1577_v17 = vpack.i.bf16 %v1298_v16, %v1296_v60 }
 0x649   : > { %1578 = vrot.lane.b32.xlu2 %v1577_v17, %s1690_s21 }
 0x657   : > { %v1564_v19 = vpop.permute.xlu2 %1563 }
 0x658   : > { %v1566_v35 = vunpack.i.h.bf16 %v1564_v19  ;;  %v1565_v15 = vunpack.i.l.bf16 %v1564_v19 }
 0x65a   : > { %v1334_v42 = vsel %vm661_vm11, %v2107_v24, %v1566_v35  ;;  %v1333_v11 = vsel %vm661_vm11, %v2103_v52, %v1565_v15 }
 0x65b   : > { %v1341_v21 = vpack.c.bf16 %v1334_v42, %v1333_v11 }
 0x65d   : > { %1529 = vmatmul.msk.bf16.vlgmr.msra.gmra.mxu0 %vm352_vm0, %v1341_v21 }
 0x691   : > { %v1569_v1 = vpop.permute.xlu2 %1568 }
 0x692   : > { %v1571_v43 = vunpack.i.h.bf16 %v1569_v1  ;;  %v1570_v39 = vunpack.i.l.bf16 %v1569_v1 }
 0x694   : > { %v1335_v27 = vsel %vm661_vm11, %v2109_v54, %v1570_v39  ;;  %v1336_v32 = vsel %vm661_vm11, %v2116_v59, %v1571_v43 }
 0x695   : > { %v1342_v20 = vpack.c.bf16 %v1336_v32, %v1335_v27 }
 0x697   : > { %1530 = vmatmul.msk.bf16.gmra.mxu0 %vm352_vm0, %v1342_v20 }
 0x6a3   : > { %v1579_v54 = vpop.permute.xlu2 %1578 }
 0x6a4   : > { %v1581_v59 = vunpack.i.h.bf16 %v1579_v54  ;;  %v1580_v37 = vunpack.i.l.bf16 %v1579_v54 }
 0x6a6   : > { %v1339_v30 = vsel %vm661_vm11, %v2118_v38, %v1580_v37  ;;  %v1340_v40 = vsel %vm661_vm11, %v2122_v58, %v1581_v59  ;;  %v1668_v38 = vld [vmem:[%s1757_s15] sm:$0xff] }
 0x6a7   : > { %v1344_v44 = vpack.c.bf16 %v1340_v40, %v1339_v30 }
 0x6b3   : > { %v1574_v31 = vpop.permute.xlu1 %1573 }
 0x6b4   : > { %v1576_v24 = vunpack.i.h.bf16 %v1574_v31  ;;  %v1575_v23 = vunpack.i.l.bf16 %v1574_v31 }
 0x6b6   : > { %v1337_v52 = vsel %vm661_vm11, %v2105_v53, %v1575_v23  ;;  %v1338_v26 = vsel %vm661_vm11, %v2111_v57, %v1576_v24  ;;  %v1585_v53 = vld [vmem:[%s2238_s6] ss:$0 sm:$0xff] }
 0x6b7   : > { %v1343_v18 = vpack.c.bf16 %v1338_v26, %v1337_v52 }
 0x6b9   : > { %1531 = vmatmul.msk.bf16.gmra.mxu0 %vm352_vm0, %v1343_v18 }
 0x6c9   : > { %1532 = vmatmul.msk.bf16.gmra.mxu0 %vm352_vm0, %v1344_v44 }
 0x6da   : > { %v1386_v57 = vpop.f32.mrf.mxu0 }
 0x6db   : > { %v1387_v45 = vadd.f32 %v1585_v53, %v1386_v57 }
 0x6dd   : > { %v1406_v58 = vadd.f32 %v1668_v38, %v1387_v45 }
 0x6df   : > { %1414 = vst.msk [vmem:[%s2203_s10] sm:$0xff] %vm352_vm0, %v1406_v58 }
 0x6e2   : > { %v1388_v50 = vpop.f32.mrf.mxu0 }
 0x6e3   : > { %v1389_v46 = vadd.f32 %v1585_v53, %v1388_v50 }
 0x6e5   : > { %v1407_v34 = vadd.f32 %v1669_v48, %v1389_v46 }
 0x6e7   : > { %1415 = vst.msk [vmem:[%s2203_s10 + $0x8] sm:$0xff] %vm352_vm0, %v1407_v34 }
 0x714   : > { %v1391_v41 = vpop.f32.mrf.mxu0 }
 0x715   : > { %v1392_v36 = vadd.f32 %v1585_v53, %v1391_v41 }
 0x717   : > { %v1408_v51 = vadd.f32 %v1670_v47, %v1392_v36 }
 0x719   : > { %1416 = vst.msk [vmem:[%s2203_s10 + $0x10] sm:$0xff] %vm352_vm0, %v1408_v51 }
 0x71c   : > { %v1393_v33 = vpop.f32.mrf.mxu0 }
 0x71d   : > { %v1394_v55 = vadd.f32 %v1585_v53, %v1393_v33 }
 0x71f   : > { %v1409_v25 = vadd.f32 %v1671_v49, %v1394_v55 }
 0x721   : > { %1417 = vst.msk [vmem:[%s2203_s10 + $0x18] sm:$0xff] %vm352_vm0, %v1409_v25 }
 0x736   : > { %v1396_v62 = vpop.f32.mrf.mxu0 }
 0x737   : > { %v1397_v0 = vadd.f32 %v1585_v53, %v1396_v62 }
 0x739   : > { %v1410_v61 = vadd.f32 %v1672_v2, %v1397_v0 }
 0x73b   : > { %1418 = vst.msk [vmem:[%s2203_s10 + $0x20] sm:$0xff] %vm352_vm0, %v1410_v61 }
 0x73e   : > { %v1398_v22 = vpop.f32.mrf.mxu0 }
 0x73f   : > { %v1399_v28 = vadd.f32 %v1585_v53, %v1398_v22 }
 0x741   : > { %v1411_v5 = vadd.f32 %v1673_v56, %v1399_v28 }
 0x743   : > { %1419 = vst.msk [vmem:[%s2203_s10 + $0x28] sm:$0xff] %vm352_vm0, %v1411_v5 }
 0x746   : > { %v1401_v6 = vpop.f32.mrf.mxu0 }
 0x747   : > { %v1402_v9 = vadd.f32 %v1585_v53, %v1401_v6 }
 0x749   : > { %v1412_v7 = vadd.f32 %v1674_v4, %v1402_v9 }
 0x74b   : > { %1420 = vst.msk [vmem:[%s2203_s10 + $0x30] sm:$0xff] %vm352_vm0, %v1412_v7 }
 0x74e   : > { %v1403_v3 = vpop.f32.mrf.mxu0 }
 0x74f   : > { %v1404_v8 = vadd.f32 %v1585_v53, %v1403_v3 }
 0x751   : > { %v1413_v29 = vadd.f32 %v1675_v10, %v1404_v8 }
 0x753   : > { %1421 = vst.msk [vmem:[%s2203_s10 + $0x38] sm:$0xff] %vm352_vm0, %v1413_v29 }
 0x754 PF: > { %s19_s30 = sadd.s32 1, %s1682_s30  }
 0x755   : > { %p16_p4 = scmp.ge.s32.totalorder %s19_s30, 4  }
 0x757   :  { %18 = sbr.rel (!%p16_p4) target bundleno = 1 (0x1), region = 87 }

// kernel: swin_forward.16
= control target key start
LH: loop header
LB: loop body
LE: loop exit
PB: predicated region body
PF: predicated region fallthrough
CT: control target
= control target key end

     0   :  { %v279_v4 = vmov 128.0   ;;  %vm209_vm13 = vcmask 523264   ;;  %s379_s0 = inlined_call_operand.vmem [shape: f32[32,128], index: 0, kind: input, shape index: {}]   ;;  %s380_s1 = inlined_call_operand.vmem [shape: f32[1,128], index: 1, kind: input, shape index: {}]   ;;  %s381_s2 = inlined_call_operand.vmem [shape: f32[1,128], index: 2, kind: input, shape index: {}]   ;;  %s382_s3 = inlined_call_operand.vmem [shape: bf16[128,64], index: 3, kind: input, shape index: {}]   ;;  %s383_s4 = inlined_call_operand.vmem [shape: f32[32,64], index: 4, kind: output, shape index: {}]  }
   0x1   :  { %v19_v0 = vld [vmem:[%s379_s0 + $0x10] sm:$0xff]  ;;  %v17_v1 = vld [vmem:[%s379_s0] sm:$0xff]  ;;  %v20_v2 = vld [vmem:[%s379_s0 + $0x18] sm:$0xff]  ;;  %269 = vrcp.f32 %v279_v4 }
   0x2   :  { %27 = vadd.xlane.f32.xlu1 %v19_v0  ;;  %23 = vadd.xlane.f32.xlu0 %v17_v1  ;;  %v18_v3 = vld [vmem:[%s379_s0 + $0x8] sm:$0xff]  ;;  %v257_v27 = vld [vmem:[%s382_s3 + $0x38] sm:$0xff]  ;;  %v256_v28 = vld [vmem:[%s382_s3 + $0x30] sm:$0xff] }
   0x3   :  { %190 = vmatpush.bf16.msra.mxu0 %v257_v27  ;;  %258 = vmatpush.bf16.msra.mxu1 %v257_v27  ;;  %v255_v29 = vld [vmem:[%s382_s3 + $0x28] sm:$0xff]  ;;  %v254_v30 = vld [vmem:[%s382_s3 + $0x20] sm:$0xff]  ;;  %v253_v31 = vld [vmem:[%s382_s3 + $0x18] sm:$0xff] }
   0x4   :  { %v252_v32 = vld [vmem:[%s382_s3 + $0x10] sm:$0xff]  ;;  %v251_v33 = vld [vmem:[%s382_s3 + $0x8] sm:$0xff]  ;;  %v250_v38 = vld [vmem:[%s382_s3] sm:$0xff] }
   0x7   :  { %v270_v5 = vpop.eup %269  ;;  %191 = vmatpush.bf16.msra.mxu0 %v256_v28  ;;  %259 = vmatpush.bf16.msra.mxu1 %v256_v28 }
   0x8   :  { %v32_v6 = vmul.f32 128.0, %v270_v5  ;;  %vm36_vm0 = vweird.f32 %v270_v5 }
   0xa   :  { %29 = vadd.xlane.f32.xlu1 %v20_v2  ;;  %25 = vadd.xlane.f32.xlu0 %v18_v3  ;;  %v33_v7 = vsub.f32 1.0, %v32_v6 }
   0xb   :  { %192 = vmatpush.bf16.msra.mxu0 %v255_v29  ;;  %260 = vmatpush.bf16.msra.mxu1 %v255_v29 }
   0xc   :  { %v34_v8 = vmul.f32 %v270_v5, %v33_v7  ;;  %v267_v7 = vld [vmem:[%s380_s1] ss:$0 sm:$0xff] }
   0xe   :  { %v35_v9 = vadd.f32 %v270_v5, %v34_v8 }
   0xf   :  { %193 = vmatpush.bf16.msra.mxu0 %v254_v30  ;;  %261 = vmatpush.bf16.msra.mxu1 %v254_v30 }
  0x10   :  { %v37_v10 = vsel %vm36_vm0, %v270_v5, %v35_v9 }
  0x13   :  { %194 = vmatpush.bf16.msra.mxu0 %v253_v31  ;;  %262 = vmatpush.bf16.msra.mxu1 %v253_v31 }
  0x17   :  { %195 = vmatpush.bf16.msra.mxu0 %v252_v32  ;;  %263 = vmatpush.bf16.msra.mxu1 %v252_v32 }
  0x1b   :  { %196 = vmatpush.bf16.msra.mxu0 %v251_v33  ;;  %264 = vmatpush.bf16.msra.mxu1 %v251_v33 }
  0x1f   :  { %197 = vmatpush.bf16.msra.mxu0 %v250_v38  ;;  %265 = vmatpush.bf16.msra.mxu1 %v250_v38 }
  0x75   :  { %v28_v11 = vpop.xlane.xlu1 %27  ;;  %v24_v12 = vpop.xlane.xlu0 %23 }
  0x76   :  { %v40_v13 = vmul.f32 %v37_v10, %v28_v11  ;;  %v38_v14 = vmul.f32 %v37_v10, %v24_v12 }
  0x78   :  { %v317_v15 = vsub.f32 %v19_v0, %v40_v13  ;;  %v319_v16 = vsub.f32 %v17_v1, %v38_v14  ;;  %v268_v14 = vld [vmem:[%s381_s2] ss:$0 sm:$0xff] }
  0x7a   :  { %v48_v17 = vmul.f32 %v317_v15, %v317_v15  ;;  %v46_v18 = vmul.f32 %v319_v16, %v319_v16 }
  0x7c   :  { %54 = vadd.xlane.f32.xlu0 %v48_v17  ;;  %50 = vadd.xlane.f32.xlu2 %v46_v18 }
  0x7d   :  { %v30_v19 = vpop.xlane.xlu1 %29  ;;  %v26_v20 = vpop.xlane.xlu0 %25 }
  0x7e   :  { %v41_v21 = vmul.f32 %v37_v10, %v30_v19  ;;  %v39_v22 = vmul.f32 %v37_v10, %v26_v20 }
  0x80   :  { %v325_v23 = vsub.f32 %v20_v2, %v41_v21  ;;  %v327_v24 = vsub.f32 %v18_v3, %v39_v22 }
  0x82   :  { %v49_v25 = vmul.f32 %v325_v23, %v325_v23  ;;  %v47_v26 = vmul.f32 %v327_v24, %v327_v24 }
  0x84   :  { %56 = vadd.xlane.f32.xlu1 %v49_v25  ;;  %52 = vadd.xlane.f32.xlu2 %v47_v26 }
  0xef   :  { %v51_v34 = vpop.xlane.xlu2 %50  ;;  %v55_v35 = vpop.xlane.xlu0 %54 }
  0xf0   :  { %v58_v36 = vmul.f32 %v51_v34, %v37_v10  ;;  %v60_v37 = vmul.f32 %v55_v35, %v37_v10 }
  0xf2   :  { %v62_v39 = vadd.f32 1e-05, %v58_v36  ;;  %v64_v40 = vadd.f32 1e-05, %v60_v37 }
  0xf4   :  { %271 = vrsqrt.f32 %v62_v39  ;;  %vm92_vm3 = vweird.f32 %v64_v40  ;;  %vm72_vm4 = vweird.f32 %v62_v39 }
  0xf5   :  { %273 = vrsqrt.f32 %v64_v40 }
  0xf7   :  { %v57_v41 = vpop.xlane.xlu1 %56  ;;  %v53_v42 = vpop.xlane.xlu2 %52 }
  0xf8   :  { %v61_v43 = vmul.f32 %v57_v41, %v37_v10  ;;  %v59_v44 = vmul.f32 %v53_v42, %v37_v10 }
  0xfa   :  { %v272_v45 = vpop.eup %271  ;;  %v65_v46 = vadd.f32 1e-05, %v61_v43  ;;  %v63_v47 = vadd.f32 1e-05, %v59_v44 }
  0xfb   :  { %v274_v48 = vpop.eup %273  ;;  %v67_v49 = vmul.f32 %v272_v45, %v62_v39  ;;  %vm73_vm2 = vweird.f32 %v272_v45 }
  0xfc   :  { %v87_v50 = vmul.f32 %v274_v48, %v64_v40  ;;  %275 = vrsqrt.f32 %v65_v46  ;;  %vm93_vm1 = vweird.f32 %v274_v48  ;;  %vm74_vm6 = vmor %vm72_vm4, %vm73_vm2  ;;  %vm102_vm9 = vweird.f32 %v65_v46 }
  0xfd   :  { %v68_v51 = vmul.f32 %v272_v45, %v67_v49  ;;  %277 = vrsqrt.f32 %v63_v47  ;;  %vm94_vm5 = vmor %vm92_vm3, %vm93_vm1  ;;  %vm82_vm11 = vweird.f32 %v63_v47 }
  0xfe   :  { %v88_v52 = vmul.f32 %v274_v48, %v87_v50 }
  0xff   :  { %v69_v53 = vmul.f32 0.5, %v68_v51 }
 0x100   :  { %v89_v54 = vmul.f32 0.5, %v88_v52 }
 0x101   :  { %v70_v55 = vsub.f32 1.5, %v69_v53 }
 0x102   :  { %v276_v56 = vpop.eup %275  ;;  %v90_v57 = vsub.f32 1.5, %v89_v54 }
 0x103   :  { %v278_v58 = vpop.eup %277  ;;  %v97_v59 = vmul.f32 %v276_v56, %v65_v46  ;;  %v71_v60 = vmul.f32 %v272_v45, %v70_v55  ;;  %vm103_vm7 = vweird.f32 %v276_v56 }
 0x104   :  { %v91_v61 = vmul.f32 %v274_v48, %v90_v57  ;;  %v77_v62 = vmul.f32 %v278_v58, %v63_v47  ;;  %vm83_vm8 = vweird.f32 %v278_v58  ;;  %vm104_vm10 = vmor %vm102_vm9, %vm103_vm7 }
 0x105   :  { %v98_v63 = vmul.f32 %v276_v56, %v97_v59  ;;  %v75_v4 = vsel %vm74_vm6, %v272_v45, %v71_v60  ;;  %vm84_vm12 = vmor %vm82_vm11, %vm83_vm8 }
 0x106   :  { %v78_v0 = vmul.f32 %v278_v58, %v77_v62  ;;  %v95_v2 = vsel %vm94_vm5, %v274_v48, %v91_v61  ;;  %v106_v10 = vmul.f32 %v75_v4, %v319_v16 }
 0x107   :  { %v99_v1 = vmul.f32 0.5, %v98_v63  ;;  %v108_v8 = vmul.f32 %v95_v2, %v317_v15 }
 0x108   :  { %v79_v3 = vmul.f32 0.5, %v78_v0  ;;  %v113_v15 = vmul.f32 %v267_v7, %v106_v10 }
 0x109   :  { %v100_v5 = vsub.f32 1.5, %v99_v1  ;;  %v115_v18 = vmul.f32 %v267_v7, %v108_v8 }
 0x10a   :  { %v80_v6 = vsub.f32 1.5, %v79_v3  ;;  %v120_v25 = vadd.f32 %v268_v14, %v113_v15 }
 0x10b   :  { %v101_v9 = vmul.f32 %v276_v56, %v100_v5  ;;  %v122_v22 = vadd.f32 %v268_v14, %v115_v18 }
 0x10c   :  { %v81_v11 = vmul.f32 %v278_v58, %v80_v6 }
 0x10d   :  { %v105_v12 = vsel %vm104_vm10, %v276_v56, %v101_v9 }
 0x10e   :  { %v85_v13 = vsel %vm84_vm12, %v278_v58, %v81_v11  ;;  %v109_v17 = vmul.f32 %v105_v12, %v325_v23 }
 0x10f   :  { %v107_v19 = vmul.f32 %v85_v13, %v327_v24 }
 0x110   :  { %v116_v20 = vmul.f32 %v267_v7, %v109_v17 }
 0x111   :  { %v114_v21 = vmul.f32 %v267_v7, %v107_v19 }
 0x112   :  { %v123_v16 = vadd.f32 %v268_v14, %v116_v20 }
 0x113   :  { %v121_v26 = vadd.f32 %v268_v14, %v114_v21 }
 0x114   :  { %v125_v27 = vpack.c.bf16 %v123_v16, %v122_v22 }
 0x115   :  { %v124_v28 = vpack.c.bf16 %v121_v26, %v120_v25 }
 0x116   :  { %203 = vmatmul.bf16.vlgmr.msra.gmra.mxu1 %v125_v27 }
 0x117   :  { %198 = vmatmul.bf16.vlgmr.msra.gmra.mxu0 %v124_v28 }
 0x193   :  { %v204_v29 = vpop.f32.mrf.mxu1 }
 0x194   :  { %v199_v30 = vpop.f32.mrf.mxu0  ;;  %212 = vst.msk [vmem:[%s383_s4 + $0x10] sm:$0xff] %vm209_vm13, %v204_v29 }
 0x195   :  { %210 = vst.msk [vmem:[%s383_s4] sm:$0xff] %vm209_vm13, %v199_v30 }
 0x19b   :  { %v206_v23 = vpop.f32.mrf.mxu1 }
 0x19c   :  { %v201_v24 = vpop.f32.mrf.mxu0  ;;  %213 = vst.msk [vmem:[%s383_s4 + $0x18] sm:$0xff] %vm209_vm13, %v206_v23 }
 0x19d   :  { %211 = vst.msk [vmem:[%s383_s4 + $0x8] sm:$0xff] %vm209_vm13, %v201_v24 }

// kernel: swin_forward.17
= control target key start
LH: loop header
LB: loop body
LE: loop exit
PB: predicated region body
PF: predicated region fallthrough
CT: control target
= control target key end

     0   :  { %s1150_s27 = smov 0   ;;  %s1353_s0 = inlined_call_operand.vmem [shape: f32[2,16,64], index: 0, kind: input, shape index: {}]   ;;  %s1354_s1 = inlined_call_operand.vmem [shape: f32[1,64], index: 1, kind: input, shape index: {}]   ;;  %s1355_s2 = inlined_call_operand.vmem [shape: f32[1,64], index: 2, kind: input, shape index: {}]   ;;  %s1356_s3 = inlined_call_operand.vmem [shape: bf16[64,192], index: 3, kind: input, shape index: {}]   ;;  %s1357_s4 = inlined_call_operand.vmem [shape: f32[1,192], index: 4, kind: input, shape index: {}]   ;;  %s1358_s5 = inlined_call_operand.vmem [shape: bf16[64,64], index: 5, kind: input, shape index: {}]   ;;  %s1359_s6 = inlined_call_operand.vmem [shape: f32[1,64], index: 6, kind: input, shape index: {}]   ;;  %s1360_s7 = inlined_call_operand.vmem [shape: f32[4,16,16], index: 7, kind: input, shape index: {}]   ;;  %s1361_s8 = inlined_call_operand.vmem [shape: f32[2,16,64], index: 8, kind: output, shape index: {}]  }
   0x1 LB: > { %s927_s28 = sadd.s32 4294967295, %s1095_s27   ;;  %p931_p0 = scmp.ge.s32.totalorder %s1095_s27, 1  ;;  %s1095_s27 = sphi %s1150_s27, %s18_s27  }
   0x2   : > { %p262_p1 = scmp.lt.s32.totalorder %s1095_s27, 3 }
   0x4   : > { %p263_p2 = pnand %p931_p0, %p262_p1 }
   0x5   : > { %p296_p3 = scmp.lt.s32.totalorder (!%p263_p2), %s927_s28, 1  ;;  %s1098_s11 = smov (!%p263_p2), 48  }
   0x6   : > { %266 = sbr.rel (%p263_p2) target bundleno = 1782 (0x6f6), region = 52  ;;  %s1099_s12 = smov (!%p263_p2), 64  }
   0x7   : > { %s1100_s17 = smov (!%p263_p2), 80   ;;  %s1101_s18 = smov (!%p263_p2), 16  }
   0x8   : > { %s1102_s19 = smov (!%p263_p2), 112   ;;  %s1103_s20 = smov (!%p263_p2), 96  }
   0x9   : > { %s1104_s21 = smov (!%p263_p2), 32  }
   0xb   : > { %s1363_s28 = smov (!%p296_p3, %s927_s28), 1  ;;  %vm311_vm0 = vcmask 523264   ;;  %v1097_v4 = vmov 64.0   ;;  %v962_v21 = vld [vmem:[%s1356_s3 + $0x30] sm:$0xf]  ;;  %vm479_vm8 = vcmask 130048  }
   0xc   : > { %s1003_s29 = sshll.u32 %s1363_s28, 4  ;;  %1051 = vrcp.f32 %v1097_v4  ;;  %v1012_v22 = vld [vmem:[%s1356_s3 + $0x34] sm:$0xf0]  ;;  %v1011_v23 = vld [vmem:[%s1356_s3 + $0x34] sm:$0xf]  ;;  %vm808_vm9 = vcmask 261120  }
   0xd   : > { %s300_s10 = scalar_lea.vmem %s1353_s0, %s1003_s29  ;;  %v963_v24 = vor.u32 %v1012_v22, %v962_v21  ;;  %v964_v25 = vld [vmem:[%s1356_s3 + $0x38] sm:$0xf0]  ;;  %v954_v27 = vld [vmem:[%s1356_s3 + $0x20] sm:$0xf]  ;;  %v1010_v28 = vld [vmem:[%s1356_s3 + $0x24] sm:$0xf0]  ;;  %s305_s30 = scalar_lea.vmem %s1361_s8, %s1003_s29 }
   0xe   : > { %v1166_v0 = vld [vmem:[%s300_s10] sm:$0xff]  ;;  %v1170_v2 = vld [vmem:[%s300_s10 + $0x8] sm:$0xff]  ;;  %v967_v26 = vor.u32 %v1011_v23, %v964_v25  ;;  %v955_v30 = vor.u32 %v1010_v28, %v954_v27  ;;  %v946_v33 = vld [vmem:[%s1356_s3 + $0x10] sm:$0xf]  ;;  %vm811_vm10 = vcmask 392192  }
   0xf   : > { %v312_v1 = vsel %vm311_vm0, %v1166_v0, 0.0  ;;  %v315_v3 = vsel %vm311_vm0, %v1170_v2, 0.0  ;;  %435 = vmatpush.bf16.msra.mxu0 %v963_v24  ;;  %v1009_v29 = vld [vmem:[%s1356_s3 + $0x24] sm:$0xf]  ;;  %v956_v31 = vld [vmem:[%s1356_s3 + $0x28] sm:$0xf0] }
  0x10   : > { %313 = vadd.xlane.f32.xlu0 %v312_v1  ;;  %449 = vmatpush.bf16.msra.mxu1 %v967_v26  ;;  %v959_v32 = vor.u32 %v1009_v29, %v956_v31  ;;  %v1008_v34 = vld [vmem:[%s1356_s3 + $0x14] sm:$0xf0]  ;;  %v1007_v35 = vld [vmem:[%s1356_s3 + $0x14] sm:$0xf]  ;;  %v948_v37 = vld [vmem:[%s1356_s3 + $0x18] sm:$0xf0] }
  0x11   : > { %v947_v36 = vor.u32 %v1008_v34, %v946_v33  ;;  %v951_v38 = vor.u32 %v1007_v35, %v948_v37  ;;  %v938_v39 = vld [vmem:[%s1356_s3] sm:$0xf]  ;;  %v1006_v40 = vld [vmem:[%s1356_s3 + $0x4] sm:$0xf0]  ;;  %v1005_v41 = vld [vmem:[%s1356_s3 + $0x4] sm:$0xf] }
  0x12   : > { %v1052_v5 = vpop.eup %1051  ;;  %v939_v43 = vor.u32 %v1006_v40, %v938_v39  ;;  %v940_v44 = vld [vmem:[%s1356_s3 + $0x8] sm:$0xf0]  ;;  %v1048_v1 = vld [vmem:[%s1354_s1] ss:$0 sm:$0xff] }
  0x13   : > { %v319_v6 = vmul.f32 64.0, %v1052_v5  ;;  %vm323_vm1 = vweird.f32 %v1052_v5  ;;  %436 = vmatpush.bf16.msra.mxu0 %v955_v30  ;;  %v943_v46 = vor.u32 %v1005_v41, %v940_v44  ;;  %v465_v44 = vld [vmem:[%s1360_s7] sm:$0xff] }
  0x14   : > { %450 = vmatpush.bf16.msra.mxu1 %v959_v32 }
  0x15   : > { %v320_v7 = vsub.f32 1.0, %v319_v6 }
  0x17   : > { %v321_v8 = vmul.f32 %v1052_v5, %v320_v7  ;;  %437 = vmatpush.bf16.msra.mxu0 %v947_v36  ;;  %v1049_v7 = vld [vmem:[%s1355_s2] ss:$0 sm:$0xff] }
  0x18   : > { %316 = vadd.xlane.f32.xlu0 %v315_v3  ;;  %451 = vmatpush.bf16.msra.mxu1 %v951_v38 }
  0x19   : > { %v322_v9 = vadd.f32 %v1052_v5, %v321_v8 }
  0x1b   : > { %v324_v10 = vsel %vm323_vm1, %v1052_v5, %v322_v9  ;;  %438 = vmatpush.bf16.msra.mxu0 %v939_v43 }
  0x1c   : > { %452 = vmatpush.bf16.msra.mxu1 %v943_v46 }
  0x83   : > { %v314_v11 = vpop.xlane.xlu0 %313 }
  0x84   : > { %v325_v12 = vmul.f32 %v324_v10, %v314_v11 }
  0x86   : > { %v1175_v13 = vsub.f32 %v1166_v0, %v325_v12  ;;  %v382_v12 = vld [vmem:[%s1357_s4] sm:$0x3] }
  0x88   : > { %v329_v14 = vmul.f32 %v1175_v13, %v1175_v13 }
  0x8a   : > { %v331_v15 = vsel %vm311_vm0, %v329_v14, 0.0 }
  0x8b   : > { %332 = vadd.xlane.f32.xlu1 %v331_v15  ;;  %v317_v16 = vpop.xlane.xlu0 %316 }
  0x8c   : > { %v326_v17 = vmul.f32 %v324_v10, %v317_v16  ;;  %v385_v16 = vperm.slane %v382_v12, 1 }
  0x8e   : > { %v1181_v18 = vsub.f32 %v1170_v2, %v326_v17 }
  0x90   : > { %v330_v19 = vmul.f32 %v1181_v18, %v1181_v18 }
  0x92   : > { %v334_v20 = vsel %vm311_vm0, %v330_v19, 0.0 }
  0x93   : > { %335 = vadd.xlane.f32.xlu1 %v334_v20 }
  0xfe   : > { %v333_v42 = vpop.xlane.xlu1 %332 }
  0xff   : > { %v337_v45 = vmul.f32 %v333_v42, %v324_v10 }
 0x101   : > { %v339_v47 = vadd.f32 1e-05, %v337_v45 }
 0x103   : > { %1053 = vrsqrt.f32 %v339_v47  ;;  %vm347_vm3 = vweird.f32 %v339_v47 }
 0x106   : > { %v336_v48 = vpop.xlane.xlu1 %335 }
 0x107   : > { %v338_v49 = vmul.f32 %v336_v48, %v324_v10  ;;  %v466_v48 = vld [vmem:[%s1360_s7 + $0x8] sm:$0xff] }
 0x109   : > { %v1054_v50 = vpop.eup %1053  ;;  %v340_v51 = vadd.f32 1e-05, %v338_v49 }
 0x10a   : > { %v342_v52 = vmul.f32 %v1054_v50, %v339_v47  ;;  %vm348_vm2 = vweird.f32 %v1054_v50 }
 0x10b   : > { %1055 = vrsqrt.f32 %v340_v51  ;;  %vm349_vm4 = vmor %vm347_vm3, %vm348_vm2  ;;  %vm357_vm6 = vweird.f32 %v340_v51 }
 0x10c   : > { %v343_v53 = vmul.f32 %v1054_v50, %v342_v52 }
 0x10e   : > { %v344_v54 = vmul.f32 0.5, %v343_v53 }
 0x110   : > { %v345_v55 = vsub.f32 1.5, %v344_v54 }
 0x111   : > { %v1056_v56 = vpop.eup %1055 }
 0x112   : > { %v346_v57 = vmul.f32 %v1054_v50, %v345_v55  ;;  %v352_v58 = vmul.f32 %v1056_v56, %v340_v51  ;;  %vm358_vm5 = vweird.f32 %v1056_v56 }
 0x113   : > { %vm359_vm7 = vmor %vm357_vm6, %vm358_vm5 }
 0x114   : > { %v353_v59 = vmul.f32 %v1056_v56, %v352_v58  ;;  %v350_v60 = vsel %vm349_vm4, %v1054_v50, %v346_v57 }
 0x115   : > { %v361_v63 = vmul.f32 %v350_v60, %v1175_v13  ;;  %v384_v13 = vperm.slane %v382_v12, 0 }
 0x116   : > { %v354_v61 = vmul.f32 0.5, %v353_v59 }
 0x117   : > { %v366_v6 = vmul.f32 %v1048_v1, %v361_v63 }
 0x118   : > { %v355_v62 = vsub.f32 1.5, %v354_v61 }
 0x119   : > { %v371_v9 = vadd.f32 %v1049_v7, %v366_v6 }
 0x11a   : > { %v356_v3 = vmul.f32 %v1056_v56, %v355_v62 }
 0x11c   : > { %v360_v4 = vsel %vm359_vm7, %v1056_v56, %v356_v3 }
 0x11d   : > { %v362_v5 = vmul.f32 %v360_v4, %v1181_v18 }
 0x11f   : > { %v367_v8 = vmul.f32 %v1048_v1, %v362_v5 }
 0x121   : > { %v372_v10 = vadd.f32 %v1049_v7, %v367_v8 }
 0x123   : > { %v373_v11 = vpack.c.bf16 %v372_v10, %v371_v9 }
 0x125   : > { %968 = vmatmul.msk.bf16.vlgmr.msra.gmra.mxu0 %vm311_vm0, %v373_v11  ;;  %969 = vmatmul.msk.bf16.vlgmr.msra.gmra.mxu1 %vm311_vm0, %v373_v11 }
 0x1a2   : > { %v440_v14 = vpop.f32.mrf.mxu0  ;;  %v454_v15 = vpop.f32.mrf.mxu1 }
 0x1a3   : > { %v441_v17 = vadd.f32 %v440_v14, %v384_v13  ;;  %v455_v18 = vadd.f32 %v454_v15, %v385_v16 }
 0x1a5   : > { %v459_v19 = vmul.f32 0.25, %v441_v17  ;;  %v463_v20 = vpack.c.bf16 %v441_v17, %v441_v17  ;;  %v524_v23 = vpack.c.bf16 %v455_v18, %v455_v18 }
 0x1a7   : > { %v461_v26 = vpack.c.bf16 %v459_v19, %v459_v19  ;;  %v474_v30 = vunpack.c.l.b16 %v463_v20  ;;  %v533_v31 = vunpack.c.l.b16 %v524_v23  ;;  %v972_v20 = vld [vmem:[%s1360_s7 + $0x10] sm:$0xff] }
 0x1a9   : > { %v469_v35 = vunpack.c.l.b16 %v461_v26 }
 0x1aa   : > { %v442_v21 = vpop.f32.mrf.mxu0  ;;  %v456_v22 = vpop.f32.mrf.mxu1 }
 0x1ab   : > { %v443_v24 = vadd.f32 %v442_v21, %v384_v13  ;;  %v457_v25 = vadd.f32 %v456_v22, %v385_v16 }
 0x1ad   : > { %v460_v27 = vmul.f32 0.25, %v443_v24  ;;  %v464_v28 = vpack.c.bf16 %v443_v24, %v443_v24  ;;  %v525_v29 = vpack.c.bf16 %v457_v25, %v457_v25  ;;  %v973_v24 = vld [vmem:[%s1360_s7 + $0x18] sm:$0xff] }
 0x1af   : > { %v462_v32 = vpack.c.bf16 %v460_v27, %v460_v27  ;;  %v475_v33 = vunpack.c.l.b16 %v464_v28  ;;  %v534_v34 = vunpack.c.l.b16 %v525_v29  ;;  %v976_v28 = vld [vmem:[%s1360_s7 + $0x20] sm:$0xff] }
 0x1b1   : > { %v470_v36 = vunpack.c.l.b16 %v462_v32  ;;  %v476_v37 = vpack.c.b16 %v475_v33, %v474_v30  ;;  %v1247_v38 = vpack.c.b16 %v534_v34, %v533_v31  ;;  %v980_v30 = vld [vmem:[%s1360_s7 + $0x30] sm:$0xff] }
 0x1b3   : > { %v471_v39 = vpack.c.b16 %v470_v36, %v469_v35  ;;  %547 = vmatpush.bf16.msra.mxu3 %v1247_v38  ;;  %559 = vrot.lane.b32.xlu1 %v476_v37, %s1098_s11  ;;  %v981_v36 = vld [vmem:[%s1360_s7 + $0x38] sm:$0xff] }
 0x1b4   : > { %477 = vrot.lane.b32.xlu2 %v476_v37, %s1099_s12 }
 0x20e   : > { %v478_v40 = vpop.permute.xlu2 %477 }
 0x20f   : > { %v484_v41 = vsel %vm479_vm8, %v478_v40, 0 }
 0x210   : > { %493 = vmatpush.bf16.xpose.msra.mxu2 %v484_v41  ;;  %v977_v41 = vld [vmem:[%s1360_s7 + $0x28] sm:$0xff] }
 0x217   : > { %970 = vmatmul.msk.bf16.vlgmr.msra.gmra.mxu2 %vm479_vm8, %v471_v39 }
 0x225   : > { %v560_v42 = vpop.permute.xlu1 %559 }
 0x226   : > { %v565_v43 = vsel %vm479_vm8, %v560_v42, 0 }
 0x227   : > { %574 = vmatpush.bf16.xpose.msrb.mxu3 %v565_v43 }
 0x29a   : > { %v495_v45 = vpop.f32.mrf.mxu2 }
 0x29b   : > { %v496_v46 = vadd.f32 %v495_v45, %v465_v44 }
 0x29d   : > { %v500_v47 = vsel %vm479_vm8, %v496_v46, -inf }
 0x29e   : > { %501 = vmax.xlane.f32.xlu2 %v500_v47 }
 0x2a2   : > { %v497_v49 = vpop.f32.mrf.mxu2 }
 0x2a3   : > { %v498_v50 = vadd.f32 %v497_v49, %v466_v48 }
 0x2a5   : > { %v503_v51 = vsel %vm479_vm8, %v498_v50, -inf }
 0x2a6   : > { %504 = vmax.xlane.f32.xlu0 %v503_v51 }
 0x2b6   : > { %709 = vrot.lane.b32.xlu2 %v471_v39, %s1100_s17 }
 0x311   : > { %v502_v52 = vpop.xlane.xlu2 %501 }
 0x312   : > { %v506_v53 = vsub.f32 %v496_v46, %v502_v52 }
 0x314   : > { %v508_v54 = vmul.f32 1.442695, %v506_v53 }
 0x316   : > { %1057 = vpow2.f32 %v508_v54 }
 0x319   : > { %v505_v55 = vpop.xlane.xlu0 %504  ;;  %v710_v17 = vpop.permute.xlu2 %709 }
 0x31a   : > { %v507_v56 = vsub.f32 %v498_v50, %v505_v55 }
 0x31c   : > { %v1058_v57 = vpop.eup %1057  ;;  %v510_v58 = vmul.f32 1.442695, %v507_v56 }
 0x31d   : > { %v512_v59 = vsel %vm479_vm8, %v1058_v57, 0.0 }
 0x31e   : > { %1059 = vpow2.f32 %v510_v58  ;;  %513 = vadd.xlane.f32.xlu1 %v512_v59 }
 0x324   : > { %v1060_v60 = vpop.eup %1059 }
 0x325   : > { %v515_v61 = vsel %vm479_vm8, %v1060_v60, 0.0 }
 0x326   : > { %516 = vadd.xlane.f32.xlu0 %v515_v61 }
 0x337   : > { %711 = vrot.lane.b32.xlu1 %v476_v37, %s1101_s18 }
 0x33a   : > { %557 = vrot.lane.b32.xlu0 %v471_v39, %s1102_s19 }
 0x33f   : > { %633 = vrot.lane.b32.xlu1 %v471_v39, %s1103_s20 }
 0x342   : > { %635 = vrot.lane.b32.xlu0 %v476_v37, %s1104_s21 }
 0x391   : > { %v514_v62 = vpop.xlane.xlu1 %513 }
 0x392   : > { %1061 = vrcp.f32 %v514_v62 }
 0x398   : > { %v1062_v1 = vpop.eup %1061 }
 0x399   : > { %v517_v63 = vpop.xlane.xlu0 %516  ;;  %v520_v3 = vmul.f32 %v1062_v1, %v1058_v57 }
 0x39a   : > { %1063 = vrcp.f32 %v517_v63 }
 0x39b   : > { %v522_v6 = vpack.c.bf16 %v520_v3, %v520_v3 }
 0x39d   : > { %v528_v8 = vunpack.c.l.b16 %v522_v6 }
 0x3a0   : > { %v1064_v4 = vpop.eup %1063 }
 0x3a1   : > { %v521_v5 = vmul.f32 %v1064_v4, %v1060_v60 }
 0x3a3   : > { %v523_v7 = vpack.c.bf16 %v521_v5, %v521_v5 }
 0x3a5   : > { %v529_v9 = vunpack.c.l.b16 %v523_v7 }
 0x3a7   : > { %v530_v10 = vpack.c.b16 %v529_v9, %v528_v8 }
 0x3a9   : > { %971 = vmatmul.msk.bf16.vlgmr.msra.gmra.mxu3 %vm479_vm8, %v530_v10  ;;  %v712_v11 = vpop.permute.xlu1 %711 }
 0x3aa   : > { %v717_v12 = vsel %vm479_vm8, %v712_v11, 0 }
 0x3ab   : > { %726 = vmatpush.bf16.xpose.msra.mxu3 %v717_v12 }
 0x3ac   : > { %v558_v13 = vpop.permute.xlu0 %557 }
 0x3b1   : > { %v634_v16 = vpop.permute.xlu1 %633 }
 0x3b4   : > { %v636_v14 = vpop.permute.xlu0 %635 }
 0x3b5   : > { %v641_v15 = vsel %vm479_vm8, %v636_v14, 0 }
 0x3b6   : > { %650 = vmatpush.bf16.xpose.msrb.mxu0 %v641_v15 }
 0x3b9   : > { %974 = vmatmul.msk.bf16.vlgmr.msrb.gmra.mxu3 %vm479_vm8, %v558_v13 }
 0x3bd   : > { %978 = vmatmul.msk.bf16.vlgmr.msrb.gmra.mxu0 %vm479_vm8, %v634_v16 }
 0x3c9   : > { %982 = vmatmul.msk.bf16.vlgmr.msra.gmra.mxu3 %vm479_vm8, %v710_v17 }
 0x42c   : > { %v1275_v18 = vpop.f32.mrf.mxu3 }
 0x434   : > { %v1277_v19 = vpop.f32.mrf.mxu3 }
 0x43a   : > { %v652_v29 = vpop.f32.mrf.mxu0 }
 0x43b   : > { %v653_v31 = vadd.f32 %v976_v28, %v652_v29 }
 0x43c   : > { %v576_v21 = vpop.f32.mrf.mxu3 }
 0x43d   : > { %v577_v22 = vadd.f32 %v972_v20, %v576_v21  ;;  %v657_v34 = vsel %vm479_vm8, %v653_v31, -inf }
 0x43f   : > { %v581_v23 = vsel %vm479_vm8, %v577_v22, -inf }
 0x440   : > { %582 = vmax.xlane.f32.xlu0 %v581_v23 }
 0x442   : > { %v654_v42 = vpop.f32.mrf.mxu0 }
 0x443   : > { %v655_v43 = vadd.f32 %v977_v41, %v654_v42 }
 0x444   : > { %v578_v25 = vpop.f32.mrf.mxu3 }
 0x445   : > { %v579_v26 = vadd.f32 %v973_v24, %v578_v25  ;;  %v660_v44 = vsel %vm479_vm8, %v655_v43, -inf }
 0x447   : > { %v584_v27 = vsel %vm479_vm8, %v579_v26, -inf }
 0x448   : > { %585 = vmax.xlane.f32.xlu1 %v584_v27 }
 0x44c   : > { %v728_v32 = vpop.f32.mrf.mxu3 }
 0x44d   : > { %v729_v33 = vadd.f32 %v980_v30, %v728_v32 }
 0x44f   : > { %v733_v35 = vsel %vm479_vm8, %v729_v33, -inf }
 0x450   : > { %658 = vmax.xlane.f32.xlu1 %v657_v34  ;;  %734 = vmax.xlane.f32.xlu2 %v733_v35 }
 0x454   : > { %v730_v37 = vpop.f32.mrf.mxu3 }
 0x455   : > { %v731_v39 = vadd.f32 %v981_v36, %v730_v37 }
 0x457   : > { %v736_v40 = vsel %vm479_vm8, %v731_v39, -inf }
 0x458   : > { %737 = vmax.xlane.f32.xlu0 %v736_v40 }
 0x460   : > { %661 = vmax.xlane.f32.xlu0 %v660_v44 }
 0x474   : > { %610 = vrot.lane.b32.xlu0 %v1247_v38, %s1102_s19 }
 0x47c   : > { %762 = vrot.lane.b32.xlu0 %v1247_v38, %s1100_s17 }
 0x4b3   : > { %v583_v45 = vpop.xlane.xlu0 %582 }
 0x4b4   : > { %v587_v46 = vsub.f32 %v577_v22, %v583_v45 }
 0x4b6   : > { %v589_v47 = vmul.f32 1.442695, %v587_v46 }
 0x4b8   : > { %1065 = vpow2.f32 %v589_v47 }
 0x4bb   : > { %v586_v48 = vpop.xlane.xlu1 %585 }
 0x4bc   : > { %v588_v49 = vsub.f32 %v579_v26, %v586_v48 }
 0x4be   : > { %v1066_v50 = vpop.eup %1065  ;;  %v591_v51 = vmul.f32 1.442695, %v588_v49 }
 0x4bf   : > { %v593_v52 = vsel %vm479_vm8, %v1066_v50, 0.0 }
 0x4c0   : > { %1067 = vpow2.f32 %v591_v51  ;;  %594 = vadd.xlane.f32.xlu2 %v593_v52 }
 0x4c3   : > { %v659_v53 = vpop.xlane.xlu1 %658  ;;  %v735_v54 = vpop.xlane.xlu2 %734 }
 0x4c4   : > { %v663_v55 = vsub.f32 %v653_v31, %v659_v53  ;;  %v739_v58 = vsub.f32 %v729_v33, %v735_v54 }
 0x4c6   : > { %v1068_v56 = vpop.eup %1067  ;;  %v665_v57 = vmul.f32 1.442695, %v663_v55  ;;  %v741_v60 = vmul.f32 1.442695, %v739_v58 }
 0x4c7   : > { %v596_v59 = vsel %vm479_vm8, %v1068_v56, 0.0 }
 0x4c8   : > { %1069 = vpow2.f32 %v665_v57  ;;  %597 = vadd.xlane.f32.xlu1 %v596_v59 }
 0x4c9   : > { %1071 = vpow2.f32 %v741_v60  ;;  %v1016_v60 = vld [vmem:[%s1358_s5 + $0x18] sm:$0xff] }
 0x4ca   : > { %858 = vmatpush.bf16.msra.mxu0 %v1016_v60 }
 0x4cb   : > { %v738_v61 = vpop.xlane.xlu0 %737 }
 0x4cc   : > { %v740_v62 = vsub.f32 %v731_v39, %v738_v61  ;;  %v1015_v61 = vld [vmem:[%s1358_s5 + $0x10] sm:$0xff] }
 0x4ce   : > { %v1070_v63 = vpop.eup %1069  ;;  %v743_v1 = vmul.f32 1.442695, %v740_v62  ;;  %859 = vmatpush.bf16.msra.mxu0 %v1015_v61  ;;  %v1014_v62 = vld [vmem:[%s1358_s5 + $0x8] sm:$0xff] }
 0x4cf   : > { %v669_v3 = vsel %vm479_vm8, %v1070_v63, 0.0  ;;  %v1072_v5 = vpop.eup %1071 }
 0x4d0   : > { %1073 = vpow2.f32 %v743_v1  ;;  %670 = vadd.xlane.f32.xlu2 %v669_v3  ;;  %v745_v10 = vsel %vm479_vm8, %v1072_v5, 0.0 }
 0x4d2   : > { %860 = vmatpush.bf16.msra.mxu0 %v1014_v62 }
 0x4d3   : > { %v662_v4 = vpop.xlane.xlu0 %661 }
 0x4d4   : > { %v664_v6 = vsub.f32 %v655_v43, %v662_v4 }
 0x4d6   : > { %v1074_v7 = vpop.eup %1073  ;;  %v667_v8 = vmul.f32 1.442695, %v664_v6 }
 0x4d7   : > { %v748_v9 = vsel %vm479_vm8, %v1074_v7, 0.0 }
 0x4d8   : > { %1075 = vpow2.f32 %v667_v8  ;;  %749 = vadd.xlane.f32.xlu1 %v748_v9  ;;  %746 = vadd.xlane.f32.xlu2 %v745_v10 }
 0x4de   : > { %v1076_v11 = vpop.eup %1075 }
 0x4df   : > { %v672_v12 = vsel %vm479_vm8, %v1076_v11, 0.0 }
 0x4e0   : > { %673 = vadd.xlane.f32.xlu1 %v672_v12 }
 0x4e6   : > { %v611_v13 = vpop.permute.xlu0 %610 }
 0x4e7   : > { %623 = vmatpush.bf16.msrb.mxu2 %v611_v13 }
 0x4ee   : > { %v763_v14 = vpop.permute.xlu0 %762 }
 0x4ef   : > { %775 = vmatpush.bf16.msra.mxu2 %v763_v14 }
 0x4f0   : > { %686 = vrot.lane.b32.xlu2 %v1247_v38, %s1103_s20 }
 0x533   : > { %v595_v15 = vpop.xlane.xlu2 %594 }
 0x534   : > { %1077 = vrcp.f32 %v595_v15 }
 0x53a   : > { %v1078_v17 = vpop.eup %1077 }
 0x53b   : > { %v598_v16 = vpop.xlane.xlu1 %597  ;;  %v601_v20 = vmul.f32 %v1078_v17, %v1066_v50 }
 0x53c   : > { %1079 = vrcp.f32 %v598_v16 }
 0x53d   : > { %v603_v22 = vpack.c.bf16 %v601_v20, %v601_v20  ;;  %v1050_v20 = vld [vmem:[%s1359_s6] ss:$0 sm:$0xff] }
 0x53f   : > { %v607_v26 = vunpack.c.l.b16 %v603_v22 }
 0x542   : > { %v1080_v21 = vpop.eup %1079 }
 0x543   : > { %v602_v23 = vmul.f32 %v1080_v21, %v1068_v56  ;;  %v671_v24 = vpop.xlane.xlu2 %670 }
 0x545   : > { %v604_v25 = vpack.c.bf16 %v602_v23, %v602_v23 }
 0x547   : > { %v608_v27 = vunpack.c.l.b16 %v604_v25 }
 0x549   : > { %v609_v28 = vpack.c.b16 %v608_v27, %v607_v26 }
 0x54b   : > { %v750_v29 = vpop.xlane.xlu1 %749  ;;  %975 = vmatmul.msk.bf16.vlgmr.msrb.gmra.mxu2 %vm479_vm8, %v609_v28  ;;  %v747_v30 = vpop.xlane.xlu2 %746 }
 0x54c   : > { %1081 = vrcp.f32 %v750_v29 }
 0x54d   : > { %1083 = vrcp.f32 %v747_v30 }
 0x54e   : > { %1085 = vrcp.f32 %v671_v24 }
 0x552   : > { %v1082_v38 = vpop.eup %1081 }
 0x553   : > { %v1084_v31 = vpop.eup %1083  ;;  %v754_v32 = vmul.f32 %v1082_v38, %v1074_v7  ;;  %v674_v33 = vpop.xlane.xlu1 %673 }
 0x554   : > { %v687_v34 = vpop.permute.xlu2 %686  ;;  %v1086_v35 = vpop.eup %1085  ;;  %v753_v36 = vmul.f32 %v1084_v31, %v1072_v5  ;;  %1087 = vrcp.f32 %v674_v33 }
 0x555   : > { %699 = vmatpush.bf16.msrb.mxu1 %v687_v34  ;;  %v756_v37 = vpack.c.bf16 %v754_v32, %v754_v32  ;;  %v677_v40 = vmul.f32 %v1086_v35, %v1070_v63  ;;  %v1013_v63 = vld [vmem:[%s1358_s5] sm:$0xff] }
 0x556   : > { %v755_v39 = vpack.c.bf16 %v753_v36, %v753_v36  ;;  %861 = vmatpush.bf16.msra.mxu0 %v1013_v63 }
 0x557   : > { %v760_v41 = vunpack.c.l.b16 %v756_v37  ;;  %v679_v45 = vpack.c.bf16 %v677_v40, %v677_v40 }
 0x558   : > { %v759_v42 = vunpack.c.l.b16 %v755_v39 }
 0x559   : > { %v683_v48 = vunpack.c.l.b16 %v679_v45 }
 0x55a   : > { %v1088_v43 = vpop.eup %1087  ;;  %v761_v44 = vpack.c.b16 %v760_v41, %v759_v42 }
 0x55b   : > { %v678_v46 = vmul.f32 %v1088_v43, %v1076_v11 }
 0x55c   : > { %983 = vmatmul.msk.bf16.vlgmr.msra.gmra.mxu2 %vm479_vm8, %v761_v44 }
 0x55d   : > { %v680_v47 = vpack.c.bf16 %v678_v46, %v678_v46 }
 0x55f   : > { %v684_v49 = vunpack.c.l.b16 %v680_v47 }
 0x561   : > { %v685_v50 = vpack.c.b16 %v684_v49, %v683_v48 }
 0x563   : > { %979 = vmatmul.msk.bf16.vlgmr.msrb.gmra.mxu1 %vm479_vm8, %v685_v50 }
 0x5ce   : > { %v625_v51 = vpop.f32.mrf.mxu2 }
 0x5d6   : > { %v627_v52 = vpop.f32.mrf.mxu2 }
 0x5d7   : > { %v1033_v53 = vpack.i.bf16 %v627_v52, %v625_v51 }
 0x5d9   : > { %1034 = vrot.lane.b32.xlu1 %v1033_v53, %s1101_s18 }
 0x5df   : > { %v777_v55 = vpop.f32.mrf.mxu2 }
 0x5e0   : > { %v701_v54 = vpop.f32.mrf.mxu1 }
 0x5e7   : > { %v779_v58 = vpop.f32.mrf.mxu2 }
 0x5e8   : > { %v703_v56 = vpop.f32.mrf.mxu1  ;;  %v1043_v59 = vpack.i.bf16 %v779_v58, %v777_v55 }
 0x5e9   : > { %v1038_v57 = vpack.i.bf16 %v703_v56, %v701_v54 }
 0x5eb   : > { %1039 = vrot.lane.b32.xlu0 %v1038_v57, %s1104_s21 }
 0x5f3   : > { %1044 = vrot.lane.b32.xlu0 %v1043_v59, %s1098_s11 }
 0x64b   : > { %v1035_v3 = vpop.permute.xlu1 %1034 }
 0x64c   : > { %v1037_v4 = vunpack.i.h.bf16 %v1035_v3  ;;  %v1036_v5 = vunpack.i.l.bf16 %v1035_v3 }
 0x64e   : > { %v807_v9 = vsel %vm479_vm8, %v1277_v19, %v1037_v4  ;;  %v806_v10 = vsel %vm479_vm8, %v1275_v18, %v1036_v5 }
 0x65d   : > { %v1040_v1 = vpop.permute.xlu0 %1039 }
 0x65e   : > { %v1042_v6 = vunpack.i.h.bf16 %v1040_v1  ;;  %v1041_v7 = vunpack.i.l.bf16 %v1040_v1 }
 0x660   : > { %v810_v13 = vsel %vm808_vm9, %v807_v9, %v1042_v6  ;;  %v809_v14 = vsel %vm808_vm9, %v806_v10, %v1041_v7 }
 0x665   : > { %v1045_v8 = vpop.permute.xlu0 %1044 }
 0x666   : > { %v1047_v11 = vunpack.i.h.bf16 %v1045_v8  ;;  %v1046_v12 = vunpack.i.l.bf16 %v1045_v8 }
 0x668   : > { %v812_v15 = vsel %vm811_vm10, %v809_v14, %v1046_v12  ;;  %v813_v16 = vsel %vm811_vm10, %v810_v13, %v1047_v11 }
 0x669   : > { %v814_v17 = vpack.c.bf16 %v813_v16, %v812_v15 }
 0x66b   : > { %1000 = vmatmul.msk.bf16.vlgmr.msra.gmra.mxu0 %vm311_vm0, %v814_v17 }
 0x6e8   : > { %v863_v21 = vpop.f32.mrf.mxu0 }
 0x6e9   : > { %v864_v22 = vadd.f32 %v1050_v20, %v863_v21 }
 0x6eb   : > { %v868_v18 = vadd.f32 %v864_v22, %v1166_v0 }
 0x6ed   : > { %870 = vst.msk [vmem:[%s305_s30] sm:$0xff] %vm311_vm0, %v868_v18 }
 0x6f0   : > { %v865_v19 = vpop.f32.mrf.mxu0 }
 0x6f1   : > { %v866_v23 = vadd.f32 %v1050_v20, %v865_v19 }
 0x6f3   : > { %v869_v24 = vadd.f32 %v866_v23, %v1170_v2 }
 0x6f5   : > { %871 = vst.msk [vmem:[%s305_s30 + $0x8] sm:$0xff] %vm311_vm0, %v869_v24 }
 0x6f6 PF: > { %s18_s27 = sadd.s32 1, %s1095_s27  }
 0x6f7   : > { %p15_p4 = scmp.ge.s32.totalorder %s18_s27, 4  }
 0x6f9   :  { %17 = sbr.rel (!%p15_p4) target bundleno = 1 (0x1), region = 85 }

// kernel: swin_forward.21
= control target key start
LH: loop header
LB: loop body
LE: loop exit
PB: predicated region body
PF: predicated region fallthrough
CT: control target
= control target key end

     0   :  { %vm27_vm0 = vcmask 523264   ;;  %s379_s0 = inlined_call_operand.vmem [shape: f32[2,16,64], index: 0, kind: input, shape index: {}]   ;;  %s380_s1 = inlined_call_operand.vmem [shape: f32[1,64], index: 1, kind: input, shape index: {}]   ;;  %s381_s2 = inlined_call_operand.vmem [shape: f32[1,64], index: 2, kind: input, shape index: {}]   ;;  %s382_s3 = inlined_call_operand.vmem [shape: f32[64,8], index: 3, kind: input, shape index: {}]   ;;  %s383_s4 = inlined_call_operand.vmem [shape: f32[1,8], index: 4, kind: input, shape index: {}]   ;;  %s384_s5 = inlined_call_operand.hbm [shape: f32[2,8], index: 5, kind: output, shape index: {}]  }
   0x1   :  { %v23_v0 = vld [vmem:[%s379_s0 + $0x10] sm:$0xff]  ;;  %v21_v1 = vld [vmem:[%s379_s0] sm:$0xff] }
   0x2   :  { %v34_v2 = vsel %vm27_vm0, %v23_v0, 0.0  ;;  %v28_v3 = vsel %vm27_vm0, %v21_v1, 0.0 }
   0x3   :  { %35 = vadd.xlane.f32.xlu1 %v34_v2  ;;  %29 = vadd.xlane.f32.xlu0 %v28_v3 }
   0x4   :  { %10 = vsyncpa [#allocation3], 0  ;;  %v24_v4 = vld [vmem:[%s379_s0 + $0x18] sm:$0xff]  ;;  %v22_v5 = vld [vmem:[%s379_s0 + $0x8] sm:$0xff]  ;;  %v265_v8 = vmov 64.0   ;;  %vm178_vm15 = vcmask 1041409  }
   0x5   :  { %v37_v6 = vsel %vm27_vm0, %v24_v4, 0.0  ;;  %v31_v7 = vsel %vm27_vm0, %v22_v5, 0.0  ;;  %227 = vrcp.f32 %v265_v8  ;;  %v171_v41 = vld [vmem:[%s382_s3 + $0x38] sm:$0xff]  ;;  %v170_v42 = vld [vmem:[%s382_s3 + $0x30] sm:$0xff]  ;;  %v169_v43 = vld [vmem:[%s382_s3 + $0x28] sm:$0xff]  ;;  %s267_s19 = smov [#allocation2]  }
   0x6   :  { %190 = vmatpush.msra.mxu0 %v171_v41  ;;  %v168_v46 = vld [vmem:[%s382_s3 + $0x20] sm:$0xff]  ;;  %v167_v49 = vld [vmem:[%s382_s3 + $0x18] sm:$0xff]  ;;  %v166_v55 = vld [vmem:[%s382_s3 + $0x10] sm:$0xff]  ;;  %s209_s20 = sshll.u32 %s267_s19, 4  ;;  %s211_s23 = sshll.u32 %s384_s5, 4  ;;  %s210_s20 = int_to_ptr.vmem [resolvable:$true] %s209_s20  ;;  %s212_s23 = int_to_ptr.hbm [resolvable:$true] %s211_s23 }
   0x7   :  { %v165_v58 = vld [vmem:[%s382_s3 + $0x8] sm:$0xff]  ;;  %v164_v61 = vld [vmem:[%s382_s3] sm:$0xff] }
   0x8   :  { %191 = vmatpush.msra.mxu0 %v170_v42 }
   0xa   :  { %192 = vmatpush.msra.mxu0 %v169_v43 }
   0xb   :  { %38 = vadd.xlane.f32.xlu1 %v37_v6  ;;  %32 = vadd.xlane.f32.xlu0 %v31_v7  ;;  %v228_v9 = vpop.eup %227 }
   0xc   :  { %v41_v10 = vmul.f32 64.0, %v228_v9  ;;  %vm45_vm1 = vweird.f32 %v228_v9  ;;  %193 = vmatpush.msra.mxu0 %v168_v46 }
   0xe   :  { %v42_v11 = vsub.f32 1.0, %v41_v10  ;;  %194 = vmatpush.msra.mxu0 %v167_v49 }
  0x10   :  { %v43_v12 = vmul.f32 %v228_v9, %v42_v11  ;;  %195 = vmatpush.msra.mxu0 %v166_v55 }
  0x12   :  { %v44_v13 = vadd.f32 %v228_v9, %v43_v12  ;;  %196 = vmatpush.msra.mxu0 %v165_v58  ;;  %v266_v12 = vmov 16.0  }
  0x14   :  { %v46_v14 = vsel %vm45_vm1, %v228_v9, %v44_v13  ;;  %197 = vmatpush.msra.mxu0 %v164_v61  ;;  %v224_v13 = vld [vmem:[%s380_s1] ss:$0 sm:$0xff]  ;;  %vm202_vm1 = vcmask 58368  }
  0x15   :  { %v226_v61 = vld [vmem:[%s383_s4] ss:$0 sm:$0xff] }
  0x76   :  { %v36_v15 = vpop.xlane.xlu1 %35  ;;  %v30_v16 = vpop.xlane.xlu0 %29 }
  0x77   :  { %v49_v17 = vmul.f32 %v46_v14, %v36_v15  ;;  %v47_v18 = vmul.f32 %v46_v14, %v30_v16 }
  0x79   :  { %v314_v19 = vsub.f32 %v23_v0, %v49_v17  ;;  %v316_v20 = vsub.f32 %v21_v1, %v47_v18 }
  0x7b   :  { %v57_v21 = vmul.f32 %v314_v19, %v314_v19  ;;  %v55_v22 = vmul.f32 %v316_v20, %v316_v20 }
  0x7d   :  { %v65_v23 = vsel %vm27_vm0, %v57_v21, 0.0  ;;  %v59_v24 = vsel %vm27_vm0, %v55_v22, 0.0  ;;  %v225_v22 = vld [vmem:[%s381_s2] ss:$0 sm:$0xff] }
  0x7e   :  { %v39_v25 = vpop.xlane.xlu1 %38  ;;  %66 = vadd.xlane.f32.xlu0 %v65_v23  ;;  %60 = vadd.xlane.f32.xlu2 %v59_v24  ;;  %v33_v26 = vpop.xlane.xlu0 %32 }
  0x7f   :  { %v50_v27 = vmul.f32 %v46_v14, %v39_v25  ;;  %v48_v28 = vmul.f32 %v46_v14, %v33_v26 }
  0x81   :  { %v324_v29 = vsub.f32 %v24_v4, %v50_v27  ;;  %v326_v30 = vsub.f32 %v22_v5, %v48_v28 }
  0x83   :  { %v58_v31 = vmul.f32 %v324_v29, %v324_v29  ;;  %v56_v32 = vmul.f32 %v326_v30, %v326_v30 }
  0x85   :  { %v68_v33 = vsel %vm27_vm0, %v58_v31, 0.0  ;;  %v62_v34 = vsel %vm27_vm0, %v56_v32, 0.0 }
  0x86   :  { %69 = vadd.xlane.f32.xlu1 %v68_v33  ;;  %63 = vadd.xlane.f32.xlu2 %v62_v34 }
  0xf1   :  { %v61_v35 = vpop.xlane.xlu2 %60  ;;  %v67_v36 = vpop.xlane.xlu0 %66 }
  0xf2   :  { %v71_v37 = vmul.f32 %v61_v35, %v46_v14  ;;  %v73_v38 = vmul.f32 %v67_v36, %v46_v14 }
  0xf4   :  { %v75_v39 = vadd.f32 1e-05, %v71_v37  ;;  %v77_v40 = vadd.f32 1e-05, %v73_v38 }
  0xf6   :  { %229 = vrsqrt.f32 %v75_v39  ;;  %vm85_vm4 = vweird.f32 %v75_v39  ;;  %vm105_vm6 = vweird.f32 %v77_v40 }
  0xf7   :  { %231 = vrsqrt.f32 %v77_v40 }
  0xf9   :  { %v70_v44 = vpop.xlane.xlu1 %69  ;;  %v64_v45 = vpop.xlane.xlu2 %63 }
  0xfa   :  { %v74_v47 = vmul.f32 %v70_v44, %v46_v14  ;;  %v72_v48 = vmul.f32 %v64_v45, %v46_v14 }
  0xfc   :  { %v230_v50 = vpop.eup %229  ;;  %v78_v51 = vadd.f32 1e-05, %v74_v47  ;;  %v76_v52 = vadd.f32 1e-05, %v72_v48 }
  0xfd   :  { %v232_v53 = vpop.eup %231  ;;  %v80_v54 = vmul.f32 %v230_v50, %v75_v39  ;;  %vm86_vm2 = vweird.f32 %v230_v50 }
  0xfe   :  { %v100_v56 = vmul.f32 %v232_v53, %v77_v40  ;;  %233 = vrsqrt.f32 %v78_v51  ;;  %vm106_vm3 = vweird.f32 %v232_v53  ;;  %vm87_vm5 = vmor %vm85_vm4, %vm86_vm2  ;;  %vm115_vm10 = vweird.f32 %v78_v51 }
  0xff   :  { %v81_v57 = vmul.f32 %v230_v50, %v80_v54  ;;  %235 = vrsqrt.f32 %v76_v52  ;;  %vm107_vm7 = vmor %vm105_vm6, %vm106_vm3  ;;  %vm95_vm12 = vweird.f32 %v76_v52 }
 0x100   :  { %v101_v59 = vmul.f32 %v232_v53, %v100_v56  ;;  %237 = vrcp.f32 %v266_v12 }
 0x101   :  { %v82_v60 = vmul.f32 0.5, %v81_v57 }
 0x102   :  { %v102_v62 = vmul.f32 0.5, %v101_v59 }
 0x103   :  { %v83_v63 = vsub.f32 1.5, %v82_v60 }
 0x104   :  { %v234_v0 = vpop.eup %233  ;;  %v103_v1 = vsub.f32 1.5, %v102_v62 }
 0x105   :  { %v236_v2 = vpop.eup %235  ;;  %v84_v3 = vmul.f32 %v230_v50, %v83_v63  ;;  %v110_v4 = vmul.f32 %v234_v0, %v78_v51  ;;  %vm116_vm8 = vweird.f32 %v234_v0 }
 0x106   :  { %v104_v5 = vmul.f32 %v232_v53, %v103_v1  ;;  %v90_v6 = vmul.f32 %v236_v2, %v76_v52  ;;  %vm96_vm9 = vweird.f32 %v236_v2  ;;  %vm117_vm11 = vmor %vm115_vm10, %vm116_vm8  ;;  %v238_v25 = vpop.eup %237 }
 0x107   :  { %v111_v7 = vmul.f32 %v234_v0, %v110_v4  ;;  %v88_v8 = vsel %vm87_vm5, %v230_v50, %v84_v3  ;;  %vm97_vm13 = vmor %vm95_vm12, %vm96_vm9  ;;  %v156_v33 = vmul.f32 16.0, %v238_v25  ;;  %vm160_vm14 = vweird.f32 %v238_v25 }
 0x108   :  { %v108_v9 = vsel %vm107_vm7, %v232_v53, %v104_v5  ;;  %v91_v10 = vmul.f32 %v236_v2, %v90_v6  ;;  %v119_v16 = vmul.f32 %v88_v8, %v316_v20 }
 0x109   :  { %v112_v11 = vmul.f32 0.5, %v111_v7  ;;  %v121_v14 = vmul.f32 %v108_v9, %v314_v19  ;;  %v157_v40 = vsub.f32 1.0, %v156_v33 }
 0x10a   :  { %v92_v15 = vmul.f32 0.5, %v91_v10  ;;  %v126_v26 = vmul.f32 %v224_v13, %v119_v16 }
 0x10b   :  { %v113_v17 = vsub.f32 1.5, %v112_v11  ;;  %v128_v23 = vmul.f32 %v224_v13, %v121_v14  ;;  %v158_v45 = vmul.f32 %v238_v25, %v157_v40 }
 0x10c   :  { %v93_v18 = vsub.f32 1.5, %v92_v15  ;;  %v133_v34 = vadd.f32 %v225_v22, %v126_v26 }
 0x10d   :  { %v114_v21 = vmul.f32 %v234_v0, %v113_v17  ;;  %v135_v31 = vadd.f32 %v225_v22, %v128_v23  ;;  %v159_v50 = vadd.f32 %v238_v25, %v158_v45 }
 0x10e   :  { %v94_v24 = vmul.f32 %v236_v2, %v93_v18  ;;  %v137_v41 = vsel %vm27_vm0, %v133_v34, 0.0 }
 0x10f   :  { %v118_v19 = vsel %vm117_vm11, %v234_v0, %v114_v21  ;;  %v146_v38 = vsel %vm27_vm0, %v135_v31, 0.0  ;;  %v161_v55 = vsel %vm160_vm14, %v238_v25, %v159_v50 }
 0x110   :  { %v122_v20 = vmul.f32 %v118_v19, %v324_v29  ;;  %v98_v27 = vsel %vm97_vm13, %v236_v2, %v94_v24 }
 0x111   :  { %v120_v28 = vmul.f32 %v98_v27, %v326_v30 }
 0x112   :  { %v129_v32 = vmul.f32 %v224_v13, %v122_v20 }
 0x113   :  { %v127_v35 = vmul.f32 %v224_v13, %v120_v28 }
 0x114   :  { %v136_v36 = vadd.f32 %v225_v22, %v129_v32 }
 0x115   :  { %v134_v37 = vadd.f32 %v225_v22, %v127_v35 }
 0x116   :  { %v147_v39 = vsel %vm27_vm0, %v136_v36, 0.0 }
 0x117   :  { %v138_v42 = vsel %vm27_vm0, %v134_v37, 0.0  ;;  %v148_v29 = vadd.f32 %v147_v39, %v146_v38 }
 0x118   :  { %v139_v43 = vadd.f32 %v138_v42, %v137_v41 }
 0x119   :  { %v149_v44 = vrot.slane %v148_v29, 4 }
 0x11a   :  { %v140_v30 = vrot.slane %v139_v43, 4 }
 0x11b   :  { %v150_v46 = vadd.f32 %v149_v44, %v148_v29 }
 0x11c   :  { %v141_v47 = vadd.f32 %v140_v30, %v139_v43 }
 0x11d   :  { %v151_v48 = vrot.slane %v150_v46, 2 }
 0x11e   :  { %v142_v49 = vrot.slane %v141_v47, 2 }
 0x11f   :  { %v152_v51 = vadd.f32 %v151_v48, %v150_v46 }
 0x120   :  { %v143_v52 = vadd.f32 %v142_v49, %v141_v47 }
 0x121   :  { %v153_v53 = vrot.slane %v152_v51, 1 }
 0x122   :  { %v144_v54 = vrot.slane %v143_v52, 1 }
 0x123   :  { %v154_v56 = vadd.f32 %v153_v53, %v152_v51 }
 0x124   :  { %v145_v57 = vadd.f32 %v144_v54, %v143_v52 }
 0x125   :  { %v163_v58 = vmul.f32 %v161_v55, %v154_v56 }
 0x126   :  { %v162_v59 = vmul.f32 %v161_v55, %v145_v57 }
 0x128   :  { %v179_v60 = vsel %vm178_vm15, %v163_v58, %v162_v59 }
 0x129   :  { %220 = vmatmul.msk.f32.vlgmr.msra.gmra.mxu0 %vm27_vm0, %v179_v60 }
 0x1a6   :  { %v199_v62 = vpop.f32.mrf.mxu0 }
 0x1a7   :  { %v200_v63 = vadd.f32 %v226_v61, %v199_v62 }
 0x1a9   :  { %203 = vst.msk [vmem:[#allocation2] sm:$0x3] %vm202_vm1, %v200_v63 }
 0x1aa   :  { %214 = dma.vmem_to_hbm [thread:$0]  %s210_s20, 32, %s212_s23, [#allocation3]  }
 0x1ab   :  { %263 = dma.done.wait [#allocation3], 32  }
 0x1ac   :  { %264 = vsyncadd [#allocation3], 4294967264 }
 0x1ad   :  { %219 = vsyncpa [#allocation3], 1 }

// kernel: swin_forward.18
= control target key start
LH: loop header
LB: loop body
LE: loop exit
PB: predicated region body
PF: predicated region fallthrough
CT: control target
= control target key end

     0   :  { %vm33_vm0 = vcmask 523264   ;;  %v923_v8 = vmov 64.0   ;;  %s1525_s0 = inlined_call_operand.vmem [shape: f32[32,64], index: 0, kind: input, shape index: {}]   ;;  %s1526_s1 = inlined_call_operand.vmem [shape: f32[1,64], index: 1, kind: input, shape index: {}]   ;;  %s1527_s2 = inlined_call_operand.vmem [shape: f32[1,64], index: 2, kind: input, shape index: {}]   ;;  %s1528_s3 = inlined_call_operand.vmem [shape: bf16[64,256], index: 3, kind: input, shape index: {}]   ;;  %s1529_s6 = inlined_call_operand.vmem [shape: f32[1,64], index: 6, kind: input, shape index: {}]   ;;  %s1530_s4 = inlined_call_operand.vmem [shape: f32[1,256], index: 4, kind: input, shape index: {}]   ;;  %s1531_s5 = inlined_call_operand.vmem [shape: bf16[256,64], index: 5, kind: input, shape index: {}]   ;;  %s1532_s7 = inlined_call_operand.vmem [shape: f32[32,64], index: 7, kind: output, shape index: {}]  }
   0x1   :  { %v29_v0 = vld [vmem:[%s1525_s0 + $0x10] sm:$0xff]  ;;  %v27_v1 = vld [vmem:[%s1525_s0] sm:$0xff]  ;;  %v30_v4 = vld [vmem:[%s1525_s0 + $0x18] sm:$0xff]  ;;  %877 = vrcp.f32 %v923_v8 }
   0x2   :  { %v40_v2 = vsel %vm33_vm0, %v29_v0, 0.0  ;;  %v34_v3 = vsel %vm33_vm0, %v27_v1, 0.0  ;;  %v28_v5 = vld [vmem:[%s1525_s0 + $0x8] sm:$0xff]  ;;  %v43_v6 = vsel %vm33_vm0, %v30_v4, 0.0  ;;  %v775_v35 = vld [vmem:[%s1528_s3 + $0x30] sm:$0xf] }
   0x3   :  { %41 = vadd.xlane.f32.xlu1 %v40_v2  ;;  %35 = vadd.xlane.f32.xlu0 %v34_v3  ;;  %v37_v7 = vsel %vm33_vm0, %v28_v5, 0.0  ;;  %v856_v36 = vld [vmem:[%s1528_s3 + $0x34] sm:$0xf0]  ;;  %v855_v37 = vld [vmem:[%s1528_s3 + $0x34] sm:$0xf] }
   0x4   :  { %v776_v38 = vor.u32 %v856_v36, %v775_v35  ;;  %v777_v39 = vld [vmem:[%s1528_s3 + $0x38] sm:$0xf0]  ;;  %v767_v41 = vld [vmem:[%s1528_s3 + $0x20] sm:$0xf]  ;;  %v854_v42 = vld [vmem:[%s1528_s3 + $0x24] sm:$0xf0] }
   0x5   :  { %v780_v40 = vor.u32 %v855_v37, %v777_v39  ;;  %v853_v43 = vld [vmem:[%s1528_s3 + $0x24] sm:$0xf]  ;;  %v768_v44 = vor.u32 %v854_v42, %v767_v41  ;;  %v769_v45 = vld [vmem:[%s1528_s3 + $0x28] sm:$0xf0]  ;;  %v759_v47 = vld [vmem:[%s1528_s3 + $0x10] sm:$0xf] }
   0x6   :  { %209 = vmatpush.bf16.msra.mxu0 %v776_v38  ;;  %v772_v46 = vor.u32 %v853_v43, %v769_v45  ;;  %v852_v48 = vld [vmem:[%s1528_s3 + $0x14] sm:$0xf0]  ;;  %v851_v49 = vld [vmem:[%s1528_s3 + $0x14] sm:$0xf]  ;;  %v761_v51 = vld [vmem:[%s1528_s3 + $0x18] sm:$0xf0] }
   0x7   :  { %v878_v9 = vpop.eup %877  ;;  %228 = vmatpush.bf16.msra.mxu1 %v780_v40  ;;  %v760_v50 = vor.u32 %v852_v48, %v759_v47  ;;  %v764_v53 = vor.u32 %v851_v49, %v761_v51  ;;  %v751_v54 = vld [vmem:[%s1528_s3] sm:$0xf]  ;;  %v850_v55 = vld [vmem:[%s1528_s3 + $0x4] sm:$0xf0]  ;;  %v849_v56 = vld [vmem:[%s1528_s3 + $0x4] sm:$0xf] }
   0x8   :  { %v47_v10 = vmul.f32 64.0, %v878_v9  ;;  %vm51_vm1 = vweird.f32 %v878_v9  ;;  %v752_v59 = vor.u32 %v850_v55, %v751_v54  ;;  %v753_v60 = vld [vmem:[%s1528_s3 + $0x8] sm:$0xf0]  ;;  %v875_v38 = vld [vmem:[%s1527_s2] ss:$0 sm:$0xff] }
   0x9   :  { %v756_v61 = vor.u32 %v849_v56, %v753_v60 }
   0xa   :  { %v48_v11 = vsub.f32 1.0, %v47_v10  ;;  %210 = vmatpush.bf16.msra.mxu0 %v768_v44 }
   0xb   :  { %44 = vadd.xlane.f32.xlu1 %v43_v6  ;;  %38 = vadd.xlane.f32.xlu0 %v37_v7 }
   0xc   :  { %v49_v12 = vmul.f32 %v878_v9, %v48_v11  ;;  %229 = vmatpush.bf16.msra.mxu1 %v772_v46 }
   0xe   :  { %v50_v13 = vadd.f32 %v878_v9, %v49_v12  ;;  %211 = vmatpush.bf16.msra.mxu0 %v760_v50 }
  0x10   :  { %v980_v14 = vsel %vm51_vm1, %v878_v9, %v50_v13  ;;  %230 = vmatpush.bf16.msra.mxu1 %v764_v53  ;;  %v153_v53 = vld [vmem:[%s1530_s4] sm:$0x3] }
  0x11   :  { %v1075_v54 = vperm.slane %v153_v53, 0  ;;  %v1077_v55 = vperm.slane %v153_v53, 1  ;;  %v860_v53 = vld [vmem:[%s1531_s5 + $0x18] sm:$0xff] }
  0x12   :  { %212 = vmatpush.bf16.msra.mxu0 %v752_v59 }
  0x14   :  { %231 = vmatpush.bf16.msra.mxu1 %v756_v61 }
  0x76   :  { %v42_v15 = vpop.xlane.xlu1 %41  ;;  %v36_v16 = vpop.xlane.xlu0 %35 }
  0x77   :  { %v55_v17 = vmul.f32 %v980_v14, %v42_v15  ;;  %v53_v18 = vmul.f32 %v980_v14, %v36_v16 }
  0x79   :  { %v984_v19 = vsub.f32 %v29_v0, %v55_v17  ;;  %v986_v20 = vsub.f32 %v27_v1, %v53_v18 }
  0x7b   :  { %v63_v21 = vmul.f32 %v984_v19, %v984_v19  ;;  %v61_v22 = vmul.f32 %v986_v20, %v986_v20 }
  0x7d   :  { %v71_v23 = vsel %vm33_vm0, %v63_v21, 0.0  ;;  %v65_v24 = vsel %vm33_vm0, %v61_v22, 0.0 }
  0x7e   :  { %v45_v25 = vpop.xlane.xlu1 %44  ;;  %72 = vadd.xlane.f32.xlu0 %v71_v23  ;;  %66 = vadd.xlane.f32.xlu2 %v65_v24  ;;  %v39_v26 = vpop.xlane.xlu0 %38 }
  0x7f   :  { %v56_v27 = vmul.f32 %v980_v14, %v45_v25  ;;  %v54_v28 = vmul.f32 %v980_v14, %v39_v26 }
  0x81   :  { %v996_v29 = vsub.f32 %v30_v4, %v56_v27  ;;  %v998_v30 = vsub.f32 %v28_v5, %v54_v28 }
  0x83   :  { %v64_v31 = vmul.f32 %v996_v29, %v996_v29  ;;  %v62_v32 = vmul.f32 %v998_v30, %v998_v30 }
  0x85   :  { %v74_v33 = vsel %vm33_vm0, %v64_v31, 0.0  ;;  %v68_v34 = vsel %vm33_vm0, %v62_v32, 0.0  ;;  %v874_v31 = vld [vmem:[%s1526_s1] ss:$0 sm:$0xff] }
  0x86   :  { %75 = vadd.xlane.f32.xlu1 %v74_v33  ;;  %69 = vadd.xlane.f32.xlu2 %v68_v34 }
  0xf1   :  { %v67_v52 = vpop.xlane.xlu2 %66  ;;  %v73_v58 = vpop.xlane.xlu0 %72 }
  0xf2   :  { %v77_v57 = vmul.f32 %v67_v52, %v980_v14  ;;  %v79_v63 = vmul.f32 %v73_v58, %v980_v14 }
  0xf4   :  { %v81_v62 = vadd.f32 1e-05, %v77_v57  ;;  %v83_v0 = vadd.f32 1e-05, %v79_v63 }
  0xf6   :  { %879 = vrsqrt.f32 %v81_v62  ;;  %vm91_vm3 = vweird.f32 %v81_v62  ;;  %vm111_vm10 = vweird.f32 %v83_v0 }
  0xf7   :  { %881 = vrsqrt.f32 %v83_v0 }
  0xf9   :  { %v76_v1 = vpop.xlane.xlu1 %75  ;;  %v70_v2 = vpop.xlane.xlu2 %69 }
  0xfa   :  { %v80_v3 = vmul.f32 %v76_v1, %v980_v14  ;;  %v78_v4 = vmul.f32 %v70_v2, %v980_v14 }
  0xfc   :  { %v880_v5 = vpop.eup %879  ;;  %v84_v6 = vadd.f32 1e-05, %v80_v3  ;;  %v82_v7 = vadd.f32 1e-05, %v78_v4 }
  0xfd   :  { %v86_v8 = vmul.f32 %v880_v5, %v81_v62  ;;  %v882_v11 = vpop.eup %881  ;;  %vm92_vm2 = vweird.f32 %v880_v5 }
  0xfe   :  { %883 = vrsqrt.f32 %v84_v6  ;;  %v106_v18 = vmul.f32 %v882_v11, %v83_v0  ;;  %vm93_vm4 = vmor %vm91_vm3, %vm92_vm2  ;;  %vm101_vm6 = vweird.f32 %v82_v7  ;;  %vm121_vm8 = vweird.f32 %v84_v6 }
  0xff   :  { %v87_v9 = vmul.f32 %v880_v5, %v86_v8  ;;  %885 = vrsqrt.f32 %v82_v7  ;;  %vm112_vm11 = vweird.f32 %v882_v11 }
 0x100   :  { %v107_v24 = vmul.f32 %v882_v11, %v106_v18  ;;  %vm113_vm13 = vmor %vm111_vm10, %vm112_vm11 }
 0x101   :  { %v88_v10 = vmul.f32 0.5, %v87_v9 }
 0x102   :  { %v108_v32 = vmul.f32 0.5, %v107_v24 }
 0x103   :  { %v89_v12 = vsub.f32 1.5, %v88_v10 }
 0x104   :  { %v884_v13 = vpop.eup %883  ;;  %v109_v39 = vsub.f32 1.5, %v108_v32  ;;  %v870_v32 = vld [vmem:[%s1531_s5 + $0x68] sm:$0xff] }
 0x105   :  { %v886_v15 = vpop.eup %885  ;;  %v116_v16 = vmul.f32 %v884_v13, %v84_v6  ;;  %v90_v17 = vmul.f32 %v880_v5, %v89_v12  ;;  %vm122_vm9 = vweird.f32 %v884_v13  ;;  %v864_v6 = vld [vmem:[%s1531_s5 + $0x38] sm:$0xff]  ;;  %v863_v12 = vld [vmem:[%s1531_s5 + $0x30] sm:$0xff] }
 0x106   :  { %v96_v21 = vmul.f32 %v886_v15, %v82_v7  ;;  %vm102_vm5 = vweird.f32 %v886_v15  ;;  %vm123_vm12 = vmor %vm121_vm8, %vm122_vm9  ;;  %v110_v43 = vmul.f32 %v882_v11, %v109_v39  ;;  %v872_v7 = vld [vmem:[%s1531_s5 + $0x78] sm:$0xff]  ;;  %699 = vmatpush.bf16.msra.mxu2 %v864_v6 }
 0x107   :  { %v117_v14 = vmul.f32 %v884_v13, %v116_v16  ;;  %v94_v23 = vsel %vm93_vm4, %v880_v5, %v90_v17  ;;  %vm103_vm7 = vmor %vm101_vm6, %vm102_vm5  ;;  %718 = vmatpush.bf16.msra.mxu3 %v872_v7 }
 0x108   :  { %v97_v22 = vmul.f32 %v886_v15, %v96_v21  ;;  %v125_v28 = vmul.f32 %v94_v23, %v986_v20 }
 0x109   :  { %v118_v26 = vmul.f32 0.5, %v117_v14 }
 0x10a   :  { %v98_v25 = vmul.f32 0.5, %v97_v22  ;;  %v132_v37 = vmul.f32 %v874_v31, %v125_v28  ;;  %700 = vmatpush.bf16.msra.mxu2 %v863_v12 }
 0x10b   :  { %v119_v34 = vsub.f32 1.5, %v118_v26 }
 0x10c   :  { %v99_v27 = vsub.f32 1.5, %v98_v25  ;;  %v139_v41 = vadd.f32 %v875_v38, %v132_v37 }
 0x10d   :  { %v120_v40 = vmul.f32 %v884_v13, %v119_v34 }
 0x10e   :  { %v100_v33 = vmul.f32 %v886_v15, %v99_v27 }
 0x10f   :  { %v124_v45 = vsel %vm123_vm12, %v884_v13, %v120_v40  ;;  %v871_v13 = vld [vmem:[%s1531_s5 + $0x70] sm:$0xff] }
 0x110   :  { %v104_v35 = vsel %vm103_vm7, %v886_v15, %v100_v33  ;;  %v128_v46 = vmul.f32 %v124_v45, %v996_v29  ;;  %719 = vmatpush.bf16.msra.mxu3 %v871_v13 }
 0x111   :  { %v126_v36 = vmul.f32 %v104_v35, %v998_v30  ;;  %v114_v30 = vsel %vm113_vm13, %v882_v11, %v110_v43 }
 0x112   :  { %v127_v47 = vmul.f32 %v114_v30, %v984_v19  ;;  %v135_v48 = vmul.f32 %v874_v31, %v128_v46 }
 0x113   :  { %v133_v20 = vmul.f32 %v874_v31, %v126_v36 }
 0x114   :  { %v134_v49 = vmul.f32 %v874_v31, %v127_v47  ;;  %v142_v50 = vadd.f32 %v875_v38, %v135_v48  ;;  %v862_v31 = vld [vmem:[%s1531_s5 + $0x28] sm:$0xff]  ;;  %720 = vmatpush.bf16.msra.mxu3 %v870_v32 }
 0x115   :  { %v140_v42 = vadd.f32 %v875_v38, %v133_v20  ;;  %701 = vmatpush.bf16.msra.mxu2 %v862_v31 }
 0x116   :  { %v141_v51 = vadd.f32 %v875_v38, %v134_v49 }
 0x117   :  { %v143_v44 = vpack.c.bf16 %v140_v42, %v139_v41  ;;  %v861_v41 = vld [vmem:[%s1531_s5 + $0x20] sm:$0xff] }
 0x118   :  { %v144_v52 = vpack.c.bf16 %v142_v50, %v141_v51  ;;  %v869_v42 = vld [vmem:[%s1531_s5 + $0x60] sm:$0xff] }
 0x119   :  { %781 = vmatmul.msk.bf16.vlgmr.msra.gmra.mxu0 %vm33_vm0, %v143_v44  ;;  %783 = vmatmul.msk.bf16.vlgmr.msra.gmra.mxu1 %vm33_vm0, %v143_v44 }
 0x11a   :  { %702 = vmatpush.bf16.msra.mxu2 %v861_v41  ;;  %721 = vmatpush.bf16.msra.mxu3 %v869_v42 }
 0x11e   :  { %703 = vmatpush.bf16.msra.mxu2 %v860_v53 }
 0x129   :  { %782 = vmatmul.msk.bf16.gmra.mxu0 %vm33_vm0, %v144_v52  ;;  %784 = vmatmul.msk.bf16.gmra.mxu1 %vm33_vm0, %v144_v52 }
 0x196   :  { %v214_v29 = vpop.f32.mrf.mxu0  ;;  %v233_v56 = vpop.f32.mrf.mxu1 }
 0x197   :  { %v215_v19 = vadd.f32 %v214_v29, %v1075_v54  ;;  %v234_v57 = vadd.f32 %v233_v56, %v1077_v55  ;;  %v868_v29 = vld [vmem:[%s1531_s5 + $0x58] sm:$0xff] }
 0x198   :  { %722 = vmatpush.bf16.msra.mxu3 %v868_v29 }
 0x199   :  { %v1081_v58 = vmul.f32 0.70710677, %v215_v19  ;;  %v1083_v59 = vmul.f32 0.70710677, %v234_v57  ;;  %v1153_v44 = vmul.f32 0.5, %v215_v19  ;;  %v1157_v47 = vmul.f32 0.5, %v234_v57 }
 0x19b   :  { %v251_v60 = vand.u32 2147483647, %v1081_v58  ;;  %v252_v61 = vand.u32 2147483647, %v1083_v59 }
 0x19d   :  { %v259_v62 = vmul.f32 0.3275911, %v251_v60  ;;  %v260_v63 = vmul.f32 0.3275911, %v252_v61  ;;  %v467_v8 = vsub.f32 0.0, %v251_v60  ;;  %v468_v15 = vsub.f32 0.0, %v252_v61 }
 0x19e   :  { %v216_v0 = vpop.f32.mrf.mxu0  ;;  %v235_v1 = vpop.f32.mrf.mxu1 }
 0x19f   :  { %v1087_v2 = vadd.f32 1.0, %v259_v62  ;;  %v1089_v3 = vadd.f32 1.0, %v260_v63  ;;  %v217_v4 = vadd.f32 %v216_v0, %v1075_v54  ;;  %v1093_v5 = vadd.f32 %v235_v1, %v1077_v55 }
 0x1a0   :  { %v475_v21 = vmul.f32 %v467_v8, %v251_v60  ;;  %v476_v34 = vmul.f32 %v468_v15, %v252_v61 }
 0x1a1   :  { %887 = vrcp.f32 %v1087_v2  ;;  %v1103_v9 = vmul.f32 0.70710677, %v217_v4  ;;  %v1106_v10 = vmul.f32 0.70710677, %v1093_v5  ;;  %v286_v33 = vand.u32 2147483648, %v1087_v2 }
 0x1a2   :  { %889 = vrcp.f32 %v1089_v3  ;;  %v483_v37 = vmul.f32 1.442695, %v475_v21  ;;  %v301_v40 = vand.u32 2147483648, %v1089_v3  ;;  %v485_v46 = vmul.f32 1.442695, %v476_v34 }
 0x1a3   :  { %v253_v11 = vand.u32 2147483647, %v1103_v9  ;;  %v254_v16 = vand.u32 2147483647, %v1106_v10  ;;  %v1155_v30 = vor.u32 1.1754944e-38, %v286_v33  ;;  %v1160_v49 = vmul.f32 0.5, %v217_v4 }
 0x1a4   :  { %v1171_v19 = vor.u32 1.1754944e-38, %v301_v40  ;;  %vm280_vm14 = vweird.f32 %v1087_v2  ;;  %v284_v21 = vand.u32 2147483647, %v1087_v2  ;;  %vm295_vm5 = vweird.f32 %v1089_v3 }
 0x1a5   :  { %v261_v14 = vmul.f32 0.3275911, %v253_v11  ;;  %v262_v23 = vmul.f32 0.3275911, %v254_v16  ;;  %v469_v28 = vsub.f32 0.0, %v253_v11  ;;  %v470_v38 = vsub.f32 0.0, %v254_v16 }
 0x1a6   :  { %v219_v17 = vpop.f32.mrf.mxu0  ;;  %v238_v24 = vpop.f32.mrf.mxu1  ;;  %vm1237_vm4 = vcmp.eq.f32.partialorder %v284_v21, 8.507059e+37 }
 0x1a7   :  { %v1116_v18 = vpop.eup %887  ;;  %v1119_v22 = vadd.f32 %v219_v17, %v1075_v54  ;;  %v1125_v27 = vadd.f32 1.0, %v261_v14  ;;  %v1134_v35 = vadd.f32 1.0, %v262_v23  ;;  %v1141_v39 = vadd.f32 %v238_v24, %v1077_v55  ;;  %v867_v17 = vld [vmem:[%s1531_s5 + $0x50] sm:$0xff] }
 0x1a8   :  { %v1121_v25 = vpop.eup %889  ;;  %v276_v26 = vmul.f32 %v1116_v18, %v1087_v2  ;;  %v477_v45 = vmul.f32 %v469_v28, %v253_v11  ;;  %v478_v50 = vmul.f32 %v470_v38, %v254_v16  ;;  %v859_v16 = vld [vmem:[%s1531_s5 + $0x10] sm:$0xff]  ;;  %vm281_vm15 = vweird.f32 %v1116_v18  ;;  %723 = vmatpush.bf16.msra.mxu3 %v867_v17 }
 0x1a9   :  { %v1137_v36 = vmul.f32 0.70710677, %v1119_v22  ;;  %891 = vrcp.f32 %v1125_v27  ;;  %v291_v20 = vmul.f32 %v1121_v25, %v1089_v3  ;;  %v1163_v51 = vmul.f32 0.70710677, %v1141_v39  ;;  %704 = vmatpush.bf16.msra.mxu2 %v859_v16  ;;  %vm1229_vm2 = vmor %vm280_vm14, %vm281_vm15 }
 0x1aa   :  { %893 = vrcp.f32 %v1134_v35  ;;  %v277_v43 = vsub.f32 1.0, %v276_v26  ;;  %v316_v57 = vand.u32 2147483648, %v1125_v27  ;;  %v487_v63 = vmul.f32 1.442695, %v477_v45 }
 0x1ab   :  { %v255_v48 = vand.u32 2147483647, %v1137_v36  ;;  %895 = vpow2.f32 %v483_v37  ;;  %v292_v56 = vsub.f32 1.0, %v291_v20  ;;  %v331_v0 = vand.u32 2147483648, %v1134_v35  ;;  %v866_v20 = vld [vmem:[%s1531_s5 + $0x48] sm:$0xff] }
 0x1ac   :  { %v278_v62 = vmul.f32 %v1116_v18, %v277_v43  ;;  %v256_v1 = vand.u32 2147483647, %v1163_v51  ;;  %897 = vpow2.f32 %v485_v46  ;;  %v489_v13 = vmul.f32 1.442695, %v478_v50  ;;  %724 = vmatpush.bf16.msra.mxu3 %v866_v20 }
 0x1ad   :  { %v263_v60 = vmul.f32 0.3275911, %v255_v48  ;;  %v471_v8 = vsub.f32 0.0, %v255_v48  ;;  %v1209_v31 = vmul.f32 %v1121_v25, %v292_v56  ;;  %vm310_vm1 = vweird.f32 %v1125_v27 }
 0x1ae   :  { %v221_v52 = vpop.f32.mrf.mxu0  ;;  %v240_v12 = vpop.f32.mrf.mxu1  ;;  %v264_v15 = vmul.f32 0.3275911, %v256_v1  ;;  %v279_v28 = vadd.f32 %v1116_v18, %v278_v62  ;;  %v1215_v34 = vor.u32 1.1754944e-38, %v316_v57  ;;  %v1217_v37 = vor.u32 1.1754944e-38, %v331_v0 }
 0x1af   :  { %v1174_v61 = vpop.eup %891  ;;  %v1183_v7 = vadd.f32 1.0, %v263_v60  ;;  %v1186_v11 = vadd.f32 %v221_v52, %v1075_v54  ;;  %v1205_v26 = vadd.f32 %v240_v12, %v1077_v55  ;;  %v479_v32 = vmul.f32 %v471_v8, %v255_v48  ;;  %v858_v55 = vld [vmem:[%s1531_s5 + $0x8] sm:$0xff] }
 0x1b0   :  { %v1179_v4 = vpop.eup %893  ;;  %v306_v6 = vmul.f32 %v1174_v61, %v1125_v27  ;;  %v1202_v24 = vadd.f32 1.0, %v264_v15  ;;  %v472_v38 = vsub.f32 0.0, %v256_v1  ;;  %vm296_vm3 = vweird.f32 %v1121_v25  ;;  %705 = vmatpush.bf16.msra.mxu2 %v858_v55 }
 0x1b1   :  { %899 = vrcp.f32 %v1183_v7  ;;  %v1198_v14 = vpop.eup %895  ;;  %v321_v23 = vmul.f32 %v1179_v4, %v1134_v35  ;;  %v1213_v33 = vmul.f32 0.70710677, %v1186_v11  ;;  %v346_v2 = vand.u32 2147483648, %v1183_v7  ;;  %vm1320_vm13 = vmor %vm295_vm5, %vm296_vm3 }
 0x1b2   :  { %v307_v54 = vsub.f32 1.0, %v306_v6  ;;  %901 = vpow2.f32 %v487_v63  ;;  %v1241_v45 = vpop.eup %897  ;;  %v1245_v48 = vmul.f32 0.70710677, %v1205_v26  ;;  %v283_v50 = vsel %vm1229_vm2, %v1116_v18, %v279_v28  ;;  %v857_v18 = vld [vmem:[%s1531_s5] sm:$0xff] }
 0x1b3   :  { %903 = vpow2.f32 %v489_v13  ;;  %v257_v42 = vand.u32 2147483647, %v1213_v33  ;;  %v322_v46 = vsub.f32 1.0, %v321_v23  ;;  %vm311_vm6 = vweird.f32 %v1174_v61  ;;  %v865_v63 = vld [vmem:[%s1531_s5 + $0x40] sm:$0xff] }
 0x1b4   :  { %v308_v41 = vmul.f32 %v1174_v61, %v307_v54  ;;  %905 = vrcp.f32 %v1202_v24  ;;  %v491_v53 = vmul.f32 1.442695, %v479_v32  ;;  %v480_v60 = vmul.f32 %v472_v38, %v256_v1  ;;  %vm1293_vm9 = vmor %vm310_vm1, %vm311_vm6  ;;  %706 = vmatpush.bf16.msra.mxu2 %v857_v18  ;;  %725 = vmatpush.bf16.msra.mxu3 %v865_v63 }
 0x1b5   :  { %v265_v29 = vmul.f32 0.3275911, %v257_v42  ;;  %v473_v56 = vsub.f32 0.0, %v257_v42  ;;  %v1257_v62 = vand.u32 2147483647, %v1245_v48  ;;  %v1268_v0 = vsel %vm1237_vm4, %v1155_v30, %v283_v50 }
 0x1b6   :  { %v361_v1 = vand.u32 2147483648, %v1202_v24  ;;  %v309_v13 = vadd.f32 %v1174_v61, %v308_v41  ;;  %v323_v16 = vmul.f32 %v1179_v4, %v322_v46  ;;  %vm325_vm7 = vweird.f32 %v1134_v35 }
 0x1b7   :  { %v1250_v52 = vpop.eup %899  ;;  %v1273_v8 = vadd.f32 1.0, %v265_v29  ;;  %v481_v12 = vmul.f32 %v473_v56, %v257_v42  ;;  %vm326_vm8 = vweird.f32 %v1179_v4  ;;  %v1281_v17 = vor.u32 1.1754944e-38, %v346_v2 }
 0x1b8   :  { %v336_v57 = vmul.f32 %v1250_v52, %v1183_v7  ;;  %v1270_v6 = vpop.eup %901  ;;  %v266_v30 = vmul.f32 0.3275911, %v1257_v62  ;;  %v314_v23 = vand.u32 2147483647, %v1125_v27  ;;  %v395_v28 = vmul.f32 1.0614054, %v1268_v0  ;;  %vm1344_vm1 = vmor %vm325_vm7, %vm326_vm8 }
 0x1b9   :  { %v1276_v15 = vpop.eup %903  ;;  %907 = vrcp.f32 %v1273_v8  ;;  %v376_v55 = vand.u32 2147483648, %v1273_v8  ;;  %v495_v20 = vmul.f32 1.442695, %v481_v12  ;;  %vm340_vm10 = vweird.f32 %v1183_v7 }
 0x1ba   :  { %v1284_v54 = vpop.eup %905  ;;  %v337_v21 = vsub.f32 1.0, %v336_v57  ;;  %v1300_v40 = vadd.f32 1.0, %v266_v30  ;;  %909 = vpow2.f32 %v491_v53  ;;  %v1303_v41 = vor.u32 1.1754944e-38, %v361_v1 }
 0x1bb   :  { %v351_v38 = vmul.f32 %v1284_v54, %v1202_v24  ;;  %v1305_v27 = vmul.f32 1.442695, %v480_v60  ;;  %v313_v42 = vsel %vm1293_vm9, %v1174_v61, %v309_v13  ;;  %vm341_vm11 = vweird.f32 %v1250_v52 }
 0x1bc   :  { %911 = vrcp.f32 %v1300_v40  ;;  %v474_v46 = vsub.f32 0.0, %v1257_v62  ;;  %v338_v2 = vmul.f32 %v1250_v52, %v337_v21  ;;  %vm315_vm12 = vcmp.eq.f32.partialorder %v314_v23, 8.507059e+37  ;;  %vm1372_vm3 = vmor %vm340_vm10, %vm341_vm11 }
 0x1bd   :  { %v352_v43 = vsub.f32 1.0, %v351_v38  ;;  %v403_v50 = vadd.f32 -1.4531521, %v395_v28  ;;  %v294_v53 = vadd.f32 %v1121_v25, %v1209_v31  ;;  %vm370_vm14 = vweird.f32 %v1273_v8 }
 0x1be   :  { %v377_v29 = vor.u32 1.1754944e-38, %v376_v55  ;;  %913 = vpow2.f32 %v495_v20  ;;  %v1326_v56 = vsel %vm315_vm12, %v1215_v34, %v313_v42  ;;  %v299_v57 = vand.u32 2147483647, %v1089_v3 }
 0x1bf   :  { %v908_v60 = vpop.eup %907  ;;  %v391_v31 = vand.u32 2147483648, %v1300_v40  ;;  %v397_v18 = vmul.f32 1.0614054, %v1326_v56  ;;  %v411_v63 = vmul.f32 %v403_v50, %v1268_v0  ;;  %v298_v1 = vsel %vm1320_vm13, %v1121_v25, %v294_v53 }
 0x1c0   :  { %v353_v12 = vmul.f32 %v1284_v54, %v352_v43  ;;  %v366_v13 = vmul.f32 %v908_v60, %v1273_v8  ;;  %vm300_vm15 = vcmp.eq.f32.partialorder %v299_v57, 8.507059e+37  ;;  %v324_v34 = vadd.f32 %v1179_v4, %v323_v16  ;;  %v1338_v30 = vpop.eup %909 }
 0x1c1   :  { %v405_v21 = vadd.f32 -1.4531521, %v397_v18  ;;  %v419_v23 = vadd.f32 1.4214138, %v411_v63  ;;  %v1349_v25 = vsel %vm300_vm15, %v1171_v19, %v298_v1  ;;  %v329_v28 = vand.u32 2147483647, %v1134_v35 }
 0x1c2   :  { %v1352_v32 = vpop.eup %911  ;;  %v367_v16 = vsub.f32 1.0, %v366_v13  ;;  %v328_v38 = vsel %vm1344_vm1, %v1179_v4, %v324_v34  ;;  %v396_v55 = vmul.f32 1.0614054, %v1349_v25  ;;  %v339_v20 = vadd.f32 %v1250_v52, %v338_v2 }
 0x1c3   :  { %vm356_vm2 = vweird.f32 %v1284_v54  ;;  %v381_v42 = vmul.f32 %v1352_v32, %v1300_v40  ;;  %v1362_v19 = vor.u32 1.1754944e-38, %v391_v31  ;;  %v413_v35 = vmul.f32 %v405_v21, %v1326_v56 }
 0x1c4   :  { %v427_v43 = vmul.f32 %v419_v23, %v1268_v0  ;;  %v1366_v50 = vpop.eup %913  ;;  %v368_v2 = vmul.f32 %v908_v60, %v367_v16  ;;  %vm371_vm4 = vweird.f32 %v908_v60  ;;  %vm330_vm5 = vcmp.eq.f32.partialorder %v329_v28, 8.507059e+37 }
 0x1c5   :  { %v404_v53 = vadd.f32 -1.4531521, %v396_v55  ;;  %vm355_vm6 = vweird.f32 %v1202_v24  ;;  %v421_v61 = vadd.f32 1.4214138, %v413_v35  ;;  %v1378_v31 = vsel %vm330_vm5, %v1217_v37, %v328_v38  ;;  %vm1388_vm7 = vmor %vm370_vm14, %vm371_vm4 }
 0x1c6   :  { %v435_v57 = vadd.f32 -0.28449672, %v427_v43  ;;  %v343_v18 = vsel %vm1372_vm3, %v1250_v52, %v339_v20  ;;  %v398_v63 = vmul.f32 1.0614054, %v1378_v31  ;;  %v344_v13 = vand.u32 2147483647, %v1183_v7  ;;  %vm1419_vm14 = vmor %vm355_vm6, %vm356_vm2 }
 0x1c7   :  { %v412_v1 = vmul.f32 %v404_v53, %v1349_v25  ;;  %v369_v34 = vadd.f32 %v908_v60, %v368_v2  ;;  %v382_v21 = vsub.f32 1.0, %v381_v42  ;;  %v429_v37 = vmul.f32 %v421_v61, %v1326_v56 }
 0x1c8   :  { %v443_v23 = vmul.f32 %v435_v57, %v1268_v0  ;;  %v374_v52 = vand.u32 2147483647, %v1273_v8  ;;  %v406_v28 = vadd.f32 -1.4531521, %v398_v63  ;;  %vm345_vm8 = vcmp.eq.f32.partialorder %v344_v13, 8.507059e+37 }
 0x1c9   :  { %v420_v16 = vadd.f32 1.4214138, %v412_v1  ;;  %v373_v7 = vsel %vm1388_vm7, %v908_v60, %v369_v34  ;;  %v437_v38 = vadd.f32 -0.28449672, %v429_v37  ;;  %v1398_v20 = vsel %vm345_vm8, %v1281_v17, %v343_v18 }
 0x1ca   :  { %v451_v55 = vadd.f32 0.2548296, %v443_v23  ;;  %vm375_vm9 = vcmp.eq.f32.partialorder %v374_v52, 8.507059e+37  ;;  %vm515_vm10 = vcmp.ge.f32.partialorder %v1081_v58, 0.0  ;;  %vm385_vm11 = vweird.f32 %v1300_v40 }
 0x1cb   :  { %v414_v42 = vmul.f32 %v406_v28, %v1378_v31  ;;  %v428_v8 = vmul.f32 %v420_v16, %v1349_v25  ;;  %v1404_v35 = vsel %vm375_vm9, %v377_v29, %v373_v7  ;;  %v399_v43 = vmul.f32 1.0614054, %v1398_v20 }
 0x1cc   :  { %v445_v60 = vmul.f32 %v437_v38, %v1326_v56  ;;  %v459_v4 = vmul.f32 %v451_v55, %v1268_v0  ;;  %v401_v17 = vmul.f32 1.0614054, %v1404_v35  ;;  %v354_v2 = vadd.f32 %v1284_v54, %v353_v12 }
 0x1cd   :  { %v383_v53 = vmul.f32 %v1352_v32, %v382_v21  ;;  %v422_v61 = vadd.f32 1.4214138, %v414_v42  ;;  %v436_v57 = vadd.f32 -0.28449672, %v428_v8  ;;  %v407_v18 = vadd.f32 -1.4531521, %v399_v43 }
 0x1ce   :  { %vm386_vm12 = vweird.f32 %v1352_v32  ;;  %v453_v63 = vadd.f32 0.2548296, %v445_v60  ;;  %v499_v29 = vmul.f32 %v1198_v14, %v459_v4  ;;  %v409_v1 = vadd.f32 -1.4531521, %v401_v17 }
 0x1cf   :  { %vm517_vm13 = vcmp.ge.f32.partialorder %v1103_v9, 0.0  ;;  %v430_v12 = vmul.f32 %v422_v61, %v1378_v31  ;;  %v444_v13 = vmul.f32 %v436_v57, %v1349_v25  ;;  %v415_v34 = vmul.f32 %v407_v18, %v1398_v20  ;;  %vm1445_vm2 = vmor %vm385_vm11, %vm386_vm12 }
 0x1d0   :  { %v359_v3 = vand.u32 2147483647, %v1202_v24  ;;  %v461_v14 = vmul.f32 %v453_v63, %v1326_v56  ;;  %v507_v21 = vsub.f32 1.0, %v499_v29  ;;  %v417_v37 = vmul.f32 %v409_v1, %v1404_v35 }
 0x1d1   :  { %v358_v23 = vsel %vm1419_vm14, %v1284_v54, %v354_v2  ;;  %v438_v52 = vadd.f32 -0.28449672, %v430_v12  ;;  %v452_v28 = vadd.f32 0.2548296, %v444_v13  ;;  %v423_v16 = vadd.f32 1.4214138, %v415_v34 }
 0x1d2   :  { %v384_v7 = vadd.f32 %v1352_v32, %v383_v53  ;;  %vm516_vm15 = vcmp.ge.f32.partialorder %v1083_v59, 0.0  ;;  %v501_v38 = vmul.f32 %v1270_v6, %v461_v14  ;;  %v523_v55 = vsub.f32 0.0, %v507_v21 }
 0x1d3   :  { %v425_v24 = vadd.f32 1.4214138, %v417_v37  ;;  %vm360_vm1 = vcmp.eq.f32.partialorder %v359_v3, 8.507059e+37  ;;  %v446_v56 = vmul.f32 %v438_v52, %v1378_v31  ;;  %v460_v42 = vmul.f32 %v452_v28, %v1349_v25 }
 0x1d4   :  { %v431_v8 = vmul.f32 %v423_v16, %v1398_v20  ;;  %v1439_v54 = vsel %vm360_vm1, %v1303_v41, %v358_v23  ;;  %v509_v6 = vsub.f32 1.0, %v501_v38  ;;  %v531_v60 = vsel %vm515_vm10, %v507_v21, %v523_v55 }
 0x1d5   :  { %v433_v4 = vmul.f32 %v425_v24, %v1404_v35  ;;  %v389_v25 = vand.u32 2147483647, %v1300_v40  ;;  %v454_v17 = vadd.f32 0.2548296, %v446_v56  ;;  %v500_v41 = vmul.f32 %v1241_v45, %v460_v42 }
 0x1d6   :  { %v439_v2 = vadd.f32 -0.28449672, %v431_v8  ;;  %v388_v53 = vsel %vm1445_vm2, %v1352_v32, %v384_v7  ;;  %v525_v61 = vsub.f32 0.0, %v509_v6  ;;  %v547_v57 = vadd.f32 1.0, %v531_v60 }
 0x1d7   :  { %v441_v18 = vadd.f32 -0.28449672, %v433_v4  ;;  %v400_v63 = vmul.f32 1.0614054, %v1439_v54  ;;  %v462_v58 = vmul.f32 %v454_v17, %v1378_v31  ;;  %v508_v29 = vsub.f32 1.0, %v500_v41 }
 0x1d8   :  { %v447_v1 = vmul.f32 %v439_v2, %v1398_v20  ;;  %vm390_vm3 = vcmp.eq.f32.partialorder %v389_v25, 8.507059e+37  ;;  %v533_v40 = vsel %vm517_vm13, %v509_v6, %v525_v61  ;;  %v555_v14 = vmul.f32 %v547_v57, %v1153_v44 }
 0x1d9   :  { %v449_v45 = vmul.f32 %v441_v18, %v1404_v35  ;;  %v393_v0 = vsel %vm390_vm3, %v1362_v19, %v388_v53  ;;  %v408_v12 = vadd.f32 -1.4531521, %v400_v63  ;;  %v549_v32 = vadd.f32 1.0, %v533_v40 }
 0x1da   :  { %v502_v13 = vmul.f32 %v1276_v15, %v462_v58  ;;  %v524_v34 = vsub.f32 0.0, %v508_v29  ;;  %v455_v3 = vadd.f32 0.2548296, %v447_v1  ;;  %v402_v21 = vmul.f32 1.0614054, %v393_v0 }
 0x1db   :  { %v457_v31 = vadd.f32 0.2548296, %v449_v45  ;;  %v416_v37 = vmul.f32 %v408_v12, %v1439_v54  ;;  %v557_v23 = vmul.f32 %v549_v32, %v1160_v49  ;;  %v482_v15 = vmul.f32 %v474_v46, %v1257_v62 }
 0x1dc   :  { %v510_v9 = vsub.f32 1.0, %v502_v13  ;;  %v532_v52 = vsel %vm516_vm15, %v508_v29, %v524_v34  ;;  %v463_v19 = vmul.f32 %v455_v3, %v1398_v20  ;;  %v410_v16 = vadd.f32 -1.4531521, %v402_v21 }
 0x1dd   :  { %v465_v28 = vmul.f32 %v457_v31, %v1404_v35  ;;  %v424_v44 = vadd.f32 1.4214138, %v416_v37  ;;  %v563_v7 = vpack.c.bf16 %v557_v23, %v555_v14  ;;  %v548_v55 = vadd.f32 1.0, %v532_v52 }
 0x1de   :  { %v526_v38 = vsub.f32 0.0, %v510_v9  ;;  %v503_v24 = vmul.f32 %v1338_v30, %v463_v19  ;;  %vm518_vm4 = vcmp.ge.f32.partialorder %v1106_v10, 0.0  ;;  %v418_v49 = vmul.f32 %v410_v16, %v393_v0 }
 0x1df   :  { %v505_v59 = vmul.f32 %v1366_v50, %v465_v28  ;;  %v432_v20 = vmul.f32 %v424_v44, %v1439_v54  ;;  %v542_v56 = vmul.f32 0.5, %v1093_v5  ;;  %vm519_vm5 = vcmp.ge.f32.partialorder %v1137_v36, 0.0  ;;  %707 = vmatmul.bf16.vlgmr.msra.gmra.mxu2 %v563_v7 }
 0x1e0   :  { %v534_v62 = vsel %vm518_vm4, %v510_v9, %v526_v38  ;;  %v511_v46 = vsub.f32 1.0, %v503_v24  ;;  %v426_v8 = vadd.f32 1.4214138, %v418_v49  ;;  %915 = vpow2.f32 %v1305_v27  ;;  %v920_v38 = vld [vmem:[%s1525_s0 + $0x8] sm:$0xff] }
 0x1e1   :  { %v550_v35 = vadd.f32 1.0, %v534_v62  ;;  %v513_v42 = vsub.f32 1.0, %v505_v59  ;;  %v440_v43 = vadd.f32 -0.28449672, %v432_v20  ;;  %v497_v30 = vmul.f32 1.442695, %v482_v15 }
 0x1e2   :  { %v556_v10 = vmul.f32 %v548_v55, %v1157_v47  ;;  %v527_v50 = vsub.f32 0.0, %v511_v46  ;;  %v434_v4 = vmul.f32 %v426_v8, %v393_v0  ;;  %vm521_vm6 = vcmp.ge.f32.partialorder %v1213_v33, 0.0  ;;  %v921_v62 = vld [vmem:[%s1525_s0 + $0x10] sm:$0xff] }
 0x1e3   :  { %v558_v6 = vmul.f32 %v550_v35, %v542_v56  ;;  %v529_v60 = vsub.f32 0.0, %v513_v42  ;;  %v448_v5 = vmul.f32 %v440_v43, %v1439_v54  ;;  %v545_v17 = vmul.f32 0.5, %v1186_v11  ;;  %v922_v43 = vld [vmem:[%s1525_s0 + $0x18] sm:$0xff] }
 0x1e4   :  { %v535_v25 = vsel %vm519_vm5, %v511_v46, %v527_v50  ;;  %v442_v53 = vadd.f32 -0.28449672, %v434_v4  ;;  %917 = vpow2.f32 %v497_v30  ;;  %v543_v63 = vmul.f32 0.5, %v1119_v22 }
 0x1e5   :  { %v564_v41 = vpack.c.bf16 %v558_v6, %v556_v10  ;;  %v537_v2 = vsel %vm521_vm6, %v513_v42, %v529_v60  ;;  %v551_v27 = vadd.f32 1.0, %v535_v25  ;;  %v456_v47 = vadd.f32 0.2548296, %v448_v5 }
 0x1e6   :  { %v553_v61 = vadd.f32 1.0, %v537_v2  ;;  %v450_v57 = vmul.f32 %v442_v53, %v393_v0  ;;  %v916_v18 = vpop.eup %915  ;;  %vm520_vm7 = vcmp.ge.f32.partialorder %v1163_v51, 0.0  ;;  %vm522_vm8 = vcmp.ge.f32.partialorder %v1245_v48, 0.0  ;;  %v876_v51 = vld [vmem:[%s1529_s6] ss:$0 sm:$0xff] }
 0x1e7   :  { %726 = vmatmul.bf16.vlgmr.msra.gmra.mxu3 %v564_v41  ;;  %v464_v33 = vmul.f32 %v456_v47, %v1439_v54  ;;  %v559_v36 = vmul.f32 %v551_v27, %v543_v63  ;;  %v544_v54 = vmul.f32 0.5, %v1141_v39  ;;  %v546_v21 = vmul.f32 0.5, %v1205_v26  ;;  %v919_v39 = vld [vmem:[%s1525_s0] sm:$0xff] }
 0x1e8   :  { %v561_v58 = vmul.f32 %v553_v61, %v545_v17  ;;  %v458_v29 = vadd.f32 0.2548296, %v450_v57 }
 0x1e9   :  { %v504_v1 = vmul.f32 %v916_v18, %v464_v33 }
 0x1ea   :  { %v466_v40 = vmul.f32 %v458_v29, %v393_v0  ;;  %v918_v11 = vpop.eup %917  ;;  %v565_v45 = vpack.c.bf16 %v561_v58, %v559_v36 }
 0x1eb   :  { %v512_v12 = vsub.f32 1.0, %v504_v1 }
 0x1ec   :  { %v506_v32 = vmul.f32 %v918_v11, %v466_v40 }
 0x1ed   :  { %v528_v13 = vsub.f32 0.0, %v512_v12 }
 0x1ee   :  { %v514_v34 = vsub.f32 1.0, %v506_v32 }
 0x1ef   :  { %712 = vmatmul.bf16.gmra.mxu2 %v565_v45  ;;  %v536_v3 = vsel %vm520_vm7, %v512_v12, %v528_v13 }
 0x1f0   :  { %v530_v14 = vsub.f32 0.0, %v514_v34  ;;  %v552_v22 = vadd.f32 1.0, %v536_v3 }
 0x1f2   :  { %v538_v31 = vsel %vm522_vm8, %v514_v34, %v530_v14  ;;  %v560_v37 = vmul.f32 %v552_v22, %v544_v54 }
 0x1f3   :  { %v554_v0 = vadd.f32 1.0, %v538_v31 }
 0x1f5   :  { %v562_v23 = vmul.f32 %v554_v0, %v546_v21 }
 0x1f7   :  { %v566_v9 = vpack.c.bf16 %v562_v23, %v560_v37 }
 0x1f9   :  { %731 = vmatmul.bf16.gmra.mxu3 %v566_v9 }
 0x262   :  { %v708_v52 = vpop.f32.mrf.mxu2 }
 0x263   :  { %v709_v19 = vadd.f32 %v876_v51, %v708_v52 }
 0x26a   :  { %v727_v15 = vpop.f32.mrf.mxu3  ;;  %v710_v48 = vpop.f32.mrf.mxu2 }
 0x26b   :  { %v728_v28 = vadd.f32 %v727_v15, %v709_v19  ;;  %v711_v26 = vadd.f32 %v876_v51, %v710_v48 }
 0x26d   :  { %v737_v16 = vadd.f32 %v919_v39, %v728_v28 }
 0x26f   :  { %741 = vst.msk [vmem:[%s1532_s7] sm:$0xff] %vm33_vm0, %v737_v16 }
 0x272   :  { %v729_v44 = vpop.f32.mrf.mxu3  ;;  %v713_v24 = vpop.f32.mrf.mxu2 }
 0x273   :  { %v730_v7 = vadd.f32 %v729_v44, %v711_v26  ;;  %v714_v59 = vadd.f32 %v876_v51, %v713_v24 }
 0x275   :  { %v738_v55 = vadd.f32 %v920_v38, %v730_v7 }
 0x277   :  { %742 = vst.msk [vmem:[%s1532_s7 + $0x8] sm:$0xff] %vm33_vm0, %v738_v55 }
 0x27a   :  { %v715_v56 = vpop.f32.mrf.mxu2 }
 0x27b   :  { %v716_v35 = vadd.f32 %v876_v51, %v715_v56 }
 0x27c   :  { %v732_v49 = vpop.f32.mrf.mxu3 }
 0x27d   :  { %v733_v20 = vadd.f32 %v732_v49, %v714_v59 }
 0x27f   :  { %v739_v46 = vadd.f32 %v921_v62, %v733_v20 }
 0x281   :  { %743 = vst.msk [vmem:[%s1532_s7 + $0x10] sm:$0xff] %vm33_vm0, %v739_v46 }
 0x284   :  { %v734_v42 = vpop.f32.mrf.mxu3 }
 0x285   :  { %v735_v8 = vadd.f32 %v734_v42, %v716_v35 }
 0x287   :  { %v740_v30 = vadd.f32 %v922_v43, %v735_v8 }
 0x289   :  { %744 = vst.msk [vmem:[%s1532_s7 + $0x18] sm:$0xff] %vm33_vm0, %v740_v30 }

</bundles_post_ra>
